<compile_context>
chip_gen: v7x
topology: tpu7x:2x2x1
jax: 0.10.0
libtpu: 0.0.40
codegen_flags: <defaults>
</compile_context>

<pallas_src>
import math
from functools import partial

import jax
import jax.numpy as jnp
from jax.experimental import pallas as pl
from jax.experimental.pallas import tpu as pltpu


# ---------------------------------------------------------------------------
# helpers
# ---------------------------------------------------------------------------
def _round_up(x, m):
    return ((x + m - 1) // m) * m


def _pick_tm(m, cap=512):
    """Large M tiles, but >= 2 grid steps when M allows (both v7x TCs busy)."""
    if m < 16:
        return _round_up(max(m, 1), 8)
    ntiles = max(2, (m + cap - 1) // cap)
    return _round_up((m + ntiles - 1) // ntiles, 8)


# ---------------------------------------------------------------------------
# Fused Pallas matmul kernel:
#   out = [relu]( [relu](A*in_scale+in_shift) @ B * out_scale + out_shift ) + bias
# A/B are bf16 tiles, accumulation in f32 on the MXU.  The BN+ReLU prologue is
# kept in bf16 (halves VALU pressure on v6e/v7x; MXU takes bf16 anyway).
# ---------------------------------------------------------------------------
def _mm_kernel(*refs, fuse_bn_in, relu_in, fuse_bn_out, relu_out, has_bias):
    it = iter(refs)
    a_ref = next(it)
    b_ref = next(it)
    in_sc_ref = next(it) if fuse_bn_in else None
    in_sh_ref = next(it) if fuse_bn_in else None
    out_sc_ref = next(it) if fuse_bn_out else None
    out_sh_ref = next(it) if fuse_bn_out else None
    bias_ref = next(it) if has_bias else None
    o_ref = next(it)

    a = a_ref[...]
    if fuse_bn_in:
        a = a * in_sc_ref[...] + in_sh_ref[...]          # bf16 prologue
        if relu_in:
            a = jnp.maximum(a, 0.0)
    acc = jnp.dot(a, b_ref[...], preferred_element_type=jnp.float32)
    if fuse_bn_out:
        acc = acc * out_sc_ref[...] + out_sh_ref[...]
        if relu_out:
            acc = jnp.maximum(acc, 0.0)
    if has_bias:
        acc = acc + bias_ref[...]
    o_ref[...] = acc.astype(o_ref.dtype)


def pallas_matmul(a, b, *, in_scale=None, in_shift=None, relu_in=False,
                  out_scale=None, out_shift=None, relu_out=False,
                  bias=None, out_dtype=jnp.bfloat16):
    """a: (M, K) bf16, b: (K, N) bf16 -> (M, N).  Full-extent K and N blocks
    (weights + epilogue vectors stay resident in VMEM across the M sweep);
    1-D parallel grid over M tiles."""
    M, K = a.shape
    Kb, N = b.shape
    assert K == Kb
    fuse_bn_in = in_scale is not None
    fuse_bn_out = out_scale is not None
    has_bias = bias is not None

    tm = _pick_tm(M)
    Mp = _round_up(M, tm)
    if Mp != M:
        a = jnp.pad(a, ((0, Mp - M), (0, 0)))

    args = [a, b]
    in_specs = [pl.BlockSpec((tm, K), lambda i: (i, 0)),
                pl.BlockSpec((K, N), lambda i: (0, 0))]
    if fuse_bn_in:
        args += [in_scale.reshape(1, K).astype(jnp.bfloat16),
                 in_shift.reshape(1, K).astype(jnp.bfloat16)]
        in_specs += [pl.BlockSpec((1, K), lambda i: (0, 0)),
                     pl.BlockSpec((1, K), lambda i: (0, 0))]
    if fuse_bn_out:
        args += [out_scale.reshape(1, N).astype(jnp.float32),
                 out_shift.reshape(1, N).astype(jnp.float32)]
        in_specs += [pl.BlockSpec((1, N), lambda i: (0, 0)),
                     pl.BlockSpec((1, N), lambda i: (0, 0))]
    if has_bias:
        args.append(bias.reshape(1, N).astype(jnp.float32))
        in_specs.append(pl.BlockSpec((1, N), lambda i: (0, 0)))

    kernel = partial(_mm_kernel, fuse_bn_in=fuse_bn_in, relu_in=relu_in,
                     fuse_bn_out=fuse_bn_out, relu_out=relu_out,
                     has_bias=has_bias)
    out = pl.pallas_call(
        kernel,
        out_shape=jax.ShapeDtypeStruct((Mp, N), out_dtype),
        grid_spec=pltpu.PrefetchScalarGridSpec(
            num_scalar_prefetch=0,
            grid=(Mp // tm,),
            in_specs=in_specs,
            out_specs=pl.BlockSpec((tm, N), lambda i: (i, 0)),
        ),
        compiler_params=pltpu.CompilerParams(
            dimension_semantics=("parallel",)),
    )(*args)
    if Mp != M:
        out = out[:M]
    return out


# ---------------------------------------------------------------------------
# Standalone fused BatchNorm(+ReLU) kernel (only needed for norm5, which acts
# on the final concatenation and therefore cannot ride a single conv epilogue).
# ---------------------------------------------------------------------------
def _bn_kernel(x_ref, sc_ref, sh_ref, o_ref, *, relu):
    y = x_ref[...].astype(jnp.float32) * sc_ref[...] + sh_ref[...]
    if relu:
        y = jnp.maximum(y, 0.0)
    o_ref[...] = y.astype(o_ref.dtype)


def pallas_bn(x2d, scale, shift, relu=True):
    M, C = x2d.shape
    tm = min(1024, _round_up(M, 8))
    Mp = _round_up(M, tm)
    if Mp != M:
        x2d = jnp.pad(x2d, ((0, Mp - M), (0, 0)))
    out = pl.pallas_call(
        partial(_bn_kernel, relu=relu),
        out_shape=jax.ShapeDtypeStruct((Mp, C), x2d.dtype),
        grid_spec=pltpu.PrefetchScalarGridSpec(
            num_scalar_prefetch=0,
            grid=(Mp // tm,),
            in_specs=[pl.BlockSpec((tm, C), lambda i: (i, 0)),
                      pl.BlockSpec((1, C), lambda i: (0, 0)),
                      pl.BlockSpec((1, C), lambda i: (0, 0))],
            out_specs=pl.BlockSpec((tm, C), lambda i: (i, 0)),
        ),
        compiler_params=pltpu.CompilerParams(
            dimension_semantics=("parallel",)),
    )(x2d, scale.reshape(1, C).astype(jnp.float32),
      shift.reshape(1, C).astype(jnp.float32))
    if Mp != M:
        out = out[:M]
    return out


# ---------------------------------------------------------------------------
# 3x3 / stride-1 / pad-1 convolution as 9 accumulated MXU dots, no HBM im2col.
# Grid over batch; per step the full zero-padded image (H+2, WP, C) lives in
# VMEM.  WP is padded to a multiple of 8 so all in-kernel reshapes keep the
# (sublane, lane) layout and are free; the per-tap width shift is a small
# sublane-offset slice of the (H, WP, 32) partial result.
# ---------------------------------------------------------------------------
def _conv3x3_kernel(x_ref, w_ref, o_ref):
    # x_ref: (1, H+2, WP, C) bf16;  w_ref: (9, C, CO) bf16;  o_ref: (1, H, W, CO)
    _, H, W, CO = o_ref.shape
    WP = x_ref.shape[2]
    C = x_ref.shape[3]
    acc = jnp.zeros((H, W, CO), jnp.float32)
    for ki in range(3):
        rows = x_ref[0, ki:ki + H, :, :].reshape(H * WP, C)      # free reshape
        for kj in range(3):
            part = jnp.dot(rows, w_ref[3 * ki + kj],
                           preferred_element_type=jnp.float32)   # (H*WP, CO)
            part = part.reshape(H, WP, CO)
            acc = acc + part[:, kj:kj + W, :]
    o_ref[0] = acc.astype(o_ref.dtype)


def pallas_conv3x3(x, w9):
    """x: (N, H, W, C) bf16 (already activated), w9: (9, C, CO) bf16."""
    n, h, w, c = x.shape
    co = w9.shape[-1]
    wp = _round_up(w + 2, 8)
    # spatial zero padding (1 px top/left, >=1 px bottom/right) done in XLA.
    xp = jnp.pad(x, ((0, 0), (1, 1), (1, wp - w - 1), (0, 0)))
    # TODO(synk): for very large feature maps, add row tiling (manual halo DMA)
    # instead of one full image per grid step.
    return pl.pallas_call(
        _conv3x3_kernel,
        out_shape=jax.ShapeDtypeStruct((n, h, w, co), x.dtype),
        grid_spec=pltpu.PrefetchScalarGridSpec(
            num_scalar_prefetch=0,
            grid=(n,),
            in_specs=[pl.BlockSpec((1, h + 2, wp, c), lambda i: (i, 0, 0, 0)),
                      pl.BlockSpec((9, c, co), lambda i: (0, 0, 0))],
            out_specs=pl.BlockSpec((1, h, w, co), lambda i: (i, 0, 0, 0)),
        ),
        compiler_params=pltpu.CompilerParams(
            dimension_semantics=("parallel",)),
    )(xp, w9)


# ---------------------------------------------------------------------------
# XLA glue (data movement / tiny-FLOP ops): stem im2col, pooling, GAP.
# ---------------------------------------------------------------------------
def _im2col(x, kh, kw, stride, pad):
    """x: (N,H,W,C) -> (N,Ho,Wo,kh*kw*C) patches (only used for the 7x7 stem)."""
    N, H, W, C = x.shape
    xp = jnp.pad(x, ((0, 0), (pad, pad), (pad, pad), (0, 0)))
    Ho = (H + 2 * pad - kh) // stride + 1
    Wo = (W + 2 * pad - kw) // stride + 1
    cols = []
    for i in range(kh):
        for j in range(kw):
            cols.append(xp[:, i:i + stride * Ho:stride,
                           j:j + stride * Wo:stride, :])
    return jnp.concatenate(cols, axis=-1), Ho, Wo


def maxpool_3x3_s2_p1(x):
    return jax.lax.reduce_window(
        x, jnp.asarray(-jnp.inf, x.dtype), jax.lax.max,
        window_dimensions=(1, 3, 3, 1),
        window_strides=(1, 2, 2, 1),
        padding=((0, 0), (1, 1), (1, 1), (0, 0)))


def avgpool_2x2(x):
    # TODO(synk): assumes even spatial dims (true for this network/input);
    # torchvision AvgPool2d floors odd dims.
    N, H, W, C = x.shape
    y = x.astype(jnp.float32).reshape(N, H // 2, 2, W // 2, 2, C).mean(axis=(2, 4))
    return y.astype(x.dtype)


# ---------------------------------------------------------------------------
# DenseNet-121 structure
# ---------------------------------------------------------------------------
BLOCK_CONFIG = (6, 12, 24, 16)
GROWTH_RATE = 32
NUM_INIT_FEATURES = 64
BN_SIZE = 4
NUM_CLASSES = 200


def _dense_layer(buf, lp):
    """buf: the full-width (zero-extended) block feature buffer.  conv1 reads
    it directly (its weights / BN vectors are zero-extended to the buffer
    width), with norm1+ReLU fused on the input side and norm2+ReLU fused as
    the epilogue.  conv2 is the in-VMEM 9-tap 3x3 kernel."""
    n, h, w, c = buf.shape
    y = pallas_matmul(
        buf.reshape(n * h * w, c), lp["conv1_w"],
        in_scale=lp["norm1_scale"], in_shift=lp["norm1_shift"], relu_in=True,
        out_scale=lp["norm2_scale"], out_shift=lp["norm2_shift"], relu_out=True)
    y = y.reshape(n, h, w, BN_SIZE * GROWTH_RATE)
    return pallas_conv3x3(y, lp["conv2_w"])              # (n, h, w, GROWTH_RATE)


def _dense_block(x, layers):
    """Preallocated full-width feature buffer; each layer writes its 32
    channels in place at its offset (no O(L^2) concatenation)."""
    n, h, w, c0 = x.shape
    c_total = c0 + len(layers) * GROWTH_RATE
    buf = jnp.pad(x, ((0, 0), (0, 0), (0, 0), (0, c_total - c0)))
    for li, lp in enumerate(layers):
        new = _dense_layer(buf, lp)
        off = c0 + li * GROWTH_RATE
        buf = buf.at[..., off:off + GROWTH_RATE].set(new)
    return buf


def _transition(x, tp):
    n, h, w, c = x.shape
    # norm+ReLU fused into the 1x1 conv, then 2x2 average pool.
    y = pallas_matmul(x.reshape(n * h * w, c), tp["conv_w"],
                      in_scale=tp["norm_scale"], in_shift=tp["norm_shift"],
                      relu_in=True)
    return avgpool_2x2(y.reshape(n, h, w, -1))


def densenet121_forward(x_nchw, p):
    """Forward pass matching torchvision DenseNet-121 + Linear(1024, 200)."""
    x = jnp.transpose(x_nchw, (0, 2, 3, 1)).astype(jnp.bfloat16)  # NCHW -> NHWC
    n = x.shape[0]
    # stem: 7x7/s2 conv with fused norm0+ReLU epilogue, then 3x3/s2 maxpool
    cols, ho, wo = _im2col(x, 7, 7, 2, 3)
    y = pallas_matmul(cols.reshape(n * ho * wo, -1), p["conv0_w"],
                      out_scale=p["norm0_scale"], out_shift=p["norm0_shift"],
                      relu_out=True)
    x = maxpool_3x3_s2_p1(y.reshape(n, ho, wo, -1))
    # dense blocks + transitions
    for bi in range(len(BLOCK_CONFIG)):
        x = _dense_block(x, p[f"denseblock{bi + 1}"])
        if bi < len(BLOCK_CONFIG) - 1:
            x = _transition(x, p[f"transition{bi + 1}"])
    # final norm + ReLU, global average pool, classifier (bias fused)
    nb, hb, wb, cb = x.shape
    x = pallas_bn(x.reshape(nb * hb * wb, cb),
                  p["norm5_scale"], p["norm5_shift"], relu=True)
    feat = x.reshape(nb, hb, wb, cb).astype(jnp.float32).mean(axis=(1, 2))
    logits = pallas_matmul(feat.astype(jnp.bfloat16), p["classifier_w"],
                           bias=p["classifier_b"], out_dtype=jnp.float32)
    return logits                                                  # (N, 200)


# ---------------------------------------------------------------------------
# deterministic parameter initialization (shapes match torchvision densenet121)
# ---------------------------------------------------------------------------
class _KeyGen:
    def __init__(self, key):
        self.key = key

    def __call__(self):
        self.key, sub = jax.random.split(self.key)
        return sub


def _conv_w(kg, cout, cin, k):
    fan_in = cin * k * k
    return (jax.random.normal(kg(), (cout, cin, k, k), dtype=jnp.float32)
            * math.sqrt(2.0 / fan_in))


def _bn_p(kg, c):
    return dict(
        gamma=1.0 + 0.05 * jax.random.normal(kg(), (c,), dtype=jnp.float32),
        beta=0.05 * jax.random.normal(kg(), (c,), dtype=jnp.float32),
        mean=0.05 * jax.random.normal(kg(), (c,), dtype=jnp.float32),
        var=1.0 + 0.05 * jnp.abs(jax.random.normal(kg(), (c,), dtype=jnp.float32)),
    )


def init_densenet121_params(key, num_classes=NUM_CLASSES):
    kg = _KeyGen(key)
    params = {}
    params["conv0"] = _conv_w(kg, NUM_INIT_FEATURES, 3, 7)
    params["norm0"] = _bn_p(kg, NUM_INIT_FEATURES)
    c = NUM_INIT_FEATURES
    for bi, n_layers in enumerate(BLOCK_CONFIG):
        layers = []
        for li in range(n_layers):
            cin = c + li * GROWTH_RATE
            layers.append(dict(
                norm1=_bn_p(kg, cin),
                conv1=_conv_w(kg, BN_SIZE * GROWTH_RATE, cin, 1),
                norm2=_bn_p(kg, BN_SIZE * GROWTH_RATE),
                conv2=_conv_w(kg, GROWTH_RATE, BN_SIZE * GROWTH_RATE, 3),
            ))
        params[f"denseblock{bi + 1}"] = layers
        c = c + n_layers * GROWTH_RATE
        if bi < len(BLOCK_CONFIG) - 1:
            params[f"transition{bi + 1}"] = dict(
                norm=_bn_p(kg, c),
                conv=_conv_w(kg, c // 2, c, 1),
            )
            c = c // 2
    params["norm5"] = _bn_p(kg, c)  # c == 1024
    params["classifier_w"] = (jax.random.normal(kg(), (c, num_classes),
                                                dtype=jnp.float32)
                              * (1.0 / math.sqrt(c)))
    params["classifier_b"] = 0.01 * jax.random.normal(
        kg(), (num_classes,), dtype=jnp.float32)
    return params


# ---------------------------------------------------------------------------
# one-time inference-time parameter preparation:
#   * fold BN running stats into (scale, shift) vectors,
#   * pre-transpose conv weights to (Cin, Cout) / (9, Cin, Cout) bf16 matrices,
#   * zero-extend each dense layer's conv1 weights + norm1 vectors to the full
#     block width so conv1 can read the preallocated concat buffer directly
#     (not-yet-written channels contribute exactly zero).
# ---------------------------------------------------------------------------
def _fold_bn(bn, eps=1e-5):
    scale = bn["gamma"] * jax.lax.rsqrt(bn["var"] + eps)
    shift = bn["beta"] - bn["mean"] * scale
    return scale.astype(jnp.float32), shift.astype(jnp.float32)


def _conv_to_matrix(w):
    cout, cin, kh, kw = w.shape
    return (jnp.transpose(w, (2, 3, 1, 0))
            .reshape(kh * kw * cin, cout).astype(jnp.bfloat16))


def prepare_params(params):
    p = {}
    p["conv0_w"] = _conv_to_matrix(params["conv0"])
    p["norm0_scale"], p["norm0_shift"] = _fold_bn(params["norm0"])
    c = NUM_INIT_FEATURES
    for bi, n_layers in enumerate(BLOCK_CONFIG):
        c_total = c + n_layers * GROWTH_RATE
        layers = []
        for li, lp in enumerate(params[f"denseblock{bi + 1}"]):
            cin = c + li * GROWTH_RATE
            pad = c_total - cin
            s1, b1 = _fold_bn(lp["norm1"])
            s2, b2 = _fold_bn(lp["norm2"])
            w1 = jnp.pad(_conv_to_matrix(lp["conv1"]), ((0, pad), (0, 0)))
            w2 = (jnp.transpose(lp["conv2"], (2, 3, 1, 0))
                  .reshape(9, BN_SIZE * GROWTH_RATE, GROWTH_RATE)
                  .astype(jnp.bfloat16))
            layers.append(dict(
                norm1_scale=jnp.pad(s1, (0, pad)),
                norm1_shift=jnp.pad(b1, (0, pad)),
                conv1_w=w1,
                norm2_scale=s2, norm2_shift=b2,
                conv2_w=w2,
            ))
        p[f"denseblock{bi + 1}"] = layers
        c = c_total
        if bi < len(BLOCK_CONFIG) - 1:
            tp = params[f"transition{bi + 1}"]
            s, b = _fold_bn(tp["norm"])
            p[f"transition{bi + 1}"] = dict(
                norm_scale=s, norm_shift=b,
                conv_w=_conv_to_matrix(tp["conv"]),
            )
            c = c // 2
    p["norm5_scale"], p["norm5_shift"] = _fold_bn(params["norm5"])
    p["classifier_w"] = params["classifier_w"].astype(jnp.bfloat16)
    p["classifier_b"] = params["classifier_b"].astype(jnp.float32)
    return p


# ---------------------------------------------------------------------------
if __name__ == "__main__":
    key = jax.random.PRNGKey(0)
    pkey, xkey = jax.random.split(key)

    params = init_densenet121_params(pkey)
    prepared = prepare_params(params)

    # small but structurally valid input: 32x32 survives the 5x downsampling
    # (conv0 s2, maxpool s2, three transition avgpools) down to 1x1.
    x = jax.random.normal(xkey, (2, 3, 32, 32), dtype=jnp.float32)

    forward = jax.jit(densenet121_forward)
    out = forward(x, prepared)
    out = jax.block_until_ready(out)

    assert out.shape == (2, NUM_CLASSES), out.shape
    assert bool(jnp.all(jnp.isfinite(out)))
    print("KERNEL_OK")
</pallas_src>

<mosaic_0001>
module attributes {stable_mosaic.version = 11 : i64} {
  func.func @_mm_kernel(%arg0: i32, %arg1: memref<256x147xbf16, #tpu.memory_space<vmem>>, %arg2: memref<147x64xbf16, #tpu.memory_space<vmem>>, %arg3: memref<1x64xf32, #tpu.memory_space<vmem>>, %arg4: memref<1x64xf32, #tpu.memory_space<vmem>>, %arg5: memref<256x64xbf16, #tpu.memory_space<vmem>>) attributes {dimension_semantics = [#tpu.dimension_semantics<parallel>], iteration_bounds = array<i64: 2>, scalar_prefetch = 0 : i64, scratch_operands = 0 : i64, tpu.core_type = #tpu.core_type<tc>, window_params = [{transform_indices = @transform_0, window_bounds = array<i64: 256, 147>}, {pipeline_mode = #tpu.pipeline_mode<synchronous>, transform_indices = @transform_1, window_bounds = array<i64: 147, 64>}, {pipeline_mode = #tpu.pipeline_mode<synchronous>, transform_indices = @transform_2, window_bounds = array<i64: 1, 64>}, {pipeline_mode = #tpu.pipeline_mode<synchronous>, transform_indices = @transform_3, window_bounds = array<i64: 1, 64>}, {transform_indices = @transform_4, window_bounds = array<i64: 256, 64>}]} {
    %c0 = arith.constant 0 : index
    %c0_0 = arith.constant 0 : index
    %0 = vector.load %arg1[%c0, %c0_0] : memref<256x147xbf16, #tpu.memory_space<vmem>>, vector<256x147xbf16>
    %c0_1 = arith.constant 0 : index
    %c0_2 = arith.constant 0 : index
    %1 = vector.load %arg2[%c0_1, %c0_2] : memref<147x64xbf16, #tpu.memory_space<vmem>>, vector<147x64xbf16>
    %cst = arith.constant dense<0.000000e+00> : vector<256x64xf32>
    %2 = tpu.matmul %0, %1, %cst {dimension_numbers = #tpu.dot_dimension_numbers<[1], [0], [0], [1], [0, 0, 1, 1], [], []>} : vector<256x147xbf16>, vector<147x64xbf16>, vector<256x64xf32> -> vector<256x64xf32>
    %c0_3 = arith.constant 0 : index
    %c0_4 = arith.constant 0 : index
    %3 = vector.load %arg3[%c0_3, %c0_4] : memref<1x64xf32, #tpu.memory_space<vmem>>, vector<1x64xf32>
    %4 = vector.broadcast %3 : vector<1x64xf32> to vector<256x64xf32>
    %5 = arith.mulf %2, %4 : vector<256x64xf32>
    %c0_5 = arith.constant 0 : index
    %c0_6 = arith.constant 0 : index
    %6 = vector.load %arg4[%c0_5, %c0_6] : memref<1x64xf32, #tpu.memory_space<vmem>>, vector<1x64xf32>
    %7 = vector.broadcast %6 : vector<1x64xf32> to vector<256x64xf32>
    %8 = arith.addf %5, %7 : vector<256x64xf32>
    %cst_7 = arith.constant 0.000000e+00 : f32
    %9 = vector.broadcast %cst_7 : f32 to vector<256x64xf32>
    %10 = arith.maximumf %8, %9 : vector<256x64xf32>
    %11 = arith.truncf %10 : vector<256x64xf32> to vector<256x64xbf16>
    %c0_8 = arith.constant 0 : index
    %c0_9 = arith.constant 0 : index
    %12 = vector.load %arg5[%c0_8, %c0_9] : memref<256x64xbf16, #tpu.memory_space<vmem>>, vector<256x64xbf16>
    tpu.vector_store %arg5[%c0_8, %c0_9], %11 {strides = array<i32>} : memref<256x64xbf16, #tpu.memory_space<vmem>>, vector<256x64xbf16>,
    return
  }
  func.func @transform_0(%arg0: i32) -> (i32, i32) {
    %c0_i32 = arith.constant 0 : i32
    %c0_i32_0 = arith.constant 0 : i32
    return %arg0, %c0_i32 : i32, i32
  }
  func.func @transform_1(%arg0: i32) -> (i32, i32) {
    %c0_i32 = arith.constant 0 : i32
    %c0_i32_0 = arith.constant 0 : i32
    %c0_i32_1 = arith.constant 0 : i32
    return %c0_i32, %c0_i32_0 : i32, i32
  }
  func.func @transform_2(%arg0: i32) -> (i32, i32) {
    %c0_i32 = arith.constant 0 : i32
    %c0_i32_0 = arith.constant 0 : i32
    %c0_i32_1 = arith.constant 0 : i32
    return %c0_i32, %c0_i32_0 : i32, i32
  }
  func.func @transform_3(%arg0: i32) -> (i32, i32) {
    %c0_i32 = arith.constant 0 : i32
    %c0_i32_0 = arith.constant 0 : i32
    %c0_i32_1 = arith.constant 0 : i32
    return %c0_i32, %c0_i32_0 : i32, i32
  }
  func.func @transform_4(%arg0: i32) -> (i32, i32) {
    %c0_i32 = arith.constant 0 : i32
    %c0_i32_0 = arith.constant 0 : i32
    return %arg0, %c0_i32 : i32, i32
  }
}

module attributes {stable_mosaic.version = 11 : i64} {
  func.func @_mm_kernel(%arg0: i32, %arg1: memref<64x256xbf16, #tpu.memory_space<vmem>>, %arg2: memref<256x128xbf16, #tpu.memory_space<vmem>>, %arg3: memref<1x256xbf16, #tpu.memory_space<vmem>>, %arg4: memref<1x256xbf16, #tpu.memory_space<vmem>>, %arg5: memref<1x128xf32, #tpu.memory_space<vmem>>, %arg6: memref<1x128xf32, #tpu.memory_space<vmem>>, %arg7: memref<64x128xbf16, #tpu.memory_space<vmem>>) attributes {dimension_semantics = [#tpu.dimension_semantics<parallel>], iteration_bounds = array<i64: 2>, scalar_prefetch = 0 : i64, scratch_operands = 0 : i64, tpu.core_type = #tpu.core_type<tc>, window_params = [{transform_indices = @transform_0, window_bounds = array<i64: 64, 256>}, {pipeline_mode = #tpu.pipeline_mode<synchronous>, transform_indices = @transform_1, window_bounds = array<i64: 256, 128>}, {pipeline_mode = #tpu.pipeline_mode<synchronous>, transform_indices = @transform_2, window_bounds = array<i64: 1, 256>}, {pipeline_mode = #tpu.pipeline_mode<synchronous>, transform_indices = @transform_3, window_bounds = array<i64: 1, 256>}, {pipeline_mode = #tpu.pipeline_mode<synchronous>, transform_indices = @transform_4, window_bounds = array<i64: 1, 128>}, {pipeline_mode = #tpu.pipeline_mode<synchronous>, transform_indices = @transform_5, window_bounds = array<i64: 1, 128>}, {transform_indices = @transform_6, window_bounds = array<i64: 64, 128>}]} {
    %c0 = arith.constant 0 : index
    %c0_0 = arith.constant 0 : index
    %0 = vector.load %arg1[%c0, %c0_0] : memref<64x256xbf16, #tpu.memory_space<vmem>>, vector<64x256xbf16>
    %c0_1 = arith.constant 0 : index
    %c0_2 = arith.constant 0 : index
    %1 = vector.load %arg3[%c0_1, %c0_2] : memref<1x256xbf16, #tpu.memory_space<vmem>>, vector<1x256xbf16>
    %2 = vector.broadcast %1 : vector<1x256xbf16> to vector<64x256xbf16>
    %3 = arith.mulf %0, %2 : vector<64x256xbf16>
    %c0_3 = arith.constant 0 : index
    %c0_4 = arith.constant 0 : index
    %4 = vector.load %arg4[%c0_3, %c0_4] : memref<1x256xbf16, #tpu.memory_space<vmem>>, vector<1x256xbf16>
    %5 = vector.broadcast %4 : vector<1x256xbf16> to vector<64x256xbf16>
    %6 = arith.addf %3, %5 : vector<64x256xbf16>
    %cst = arith.constant 0.000000e+00 : bf16
    %7 = vector.broadcast %cst : bf16 to vector<64x256xbf16>
    %8 = arith.maximumf %6, %7 : vector<64x256xbf16>
    %c0_5 = arith.constant 0 : index
    %c0_6 = arith.constant 0 : index
    %9 = vector.load %arg2[%c0_5, %c0_6] : memref<256x128xbf16, #tpu.memory_space<vmem>>, vector<256x128xbf16>
    %cst_7 = arith.constant dense<0.000000e+00> : vector<64x128xf32>
    %10 = tpu.matmul %8, %9, %cst_7 {dimension_numbers = #tpu.dot_dimension_numbers<[1], [0], [0], [1], [0, 0, 1, 1], [], []>} : vector<64x256xbf16>, vector<256x128xbf16>, vector<64x128xf32> -> vector<64x128xf32>
    %c0_8 = arith.constant 0 : index
    %c0_9 = arith.constant 0 : index
    %11 = vector.load %arg5[%c0_8, %c0_9] : memref<1x128xf32, #tpu.memory_space<vmem>>, vector<1x128xf32>
    %12 = vector.broadcast %11 : vector<1x128xf32> to vector<64x128xf32>
    %13 = arith.mulf %10, %12 : vector<64x128xf32>
    %c0_10 = arith.constant 0 : index
    %c0_11 = arith.constant 0 : index
    %14 = vector.load %arg6[%c0_10, %c0_11] : memref<1x128xf32, #tpu.memory_space<vmem>>, vector<1x128xf32>
    %15 = vector.broadcast %14 : vector<1x128xf32> to vector<64x128xf32>
    %16 = arith.addf %13, %15 : vector<64x128xf32>
    %cst_12 = arith.constant 0.000000e+00 : f32
    %17 = vector.broadcast %cst_12 : f32 to vector<64x128xf32>
    %18 = arith.maximumf %16, %17 : vector<64x128xf32>
    %19 = arith.truncf %18 : vector<64x128xf32> to vector<64x128xbf16>
    %c0_13 = arith.constant 0 : index
    %c0_14 = arith.constant 0 : index
    %20 = vector.load %arg7[%c0_13, %c0_14] : memref<64x128xbf16, #tpu.memory_space<vmem>>, vector<64x128xbf16>
    tpu.vector_store %arg7[%c0_13, %c0_14], %19 {strides = array<i32>} : memref<64x128xbf16, #tpu.memory_space<vmem>>, vector<64x128xbf16>,
    return
  }
  func.func @transform_0(%arg0: i32) -> (i32, i32) {
    %c0_i32 = arith.constant 0 : i32
    %c0_i32_0 = arith.constant 0 : i32
    return %arg0, %c0_i32 : i32, i32
  }
  func.func @transform_1(%arg0: i32) -> (i32, i32) {
    %c0_i32 = arith.constant 0 : i32
    %c0_i32_0 = arith.constant 0 : i32
    %c0_i32_1 = arith.constant 0 : i32
    return %c0_i32, %c0_i32_0 : i32, i32
  }
  func.func @transform_2(%arg0: i32) -> (i32, i32) {
    %c0_i32 = arith.constant 0 : i32
    %c0_i32_0 = arith.constant 0 : i32
    %c0_i32_1 = arith.constant 0 : i32
    return %c0_i32, %c0_i32_0 : i32, i32
  }
  func.func @transform_3(%arg0: i32) -> (i32, i32) {
    %c0_i32 = arith.constant 0 : i32
    %c0_i32_0 = arith.constant 0 : i32
    %c0_i32_1 = arith.constant 0 : i32
    return %c0_i32, %c0_i32_0 : i32, i32
  }
  func.func @transform_4(%arg0: i32) -> (i32, i32) {
    %c0_i32 = arith.constant 0 : i32
    %c0_i32_0 = arith.constant 0 : i32
    %c0_i32_1 = arith.constant 0 : i32
    return %c0_i32, %c0_i32_0 : i32, i32
  }
  func.func @transform_5(%arg0: i32) -> (i32, i32) {
    %c0_i32 = arith.constant 0 : i32
    %c0_i32_0 = arith.constant 0 : i32
    %c0_i32_1 = arith.constant 0 : i32
    return %c0_i32, %c0_i32_0 : i32, i32
  }
  func.func @transform_6(%arg0: i32) -> (i32, i32) {
    %c0_i32 = arith.constant 0 : i32
    %c0_i32_0 = arith.constant 0 : i32
    return %arg0, %c0_i32 : i32, i32
  }
}

module attributes {stable_mosaic.version = 11 : i64} {
  func.func @_conv3x3_kernel(%arg0: i32, %arg1: memref<1x10x16x128xbf16, #tpu.memory_space<vmem>>, %arg2: memref<9x128x32xbf16, #tpu.memory_space<vmem>>, %arg3: memref<1x8x8x32xbf16, #tpu.memory_space<vmem>>) attributes {dimension_semantics = [#tpu.dimension_semantics<parallel>], iteration_bounds = array<i64: 2>, scalar_prefetch = 0 : i64, scratch_operands = 0 : i64, tpu.core_type = #tpu.core_type<tc>, window_params = [{transform_indices = @transform_0, window_bounds = array<i64: 1, 10, 16, 128>}, {pipeline_mode = #tpu.pipeline_mode<synchronous>, transform_indices = @transform_1, window_bounds = array<i64: 9, 128, 32>}, {transform_indices = @transform_2, window_bounds = array<i64: 1, 8, 8, 32>}]} {
    %cst = arith.constant 0.000000e+00 : f32
    %0 = vector.broadcast %cst : f32 to vector<8x8x32xf32>
    %c0 = arith.constant 0 : index
    %c0_0 = arith.constant 0 : index
    %c0_1 = arith.constant 0 : index
    %c0_2 = arith.constant 0 : index
    %1 = vector.load %arg1[%c0, %c0_0, %c0_1, %c0_2] : memref<1x10x16x128xbf16, #tpu.memory_space<vmem>>, vector<1x8x16x128xbf16>
    %2 = vector.shape_cast %1 : vector<1x8x16x128xbf16> to vector<8x16x128xbf16>
    %3 = vector.shape_cast %2 : vector<8x16x128xbf16> to vector<128x128xbf16>
    %c0_3 = arith.constant 0 : index
    %c0_4 = arith.constant 0 : index
    %c0_5 = arith.constant 0 : index
    %4 = vector.load %arg2[%c0_3, %c0_4, %c0_5] : memref<9x128x32xbf16, #tpu.memory_space<vmem>>, vector<1x128x32xbf16>
    %5 = vector.shape_cast %4 : vector<1x128x32xbf16> to vector<128x32xbf16>
    %cst_6 = arith.constant dense<0.000000e+00> : vector<128x32xf32>
    %6 = tpu.matmul %3, %5, %cst_6 {dimension_numbers = #tpu.dot_dimension_numbers<[1], [0], [0], [1], [0, 0, 1, 1], [], []>} : vector<128x128xbf16>, vector<128x32xbf16>, vector<128x32xf32> -> vector<128x32xf32>
    %7 = vector.shape_cast %6 : vector<128x32xf32> to vector<8x16x32xf32>
    %8 = vector.extract_strided_slice %7 {offsets = [0, 0, 0], sizes = [8, 8, 32], strides = [1, 1, 1]} : vector<8x16x32xf32> to vector<8x8x32xf32>
    %9 = arith.addf %0, %8 : vector<8x8x32xf32>
    %c1 = arith.constant 1 : index
    %c0_7 = arith.constant 0 : index
    %c0_8 = arith.constant 0 : index
    %10 = vector.load %arg2[%c1, %c0_7, %c0_8] : memref<9x128x32xbf16, #tpu.memory_space<vmem>>, vector<1x128x32xbf16>
    %11 = vector.shape_cast %10 : vector<1x128x32xbf16> to vector<128x32xbf16>
    %cst_9 = arith.constant dense<0.000000e+00> : vector<128x32xf32>
    %12 = tpu.matmul %3, %11, %cst_9 {dimension_numbers = #tpu.dot_dimension_numbers<[1], [0], [0], [1], [0, 0, 1, 1], [], []>} : vector<128x128xbf16>, vector<128x32xbf16>, vector<128x32xf32> -> vector<128x32xf32>
    %13 = vector.shape_cast %12 : vector<128x32xf32> to vector<8x16x32xf32>
    %14 = vector.extract_strided_slice %13 {offsets = [0, 1, 0], sizes = [8, 8, 32], strides = [1, 1, 1]} : vector<8x16x32xf32> to vector<8x8x32xf32>
    %15 = arith.addf %9, %14 : vector<8x8x32xf32>
    %c2 = arith.constant 2 : index
    %c0_10 = arith.constant 0 : index
    %c0_11 = arith.constant 0 : index
    %16 = vector.load %arg2[%c2, %c0_10, %c0_11] : memref<9x128x32xbf16, #tpu.memory_space<vmem>>, vector<1x128x32xbf16>
    %17 = vector.shape_cast %16 : vector<1x128x32xbf16> to vector<128x32xbf16>
    %cst_12 = arith.constant dense<0.000000e+00> : vector<128x32xf32>
    %18 = tpu.matmul %3, %17, %cst_12 {dimension_numbers = #tpu.dot_dimension_numbers<[1], [0], [0], [1], [0, 0, 1, 1], [], []>} : vector<128x128xbf16>, vector<128x32xbf16>, vector<128x32xf32> -> vector<128x32xf32>
    %19 = vector.shape_cast %18 : vector<128x32xf32> to vector<8x16x32xf32>
    %20 = vector.extract_strided_slice %19 {offsets = [0, 2, 0], sizes = [8, 8, 32], strides = [1, 1, 1]} : vector<8x16x32xf32> to vector<8x8x32xf32>
    %21 = arith.addf %15, %20 : vector<8x8x32xf32>
    %c0_13 = arith.constant 0 : index
    %c1_14 = arith.constant 1 : index
    %c0_15 = arith.constant 0 : index
    %c0_16 = arith.constant 0 : index
    %22 = vector.load %arg1[%c0_13, %c1_14, %c0_15, %c0_16] : memref<1x10x16x128xbf16, #tpu.memory_space<vmem>>, vector<1x8x16x128xbf16>
    %23 = vector.shape_cast %22 : vector<1x8x16x128xbf16> to vector<8x16x128xbf16>
    %24 = vector.shape_cast %23 : vector<8x16x128xbf16> to vector<128x128xbf16>
    %c3 = arith.constant 3 : index
    %c0_17 = arith.constant 0 : index
    %c0_18 = arith.constant 0 : index
    %25 = vector.load %arg2[%c3, %c0_17, %c0_18] : memref<9x128x32xbf16, #tpu.memory_space<vmem>>, vector<1x128x32xbf16>
    %26 = vector.shape_cast %25 : vector<1x128x32xbf16> to vector<128x32xbf16>
    %cst_19 = arith.constant dense<0.000000e+00> : vector<128x32xf32>
    %27 = tpu.matmul %24, %26, %cst_19 {dimension_numbers = #tpu.dot_dimension_numbers<[1], [0], [0], [1], [0, 0, 1, 1], [], []>} : vector<128x128xbf16>, vector<128x32xbf16>, vector<128x32xf32> -> vector<128x32xf32>
    %28 = vector.shape_cast %27 : vector<128x32xf32> to vector<8x16x32xf32>
    %29 = vector.extract_strided_slice %28 {offsets = [0, 0, 0], sizes = [8, 8, 32], strides = [1, 1, 1]} : vector<8x16x32xf32> to vector<8x8x32xf32>
    %30 = arith.addf %21, %29 : vector<8x8x32xf32>
    %c4 = arith.constant 4 : index
    %c0_20 = arith.constant 0 : index
    %c0_21 = arith.constant 0 : index
    %31 = vector.load %arg2[%c4, %c0_20, %c0_21] : memref<9x128x32xbf16, #tpu.memory_space<vmem>>, vector<1x128x32xbf16>
    %32 = vector.shape_cast %31 : vector<1x128x32xbf16> to vector<128x32xbf16>
    %cst_22 = arith.constant dense<0.000000e+00> : vector<128x32xf32>
    %33 = tpu.matmul %24, %32, %cst_22 {dimension_numbers = #tpu.dot_dimension_numbers<[1], [0], [0], [1], [0, 0, 1, 1], [], []>} : vector<128x128xbf16>, vector<128x32xbf16>, vector<128x32xf32> -> vector<128x32xf32>
    %34 = vector.shape_cast %33 : vector<128x32xf32> to vector<8x16x32xf32>
    %35 = vector.extract_strided_slice %34 {offsets = [0, 1, 0], sizes = [8, 8, 32], strides = [1, 1, 1]} : vector<8x16x32xf32> to vector<8x8x32xf32>
    %36 = arith.addf %30, %35 : vector<8x8x32xf32>
    %c5 = arith.constant 5 : index
    %c0_23 = arith.constant 0 : index
    %c0_24 = arith.constant 0 : index
    %37 = vector.load %arg2[%c5, %c0_23, %c0_24] : memref<9x128x32xbf16, #tpu.memory_space<vmem>>, vector<1x128x32xbf16>
    %38 = vector.shape_cast %37 : vector<1x128x32xbf16> to vector<128x32xbf16>
    %cst_25 = arith.constant dense<0.000000e+00> : vector<128x32xf32>
    %39 = tpu.matmul %24, %38, %cst_25 {dimension_numbers = #tpu.dot_dimension_numbers<[1], [0], [0], [1], [0, 0, 1, 1], [], []>} : vector<128x128xbf16>, vector<128x32xbf16>, vector<128x32xf32> -> vector<128x32xf32>
    %40 = vector.shape_cast %39 : vector<128x32xf32> to vector<8x16x32xf32>
    %41 = vector.extract_strided_slice %40 {offsets = [0, 2, 0], sizes = [8, 8, 32], strides = [1, 1, 1]} : vector<8x16x32xf32> to vector<8x8x32xf32>
    %42 = arith.addf %36, %41 : vector<8x8x32xf32>
    %c0_26 = arith.constant 0 : index
    %c2_27 = arith.constant 2 : index
    %c0_28 = arith.constant 0 : index
    %c0_29 = arith.constant 0 : index
    %43 = vector.load %arg1[%c0_26, %c2_27, %c0_28, %c0_29] : memref<1x10x16x128xbf16, #tpu.memory_space<vmem>>, vector<1x8x16x128xbf16>
    %44 = vector.shape_cast %43 : vector<1x8x16x128xbf16> to vector<8x16x128xbf16>
    %45 = vector.shape_cast %44 : vector<8x16x128xbf16> to vector<128x128xbf16>
    %c6 = arith.constant 6 : index
    %c0_30 = arith.constant 0 : index
    %c0_31 = arith.constant 0 : index
    %46 = vector.load %arg2[%c6, %c0_30, %c0_31] : memref<9x128x32xbf16, #tpu.memory_space<vmem>>, vector<1x128x32xbf16>
    %47 = vector.shape_cast %46 : vector<1x128x32xbf16> to vector<128x32xbf16>
    %cst_32 = arith.constant dense<0.000000e+00> : vector<128x32xf32>
    %48 = tpu.matmul %45, %47, %cst_32 {dimension_numbers = #tpu.dot_dimension_numbers<[1], [0], [0], [1], [0, 0, 1, 1], [], []>} : vector<128x128xbf16>, vector<128x32xbf16>, vector<128x32xf32> -> vector<128x32xf32>
    %49 = vector.shape_cast %48 : vector<128x32xf32> to vector<8x16x32xf32>
    %50 = vector.extract_strided_slice %49 {offsets = [0, 0, 0], sizes = [8, 8, 32], strides = [1, 1, 1]} : vector<8x16x32xf32> to vector<8x8x32xf32>
    %51 = arith.addf %42, %50 : vector<8x8x32xf32>
    %c7 = arith.constant 7 : index
    %c0_33 = arith.constant 0 : index
    %c0_34 = arith.constant 0 : index
    %52 = vector.load %arg2[%c7, %c0_33, %c0_34] : memref<9x128x32xbf16, #tpu.memory_space<vmem>>, vector<1x128x32xbf16>
    %53 = vector.shape_cast %52 : vector<1x128x32xbf16> to vector<128x32xbf16>
    %cst_35 = arith.constant dense<0.000000e+00> : vector<128x32xf32>
    %54 = tpu.matmul %45, %53, %cst_35 {dimension_numbers = #tpu.dot_dimension_numbers<[1], [0], [0], [1], [0, 0, 1, 1], [], []>} : vector<128x128xbf16>, vector<128x32xbf16>, vector<128x32xf32> -> vector<128x32xf32>
    %55 = vector.shape_cast %54 : vector<128x32xf32> to vector<8x16x32xf32>
    %56 = vector.extract_strided_slice %55 {offsets = [0, 1, 0], sizes = [8, 8, 32], strides = [1, 1, 1]} : vector<8x16x32xf32> to vector<8x8x32xf32>
    %57 = arith.addf %51, %56 : vector<8x8x32xf32>
    %c8 = arith.constant 8 : index
    %c0_36 = arith.constant 0 : index
    %c0_37 = arith.constant 0 : index
    %58 = vector.load %arg2[%c8, %c0_36, %c0_37] : memref<9x128x32xbf16, #tpu.memory_space<vmem>>, vector<1x128x32xbf16>
    %59 = vector.shape_cast %58 : vector<1x128x32xbf16> to vector<128x32xbf16>
    %cst_38 = arith.constant dense<0.000000e+00> : vector<128x32xf32>
    %60 = tpu.matmul %45, %59, %cst_38 {dimension_numbers = #tpu.dot_dimension_numbers<[1], [0], [0], [1], [0, 0, 1, 1], [], []>} : vector<128x128xbf16>, vector<128x32xbf16>, vector<128x32xf32> -> vector<128x32xf32>
    %61 = vector.shape_cast %60 : vector<128x32xf32> to vector<8x16x32xf32>
    %62 = vector.extract_strided_slice %61 {offsets = [0, 2, 0], sizes = [8, 8, 32], strides = [1, 1, 1]} : vector<8x16x32xf32> to vector<8x8x32xf32>
    %63 = arith.addf %57, %62 : vector<8x8x32xf32>
    %64 = arith.truncf %63 : vector<8x8x32xf32> to vector<8x8x32xbf16>
    %c0_39 = arith.constant 0 : index
    %c0_40 = arith.constant 0 : index
    %c0_41 = arith.constant 0 : index
    %c0_42 = arith.constant 0 : index
    %65 = vector.load %arg3[%c0_39, %c0_40, %c0_41, %c0_42] : memref<1x8x8x32xbf16, #tpu.memory_space<vmem>>, vector<1x8x8x32xbf16>
    %66 = vector.shape_cast %65 : vector<1x8x8x32xbf16> to vector<8x8x32xbf16>
    %67 = vector.shape_cast %64 : vector<8x8x32xbf16> to vector<1x8x8x32xbf16>
    tpu.vector_store %arg3[%c0_39, %c0_40, %c0_41, %c0_42], %67 {strides = array<i32>} : memref<1x8x8x32xbf16, #tpu.memory_space<vmem>>, vector<1x8x8x32xbf16>,
    return
  }
  func.func @transform_0(%arg0: i32) -> (i32, i32, i32, i32) {
    %c0_i32 = arith.constant 0 : i32
    %c0_i32_0 = arith.constant 0 : i32
    %c0_i32_1 = arith.constant 0 : i32
    %c0_i32_2 = arith.constant 0 : i32
    return %arg0, %c0_i32, %c0_i32_0, %c0_i32_1 : i32, i32, i32, i32
  }
  func.func @transform_1(%arg0: i32) -> (i32, i32, i32) {
    %c0_i32 = arith.constant 0 : i32
    %c0_i32_0 = arith.constant 0 : i32
    %c0_i32_1 = arith.constant 0 : i32
    %c0_i32_2 = arith.constant 0 : i32
    return %c0_i32, %c0_i32_0, %c0_i32_1 : i32, i32, i32
  }
  func.func @transform_2(%arg0: i32) -> (i32, i32, i32, i32) {
    %c0_i32 = arith.constant 0 : i32
    %c0_i32_0 = arith.constant 0 : i32
    %c0_i32_1 = arith.constant 0 : i32
    %c0_i32_2 = arith.constant 0 : i32
    return %arg0, %c0_i32, %c0_i32_0, %c0_i32_1 : i32, i32, i32, i32
  }
}

module attributes {stable_mosaic.version = 11 : i64} {
  func.func @_mm_kernel(%arg0: i32, %arg1: memref<64x256xbf16, #tpu.memory_space<vmem>>, %arg2: memref<256x128xbf16, #tpu.memory_space<vmem>>, %arg3: memref<1x256xbf16, #tpu.memory_space<vmem>>, %arg4: memref<1x256xbf16, #tpu.memory_space<vmem>>, %arg5: memref<64x128xbf16, #tpu.memory_space<vmem>>) attributes {dimension_semantics = [#tpu.dimension_semantics<parallel>], iteration_bounds = array<i64: 2>, scalar_prefetch = 0 : i64, scratch_operands = 0 : i64, tpu.core_type = #tpu.core_type<tc>, window_params = [{transform_indices = @transform_0, window_bounds = array<i64: 64, 256>}, {pipeline_mode = #tpu.pipeline_mode<synchronous>, transform_indices = @transform_1, window_bounds = array<i64: 256, 128>}, {pipeline_mode = #tpu.pipeline_mode<synchronous>, transform_indices = @transform_2, window_bounds = array<i64: 1, 256>}, {pipeline_mode = #tpu.pipeline_mode<synchronous>, transform_indices = @transform_3, window_bounds = array<i64: 1, 256>}, {transform_indices = @transform_4, window_bounds = array<i64: 64, 128>}]} {
    %c0 = arith.constant 0 : index
    %c0_0 = arith.constant 0 : index
    %0 = vector.load %arg1[%c0, %c0_0] : memref<64x256xbf16, #tpu.memory_space<vmem>>, vector<64x256xbf16>
    %c0_1 = arith.constant 0 : index
    %c0_2 = arith.constant 0 : index
    %1 = vector.load %arg3[%c0_1, %c0_2] : memref<1x256xbf16, #tpu.memory_space<vmem>>, vector<1x256xbf16>
    %2 = vector.broadcast %1 : vector<1x256xbf16> to vector<64x256xbf16>
    %3 = arith.mulf %0, %2 : vector<64x256xbf16>
    %c0_3 = arith.constant 0 : index
    %c0_4 = arith.constant 0 : index
    %4 = vector.load %arg4[%c0_3, %c0_4] : memref<1x256xbf16, #tpu.memory_space<vmem>>, vector<1x256xbf16>
    %5 = vector.broadcast %4 : vector<1x256xbf16> to vector<64x256xbf16>
    %6 = arith.addf %3, %5 : vector<64x256xbf16>
    %cst = arith.constant 0.000000e+00 : bf16
    %7 = vector.broadcast %cst : bf16 to vector<64x256xbf16>
    %8 = arith.maximumf %6, %7 : vector<64x256xbf16>
    %c0_5 = arith.constant 0 : index
    %c0_6 = arith.constant 0 : index
    %9 = vector.load %arg2[%c0_5, %c0_6] : memref<256x128xbf16, #tpu.memory_space<vmem>>, vector<256x128xbf16>
    %cst_7 = arith.constant dense<0.000000e+00> : vector<64x128xf32>
    %10 = tpu.matmul %8, %9, %cst_7 {dimension_numbers = #tpu.dot_dimension_numbers<[1], [0], [0], [1], [0, 0, 1, 1], [], []>} : vector<64x256xbf16>, vector<256x128xbf16>, vector<64x128xf32> -> vector<64x128xf32>
    %11 = arith.truncf %10 : vector<64x128xf32> to vector<64x128xbf16>
    %c0_8 = arith.constant 0 : index
    %c0_9 = arith.constant 0 : index
    %12 = vector.load %arg5[%c0_8, %c0_9] : memref<64x128xbf16, #tpu.memory_space<vmem>>, vector<64x128xbf16>
    tpu.vector_store %arg5[%c0_8, %c0_9], %11 {strides = array<i32>} : memref<64x128xbf16, #tpu.memory_space<vmem>>, vector<64x128xbf16>,
    return
  }
  func.func @transform_0(%arg0: i32) -> (i32, i32) {
    %c0_i32 = arith.constant 0 : i32
    %c0_i32_0 = arith.constant 0 : i32
    return %arg0, %c0_i32 : i32, i32
  }
  func.func @transform_1(%arg0: i32) -> (i32, i32) {
    %c0_i32 = arith.constant 0 : i32
    %c0_i32_0 = arith.constant 0 : i32
    %c0_i32_1 = arith.constant 0 : i32
    return %c0_i32, %c0_i32_0 : i32, i32
  }
  func.func @transform_2(%arg0: i32) -> (i32, i32) {
    %c0_i32 = arith.constant 0 : i32
    %c0_i32_0 = arith.constant 0 : i32
    %c0_i32_1 = arith.constant 0 : i32
    return %c0_i32, %c0_i32_0 : i32, i32
  }
  func.func @transform_3(%arg0: i32) -> (i32, i32) {
    %c0_i32 = arith.constant 0 : i32
    %c0_i32_0 = arith.constant 0 : i32
    %c0_i32_1 = arith.constant 0 : i32
    return %c0_i32, %c0_i32_0 : i32, i32
  }
  func.func @transform_4(%arg0: i32) -> (i32, i32) {
    %c0_i32 = arith.constant 0 : i32
    %c0_i32_0 = arith.constant 0 : i32
    return %arg0, %c0_i32 : i32, i32
  }
}

module attributes {stable_mosaic.version = 11 : i64} {
  func.func @_mm_kernel(%arg0: i32, %arg1: memref<16x512xbf16, #tpu.memory_space<vmem>>, %arg2: memref<512x128xbf16, #tpu.memory_space<vmem>>, %arg3: memref<1x512xbf16, #tpu.memory_space<vmem>>, %arg4: memref<1x512xbf16, #tpu.memory_space<vmem>>, %arg5: memref<1x128xf32, #tpu.memory_space<vmem>>, %arg6: memref<1x128xf32, #tpu.memory_space<vmem>>, %arg7: memref<16x128xbf16, #tpu.memory_space<vmem>>) attributes {dimension_semantics = [#tpu.dimension_semantics<parallel>], iteration_bounds = array<i64: 2>, scalar_prefetch = 0 : i64, scratch_operands = 0 : i64, tpu.core_type = #tpu.core_type<tc>, window_params = [{transform_indices = @transform_0, window_bounds = array<i64: 16, 512>}, {pipeline_mode = #tpu.pipeline_mode<synchronous>, transform_indices = @transform_1, window_bounds = array<i64: 512, 128>}, {pipeline_mode = #tpu.pipeline_mode<synchronous>, transform_indices = @transform_2, window_bounds = array<i64: 1, 512>}, {pipeline_mode = #tpu.pipeline_mode<synchronous>, transform_indices = @transform_3, window_bounds = array<i64: 1, 512>}, {pipeline_mode = #tpu.pipeline_mode<synchronous>, transform_indices = @transform_4, window_bounds = array<i64: 1, 128>}, {pipeline_mode = #tpu.pipeline_mode<synchronous>, transform_indices = @transform_5, window_bounds = array<i64: 1, 128>}, {transform_indices = @transform_6, window_bounds = array<i64: 16, 128>}]} {
    %c0 = arith.constant 0 : index
    %c0_0 = arith.constant 0 : index
    %0 = vector.load %arg1[%c0, %c0_0] : memref<16x512xbf16, #tpu.memory_space<vmem>>, vector<16x512xbf16>
    %c0_1 = arith.constant 0 : index
    %c0_2 = arith.constant 0 : index
    %1 = vector.load %arg3[%c0_1, %c0_2] : memref<1x512xbf16, #tpu.memory_space<vmem>>, vector<1x512xbf16>
    %2 = vector.broadcast %1 : vector<1x512xbf16> to vector<16x512xbf16>
    %3 = arith.mulf %0, %2 : vector<16x512xbf16>
    %c0_3 = arith.constant 0 : index
    %c0_4 = arith.constant 0 : index
    %4 = vector.load %arg4[%c0_3, %c0_4] : memref<1x512xbf16, #tpu.memory_space<vmem>>, vector<1x512xbf16>
    %5 = vector.broadcast %4 : vector<1x512xbf16> to vector<16x512xbf16>
    %6 = arith.addf %3, %5 : vector<16x512xbf16>
    %cst = arith.constant 0.000000e+00 : bf16
    %7 = vector.broadcast %cst : bf16 to vector<16x512xbf16>
    %8 = arith.maximumf %6, %7 : vector<16x512xbf16>
    %c0_5 = arith.constant 0 : index
    %c0_6 = arith.constant 0 : index
    %9 = vector.load %arg2[%c0_5, %c0_6] : memref<512x128xbf16, #tpu.memory_space<vmem>>, vector<512x128xbf16>
    %cst_7 = arith.constant dense<0.000000e+00> : vector<16x128xf32>
    %10 = tpu.matmul %8, %9, %cst_7 {dimension_numbers = #tpu.dot_dimension_numbers<[1], [0], [0], [1], [0, 0, 1, 1], [], []>} : vector<16x512xbf16>, vector<512x128xbf16>, vector<16x128xf32> -> vector<16x128xf32>
    %c0_8 = arith.constant 0 : index
    %c0_9 = arith.constant 0 : index
    %11 = vector.load %arg5[%c0_8, %c0_9] : memref<1x128xf32, #tpu.memory_space<vmem>>, vector<1x128xf32>
    %12 = vector.broadcast %11 : vector<1x128xf32> to vector<16x128xf32>
    %13 = arith.mulf %10, %12 : vector<16x128xf32>
    %c0_10 = arith.constant 0 : index
    %c0_11 = arith.constant 0 : index
    %14 = vector.load %arg6[%c0_10, %c0_11] : memref<1x128xf32, #tpu.memory_space<vmem>>, vector<1x128xf32>
    %15 = vector.broadcast %14 : vector<1x128xf32> to vector<16x128xf32>
    %16 = arith.addf %13, %15 : vector<16x128xf32>
    %cst_12 = arith.constant 0.000000e+00 : f32
    %17 = vector.broadcast %cst_12 : f32 to vector<16x128xf32>
    %18 = arith.maximumf %16, %17 : vector<16x128xf32>
    %19 = arith.truncf %18 : vector<16x128xf32> to vector<16x128xbf16>
    %c0_13 = arith.constant 0 : index
    %c0_14 = arith.constant 0 : index
    %20 = vector.load %arg7[%c0_13, %c0_14] : memref<16x128xbf16, #tpu.memory_space<vmem>>, vector<16x128xbf16>
    tpu.vector_store %arg7[%c0_13, %c0_14], %19 {strides = array<i32>} : memref<16x128xbf16, #tpu.memory_space<vmem>>, vector<16x128xbf16>,
    return
  }
  func.func @transform_0(%arg0: i32) -> (i32, i32) {
    %c0_i32 = arith.constant 0 : i32
    %c0_i32_0 = arith.constant 0 : i32
    return %arg0, %c0_i32 : i32, i32
  }
  func.func @transform_1(%arg0: i32) -> (i32, i32) {
    %c0_i32 = arith.constant 0 : i32
    %c0_i32_0 = arith.constant 0 : i32
    %c0_i32_1 = arith.constant 0 : i32
    return %c0_i32, %c0_i32_0 : i32, i32
  }
  func.func @transform_2(%arg0: i32) -> (i32, i32) {
    %c0_i32 = arith.constant 0 : i32
    %c0_i32_0 = arith.constant 0 : i32
    %c0_i32_1 = arith.constant 0 : i32
    return %c0_i32, %c0_i32_0 : i32, i32
  }
  func.func @transform_3(%arg0: i32) -> (i32, i32) {
    %c0_i32 = arith.constant 0 : i32
    %c0_i32_0 = arith.constant 0 : i32
    %c0_i32_1 = arith.constant 0 : i32
    return %c0_i32, %c0_i32_0 : i32, i32
  }
  func.func @transform_4(%arg0: i32) -> (i32, i32) {
    %c0_i32 = arith.constant 0 : i32
    %c0_i32_0 = arith.constant 0 : i32
    %c0_i32_1 = arith.constant 0 : i32
    return %c0_i32, %c0_i32_0 : i32, i32
  }
  func.func @transform_5(%arg0: i32) -> (i32, i32) {
    %c0_i32 = arith.constant 0 : i32
    %c0_i32_0 = arith.constant 0 : i32
    %c0_i32_1 = arith.constant 0 : i32
    return %c0_i32, %c0_i32_0 : i32, i32
  }
  func.func @transform_6(%arg0: i32) -> (i32, i32) {
    %c0_i32 = arith.constant 0 : i32
    %c0_i32_0 = arith.constant 0 : i32
    return %arg0, %c0_i32 : i32, i32
  }
}

module attributes {stable_mosaic.version = 11 : i64} {
  func.func @_conv3x3_kernel(%arg0: i32, %arg1: memref<1x6x8x128xbf16, #tpu.memory_space<vmem>>, %arg2: memref<9x128x32xbf16, #tpu.memory_space<vmem>>, %arg3: memref<1x4x4x32xbf16, #tpu.memory_space<vmem>>) attributes {dimension_semantics = [#tpu.dimension_semantics<parallel>], iteration_bounds = array<i64: 2>, scalar_prefetch = 0 : i64, scratch_operands = 0 : i64, tpu.core_type = #tpu.core_type<tc>, window_params = [{transform_indices = @transform_0, window_bounds = array<i64: 1, 6, 8, 128>}, {pipeline_mode = #tpu.pipeline_mode<synchronous>, transform_indices = @transform_1, window_bounds = array<i64: 9, 128, 32>}, {transform_indices = @transform_2, window_bounds = array<i64: 1, 4, 4, 32>}]} {
    %cst = arith.constant 0.000000e+00 : f32
    %0 = vector.broadcast %cst : f32 to vector<4x4x32xf32>
    %c0 = arith.constant 0 : index
    %c0_0 = arith.constant 0 : index
    %c0_1 = arith.constant 0 : index
    %c0_2 = arith.constant 0 : index
    %1 = vector.load %arg1[%c0, %c0_0, %c0_1, %c0_2] : memref<1x6x8x128xbf16, #tpu.memory_space<vmem>>, vector<1x4x8x128xbf16>
    %2 = vector.shape_cast %1 : vector<1x4x8x128xbf16> to vector<4x8x128xbf16>
    %3 = vector.shape_cast %2 : vector<4x8x128xbf16> to vector<32x128xbf16>
    %c0_3 = arith.constant 0 : index
    %c0_4 = arith.constant 0 : index
    %c0_5 = arith.constant 0 : index
    %4 = vector.load %arg2[%c0_3, %c0_4, %c0_5] : memref<9x128x32xbf16, #tpu.memory_space<vmem>>, vector<1x128x32xbf16>
    %5 = vector.shape_cast %4 : vector<1x128x32xbf16> to vector<128x32xbf16>
    %cst_6 = arith.constant dense<0.000000e+00> : vector<32x32xf32>
    %6 = tpu.matmul %3, %5, %cst_6 {dimension_numbers = #tpu.dot_dimension_numbers<[1], [0], [0], [1], [0, 0, 1, 1], [], []>} : vector<32x128xbf16>, vector<128x32xbf16>, vector<32x32xf32> -> vector<32x32xf32>
    %7 = vector.shape_cast %6 : vector<32x32xf32> to vector<4x8x32xf32>
    %8 = vector.extract_strided_slice %7 {offsets = [0, 0, 0], sizes = [4, 4, 32], strides = [1, 1, 1]} : vector<4x8x32xf32> to vector<4x4x32xf32>
    %9 = arith.addf %0, %8 : vector<4x4x32xf32>
    %c1 = arith.constant 1 : index
    %c0_7 = arith.constant 0 : index
    %c0_8 = arith.constant 0 : index
    %10 = vector.load %arg2[%c1, %c0_7, %c0_8] : memref<9x128x32xbf16, #tpu.memory_space<vmem>>, vector<1x128x32xbf16>
    %11 = vector.shape_cast %10 : vector<1x128x32xbf16> to vector<128x32xbf16>
    %cst_9 = arith.constant dense<0.000000e+00> : vector<32x32xf32>
    %12 = tpu.matmul %3, %11, %cst_9 {dimension_numbers = #tpu.dot_dimension_numbers<[1], [0], [0], [1], [0, 0, 1, 1], [], []>} : vector<32x128xbf16>, vector<128x32xbf16>, vector<32x32xf32> -> vector<32x32xf32>
    %13 = vector.shape_cast %12 : vector<32x32xf32> to vector<4x8x32xf32>
    %14 = vector.extract_strided_slice %13 {offsets = [0, 1, 0], sizes = [4, 4, 32], strides = [1, 1, 1]} : vector<4x8x32xf32> to vector<4x4x32xf32>
    %15 = arith.addf %9, %14 : vector<4x4x32xf32>
    %c2 = arith.constant 2 : index
    %c0_10 = arith.constant 0 : index
    %c0_11 = arith.constant 0 : index
    %16 = vector.load %arg2[%c2, %c0_10, %c0_11] : memref<9x128x32xbf16, #tpu.memory_space<vmem>>, vector<1x128x32xbf16>
    %17 = vector.shape_cast %16 : vector<1x128x32xbf16> to vector<128x32xbf16>
    %cst_12 = arith.constant dense<0.000000e+00> : vector<32x32xf32>
    %18 = tpu.matmul %3, %17, %cst_12 {dimension_numbers = #tpu.dot_dimension_numbers<[1], [0], [0], [1], [0, 0, 1, 1], [], []>} : vector<32x128xbf16>, vector<128x32xbf16>, vector<32x32xf32> -> vector<32x32xf32>
    %19 = vector.shape_cast %18 : vector<32x32xf32> to vector<4x8x32xf32>
    %20 = vector.extract_strided_slice %19 {offsets = [0, 2, 0], sizes = [4, 4, 32], strides = [1, 1, 1]} : vector<4x8x32xf32> to vector<4x4x32xf32>
    %21 = arith.addf %15, %20 : vector<4x4x32xf32>
    %c0_13 = arith.constant 0 : index
    %c1_14 = arith.constant 1 : index
    %c0_15 = arith.constant 0 : index
    %c0_16 = arith.constant 0 : index
    %22 = vector.load %arg1[%c0_13, %c1_14, %c0_15, %c0_16] : memref<1x6x8x128xbf16, #tpu.memory_space<vmem>>, vector<1x4x8x128xbf16>
    %23 = vector.shape_cast %22 : vector<1x4x8x128xbf16> to vector<4x8x128xbf16>
    %24 = vector.shape_cast %23 : vector<4x8x128xbf16> to vector<32x128xbf16>
    %c3 = arith.constant 3 : index
    %c0_17 = arith.constant 0 : index
    %c0_18 = arith.constant 0 : index
    %25 = vector.load %arg2[%c3, %c0_17, %c0_18] : memref<9x128x32xbf16, #tpu.memory_space<vmem>>, vector<1x128x32xbf16>
    %26 = vector.shape_cast %25 : vector<1x128x32xbf16> to vector<128x32xbf16>
    %cst_19 = arith.constant dense<0.000000e+00> : vector<32x32xf32>
    %27 = tpu.matmul %24, %26, %cst_19 {dimension_numbers = #tpu.dot_dimension_numbers<[1], [0], [0], [1], [0, 0, 1, 1], [], []>} : vector<32x128xbf16>, vector<128x32xbf16>, vector<32x32xf32> -> vector<32x32xf32>
    %28 = vector.shape_cast %27 : vector<32x32xf32> to vector<4x8x32xf32>
    %29 = vector.extract_strided_slice %28 {offsets = [0, 0, 0], sizes = [4, 4, 32], strides = [1, 1, 1]} : vector<4x8x32xf32> to vector<4x4x32xf32>
    %30 = arith.addf %21, %29 : vector<4x4x32xf32>
    %c4 = arith.constant 4 : index
    %c0_20 = arith.constant 0 : index
    %c0_21 = arith.constant 0 : index
    %31 = vector.load %arg2[%c4, %c0_20, %c0_21] : memref<9x128x32xbf16, #tpu.memory_space<vmem>>, vector<1x128x32xbf16>
    %32 = vector.shape_cast %31 : vector<1x128x32xbf16> to vector<128x32xbf16>
    %cst_22 = arith.constant dense<0.000000e+00> : vector<32x32xf32>
    %33 = tpu.matmul %24, %32, %cst_22 {dimension_numbers = #tpu.dot_dimension_numbers<[1], [0], [0], [1], [0, 0, 1, 1], [], []>} : vector<32x128xbf16>, vector<128x32xbf16>, vector<32x32xf32> -> vector<32x32xf32>
    %34 = vector.shape_cast %33 : vector<32x32xf32> to vector<4x8x32xf32>
    %35 = vector.extract_strided_slice %34 {offsets = [0, 1, 0], sizes = [4, 4, 32], strides = [1, 1, 1]} : vector<4x8x32xf32> to vector<4x4x32xf32>
    %36 = arith.addf %30, %35 : vector<4x4x32xf32>
    %c5 = arith.constant 5 : index
    %c0_23 = arith.constant 0 : index
    %c0_24 = arith.constant 0 : index
    %37 = vector.load %arg2[%c5, %c0_23, %c0_24] : memref<9x128x32xbf16, #tpu.memory_space<vmem>>, vector<1x128x32xbf16>
    %38 = vector.shape_cast %37 : vector<1x128x32xbf16> to vector<128x32xbf16>
    %cst_25 = arith.constant dense<0.000000e+00> : vector<32x32xf32>
    %39 = tpu.matmul %24, %38, %cst_25 {dimension_numbers = #tpu.dot_dimension_numbers<[1], [0], [0], [1], [0, 0, 1, 1], [], []>} : vector<32x128xbf16>, vector<128x32xbf16>, vector<32x32xf32> -> vector<32x32xf32>
    %40 = vector.shape_cast %39 : vector<32x32xf32> to vector<4x8x32xf32>
    %41 = vector.extract_strided_slice %40 {offsets = [0, 2, 0], sizes = [4, 4, 32], strides = [1, 1, 1]} : vector<4x8x32xf32> to vector<4x4x32xf32>
    %42 = arith.addf %36, %41 : vector<4x4x32xf32>
    %c0_26 = arith.constant 0 : index
    %c2_27 = arith.constant 2 : index
    %c0_28 = arith.constant 0 : index
    %c0_29 = arith.constant 0 : index
    %43 = vector.load %arg1[%c0_26, %c2_27, %c0_28, %c0_29] : memref<1x6x8x128xbf16, #tpu.memory_space<vmem>>, vector<1x4x8x128xbf16>
    %44 = vector.shape_cast %43 : vector<1x4x8x128xbf16> to vector<4x8x128xbf16>
    %45 = vector.shape_cast %44 : vector<4x8x128xbf16> to vector<32x128xbf16>
    %c6 = arith.constant 6 : index
    %c0_30 = arith.constant 0 : index
    %c0_31 = arith.constant 0 : index
    %46 = vector.load %arg2[%c6, %c0_30, %c0_31] : memref<9x128x32xbf16, #tpu.memory_space<vmem>>, vector<1x128x32xbf16>
    %47 = vector.shape_cast %46 : vector<1x128x32xbf16> to vector<128x32xbf16>
    %cst_32 = arith.constant dense<0.000000e+00> : vector<32x32xf32>
    %48 = tpu.matmul %45, %47, %cst_32 {dimension_numbers = #tpu.dot_dimension_numbers<[1], [0], [0], [1], [0, 0, 1, 1], [], []>} : vector<32x128xbf16>, vector<128x32xbf16>, vector<32x32xf32> -> vector<32x32xf32>
    %49 = vector.shape_cast %48 : vector<32x32xf32> to vector<4x8x32xf32>
    %50 = vector.extract_strided_slice %49 {offsets = [0, 0, 0], sizes = [4, 4, 32], strides = [1, 1, 1]} : vector<4x8x32xf32> to vector<4x4x32xf32>
    %51 = arith.addf %42, %50 : vector<4x4x32xf32>
    %c7 = arith.constant 7 : index
    %c0_33 = arith.constant 0 : index
    %c0_34 = arith.constant 0 : index
    %52 = vector.load %arg2[%c7, %c0_33, %c0_34] : memref<9x128x32xbf16, #tpu.memory_space<vmem>>, vector<1x128x32xbf16>
    %53 = vector.shape_cast %52 : vector<1x128x32xbf16> to vector<128x32xbf16>
    %cst_35 = arith.constant dense<0.000000e+00> : vector<32x32xf32>
    %54 = tpu.matmul %45, %53, %cst_35 {dimension_numbers = #tpu.dot_dimension_numbers<[1], [0], [0], [1], [0, 0, 1, 1], [], []>} : vector<32x128xbf16>, vector<128x32xbf16>, vector<32x32xf32> -> vector<32x32xf32>
    %55 = vector.shape_cast %54 : vector<32x32xf32> to vector<4x8x32xf32>
    %56 = vector.extract_strided_slice %55 {offsets = [0, 1, 0], sizes = [4, 4, 32], strides = [1, 1, 1]} : vector<4x8x32xf32> to vector<4x4x32xf32>
    %57 = arith.addf %51, %56 : vector<4x4x32xf32>
    %c8 = arith.constant 8 : index
    %c0_36 = arith.constant 0 : index
    %c0_37 = arith.constant 0 : index
    %58 = vector.load %arg2[%c8, %c0_36, %c0_37] : memref<9x128x32xbf16, #tpu.memory_space<vmem>>, vector<1x128x32xbf16>
    %59 = vector.shape_cast %58 : vector<1x128x32xbf16> to vector<128x32xbf16>
    %cst_38 = arith.constant dense<0.000000e+00> : vector<32x32xf32>
    %60 = tpu.matmul %45, %59, %cst_38 {dimension_numbers = #tpu.dot_dimension_numbers<[1], [0], [0], [1], [0, 0, 1, 1], [], []>} : vector<32x128xbf16>, vector<128x32xbf16>, vector<32x32xf32> -> vector<32x32xf32>
    %61 = vector.shape_cast %60 : vector<32x32xf32> to vector<4x8x32xf32>
    %62 = vector.extract_strided_slice %61 {offsets = [0, 2, 0], sizes = [4, 4, 32], strides = [1, 1, 1]} : vector<4x8x32xf32> to vector<4x4x32xf32>
    %63 = arith.addf %57, %62 : vector<4x4x32xf32>
    %64 = arith.truncf %63 : vector<4x4x32xf32> to vector<4x4x32xbf16>
    %c0_39 = arith.constant 0 : index
    %c0_40 = arith.constant 0 : index
    %c0_41 = arith.constant 0 : index
    %c0_42 = arith.constant 0 : index
    %65 = vector.load %arg3[%c0_39, %c0_40, %c0_41, %c0_42] : memref<1x4x4x32xbf16, #tpu.memory_space<vmem>>, vector<1x4x4x32xbf16>
    %66 = vector.shape_cast %65 : vector<1x4x4x32xbf16> to vector<4x4x32xbf16>
    %67 = vector.shape_cast %64 : vector<4x4x32xbf16> to vector<1x4x4x32xbf16>
    tpu.vector_store %arg3[%c0_39, %c0_40, %c0_41, %c0_42], %67 {strides = array<i32>} : memref<1x4x4x32xbf16, #tpu.memory_space<vmem>>, vector<1x4x4x32xbf16>,
    return
  }
  func.func @transform_0(%arg0: i32) -> (i32, i32, i32, i32) {
    %c0_i32 = arith.constant 0 : i32
    %c0_i32_0 = arith.constant 0 : i32
    %c0_i32_1 = arith.constant 0 : i32
    %c0_i32_2 = arith.constant 0 : i32
    return %arg0, %c0_i32, %c0_i32_0, %c0_i32_1 : i32, i32, i32, i32
  }
  func.func @transform_1(%arg0: i32) -> (i32, i32, i32) {
    %c0_i32 = arith.constant 0 : i32
    %c0_i32_0 = arith.constant 0 : i32
    %c0_i32_1 = arith.constant 0 : i32
    %c0_i32_2 = arith.constant 0 : i32
    return %c0_i32, %c0_i32_0, %c0_i32_1 : i32, i32, i32
  }
  func.func @transform_2(%arg0: i32) -> (i32, i32, i32, i32) {
    %c0_i32 = arith.constant 0 : i32
    %c0_i32_0 = arith.constant 0 : i32
    %c0_i32_1 = arith.constant 0 : i32
    %c0_i32_2 = arith.constant 0 : i32
    return %arg0, %c0_i32, %c0_i32_0, %c0_i32_1 : i32, i32, i32, i32
  }
}

module attributes {stable_mosaic.version = 11 : i64} {
  func.func @_mm_kernel(%arg0: i32, %arg1: memref<16x512xbf16, #tpu.memory_space<vmem>>, %arg2: memref<512x256xbf16, #tpu.memory_space<vmem>>, %arg3: memref<1x512xbf16, #tpu.memory_space<vmem>>, %arg4: memref<1x512xbf16, #tpu.memory_space<vmem>>, %arg5: memref<16x256xbf16, #tpu.memory_space<vmem>>) attributes {dimension_semantics = [#tpu.dimension_semantics<parallel>], iteration_bounds = array<i64: 2>, scalar_prefetch = 0 : i64, scratch_operands = 0 : i64, tpu.core_type = #tpu.core_type<tc>, window_params = [{transform_indices = @transform_0, window_bounds = array<i64: 16, 512>}, {pipeline_mode = #tpu.pipeline_mode<synchronous>, transform_indices = @transform_1, window_bounds = array<i64: 512, 256>}, {pipeline_mode = #tpu.pipeline_mode<synchronous>, transform_indices = @transform_2, window_bounds = array<i64: 1, 512>}, {pipeline_mode = #tpu.pipeline_mode<synchronous>, transform_indices = @transform_3, window_bounds = array<i64: 1, 512>}, {transform_indices = @transform_4, window_bounds = array<i64: 16, 256>}]} {
    %c0 = arith.constant 0 : index
    %c0_0 = arith.constant 0 : index
    %0 = vector.load %arg1[%c0, %c0_0] : memref<16x512xbf16, #tpu.memory_space<vmem>>, vector<16x512xbf16>
    %c0_1 = arith.constant 0 : index
    %c0_2 = arith.constant 0 : index
    %1 = vector.load %arg3[%c0_1, %c0_2] : memref<1x512xbf16, #tpu.memory_space<vmem>>, vector<1x512xbf16>
    %2 = vector.broadcast %1 : vector<1x512xbf16> to vector<16x512xbf16>
    %3 = arith.mulf %0, %2 : vector<16x512xbf16>
    %c0_3 = arith.constant 0 : index
    %c0_4 = arith.constant 0 : index
    %4 = vector.load %arg4[%c0_3, %c0_4] : memref<1x512xbf16, #tpu.memory_space<vmem>>, vector<1x512xbf16>
    %5 = vector.broadcast %4 : vector<1x512xbf16> to vector<16x512xbf16>
    %6 = arith.addf %3, %5 : vector<16x512xbf16>
    %cst = arith.constant 0.000000e+00 : bf16
    %7 = vector.broadcast %cst : bf16 to vector<16x512xbf16>
    %8 = arith.maximumf %6, %7 : vector<16x512xbf16>
    %c0_5 = arith.constant 0 : index
    %c0_6 = arith.constant 0 : index
    %9 = vector.load %arg2[%c0_5, %c0_6] : memref<512x256xbf16, #tpu.memory_space<vmem>>, vector<512x256xbf16>
    %cst_7 = arith.constant dense<0.000000e+00> : vector<16x256xf32>
    %10 = tpu.matmul %8, %9, %cst_7 {dimension_numbers = #tpu.dot_dimension_numbers<[1], [0], [0], [1], [0, 0, 1, 1], [], []>} : vector<16x512xbf16>, vector<512x256xbf16>, vector<16x256xf32> -> vector<16x256xf32>
    %11 = arith.truncf %10 : vector<16x256xf32> to vector<16x256xbf16>
    %c0_8 = arith.constant 0 : index
    %c0_9 = arith.constant 0 : index
    %12 = vector.load %arg5[%c0_8, %c0_9] : memref<16x256xbf16, #tpu.memory_space<vmem>>, vector<16x256xbf16>
    tpu.vector_store %arg5[%c0_8, %c0_9], %11 {strides = array<i32>} : memref<16x256xbf16, #tpu.memory_space<vmem>>, vector<16x256xbf16>,
    return
  }
  func.func @transform_0(%arg0: i32) -> (i32, i32) {
    %c0_i32 = arith.constant 0 : i32
    %c0_i32_0 = arith.constant 0 : i32
    return %arg0, %c0_i32 : i32, i32
  }
  func.func @transform_1(%arg0: i32) -> (i32, i32) {
    %c0_i32 = arith.constant 0 : i32
    %c0_i32_0 = arith.constant 0 : i32
    %c0_i32_1 = arith.constant 0 : i32
    return %c0_i32, %c0_i32_0 : i32, i32
  }
  func.func @transform_2(%arg0: i32) -> (i32, i32) {
    %c0_i32 = arith.constant 0 : i32
    %c0_i32_0 = arith.constant 0 : i32
    %c0_i32_1 = arith.constant 0 : i32
    return %c0_i32, %c0_i32_0 : i32, i32
  }
  func.func @transform_3(%arg0: i32) -> (i32, i32) {
    %c0_i32 = arith.constant 0 : i32
    %c0_i32_0 = arith.constant 0 : i32
    %c0_i32_1 = arith.constant 0 : i32
    return %c0_i32, %c0_i32_0 : i32, i32
  }
  func.func @transform_4(%arg0: i32) -> (i32, i32) {
    %c0_i32 = arith.constant 0 : i32
    %c0_i32_0 = arith.constant 0 : i32
    return %arg0, %c0_i32 : i32, i32
  }
}

module attributes {stable_mosaic.version = 11 : i64} {
  func.func @_mm_kernel(%arg0: i32, %arg1: memref<8x1024xbf16, #tpu.memory_space<vmem>>, %arg2: memref<1024x128xbf16, #tpu.memory_space<vmem>>, %arg3: memref<1x1024xbf16, #tpu.memory_space<vmem>>, %arg4: memref<1x1024xbf16, #tpu.memory_space<vmem>>, %arg5: memref<1x128xf32, #tpu.memory_space<vmem>>, %arg6: memref<1x128xf32, #tpu.memory_space<vmem>>, %arg7: memref<8x128xbf16, #tpu.memory_space<vmem>>) attributes {dimension_semantics = [#tpu.dimension_semantics<parallel>], iteration_bounds = array<i64: 1>, scalar_prefetch = 0 : i64, scratch_operands = 0 : i64, tpu.core_type = #tpu.core_type<tc>, window_params = [{transform_indices = @transform_0, window_bounds = array<i64: 8, 1024>}, {pipeline_mode = #tpu.pipeline_mode<synchronous>, transform_indices = @transform_1, window_bounds = array<i64: 1024, 128>}, {pipeline_mode = #tpu.pipeline_mode<synchronous>, transform_indices = @transform_2, window_bounds = array<i64: 1, 1024>}, {pipeline_mode = #tpu.pipeline_mode<synchronous>, transform_indices = @transform_3, window_bounds = array<i64: 1, 1024>}, {pipeline_mode = #tpu.pipeline_mode<synchronous>, transform_indices = @transform_4, window_bounds = array<i64: 1, 128>}, {pipeline_mode = #tpu.pipeline_mode<synchronous>, transform_indices = @transform_5, window_bounds = array<i64: 1, 128>}, {transform_indices = @transform_6, window_bounds = array<i64: 8, 128>}]} {
    %c0 = arith.constant 0 : index
    %c0_0 = arith.constant 0 : index
    %0 = vector.load %arg1[%c0, %c0_0] : memref<8x1024xbf16, #tpu.memory_space<vmem>>, vector<8x1024xbf16>
    %c0_1 = arith.constant 0 : index
    %c0_2 = arith.constant 0 : index
    %1 = vector.load %arg3[%c0_1, %c0_2] : memref<1x1024xbf16, #tpu.memory_space<vmem>>, vector<1x1024xbf16>
    %2 = vector.broadcast %1 : vector<1x1024xbf16> to vector<8x1024xbf16>
    %3 = arith.mulf %0, %2 : vector<8x1024xbf16>
    %c0_3 = arith.constant 0 : index
    %c0_4 = arith.constant 0 : index
    %4 = vector.load %arg4[%c0_3, %c0_4] : memref<1x1024xbf16, #tpu.memory_space<vmem>>, vector<1x1024xbf16>
    %5 = vector.broadcast %4 : vector<1x1024xbf16> to vector<8x1024xbf16>
    %6 = arith.addf %3, %5 : vector<8x1024xbf16>
    %cst = arith.constant 0.000000e+00 : bf16
    %7 = vector.broadcast %cst : bf16 to vector<8x1024xbf16>
    %8 = arith.maximumf %6, %7 : vector<8x1024xbf16>
    %c0_5 = arith.constant 0 : index
    %c0_6 = arith.constant 0 : index
    %9 = vector.load %arg2[%c0_5, %c0_6] : memref<1024x128xbf16, #tpu.memory_space<vmem>>, vector<1024x128xbf16>
    %cst_7 = arith.constant dense<0.000000e+00> : vector<8x128xf32>
    %10 = tpu.matmul %8, %9, %cst_7 {dimension_numbers = #tpu.dot_dimension_numbers<[1], [0], [0], [1], [0, 0, 1, 1], [], []>} : vector<8x1024xbf16>, vector<1024x128xbf16>, vector<8x128xf32> -> vector<8x128xf32>
    %c0_8 = arith.constant 0 : index
    %c0_9 = arith.constant 0 : index
    %11 = vector.load %arg5[%c0_8, %c0_9] : memref<1x128xf32, #tpu.memory_space<vmem>>, vector<1x128xf32>
    %12 = vector.broadcast %11 : vector<1x128xf32> to vector<8x128xf32>
    %13 = arith.mulf %10, %12 : vector<8x128xf32>
    %c0_10 = arith.constant 0 : index
    %c0_11 = arith.constant 0 : index
    %14 = vector.load %arg6[%c0_10, %c0_11] : memref<1x128xf32, #tpu.memory_space<vmem>>, vector<1x128xf32>
    %15 = vector.broadcast %14 : vector<1x128xf32> to vector<8x128xf32>
    %16 = arith.addf %13, %15 : vector<8x128xf32>
    %cst_12 = arith.constant 0.000000e+00 : f32
    %17 = vector.broadcast %cst_12 : f32 to vector<8x128xf32>
    %18 = arith.maximumf %16, %17 : vector<8x128xf32>
    %19 = arith.truncf %18 : vector<8x128xf32> to vector<8x128xbf16>
    %c0_13 = arith.constant 0 : index
    %c0_14 = arith.constant 0 : index
    %20 = vector.load %arg7[%c0_13, %c0_14] : memref<8x128xbf16, #tpu.memory_space<vmem>>, vector<8x128xbf16>
    tpu.vector_store %arg7[%c0_13, %c0_14], %19 {strides = array<i32>} : memref<8x128xbf16, #tpu.memory_space<vmem>>, vector<8x128xbf16>,
    return
  }
  func.func @transform_0(%arg0: i32) -> (i32, i32) {
    %c0_i32 = arith.constant 0 : i32
    %c0_i32_0 = arith.constant 0 : i32
    return %arg0, %c0_i32 : i32, i32
  }
  func.func @transform_1(%arg0: i32) -> (i32, i32) {
    %c0_i32 = arith.constant 0 : i32
    %c0_i32_0 = arith.constant 0 : i32
    %c0_i32_1 = arith.constant 0 : i32
    return %c0_i32, %c0_i32_0 : i32, i32
  }
  func.func @transform_2(%arg0: i32) -> (i32, i32) {
    %c0_i32 = arith.constant 0 : i32
    %c0_i32_0 = arith.constant 0 : i32
    %c0_i32_1 = arith.constant 0 : i32
    return %c0_i32, %c0_i32_0 : i32, i32
  }
  func.func @transform_3(%arg0: i32) -> (i32, i32) {
    %c0_i32 = arith.constant 0 : i32
    %c0_i32_0 = arith.constant 0 : i32
    %c0_i32_1 = arith.constant 0 : i32
    return %c0_i32, %c0_i32_0 : i32, i32
  }
  func.func @transform_4(%arg0: i32) -> (i32, i32) {
    %c0_i32 = arith.constant 0 : i32
    %c0_i32_0 = arith.constant 0 : i32
    %c0_i32_1 = arith.constant 0 : i32
    return %c0_i32, %c0_i32_0 : i32, i32
  }
  func.func @transform_5(%arg0: i32) -> (i32, i32) {
    %c0_i32 = arith.constant 0 : i32
    %c0_i32_0 = arith.constant 0 : i32
    %c0_i32_1 = arith.constant 0 : i32
    return %c0_i32, %c0_i32_0 : i32, i32
  }
  func.func @transform_6(%arg0: i32) -> (i32, i32) {
    %c0_i32 = arith.constant 0 : i32
    %c0_i32_0 = arith.constant 0 : i32
    return %arg0, %c0_i32 : i32, i32
  }
}

module attributes {stable_mosaic.version = 11 : i64} {
  func.func @_conv3x3_kernel(%arg0: i32, %arg1: memref<1x4x8x128xbf16, #tpu.memory_space<vmem>>, %arg2: memref<9x128x32xbf16, #tpu.memory_space<vmem>>, %arg3: memref<1x2x2x32xbf16, #tpu.memory_space<vmem>>) attributes {dimension_semantics = [#tpu.dimension_semantics<parallel>], iteration_bounds = array<i64: 2>, scalar_prefetch = 0 : i64, scratch_operands = 0 : i64, tpu.core_type = #tpu.core_type<tc>, window_params = [{transform_indices = @transform_0, window_bounds = array<i64: 1, 4, 8, 128>}, {pipeline_mode = #tpu.pipeline_mode<synchronous>, transform_indices = @transform_1, window_bounds = array<i64: 9, 128, 32>}, {transform_indices = @transform_2, window_bounds = array<i64: 1, 2, 2, 32>}]} {
    %cst = arith.constant 0.000000e+00 : f32
    %0 = vector.broadcast %cst : f32 to vector<2x2x32xf32>
    %c0 = arith.constant 0 : index
    %c0_0 = arith.constant 0 : index
    %c0_1 = arith.constant 0 : index
    %c0_2 = arith.constant 0 : index
    %1 = vector.load %arg1[%c0, %c0_0, %c0_1, %c0_2] : memref<1x4x8x128xbf16, #tpu.memory_space<vmem>>, vector<1x2x8x128xbf16>
    %2 = vector.shape_cast %1 : vector<1x2x8x128xbf16> to vector<2x8x128xbf16>
    %3 = vector.shape_cast %2 : vector<2x8x128xbf16> to vector<16x128xbf16>
    %c0_3 = arith.constant 0 : index
    %c0_4 = arith.constant 0 : index
    %c0_5 = arith.constant 0 : index
    %4 = vector.load %arg2[%c0_3, %c0_4, %c0_5] : memref<9x128x32xbf16, #tpu.memory_space<vmem>>, vector<1x128x32xbf16>
    %5 = vector.shape_cast %4 : vector<1x128x32xbf16> to vector<128x32xbf16>
    %cst_6 = arith.constant dense<0.000000e+00> : vector<16x32xf32>
    %6 = tpu.matmul %3, %5, %cst_6 {dimension_numbers = #tpu.dot_dimension_numbers<[1], [0], [0], [1], [0, 0, 1, 1], [], []>} : vector<16x128xbf16>, vector<128x32xbf16>, vector<16x32xf32> -> vector<16x32xf32>
    %7 = vector.shape_cast %6 : vector<16x32xf32> to vector<2x8x32xf32>
    %8 = vector.extract_strided_slice %7 {offsets = [0, 0, 0], sizes = [2, 2, 32], strides = [1, 1, 1]} : vector<2x8x32xf32> to vector<2x2x32xf32>
    %9 = arith.addf %0, %8 : vector<2x2x32xf32>
    %c1 = arith.constant 1 : index
    %c0_7 = arith.constant 0 : index
    %c0_8 = arith.constant 0 : index
    %10 = vector.load %arg2[%c1, %c0_7, %c0_8] : memref<9x128x32xbf16, #tpu.memory_space<vmem>>, vector<1x128x32xbf16>
    %11 = vector.shape_cast %10 : vector<1x128x32xbf16> to vector<128x32xbf16>
    %cst_9 = arith.constant dense<0.000000e+00> : vector<16x32xf32>
    %12 = tpu.matmul %3, %11, %cst_9 {dimension_numbers = #tpu.dot_dimension_numbers<[1], [0], [0], [1], [0, 0, 1, 1], [], []>} : vector<16x128xbf16>, vector<128x32xbf16>, vector<16x32xf32> -> vector<16x32xf32>
    %13 = vector.shape_cast %12 : vector<16x32xf32> to vector<2x8x32xf32>
    %14 = vector.extract_strided_slice %13 {offsets = [0, 1, 0], sizes = [2, 2, 32], strides = [1, 1, 1]} : vector<2x8x32xf32> to vector<2x2x32xf32>
    %15 = arith.addf %9, %14 : vector<2x2x32xf32>
    %c2 = arith.constant 2 : index
    %c0_10 = arith.constant 0 : index
    %c0_11 = arith.constant 0 : index
    %16 = vector.load %arg2[%c2, %c0_10, %c0_11] : memref<9x128x32xbf16, #tpu.memory_space<vmem>>, vector<1x128x32xbf16>
    %17 = vector.shape_cast %16 : vector<1x128x32xbf16> to vector<128x32xbf16>
    %cst_12 = arith.constant dense<0.000000e+00> : vector<16x32xf32>
    %18 = tpu.matmul %3, %17, %cst_12 {dimension_numbers = #tpu.dot_dimension_numbers<[1], [0], [0], [1], [0, 0, 1, 1], [], []>} : vector<16x128xbf16>, vector<128x32xbf16>, vector<16x32xf32> -> vector<16x32xf32>
    %19 = vector.shape_cast %18 : vector<16x32xf32> to vector<2x8x32xf32>
    %20 = vector.extract_strided_slice %19 {offsets = [0, 2, 0], sizes = [2, 2, 32], strides = [1, 1, 1]} : vector<2x8x32xf32> to vector<2x2x32xf32>
    %21 = arith.addf %15, %20 : vector<2x2x32xf32>
    %c0_13 = arith.constant 0 : index
    %c1_14 = arith.constant 1 : index
    %c0_15 = arith.constant 0 : index
    %c0_16 = arith.constant 0 : index
    %22 = vector.load %arg1[%c0_13, %c1_14, %c0_15, %c0_16] : memref<1x4x8x128xbf16, #tpu.memory_space<vmem>>, vector<1x2x8x128xbf16>
    %23 = vector.shape_cast %22 : vector<1x2x8x128xbf16> to vector<2x8x128xbf16>
    %24 = vector.shape_cast %23 : vector<2x8x128xbf16> to vector<16x128xbf16>
    %c3 = arith.constant 3 : index
    %c0_17 = arith.constant 0 : index
    %c0_18 = arith.constant 0 : index
    %25 = vector.load %arg2[%c3, %c0_17, %c0_18] : memref<9x128x32xbf16, #tpu.memory_space<vmem>>, vector<1x128x32xbf16>
    %26 = vector.shape_cast %25 : vector<1x128x32xbf16> to vector<128x32xbf16>
    %cst_19 = arith.constant dense<0.000000e+00> : vector<16x32xf32>
    %27 = tpu.matmul %24, %26, %cst_19 {dimension_numbers = #tpu.dot_dimension_numbers<[1], [0], [0], [1], [0, 0, 1, 1], [], []>} : vector<16x128xbf16>, vector<128x32xbf16>, vector<16x32xf32> -> vector<16x32xf32>
    %28 = vector.shape_cast %27 : vector<16x32xf32> to vector<2x8x32xf32>
    %29 = vector.extract_strided_slice %28 {offsets = [0, 0, 0], sizes = [2, 2, 32], strides = [1, 1, 1]} : vector<2x8x32xf32> to vector<2x2x32xf32>
    %30 = arith.addf %21, %29 : vector<2x2x32xf32>
    %c4 = arith.constant 4 : index
    %c0_20 = arith.constant 0 : index
    %c0_21 = arith.constant 0 : index
    %31 = vector.load %arg2[%c4, %c0_20, %c0_21] : memref<9x128x32xbf16, #tpu.memory_space<vmem>>, vector<1x128x32xbf16>
    %32 = vector.shape_cast %31 : vector<1x128x32xbf16> to vector<128x32xbf16>
    %cst_22 = arith.constant dense<0.000000e+00> : vector<16x32xf32>
    %33 = tpu.matmul %24, %32, %cst_22 {dimension_numbers = #tpu.dot_dimension_numbers<[1], [0], [0], [1], [0, 0, 1, 1], [], []>} : vector<16x128xbf16>, vector<128x32xbf16>, vector<16x32xf32> -> vector<16x32xf32>
    %34 = vector.shape_cast %33 : vector<16x32xf32> to vector<2x8x32xf32>
    %35 = vector.extract_strided_slice %34 {offsets = [0, 1, 0], sizes = [2, 2, 32], strides = [1, 1, 1]} : vector<2x8x32xf32> to vector<2x2x32xf32>
    %36 = arith.addf %30, %35 : vector<2x2x32xf32>
    %c5 = arith.constant 5 : index
    %c0_23 = arith.constant 0 : index
    %c0_24 = arith.constant 0 : index
    %37 = vector.load %arg2[%c5, %c0_23, %c0_24] : memref<9x128x32xbf16, #tpu.memory_space<vmem>>, vector<1x128x32xbf16>
    %38 = vector.shape_cast %37 : vector<1x128x32xbf16> to vector<128x32xbf16>
    %cst_25 = arith.constant dense<0.000000e+00> : vector<16x32xf32>
    %39 = tpu.matmul %24, %38, %cst_25 {dimension_numbers = #tpu.dot_dimension_numbers<[1], [0], [0], [1], [0, 0, 1, 1], [], []>} : vector<16x128xbf16>, vector<128x32xbf16>, vector<16x32xf32> -> vector<16x32xf32>
    %40 = vector.shape_cast %39 : vector<16x32xf32> to vector<2x8x32xf32>
    %41 = vector.extract_strided_slice %40 {offsets = [0, 2, 0], sizes = [2, 2, 32], strides = [1, 1, 1]} : vector<2x8x32xf32> to vector<2x2x32xf32>
    %42 = arith.addf %36, %41 : vector<2x2x32xf32>
    %c0_26 = arith.constant 0 : index
    %c2_27 = arith.constant 2 : index
    %c0_28 = arith.constant 0 : index
    %c0_29 = arith.constant 0 : index
    %43 = vector.load %arg1[%c0_26, %c2_27, %c0_28, %c0_29] : memref<1x4x8x128xbf16, #tpu.memory_space<vmem>>, vector<1x2x8x128xbf16>
    %44 = vector.shape_cast %43 : vector<1x2x8x128xbf16> to vector<2x8x128xbf16>
    %45 = vector.shape_cast %44 : vector<2x8x128xbf16> to vector<16x128xbf16>
    %c6 = arith.constant 6 : index
    %c0_30 = arith.constant 0 : index
    %c0_31 = arith.constant 0 : index
    %46 = vector.load %arg2[%c6, %c0_30, %c0_31] : memref<9x128x32xbf16, #tpu.memory_space<vmem>>, vector<1x128x32xbf16>
    %47 = vector.shape_cast %46 : vector<1x128x32xbf16> to vector<128x32xbf16>
    %cst_32 = arith.constant dense<0.000000e+00> : vector<16x32xf32>
    %48 = tpu.matmul %45, %47, %cst_32 {dimension_numbers = #tpu.dot_dimension_numbers<[1], [0], [0], [1], [0, 0, 1, 1], [], []>} : vector<16x128xbf16>, vector<128x32xbf16>, vector<16x32xf32> -> vector<16x32xf32>
    %49 = vector.shape_cast %48 : vector<16x32xf32> to vector<2x8x32xf32>
    %50 = vector.extract_strided_slice %49 {offsets = [0, 0, 0], sizes = [2, 2, 32], strides = [1, 1, 1]} : vector<2x8x32xf32> to vector<2x2x32xf32>
    %51 = arith.addf %42, %50 : vector<2x2x32xf32>
    %c7 = arith.constant 7 : index
    %c0_33 = arith.constant 0 : index
    %c0_34 = arith.constant 0 : index
    %52 = vector.load %arg2[%c7, %c0_33, %c0_34] : memref<9x128x32xbf16, #tpu.memory_space<vmem>>, vector<1x128x32xbf16>
    %53 = vector.shape_cast %52 : vector<1x128x32xbf16> to vector<128x32xbf16>
    %cst_35 = arith.constant dense<0.000000e+00> : vector<16x32xf32>
    %54 = tpu.matmul %45, %53, %cst_35 {dimension_numbers = #tpu.dot_dimension_numbers<[1], [0], [0], [1], [0, 0, 1, 1], [], []>} : vector<16x128xbf16>, vector<128x32xbf16>, vector<16x32xf32> -> vector<16x32xf32>
    %55 = vector.shape_cast %54 : vector<16x32xf32> to vector<2x8x32xf32>
    %56 = vector.extract_strided_slice %55 {offsets = [0, 1, 0], sizes = [2, 2, 32], strides = [1, 1, 1]} : vector<2x8x32xf32> to vector<2x2x32xf32>
    %57 = arith.addf %51, %56 : vector<2x2x32xf32>
    %c8 = arith.constant 8 : index
    %c0_36 = arith.constant 0 : index
    %c0_37 = arith.constant 0 : index
    %58 = vector.load %arg2[%c8, %c0_36, %c0_37] : memref<9x128x32xbf16, #tpu.memory_space<vmem>>, vector<1x128x32xbf16>
    %59 = vector.shape_cast %58 : vector<1x128x32xbf16> to vector<128x32xbf16>
    %cst_38 = arith.constant dense<0.000000e+00> : vector<16x32xf32>
    %60 = tpu.matmul %45, %59, %cst_38 {dimension_numbers = #tpu.dot_dimension_numbers<[1], [0], [0], [1], [0, 0, 1, 1], [], []>} : vector<16x128xbf16>, vector<128x32xbf16>, vector<16x32xf32> -> vector<16x32xf32>
    %61 = vector.shape_cast %60 : vector<16x32xf32> to vector<2x8x32xf32>
    %62 = vector.extract_strided_slice %61 {offsets = [0, 2, 0], sizes = [2, 2, 32], strides = [1, 1, 1]} : vector<2x8x32xf32> to vector<2x2x32xf32>
    %63 = arith.addf %57, %62 : vector<2x2x32xf32>
    %64 = arith.truncf %63 : vector<2x2x32xf32> to vector<2x2x32xbf16>
    %c0_39 = arith.constant 0 : index
    %c0_40 = arith.constant 0 : index
    %c0_41 = arith.constant 0 : index
    %c0_42 = arith.constant 0 : index
    %65 = vector.load %arg3[%c0_39, %c0_40, %c0_41, %c0_42] : memref<1x2x2x32xbf16, #tpu.memory_space<vmem>>, vector<1x2x2x32xbf16>
    %66 = vector.shape_cast %65 : vector<1x2x2x32xbf16> to vector<2x2x32xbf16>
    %67 = vector.shape_cast %64 : vector<2x2x32xbf16> to vector<1x2x2x32xbf16>
    tpu.vector_store %arg3[%c0_39, %c0_40, %c0_41, %c0_42], %67 {strides = array<i32>} : memref<1x2x2x32xbf16, #tpu.memory_space<vmem>>, vector<1x2x2x32xbf16>,
    return
  }
  func.func @transform_0(%arg0: i32) -> (i32, i32, i32, i32) {
    %c0_i32 = arith.constant 0 : i32
    %c0_i32_0 = arith.constant 0 : i32
    %c0_i32_1 = arith.constant 0 : i32
    %c0_i32_2 = arith.constant 0 : i32
    return %arg0, %c0_i32, %c0_i32_0, %c0_i32_1 : i32, i32, i32, i32
  }
  func.func @transform_1(%arg0: i32) -> (i32, i32, i32) {
    %c0_i32 = arith.constant 0 : i32
    %c0_i32_0 = arith.constant 0 : i32
    %c0_i32_1 = arith.constant 0 : i32
    %c0_i32_2 = arith.constant 0 : i32
    return %c0_i32, %c0_i32_0, %c0_i32_1 : i32, i32, i32
  }
  func.func @transform_2(%arg0: i32) -> (i32, i32, i32, i32) {
    %c0_i32 = arith.constant 0 : i32
    %c0_i32_0 = arith.constant 0 : i32
    %c0_i32_1 = arith.constant 0 : i32
    %c0_i32_2 = arith.constant 0 : i32
    return %arg0, %c0_i32, %c0_i32_0, %c0_i32_1 : i32, i32, i32, i32
  }
}

module attributes {stable_mosaic.version = 11 : i64} {
  func.func @_mm_kernel(%arg0: i32, %arg1: memref<8x1024xbf16, #tpu.memory_space<vmem>>, %arg2: memref<1024x512xbf16, #tpu.memory_space<vmem>>, %arg3: memref<1x1024xbf16, #tpu.memory_space<vmem>>, %arg4: memref<1x1024xbf16, #tpu.memory_space<vmem>>, %arg5: memref<8x512xbf16, #tpu.memory_space<vmem>>) attributes {dimension_semantics = [#tpu.dimension_semantics<parallel>], iteration_bounds = array<i64: 1>, scalar_prefetch = 0 : i64, scratch_operands = 0 : i64, tpu.core_type = #tpu.core_type<tc>, window_params = [{transform_indices = @transform_0, window_bounds = array<i64: 8, 1024>}, {pipeline_mode = #tpu.pipeline_mode<synchronous>, transform_indices = @transform_1, window_bounds = array<i64: 1024, 512>}, {pipeline_mode = #tpu.pipeline_mode<synchronous>, transform_indices = @transform_2, window_bounds = array<i64: 1, 1024>}, {pipeline_mode = #tpu.pipeline_mode<synchronous>, transform_indices = @transform_3, window_bounds = array<i64: 1, 1024>}, {transform_indices = @transform_4, window_bounds = array<i64: 8, 512>}]} {
    %c0 = arith.constant 0 : index
    %c0_0 = arith.constant 0 : index
    %0 = vector.load %arg1[%c0, %c0_0] : memref<8x1024xbf16, #tpu.memory_space<vmem>>, vector<8x1024xbf16>
    %c0_1 = arith.constant 0 : index
    %c0_2 = arith.constant 0 : index
    %1 = vector.load %arg3[%c0_1, %c0_2] : memref<1x1024xbf16, #tpu.memory_space<vmem>>, vector<1x1024xbf16>
    %2 = vector.broadcast %1 : vector<1x1024xbf16> to vector<8x1024xbf16>
    %3 = arith.mulf %0, %2 : vector<8x1024xbf16>
    %c0_3 = arith.constant 0 : index
    %c0_4 = arith.constant 0 : index
    %4 = vector.load %arg4[%c0_3, %c0_4] : memref<1x1024xbf16, #tpu.memory_space<vmem>>, vector<1x1024xbf16>
    %5 = vector.broadcast %4 : vector<1x1024xbf16> to vector<8x1024xbf16>
    %6 = arith.addf %3, %5 : vector<8x1024xbf16>
    %cst = arith.constant 0.000000e+00 : bf16
    %7 = vector.broadcast %cst : bf16 to vector<8x1024xbf16>
    %8 = arith.maximumf %6, %7 : vector<8x1024xbf16>
    %c0_5 = arith.constant 0 : index
    %c0_6 = arith.constant 0 : index
    %9 = vector.load %arg2[%c0_5, %c0_6] : memref<1024x512xbf16, #tpu.memory_space<vmem>>, vector<1024x512xbf16>
    %cst_7 = arith.constant dense<0.000000e+00> : vector<8x512xf32>
    %10 = tpu.matmul %8, %9, %cst_7 {dimension_numbers = #tpu.dot_dimension_numbers<[1], [0], [0], [1], [0, 0, 1, 1], [], []>} : vector<8x1024xbf16>, vector<1024x512xbf16>, vector<8x512xf32> -> vector<8x512xf32>
    %11 = arith.truncf %10 : vector<8x512xf32> to vector<8x512xbf16>
    %c0_8 = arith.constant 0 : index
    %c0_9 = arith.constant 0 : index
    %12 = vector.load %arg5[%c0_8, %c0_9] : memref<8x512xbf16, #tpu.memory_space<vmem>>, vector<8x512xbf16>
    tpu.vector_store %arg5[%c0_8, %c0_9], %11 {strides = array<i32>} : memref<8x512xbf16, #tpu.memory_space<vmem>>, vector<8x512xbf16>,
    return
  }
  func.func @transform_0(%arg0: i32) -> (i32, i32) {
    %c0_i32 = arith.constant 0 : i32
    %c0_i32_0 = arith.constant 0 : i32
    return %arg0, %c0_i32 : i32, i32
  }
  func.func @transform_1(%arg0: i32) -> (i32, i32) {
    %c0_i32 = arith.constant 0 : i32
    %c0_i32_0 = arith.constant 0 : i32
    %c0_i32_1 = arith.constant 0 : i32
    return %c0_i32, %c0_i32_0 : i32, i32
  }
  func.func @transform_2(%arg0: i32) -> (i32, i32) {
    %c0_i32 = arith.constant 0 : i32
    %c0_i32_0 = arith.constant 0 : i32
    %c0_i32_1 = arith.constant 0 : i32
    return %c0_i32, %c0_i32_0 : i32, i32
  }
  func.func @transform_3(%arg0: i32) -> (i32, i32) {
    %c0_i32 = arith.constant 0 : i32
    %c0_i32_0 = arith.constant 0 : i32
    %c0_i32_1 = arith.constant 0 : i32
    return %c0_i32, %c0_i32_0 : i32, i32
  }
  func.func @transform_4(%arg0: i32) -> (i32, i32) {
    %c0_i32 = arith.constant 0 : i32
    %c0_i32_0 = arith.constant 0 : i32
    return %arg0, %c0_i32 : i32, i32
  }
}

module attributes {stable_mosaic.version = 11 : i64} {
  func.func @_conv3x3_kernel(%arg0: i32, %arg1: memref<1x3x8x128xbf16, #tpu.memory_space<vmem>>, %arg2: memref<9x128x32xbf16, #tpu.memory_space<vmem>>, %arg3: memref<1x1x1x32xbf16, #tpu.memory_space<vmem>>) attributes {dimension_semantics = [#tpu.dimension_semantics<parallel>], iteration_bounds = array<i64: 2>, scalar_prefetch = 0 : i64, scratch_operands = 0 : i64, tpu.core_type = #tpu.core_type<tc>, window_params = [{transform_indices = @transform_0, window_bounds = array<i64: 1, 3, 8, 128>}, {pipeline_mode = #tpu.pipeline_mode<synchronous>, transform_indices = @transform_1, window_bounds = array<i64: 9, 128, 32>}, {transform_indices = @transform_2, window_bounds = array<i64: 1, 1, 1, 32>}]} {
    %cst = arith.constant 0.000000e+00 : f32
    %0 = vector.broadcast %cst : f32 to vector<1x1x32xf32>
    %c0 = arith.constant 0 : index
    %c0_0 = arith.constant 0 : index
    %c0_1 = arith.constant 0 : index
    %c0_2 = arith.constant 0 : index
    %1 = vector.load %arg1[%c0, %c0_0, %c0_1, %c0_2] : memref<1x3x8x128xbf16, #tpu.memory_space<vmem>>, vector<1x1x8x128xbf16>
    %2 = vector.shape_cast %1 : vector<1x1x8x128xbf16> to vector<1x8x128xbf16>
    %3 = vector.shape_cast %2 : vector<1x8x128xbf16> to vector<8x128xbf16>
    %c0_3 = arith.constant 0 : index
    %c0_4 = arith.constant 0 : index
    %c0_5 = arith.constant 0 : index
    %4 = vector.load %arg2[%c0_3, %c0_4, %c0_5] : memref<9x128x32xbf16, #tpu.memory_space<vmem>>, vector<1x128x32xbf16>
    %5 = vector.shape_cast %4 : vector<1x128x32xbf16> to vector<128x32xbf16>
    %cst_6 = arith.constant dense<0.000000e+00> : vector<8x32xf32>
    %6 = tpu.matmul %3, %5, %cst_6 {dimension_numbers = #tpu.dot_dimension_numbers<[1], [0], [0], [1], [0, 0, 1, 1], [], []>} : vector<8x128xbf16>, vector<128x32xbf16>, vector<8x32xf32> -> vector<8x32xf32>
    %7 = vector.shape_cast %6 : vector<8x32xf32> to vector<1x8x32xf32>
    %8 = vector.extract_strided_slice %7 {offsets = [0, 0, 0], sizes = [1, 1, 32], strides = [1, 1, 1]} : vector<1x8x32xf32> to vector<1x1x32xf32>
    %9 = arith.addf %0, %8 : vector<1x1x32xf32>
    %c1 = arith.constant 1 : index
    %c0_7 = arith.constant 0 : index
    %c0_8 = arith.constant 0 : index
    %10 = vector.load %arg2[%c1, %c0_7, %c0_8] : memref<9x128x32xbf16, #tpu.memory_space<vmem>>, vector<1x128x32xbf16>
    %11 = vector.shape_cast %10 : vector<1x128x32xbf16> to vector<128x32xbf16>
    %cst_9 = arith.constant dense<0.000000e+00> : vector<8x32xf32>
    %12 = tpu.matmul %3, %11, %cst_9 {dimension_numbers = #tpu.dot_dimension_numbers<[1], [0], [0], [1], [0, 0, 1, 1], [], []>} : vector<8x128xbf16>, vector<128x32xbf16>, vector<8x32xf32> -> vector<8x32xf32>
    %13 = vector.shape_cast %12 : vector<8x32xf32> to vector<1x8x32xf32>
    %14 = vector.extract_strided_slice %13 {offsets = [0, 1, 0], sizes = [1, 1, 32], strides = [1, 1, 1]} : vector<1x8x32xf32> to vector<1x1x32xf32>
    %15 = arith.addf %9, %14 : vector<1x1x32xf32>
    %c2 = arith.constant 2 : index
    %c0_10 = arith.constant 0 : index
    %c0_11 = arith.constant 0 : index
    %16 = vector.load %arg2[%c2, %c0_10, %c0_11] : memref<9x128x32xbf16, #tpu.memory_space<vmem>>, vector<1x128x32xbf16>
    %17 = vector.shape_cast %16 : vector<1x128x32xbf16> to vector<128x32xbf16>
    %cst_12 = arith.constant dense<0.000000e+00> : vector<8x32xf32>
    %18 = tpu.matmul %3, %17, %cst_12 {dimension_numbers = #tpu.dot_dimension_numbers<[1], [0], [0], [1], [0, 0, 1, 1], [], []>} : vector<8x128xbf16>, vector<128x32xbf16>, vector<8x32xf32> -> vector<8x32xf32>
    %19 = vector.shape_cast %18 : vector<8x32xf32> to vector<1x8x32xf32>
    %20 = vector.extract_strided_slice %19 {offsets = [0, 2, 0], sizes = [1, 1, 32], strides = [1, 1, 1]} : vector<1x8x32xf32> to vector<1x1x32xf32>
    %21 = arith.addf %15, %20 : vector<1x1x32xf32>
    %c0_13 = arith.constant 0 : index
    %c1_14 = arith.constant 1 : index
    %c0_15 = arith.constant 0 : index
    %c0_16 = arith.constant 0 : index
    %22 = vector.load %arg1[%c0_13, %c1_14, %c0_15, %c0_16] : memref<1x3x8x128xbf16, #tpu.memory_space<vmem>>, vector<1x1x8x128xbf16>
    %23 = vector.shape_cast %22 : vector<1x1x8x128xbf16> to vector<1x8x128xbf16>
    %24 = vector.shape_cast %23 : vector<1x8x128xbf16> to vector<8x128xbf16>
    %c3 = arith.constant 3 : index
    %c0_17 = arith.constant 0 : index
    %c0_18 = arith.constant 0 : index
    %25 = vector.load %arg2[%c3, %c0_17, %c0_18] : memref<9x128x32xbf16, #tpu.memory_space<vmem>>, vector<1x128x32xbf16>
    %26 = vector.shape_cast %25 : vector<1x128x32xbf16> to vector<128x32xbf16>
    %cst_19 = arith.constant dense<0.000000e+00> : vector<8x32xf32>
    %27 = tpu.matmul %24, %26, %cst_19 {dimension_numbers = #tpu.dot_dimension_numbers<[1], [0], [0], [1], [0, 0, 1, 1], [], []>} : vector<8x128xbf16>, vector<128x32xbf16>, vector<8x32xf32> -> vector<8x32xf32>
    %28 = vector.shape_cast %27 : vector<8x32xf32> to vector<1x8x32xf32>
    %29 = vector.extract_strided_slice %28 {offsets = [0, 0, 0], sizes = [1, 1, 32], strides = [1, 1, 1]} : vector<1x8x32xf32> to vector<1x1x32xf32>
    %30 = arith.addf %21, %29 : vector<1x1x32xf32>
    %c4 = arith.constant 4 : index
    %c0_20 = arith.constant 0 : index
    %c0_21 = arith.constant 0 : index
    %31 = vector.load %arg2[%c4, %c0_20, %c0_21] : memref<9x128x32xbf16, #tpu.memory_space<vmem>>, vector<1x128x32xbf16>
    %32 = vector.shape_cast %31 : vector<1x128x32xbf16> to vector<128x32xbf16>
    %cst_22 = arith.constant dense<0.000000e+00> : vector<8x32xf32>
    %33 = tpu.matmul %24, %32, %cst_22 {dimension_numbers = #tpu.dot_dimension_numbers<[1], [0], [0], [1], [0, 0, 1, 1], [], []>} : vector<8x128xbf16>, vector<128x32xbf16>, vector<8x32xf32> -> vector<8x32xf32>
    %34 = vector.shape_cast %33 : vector<8x32xf32> to vector<1x8x32xf32>
    %35 = vector.extract_strided_slice %34 {offsets = [0, 1, 0], sizes = [1, 1, 32], strides = [1, 1, 1]} : vector<1x8x32xf32> to vector<1x1x32xf32>
    %36 = arith.addf %30, %35 : vector<1x1x32xf32>
    %c5 = arith.constant 5 : index
    %c0_23 = arith.constant 0 : index
    %c0_24 = arith.constant 0 : index
    %37 = vector.load %arg2[%c5, %c0_23, %c0_24] : memref<9x128x32xbf16, #tpu.memory_space<vmem>>, vector<1x128x32xbf16>
    %38 = vector.shape_cast %37 : vector<1x128x32xbf16> to vector<128x32xbf16>
    %cst_25 = arith.constant dense<0.000000e+00> : vector<8x32xf32>
    %39 = tpu.matmul %24, %38, %cst_25 {dimension_numbers = #tpu.dot_dimension_numbers<[1], [0], [0], [1], [0, 0, 1, 1], [], []>} : vector<8x128xbf16>, vector<128x32xbf16>, vector<8x32xf32> -> vector<8x32xf32>
    %40 = vector.shape_cast %39 : vector<8x32xf32> to vector<1x8x32xf32>
    %41 = vector.extract_strided_slice %40 {offsets = [0, 2, 0], sizes = [1, 1, 32], strides = [1, 1, 1]} : vector<1x8x32xf32> to vector<1x1x32xf32>
    %42 = arith.addf %36, %41 : vector<1x1x32xf32>
    %c0_26 = arith.constant 0 : index
    %c2_27 = arith.constant 2 : index
    %c0_28 = arith.constant 0 : index
    %c0_29 = arith.constant 0 : index
    %43 = vector.load %arg1[%c0_26, %c2_27, %c0_28, %c0_29] : memref<1x3x8x128xbf16, #tpu.memory_space<vmem>>, vector<1x1x8x128xbf16>
    %44 = vector.shape_cast %43 : vector<1x1x8x128xbf16> to vector<1x8x128xbf16>
    %45 = vector.shape_cast %44 : vector<1x8x128xbf16> to vector<8x128xbf16>
    %c6 = arith.constant 6 : index
    %c0_30 = arith.constant 0 : index
    %c0_31 = arith.constant 0 : index
    %46 = vector.load %arg2[%c6, %c0_30, %c0_31] : memref<9x128x32xbf16, #tpu.memory_space<vmem>>, vector<1x128x32xbf16>
    %47 = vector.shape_cast %46 : vector<1x128x32xbf16> to vector<128x32xbf16>
    %cst_32 = arith.constant dense<0.000000e+00> : vector<8x32xf32>
    %48 = tpu.matmul %45, %47, %cst_32 {dimension_numbers = #tpu.dot_dimension_numbers<[1], [0], [0], [1], [0, 0, 1, 1], [], []>} : vector<8x128xbf16>, vector<128x32xbf16>, vector<8x32xf32> -> vector<8x32xf32>
    %49 = vector.shape_cast %48 : vector<8x32xf32> to vector<1x8x32xf32>
    %50 = vector.extract_strided_slice %49 {offsets = [0, 0, 0], sizes = [1, 1, 32], strides = [1, 1, 1]} : vector<1x8x32xf32> to vector<1x1x32xf32>
    %51 = arith.addf %42, %50 : vector<1x1x32xf32>
    %c7 = arith.constant 7 : index
    %c0_33 = arith.constant 0 : index
    %c0_34 = arith.constant 0 : index
    %52 = vector.load %arg2[%c7, %c0_33, %c0_34] : memref<9x128x32xbf16, #tpu.memory_space<vmem>>, vector<1x128x32xbf16>
    %53 = vector.shape_cast %52 : vector<1x128x32xbf16> to vector<128x32xbf16>
    %cst_35 = arith.constant dense<0.000000e+00> : vector<8x32xf32>
    %54 = tpu.matmul %45, %53, %cst_35 {dimension_numbers = #tpu.dot_dimension_numbers<[1], [0], [0], [1], [0, 0, 1, 1], [], []>} : vector<8x128xbf16>, vector<128x32xbf16>, vector<8x32xf32> -> vector<8x32xf32>
    %55 = vector.shape_cast %54 : vector<8x32xf32> to vector<1x8x32xf32>
    %56 = vector.extract_strided_slice %55 {offsets = [0, 1, 0], sizes = [1, 1, 32], strides = [1, 1, 1]} : vector<1x8x32xf32> to vector<1x1x32xf32>
    %57 = arith.addf %51, %56 : vector<1x1x32xf32>
    %c8 = arith.constant 8 : index
    %c0_36 = arith.constant 0 : index
    %c0_37 = arith.constant 0 : index
    %58 = vector.load %arg2[%c8, %c0_36, %c0_37] : memref<9x128x32xbf16, #tpu.memory_space<vmem>>, vector<1x128x32xbf16>
    %59 = vector.shape_cast %58 : vector<1x128x32xbf16> to vector<128x32xbf16>
    %cst_38 = arith.constant dense<0.000000e+00> : vector<8x32xf32>
    %60 = tpu.matmul %45, %59, %cst_38 {dimension_numbers = #tpu.dot_dimension_numbers<[1], [0], [0], [1], [0, 0, 1, 1], [], []>} : vector<8x128xbf16>, vector<128x32xbf16>, vector<8x32xf32> -> vector<8x32xf32>
    %61 = vector.shape_cast %60 : vector<8x32xf32> to vector<1x8x32xf32>
    %62 = vector.extract_strided_slice %61 {offsets = [0, 2, 0], sizes = [1, 1, 32], strides = [1, 1, 1]} : vector<1x8x32xf32> to vector<1x1x32xf32>
    %63 = arith.addf %57, %62 : vector<1x1x32xf32>
    %64 = arith.truncf %63 : vector<1x1x32xf32> to vector<1x1x32xbf16>
    %c0_39 = arith.constant 0 : index
    %c0_40 = arith.constant 0 : index
    %c0_41 = arith.constant 0 : index
    %c0_42 = arith.constant 0 : index
    %65 = vector.load %arg3[%c0_39, %c0_40, %c0_41, %c0_42] : memref<1x1x1x32xbf16, #tpu.memory_space<vmem>>, vector<1x1x1x32xbf16>
    %66 = vector.shape_cast %65 : vector<1x1x1x32xbf16> to vector<1x1x32xbf16>
    %67 = vector.shape_cast %64 : vector<1x1x32xbf16> to vector<1x1x1x32xbf16>
    tpu.vector_store %arg3[%c0_39, %c0_40, %c0_41, %c0_42], %67 {strides = array<i32>} : memref<1x1x1x32xbf16, #tpu.memory_space<vmem>>, vector<1x1x1x32xbf16>,
    return
  }
  func.func @transform_0(%arg0: i32) -> (i32, i32, i32, i32) {
    %c0_i32 = arith.constant 0 : i32
    %c0_i32_0 = arith.constant 0 : i32
    %c0_i32_1 = arith.constant 0 : i32
    %c0_i32_2 = arith.constant 0 : i32
    return %arg0, %c0_i32, %c0_i32_0, %c0_i32_1 : i32, i32, i32, i32
  }
  func.func @transform_1(%arg0: i32) -> (i32, i32, i32) {
    %c0_i32 = arith.constant 0 : i32
    %c0_i32_0 = arith.constant 0 : i32
    %c0_i32_1 = arith.constant 0 : i32
    %c0_i32_2 = arith.constant 0 : i32
    return %c0_i32, %c0_i32_0, %c0_i32_1 : i32, i32, i32
  }
  func.func @transform_2(%arg0: i32) -> (i32, i32, i32, i32) {
    %c0_i32 = arith.constant 0 : i32
    %c0_i32_0 = arith.constant 0 : i32
    %c0_i32_1 = arith.constant 0 : i32
    %c0_i32_2 = arith.constant 0 : i32
    return %arg0, %c0_i32, %c0_i32_0, %c0_i32_1 : i32, i32, i32, i32
  }
}

module attributes {stable_mosaic.version = 11 : i64} {
  func.func @_bn_kernel(%arg0: i32, %arg1: memref<8x1024xbf16, #tpu.memory_space<vmem>>, %arg2: memref<1x1024xf32, #tpu.memory_space<vmem>>, %arg3: memref<1x1024xf32, #tpu.memory_space<vmem>>, %arg4: memref<8x1024xbf16, #tpu.memory_space<vmem>>) attributes {dimension_semantics = [#tpu.dimension_semantics<parallel>], iteration_bounds = array<i64: 1>, scalar_prefetch = 0 : i64, scratch_operands = 0 : i64, tpu.core_type = #tpu.core_type<tc>, window_params = [{transform_indices = @transform_0, window_bounds = array<i64: 8, 1024>}, {pipeline_mode = #tpu.pipeline_mode<synchronous>, transform_indices = @transform_1, window_bounds = array<i64: 1, 1024>}, {pipeline_mode = #tpu.pipeline_mode<synchronous>, transform_indices = @transform_2, window_bounds = array<i64: 1, 1024>}, {transform_indices = @transform_3, window_bounds = array<i64: 8, 1024>}]} {
    %c0 = arith.constant 0 : index
    %c0_0 = arith.constant 0 : index
    %0 = vector.load %arg1[%c0, %c0_0] : memref<8x1024xbf16, #tpu.memory_space<vmem>>, vector<8x1024xbf16>
    %1 = arith.extf %0 : vector<8x1024xbf16> to vector<8x1024xf32>
    %c0_1 = arith.constant 0 : index
    %c0_2 = arith.constant 0 : index
    %2 = vector.load %arg2[%c0_1, %c0_2] : memref<1x1024xf32, #tpu.memory_space<vmem>>, vector<1x1024xf32>
    %3 = vector.broadcast %2 : vector<1x1024xf32> to vector<8x1024xf32>
    %4 = arith.mulf %1, %3 : vector<8x1024xf32>
    %c0_3 = arith.constant 0 : index
    %c0_4 = arith.constant 0 : index
    %5 = vector.load %arg3[%c0_3, %c0_4] : memref<1x1024xf32, #tpu.memory_space<vmem>>, vector<1x1024xf32>
    %6 = vector.broadcast %5 : vector<1x1024xf32> to vector<8x1024xf32>
    %7 = arith.addf %4, %6 : vector<8x1024xf32>
    %cst = arith.constant 0.000000e+00 : f32
    %8 = vector.broadcast %cst : f32 to vector<8x1024xf32>
    %9 = arith.maximumf %7, %8 : vector<8x1024xf32>
    %10 = arith.truncf %9 : vector<8x1024xf32> to vector<8x1024xbf16>
    %c0_5 = arith.constant 0 : index
    %c0_6 = arith.constant 0 : index
    %11 = vector.load %arg4[%c0_5, %c0_6] : memref<8x1024xbf16, #tpu.memory_space<vmem>>, vector<8x1024xbf16>
    tpu.vector_store %arg4[%c0_5, %c0_6], %10 {strides = array<i32>} : memref<8x1024xbf16, #tpu.memory_space<vmem>>, vector<8x1024xbf16>,
    return
  }
  func.func @transform_0(%arg0: i32) -> (i32, i32) {
    %c0_i32 = arith.constant 0 : i32
    %c0_i32_0 = arith.constant 0 : i32
    return %arg0, %c0_i32 : i32, i32
  }
  func.func @transform_1(%arg0: i32) -> (i32, i32) {
    %c0_i32 = arith.constant 0 : i32
    %c0_i32_0 = arith.constant 0 : i32
    %c0_i32_1 = arith.constant 0 : i32
    return %c0_i32, %c0_i32_0 : i32, i32
  }
  func.func @transform_2(%arg0: i32) -> (i32, i32) {
    %c0_i32 = arith.constant 0 : i32
    %c0_i32_0 = arith.constant 0 : i32
    %c0_i32_1 = arith.constant 0 : i32
    return %c0_i32, %c0_i32_0 : i32, i32
  }
  func.func @transform_3(%arg0: i32) -> (i32, i32) {
    %c0_i32 = arith.constant 0 : i32
    %c0_i32_0 = arith.constant 0 : i32
    return %arg0, %c0_i32 : i32, i32
  }
}

module attributes {stable_mosaic.version = 11 : i64} {
  func.func @_mm_kernel(%arg0: i32, %arg1: memref<8x1024xbf16, #tpu.memory_space<vmem>>, %arg2: memref<1024x200xbf16, #tpu.memory_space<vmem>>, %arg3: memref<1x200xf32, #tpu.memory_space<vmem>>, %arg4: memref<8x200xf32, #tpu.memory_space<vmem>>) attributes {dimension_semantics = [#tpu.dimension_semantics<parallel>], iteration_bounds = array<i64: 1>, scalar_prefetch = 0 : i64, scratch_operands = 0 : i64, tpu.core_type = #tpu.core_type<tc>, window_params = [{transform_indices = @transform_0, window_bounds = array<i64: 8, 1024>}, {pipeline_mode = #tpu.pipeline_mode<synchronous>, transform_indices = @transform_1, window_bounds = array<i64: 1024, 200>}, {pipeline_mode = #tpu.pipeline_mode<synchronous>, transform_indices = @transform_2, window_bounds = array<i64: 1, 200>}, {transform_indices = @transform_3, window_bounds = array<i64: 8, 200>}]} {
    %c0 = arith.constant 0 : index
    %c0_0 = arith.constant 0 : index
    %0 = vector.load %arg1[%c0, %c0_0] : memref<8x1024xbf16, #tpu.memory_space<vmem>>, vector<8x1024xbf16>
    %c0_1 = arith.constant 0 : index
    %c0_2 = arith.constant 0 : index
    %1 = vector.load %arg2[%c0_1, %c0_2] : memref<1024x200xbf16, #tpu.memory_space<vmem>>, vector<1024x200xbf16>
    %cst = arith.constant dense<0.000000e+00> : vector<8x200xf32>
    %2 = tpu.matmul %0, %1, %cst {dimension_numbers = #tpu.dot_dimension_numbers<[1], [0], [0], [1], [0, 0, 1, 1], [], []>} : vector<8x1024xbf16>, vector<1024x200xbf16>, vector<8x200xf32> -> vector<8x200xf32>
    %c0_3 = arith.constant 0 : index
    %c0_4 = arith.constant 0 : index
    %3 = vector.load %arg3[%c0_3, %c0_4] : memref<1x200xf32, #tpu.memory_space<vmem>>, vector<1x200xf32>
    %4 = vector.broadcast %3 : vector<1x200xf32> to vector<8x200xf32>
    %5 = arith.addf %2, %4 : vector<8x200xf32>
    %c0_5 = arith.constant 0 : index
    %c0_6 = arith.constant 0 : index
    %6 = vector.load %arg4[%c0_5, %c0_6] : memref<8x200xf32, #tpu.memory_space<vmem>>, vector<8x200xf32>
    tpu.vector_store %arg4[%c0_5, %c0_6], %5 {strides = array<i32>} : memref<8x200xf32, #tpu.memory_space<vmem>>, vector<8x200xf32>,
    return
  }
  func.func @transform_0(%arg0: i32) -> (i32, i32) {
    %c0_i32 = arith.constant 0 : i32
    %c0_i32_0 = arith.constant 0 : i32
    return %arg0, %c0_i32 : i32, i32
  }
  func.func @transform_1(%arg0: i32) -> (i32, i32) {
    %c0_i32 = arith.constant 0 : i32
    %c0_i32_0 = arith.constant 0 : i32
    %c0_i32_1 = arith.constant 0 : i32
    return %c0_i32, %c0_i32_0 : i32, i32
  }
  func.func @transform_2(%arg0: i32) -> (i32, i32) {
    %c0_i32 = arith.constant 0 : i32
    %c0_i32_0 = arith.constant 0 : i32
    %c0_i32_1 = arith.constant 0 : i32
    return %c0_i32, %c0_i32_0 : i32, i32
  }
  func.func @transform_3(%arg0: i32) -> (i32, i32) {
    %c0_i32 = arith.constant 0 : i32
    %c0_i32_0 = arith.constant 0 : i32
    return %arg0, %c0_i32 : i32, i32
  }
}

</mosaic_0001>

<bundles_post_ra>
// kernel: densenet121_forward.123
= control target key start
LH: loop header
LB: loop body
LE: loop exit
PB: predicated region body
PF: predicated region fallthrough
CT: control target
= control target key end

     0   :  { %s955_s21 = smov 0   ;;  %s1036_s0 = inlined_call_operand.vmem [shape: bf16[128,256], index: 0, kind: input, shape index: {}]   ;;  %s1037_s1 = inlined_call_operand.vmem [shape: bf16[256,128], index: 1, kind: input, shape index: {}]   ;;  %s1038_s2 = inlined_call_operand.vmem [shape: bf16[1,256], index: 2, kind: input, shape index: {}]   ;;  %s1039_s3 = inlined_call_operand.vmem [shape: bf16[1,256], index: 3, kind: input, shape index: {}]   ;;  %s1040_s4 = inlined_call_operand.vmem [shape: f32[1,128], index: 4, kind: input, shape index: {}]   ;;  %s1041_s5 = inlined_call_operand.vmem [shape: f32[1,128], index: 5, kind: input, shape index: {}]   ;;  %s1042_s6 = inlined_call_operand.vmem [shape: bf16[128,128], index: 6, kind: output, shape index: {}]  }
   0x1 LB: > { %s746_s22 = sadd.s32 4294967295, %s916_s21   ;;  %p750_p0 = scmp.ge.s32.totalorder %s916_s21, 1  ;;  %s916_s21 = sphi %s955_s21, %s16_s21  }
   0x2   : > { %p214_p1 = scmp.lt.s32.totalorder %s916_s21, 3 }
   0x4   : > { %p215_p2 = pnand %p750_p0, %p214_p1 }
   0x5   : > { %v894_v0 = vld [vmem:[%s1037_s1 + $0x40] sm:$0xff] (!%p215_p2)   ;;  %v896_v2 = vld [vmem:[%s1037_s1 + $0x48] sm:$0xff] (!%p215_p2)   ;;  %v898_v4 = vld [vmem:[%s1037_s1 + $0x50] sm:$0xff] (!%p215_p2)   ;;  %s751_s15 = sshll.u32 (!%p215_p2), %s746_s22, 3  ;;  %v280_v9 = vlaneseq (!%p215_p2)  ;;  %v918_v13 = vmov (!%p215_p2), 1966171168  }
   0x6   : > { %218 = sbr.rel (%p215_p2) target bundleno = 273 (0x111), region = 44  ;;  %v895_v1 = vld [vmem:[%s1037_s1] sm:$0xff] (!%p215_p2)   ;;  %828 = vmatprep.subr.bf16.mxu0 (!%p215_p2), %v894_v0  ;;  %868 = vmatprep.subr.bf16.mxu1 (!%p215_p2), %v894_v0  ;;  %v897_v3 = vld [vmem:[%s1037_s1 + $0x8] sm:$0xff] (!%p215_p2)   ;;  %v899_v5 = vld [vmem:[%s1037_s1 + $0x10] sm:$0xff] (!%p215_p2)   ;;  %p246_p3 = scmp.lt.s32.totalorder (!%p215_p2), %s751_s15, 15  ;;  %v278_v14 = vunpack.c.l.s4 (!%p215_p2), %v918_v13 }
   0x7   : > { %829 = vmatpush3.bf16.msra.mxu0 (!%p215_p2), %v895_v1  ;;  %876 = vmatpush3.bf16.msra.mxu1 (!%p215_p2), %v895_v1  ;;  %v900_v6 = vld [vmem:[%s1037_s1 + $0x58] sm:$0xff] (!%p215_p2)   ;;  %v902_v8 = vld [vmem:[%s1037_s1 + $0x60] sm:$0xff] (!%p215_p2)   ;;  %v904_v11 = vld [vmem:[%s1037_s1 + $0x68] sm:$0xff] (!%p215_p2)   ;;  %v281_v15 = vshrl.u32 (!%p215_p2), %v280_v9, 7  ;;  %v919_v1 = vmov (!%p215_p2), 0  }
   0x8   : > { %830 = vmatprep.subr.bf16.mxu0 (!%p215_p2), %v896_v2  ;;  %869 = vmatprep.subr.bf16.mxu1 (!%p215_p2), %v896_v2  ;;  %v901_v7 = vld [vmem:[%s1037_s1 + $0x18] sm:$0xff] (!%p215_p2)   ;;  %v903_v10 = vld [vmem:[%s1037_s1 + $0x20] sm:$0xff] (!%p215_p2)   ;;  %v905_v17 = vld [vmem:[%s1037_s1 + $0x28] sm:$0xff] (!%p215_p2)   ;;  %v279_v20 = vunpack.c.0.s8 (!%p215_p2), %v278_v14 }
   0x9   : > { %v756_v12 = vld.sshfl [vmem:[%s1038_s2] sm:$0x11 pattern:$0x75316420] (!%p215_p2)  ;;  %v906_v18 = vld [vmem:[%s1037_s1 + $0x70] sm:$0xff] (!%p215_p2)   ;;  %v908_v24 = vld [vmem:[%s1037_s1 + $0x78] sm:$0xff] (!%p215_p2)  }
   0xa   : > { %v758_v16 = vld.sshfl [vmem:[%s1039_s3] sm:$0x11 pattern:$0x75316420] (!%p215_p2)  ;;  %v276_v19 = vcombine.high (!%p215_p2), %v756_v12, %v756_v12  ;;  %v282_v22 = vsub.s32 (!%p215_p2), %v279_v20, %v281_v15  ;;  %v907_v23 = vld [vmem:[%s1037_s1 + $0x30] sm:$0xff] (!%p215_p2)   ;;  %v296_v27 = vsub.s32 (!%p215_p2), 0, %v281_v15 }
   0xb   : > { %831 = vmatpush3.bf16.msra.mxu0 (!%p215_p2), %v897_v3  ;;  %877 = vmatpush3.bf16.msra.mxu1 (!%p215_p2), %v897_v3  ;;  %v328_v21 = vcombine.high (!%p215_p2), %v758_v16, %v758_v16  ;;  %v909_v33 = vld [vmem:[%s1037_s1 + $0x38] sm:$0xff] (!%p215_p2)  }
   0xc   : > { %832 = vmatprep.subr.bf16.mxu0 (!%p215_p2), %v898_v4  ;;  %870 = vmatprep.subr.bf16.mxu1 (!%p215_p2), %v898_v4  ;;  %v283_v25 = vrot.slane (!%p215_p2), %v756_v12, %v282_v22  ;;  %v290_v26 = vrot.slane (!%p215_p2), %v276_v19, %v282_v22  ;;  %v335_v28 = vrot.slane (!%p215_p2), %v758_v16, %v282_v22 }
   0xd   : > { %s1044_s15 = smov (!%p246_p3, %s751_s15), 15  ;;  %v342_v29 = vrot.slane %v328_v21, %v282_v22  ;;  %v784_v21 = vld [vmem:[%s1040_s4] ss:$0 sm:$0xff] }
   0xe   : > { %s796_s7 = sshll.u32 %s1044_s15, 3  ;;  %v292_v30 = vpack.i.b16 %v283_v25, %v283_v25  ;;  %v299_v31 = vpack.i.b16 %v290_v26, %v290_v26  ;;  %v344_v32 = vpack.i.b16 %v335_v28, %v335_v28  ;;  %s755_s22 = sshll.u32 %s1044_s15, 2 }
   0xf   : > { %833 = vmatpush3.bf16.msra.mxu0 %v899_v5  ;;  %878 = vmatpush3.bf16.msra.mxu1 %v899_v5  ;;  %s250_s14 = scalar_lea.vmem %s1036_s0, %s796_s7  ;;  %v351_v34 = vpack.i.b16 %v342_v29, %v342_v29  ;;  %s256_s26 = scalar_lea.vmem %s1042_s6, %s755_s22 }
  0x10   : > { %834 = vmatprep.subr.bf16.mxu0 %v900_v6  ;;  %871 = vmatprep.subr.bf16.mxu1 %v900_v6  ;;  %v259_v35 = vld [vmem:[%s250_s14] sm:$0xff]  ;;  %v260_v36 = vld [vmem:[%s250_s14 + $0x8] sm:$0xff]  ;;  %v297_v37 = vrot.slane %v292_v30, %v296_v27  ;;  %v304_v38 = vrot.slane %v299_v31, %v296_v27  ;;  %v349_v39 = vrot.slane %v344_v32, %v296_v27  ;;  %v261_v43 = vld [vmem:[%s250_s14 + $0x10] sm:$0xff] }
  0x11   : > { %v356_v40 = vrot.slane %v351_v34, %v296_v27  ;;  %v263_v41 = vld [vmem:[%s250_s14 + $0x20] sm:$0xff]  ;;  %v264_v42 = vld [vmem:[%s250_s14 + $0x28] sm:$0xff]  ;;  %v262_v45 = vld [vmem:[%s250_s14 + $0x18] sm:$0xff] }
  0x12   : > { %v757_v44 = vcombine.low %v297_v37, %v304_v38  ;;  %v265_v46 = vld [vmem:[%s250_s14 + $0x30] sm:$0xff]  ;;  %v266_v47 = vld [vmem:[%s250_s14 + $0x38] sm:$0xff]  ;;  %v785_v27 = vld [vmem:[%s1041_s5] ss:$0 sm:$0xff] }
  0x13   : > { %835 = vmatpush3.bf16.msra.mxu0 %v901_v7  ;;  %879 = vmatpush3.bf16.msra.mxu1 %v901_v7  ;;  %v759_v48 = vcombine.low %v349_v39, %v356_v40 }
  0x14   : > { %836 = vmatprep.subr.bf16.mxu0 %v902_v8  ;;  %872 = vmatprep.subr.bf16.mxu1 %v902_v8  ;;  %v311_v49 = vmul.bf16 %v757_v44, %v259_v35  ;;  %v312_v50 = vmul.bf16 %v757_v44, %v260_v36  ;;  %v315_v51 = vmul.bf16 %v757_v44, %v263_v41 }
  0x15   : > { %v316_v52 = vmul.bf16 %v757_v44, %v264_v42  ;;  %v313_v53 = vmul.bf16 %v757_v44, %v261_v43  ;;  %v314_v54 = vmul.bf16 %v757_v44, %v262_v45  ;;  %v317_v55 = vmul.bf16 %v757_v44, %v265_v46 }
  0x16   : > { %v318_v56 = vmul.bf16 %v757_v44, %v266_v47  ;;  %v363_v57 = vadd.bf16 %v759_v48, %v311_v49  ;;  %v364_v58 = vadd.bf16 %v759_v48, %v312_v50  ;;  %v367_v59 = vadd.bf16 %v759_v48, %v315_v51 }
  0x17   : > { %837 = vmatpush3.bf16.msra.mxu0 %v903_v10  ;;  %880 = vmatpush3.bf16.msra.mxu1 %v903_v10  ;;  %v368_v60 = vadd.bf16 %v759_v48, %v316_v52  ;;  %v365_v61 = vadd.bf16 %v759_v48, %v313_v53  ;;  %v366_v62 = vadd.bf16 %v759_v48, %v314_v54 }
  0x18   : > { %838 = vmatprep.subr.bf16.mxu0 %v904_v11  ;;  %873 = vmatprep.subr.bf16.mxu1 %v904_v11  ;;  %v369_v63 = vadd.bf16 %v759_v48, %v317_v55  ;;  %v370_v0 = vadd.bf16 %v759_v48, %v318_v56  ;;  %v371_v2 = vmax.bf16 %v919_v1, %v363_v57 }
  0x19   : > { %v372_v3 = vmax.bf16 %v919_v1, %v364_v58  ;;  %v375_v4 = vmax.bf16 %v919_v1, %v367_v59  ;;  %v376_v5 = vmax.bf16 %v919_v1, %v368_v60  ;;  %v373_v6 = vmax.bf16 %v919_v1, %v365_v61 }
  0x1a   : > { %v374_v7 = vmax.bf16 %v919_v1, %v366_v62  ;;  %v377_v8 = vmax.bf16 %v919_v1, %v369_v63  ;;  %v378_v9 = vmax.bf16 %v919_v1, %v370_v0 }
  0x1b   : > { %839 = vmatpush3.bf16.msra.mxu0 %v905_v17  ;;  %881 = vmatpush3.bf16.msra.mxu1 %v905_v17  ;;  %v761_v10 = vcombine.high %v371_v2, %v372_v3  ;;  %v765_v11 = vcombine.high %v375_v4, %v376_v5  ;;  %v760_v12 = vcombine.low %v371_v2, %v372_v3 }
  0x1c   : > { %840 = vmatprep.subr.bf16.mxu0 %v906_v18  ;;  %874 = vmatprep.subr.bf16.mxu1 %v906_v18  ;;  %v764_v13 = vcombine.low %v375_v4, %v376_v5  ;;  %v763_v14 = vcombine.high %v373_v6, %v374_v7  ;;  %v767_v15 = vcombine.high %v377_v8, %v378_v9 }
  0x1d   : > { %579 = vmatprep.mubr.bf16.mxu0 %v761_v10  ;;  %595 = vmatprep.mubr.bf16.mxu1 %v765_v11  ;;  %v762_v16 = vcombine.low %v373_v6, %v374_v7  ;;  %v766_v17 = vcombine.low %v377_v8, %v378_v9 }
  0x1f   : > { %841 = vmatpush3.bf16.msra.mxu0 %v907_v23  ;;  %882 = vmatpush3.bf16.msra.mxu1 %v907_v23 }
  0x20   : > { %842 = vmatprep.subr.bf16.mxu0 %v908_v24  ;;  %875 = vmatprep.subr.bf16.mxu1 %v908_v24 }
  0x23   : > { %843 = vmatpush3.bf16.msra.mxu0 %v909_v33  ;;  %883 = vmatpush3.bf16.msra.mxu1 %v909_v33 }
  0x26   : > { %580 = vmatmul.mubr.bf16.vlgmr.msra.gmra.mrb[0].mxu0 %v760_v12  ;;  %596 = vmatmul.mubr.bf16.vlgmr.msra.gmra.mrb[0].mxu1 %v764_v13 }
  0x27   : > { %587 = vmatprep.mubr.bf16.mxu0 %v763_v14  ;;  %603 = vmatprep.mubr.bf16.mxu1 %v767_v15 }
  0x2e   : > { %588 = vmatmul.mubr.bf16.gmra.mrb[4].mxu0 %v762_v16  ;;  %604 = vmatmul.mubr.bf16.gmra.mrb[4].mxu1 %v766_v17 }
  0xf9   : > { %v844_v18 = vpop.f32.mrb[0].mxu0  ;;  %v856_v19 = vpop.f32.mrb[0].mxu1 }
  0xfa   : > { %v845_v20 = vpop.f32.mrb[1].mxu0  ;;  %v857_v22 = vpop.f32.mrb[1].mxu1 }
  0xfb   : > { %v846_v23 = vadd.f32 %v845_v20, %v844_v18  ;;  %v858_v24 = vadd.f32 %v857_v22, %v856_v19  ;;  %v847_v25 = vpop.f32.mrb[2].mxu0  ;;  %v859_v26 = vpop.f32.mrb[2].mxu1 }
  0xfc   : > { %v848_v28 = vpop.f32.mrb[3].mxu0  ;;  %v860_v29 = vpop.f32.mrb[3].mxu1 }
  0xfd   : > { %v619_v30 = vmul.f32 %v846_v23, %v784_v21  ;;  %v623_v31 = vmul.f32 %v858_v24, %v784_v21  ;;  %v849_v32 = vadd.f32 %v848_v28, %v847_v25  ;;  %v861_v33 = vadd.f32 %v860_v29, %v859_v26 }
  0xff   : > { %v634_v34 = vadd.f32 %v785_v27, %v619_v30  ;;  %v638_v35 = vadd.f32 %v785_v27, %v623_v31  ;;  %v620_v36 = vmul.f32 %v849_v32, %v784_v21  ;;  %v624_v37 = vmul.f32 %v861_v33, %v784_v21 }
 0x101   : > { %v635_v38 = vadd.f32 %v785_v27, %v620_v36  ;;  %v639_v39 = vadd.f32 %v785_v27, %v624_v37  ;;  %v850_v40 = vpop.f32.mrb[4].mxu0  ;;  %v862_v41 = vpop.f32.mrb[4].mxu1  ;;  %v642_v42 = vmax.f32 %v634_v34, 0.0  ;;  %v646_v43 = vmax.f32 %v638_v35, 0.0 }
 0x102   : > { %v851_v44 = vpop.f32.mrb[5].mxu0  ;;  %v863_v45 = vpop.f32.mrb[5].mxu1 }
 0x103   : > { %v643_v46 = vmax.f32 %v635_v38, 0.0  ;;  %v647_v47 = vmax.f32 %v639_v39, 0.0  ;;  %v852_v48 = vadd.f32 %v851_v44, %v850_v40  ;;  %v864_v49 = vadd.f32 %v863_v45, %v862_v41  ;;  %v853_v50 = vpop.f32.mrb[6].mxu0  ;;  %v865_v51 = vpop.f32.mrb[6].mxu1 }
 0x104   : > { %v854_v52 = vpop.f32.mrb[7].mxu0  ;;  %v866_v53 = vpop.f32.mrb[7].mxu1 }
 0x105   : > { %v808_v54 = vpack.c.bf16 %v643_v46, %v642_v42  ;;  %v818_v55 = vpack.c.bf16 %v647_v47, %v646_v43  ;;  %v621_v56 = vmul.f32 %v852_v48, %v784_v21  ;;  %v625_v57 = vmul.f32 %v864_v49, %v784_v21 }
 0x106   : > { %v855_v58 = vadd.f32 %v854_v52, %v853_v50  ;;  %v867_v59 = vadd.f32 %v866_v53, %v865_v51 }
 0x107   : > { %809 = vst [vmem:[%s256_s26] sm:$0xff] %v808_v54   ;;  %826 = vst [vmem:[%s256_s26 + $0x10] sm:$0xff] %v818_v55   ;;  %v636_v60 = vadd.f32 %v785_v27, %v621_v56  ;;  %v640_v61 = vadd.f32 %v785_v27, %v625_v57 }
 0x108   : > { %v622_v62 = vmul.f32 %v855_v58, %v784_v21  ;;  %v626_v63 = vmul.f32 %v867_v59, %v784_v21 }
 0x109   : > { %v644_v2 = vmax.f32 %v636_v60, 0.0  ;;  %v648_v3 = vmax.f32 %v640_v61, 0.0 }
 0x10a   : > { %v637_v0 = vadd.f32 %v785_v27, %v622_v62  ;;  %v641_v1 = vadd.f32 %v785_v27, %v626_v63 }
 0x10c   : > { %v645_v4 = vmax.f32 %v637_v0, 0.0  ;;  %v649_v5 = vmax.f32 %v641_v1, 0.0 }
 0x10e   : > { %v813_v6 = vpack.c.bf16 %v645_v4, %v644_v2  ;;  %v823_v7 = vpack.c.bf16 %v649_v5, %v648_v3 }
 0x110   : > { %825 = vst [vmem:[%s256_s26 + $0x8] sm:$0xff] %v813_v6   ;;  %827 = vst [vmem:[%s256_s26 + $0x18] sm:$0xff] %v823_v7  }
 0x111 PF: > { %s16_s21 = sadd.s32 1, %s916_s21  }
 0x112   : > { %p13_p4 = scmp.ge.s32.totalorder %s16_s21, 4  }
 0x114   :  { %15 = sbr.rel (!%p13_p4) target bundleno = 1 (0x1), region = 74 }

// kernel: densenet121_forward.122
= control target key start
LH: loop header
LB: loop body
LE: loop exit
PB: predicated region body
PF: predicated region fallthrough
CT: control target
= control target key end

     0   :  { %s1261_s15 = smov 0   ;;  %s1502_s0 = inlined_call_operand.vmem [shape: bf16[512,147], index: 0, kind: input, shape index: {}]   ;;  %s1503_s1 = inlined_call_operand.vmem [shape: bf16[147,64], index: 1, kind: input, shape index: {}]   ;;  %s1504_s2 = inlined_call_operand.vmem [shape: f32[1,64], index: 2, kind: input, shape index: {}]   ;;  %s1505_s3 = inlined_call_operand.vmem [shape: f32[1,64], index: 3, kind: input, shape index: {}]   ;;  %s1506_s4 = inlined_call_operand.vmem [shape: bf16[512,64], index: 4, kind: output, shape index: {}]  }
   0x1 LB: > { %s1001_s16 = sadd.s32 4294967295, %s1232_s15   ;;  %p1005_p0 = scmp.ge.s32.totalorder %s1232_s15, 1  ;;  %s1232_s15 = sphi %s1261_s15, %s14_s15  }
   0x2   : > { %p164_p1 = scmp.lt.s32.totalorder %s1232_s15, 3 }
   0x4   : > { %p165_p2 = pnand %p1005_p0, %p164_p1 }
   0x5   : > { %v1168_v0 = vld [vmem:[%s1503_s1] sm:$0xff] (!%p165_p2)   ;;  %v1234_v1 = vmov (!%p165_p2), 0   ;;  %v1169_v2 = vld [vmem:[%s1503_s1 + $0x8] sm:$0xff] (!%p165_p2)   ;;  %v1170_v3 = vld [vmem:[%s1503_s1 + $0x10] sm:$0xff] (!%p165_p2)   ;;  %s1006_s23 = sshll.u32 (!%p165_p2), %s1001_s16, 5  ;;  %vm457_vm0 = vcmask (!%p165_p2), 154624  }
   0x6   : > { %168 = sbr.rel (%p165_p2) target bundleno = 325 (0x145), region = 36  ;;  %513 = vmatprep.subr.bf16.mxu0 (!%p165_p2), %v1234_v1  ;;  %1138 = vmatprep.subr.bf16.mxu1 (!%p165_p2), %v1234_v1  ;;  %p192_p3 = scmp.lt.s32.totalorder (!%p165_p2), %s1006_s23, 63  ;;  %v1171_v4 = vld [vmem:[%s1503_s1 + $0x18] sm:$0xff] (!%p165_p2)   ;;  %v1172_v5 = vld [vmem:[%s1503_s1 + $0x20] sm:$0xff] (!%p165_p2)   ;;  %v1173_v8 = vld [vmem:[%s1503_s1 + $0x28] sm:$0xff] (!%p165_p2)   ;;  %vm506_vm1 = vcmask (!%p165_p2), 1040384  }
   0x7   : > { %514 = vmatpush1.bf16.msra.mxu0 (!%p165_p2), %v1168_v0  ;;  %1148 = vmatpush1.bf16.msra.mxu1 (!%p165_p2), %v1168_v0  ;;  %v1174_v9 = vld [vmem:[%s1503_s1 + $0x30] sm:$0xff] (!%p165_p2)   ;;  %v1175_v10 = vld [vmem:[%s1503_s1 + $0x38] sm:$0xff] (!%p165_p2)   ;;  %vm507_vm2 = vcmask (!%p165_p2), 1041408   ;;  %v1235_v11 = vmov (!%p165_p2), 65535   ;;  %v1176_v13 = vld [vmem:[%s1503_s1 + $0x40] sm:$0xff] (!%p165_p2)   ;;  %vm912_vm3 = vcmask (!%p165_p2), 519168  }
   0x8   : > { %515 = vmatprep.subr.bf16.mxu0 (!%p165_p2), %v1234_v1  ;;  %1139 = vmatprep.subr.bf16.mxu1 (!%p165_p2), %v1234_v1  ;;  %v508_v12 = vsel (!%p165_p2), %vm506_vm1, 4294967295, %v1235_v11  ;;  %v1177_v14 = vld [vmem:[%s1503_s1 + $0x48] ss:$0 sps:$4 sm:$0x33] (!%p165_p2)   ;;  %v1358_v47 = vld [vmem:[%s1504_s2] ss:$0 sm:$0xff] (!%p165_p2) }
   0x9   : > { %v509_v15 = vsel (!%p165_p2), %vm507_vm2, %v508_v12, 0  ;;  %v1363_v49 = vld [vmem:[%s1505_s3] ss:$0 sm:$0xff] (!%p165_p2) }
   0xa   : > { %v511_v16 = vand.u32 (!%p165_p2), %v1177_v14, %v509_v15 }
   0xb   : > { %516 = vmatpush1.bf16.msra.mxu0 (!%p165_p2), %v1169_v2  ;;  %1149 = vmatpush1.bf16.msra.mxu1 (!%p165_p2), %v1169_v2 }
   0xc   : > { %517 = vmatprep.subr.bf16.mxu0 (!%p165_p2), %v1234_v1  ;;  %1140 = vmatprep.subr.bf16.mxu1 (!%p165_p2), %v1234_v1 }
   0xd   : > { %s1508_s23 = smov (!%p192_p3, %s1006_s23), 63 }
   0xe   : > { %s1105_s26 = sshll.u32 %s1508_s23, 3  ;;  %s1010_s21 = sshll.u32 %s1508_s23, 2 }
   0xf   : > { %518 = vmatpush1.bf16.msra.mxu0 %v1170_v3  ;;  %1150 = vmatpush1.bf16.msra.mxu1 %v1170_v3  ;;  %s1287_s29 = scalar_lea.vmem %s1502_s0, %s1105_s26  ;;  %s1377_s23 = scalar_lea.vmem %s1506_s4, %s1010_s21 }
  0x10   : > { %519 = vmatprep.subr.bf16.mxu0 %v1234_v1  ;;  %1141 = vmatprep.subr.bf16.mxu1 %v1234_v1  ;;  %v1180_v6 = vld [vmem:[%s1287_s29 + $0x4] ss:$8 sps:$4 sm:$0xff]   ;;  %v1178_v17 = vld [vmem:[%s1287_s29] ss:$8 sps:$4 sm:$0xff]   ;;  %v1184_v19 = vld [vmem:[%s1287_s29 + $0x14] ss:$8 sps:$4 sm:$0xff]  }
  0x11   : > { %v1183_v7 = vld [vmem:[%s1287_s29 + $0x84] ss:$8 sps:$4 sm:$0xff]   ;;  %1053 = vmatprep.mubr.msk.bf16.mxu0 %vm457_vm0, %v1180_v6  ;;  %v1181_v18 = vld [vmem:[%s1287_s29 + $0x80] ss:$8 sps:$4 sm:$0xff]   ;;  %v1186_v20 = vld [vmem:[%s1287_s29 + $0x94] ss:$8 sps:$4 sm:$0xff]  }
  0x12   : > { %1061 = vmatprep.mubr.msk.bf16.mxu1 %vm457_vm0, %v1183_v7  ;;  %v1188_v21 = vld [vmem:[%s1287_s29 + $0x10] ss:$8 sps:$4 sm:$0xff]   ;;  %v1190_v23 = vld [vmem:[%s1287_s29 + $0x24] ss:$8 sps:$4 sm:$0xff]   ;;  %v1194_v25 = vld [vmem:[%s1287_s29 + $0x20] ss:$8 sps:$4 sm:$0xff]  }
  0x13   : > { %520 = vmatpush1.bf16.msra.mxu0 %v1171_v4  ;;  %1151 = vmatpush1.bf16.msra.mxu1 %v1171_v4  ;;  %v1189_v22 = vld [vmem:[%s1287_s29 + $0x90] ss:$8 sps:$4 sm:$0xff]   ;;  %v1192_v24 = vld [vmem:[%s1287_s29 + $0xa4] ss:$8 sps:$4 sm:$0xff]   ;;  %v1195_v26 = vld [vmem:[%s1287_s29 + $0xa0] ss:$8 sps:$4 sm:$0xff]  }
  0x14   : > { %521 = vmatprep.subr.bf16.mxu0 %v1234_v1  ;;  %1142 = vmatprep.subr.bf16.mxu1 %v1234_v1  ;;  %v1196_v27 = vld [vmem:[%s1287_s29 + $0x34] ss:$8 sps:$4 sm:$0xff]   ;;  %v1200_v29 = vld [vmem:[%s1287_s29 + $0x30] ss:$8 sps:$4 sm:$0xff]   ;;  %v1202_v31 = vld [vmem:[%s1287_s29 + $0x44] ss:$8 sps:$4 sm:$0xff]  }
  0x15   : > { %v1198_v28 = vld [vmem:[%s1287_s29 + $0xb4] ss:$8 sps:$4 sm:$0xff]   ;;  %v1201_v30 = vld [vmem:[%s1287_s29 + $0xb0] ss:$8 sps:$4 sm:$0xff]   ;;  %v1204_v32 = vld [vmem:[%s1287_s29 + $0xc4] ss:$8 sps:$4 sm:$0xff]  }
  0x16   : > { %v1206_v33 = vld [vmem:[%s1287_s29 + $0x40] ss:$8 sps:$4 sm:$0xff]   ;;  %v1208_v35 = vld [vmem:[%s1287_s29 + $0x54] ss:$8 sps:$4 sm:$0xff]   ;;  %v1212_v37 = vld [vmem:[%s1287_s29 + $0x50] ss:$8 sps:$4 sm:$0xff]  }
  0x17   : > { %522 = vmatpush1.bf16.msra.mxu0 %v1172_v5  ;;  %1152 = vmatpush1.bf16.msra.mxu1 %v1172_v5  ;;  %v1207_v34 = vld [vmem:[%s1287_s29 + $0xc0] ss:$8 sps:$4 sm:$0xff]   ;;  %v1210_v36 = vld [vmem:[%s1287_s29 + $0xd4] ss:$8 sps:$4 sm:$0xff]   ;;  %v1213_v38 = vld [vmem:[%s1287_s29 + $0xd0] ss:$8 sps:$4 sm:$0xff]  }
  0x18   : > { %523 = vmatprep.subr.bf16.mxu0 %v1234_v1  ;;  %1143 = vmatprep.subr.bf16.mxu1 %v1234_v1  ;;  %v1214_v39 = vld [vmem:[%s1287_s29 + $0x64] ss:$8 sps:$4 sm:$0xff]   ;;  %v1218_v41 = vld [vmem:[%s1287_s29 + $0x60] ss:$8 sps:$4 sm:$0xff]   ;;  %v1220_v43 = vld [vmem:[%s1287_s29 + $0x74] ss:$8 sps:$4 sm:$0xff]  }
  0x19   : > { %v1216_v40 = vld [vmem:[%s1287_s29 + $0xe4] ss:$8 sps:$4 sm:$0xff]   ;;  %v1219_v42 = vld [vmem:[%s1287_s29 + $0xe0] ss:$8 sps:$4 sm:$0xff]   ;;  %v1222_v44 = vld [vmem:[%s1287_s29 + $0xf4] ss:$8 sps:$4 sm:$0xff]  }
  0x1a   : > { %v1224_v45 = vld [vmem:[%s1287_s29 + $0x70] ss:$8 sps:$4 sm:$0xff]  }
  0x1b   : > { %524 = vmatpush1.bf16.msra.mxu0 %v1173_v8  ;;  %1153 = vmatpush1.bf16.msra.mxu1 %v1173_v8  ;;  %v1225_v46 = vld [vmem:[%s1287_s29 + $0xf0] ss:$8 sps:$4 sm:$0xff]  }
  0x1c   : > { %525 = vmatprep.subr.bf16.mxu0 %v1234_v1  ;;  %1144 = vmatprep.subr.bf16.mxu1 %v1234_v1 }
  0x1f   : > { %526 = vmatpush1.bf16.msra.mxu0 %v1174_v9  ;;  %1154 = vmatpush1.bf16.msra.mxu1 %v1174_v9 }
  0x20   : > { %527 = vmatprep.subr.bf16.mxu0 %v1234_v1  ;;  %1145 = vmatprep.subr.bf16.mxu1 %v1234_v1 }
  0x23   : > { %528 = vmatpush1.bf16.msra.mxu0 %v1175_v10  ;;  %1155 = vmatpush1.bf16.msra.mxu1 %v1175_v10 }
  0x24   : > { %529 = vmatprep.subr.bf16.mxu0 %v1234_v1  ;;  %1146 = vmatprep.subr.bf16.mxu1 %v1234_v1 }
  0x27   : > { %530 = vmatpush1.bf16.msra.mxu0 %v1176_v13  ;;  %1156 = vmatpush1.bf16.msra.mxu1 %v1176_v13 }
  0x28   : > { %531 = vmatprep.subr.bf16.mxu0 %v1234_v1  ;;  %1147 = vmatprep.subr.bf16.mxu1 %v1234_v1 }
  0x2b   : > { %532 = vmatpush1.bf16.msra.mxu0 %v511_v16  ;;  %1157 = vmatpush1.bf16.msra.mxu1 %v511_v16 }
  0x2e   : > { %546 = vmatmul.mubr.bf16.vlgmr.msra.gmra.mrb[0].mxu0 %v1178_v17  ;;  %610 = vmatmul.mubr.bf16.vlgmr.msra.gmra.mrb[0].mxu1 %v1181_v18 }
  0x2f   : > { %1054 = vmatprep.mubr.msk.bf16.mxu0 %vm457_vm0, %v1184_v19  ;;  %1062 = vmatprep.mubr.msk.bf16.mxu1 %vm457_vm0, %v1186_v20 }
  0x36   : > { %554 = vmatmul.mubr.bf16.gmra.mrb[4].mxu0 %v1188_v21  ;;  %618 = vmatmul.mubr.bf16.gmra.mrb[4].mxu1 %v1189_v22 }
  0x37   : > { %1055 = vmatprep.mubr.msk.bf16.mxu0 %vm457_vm0, %v1190_v23  ;;  %1063 = vmatprep.mubr.msk.bf16.mxu1 %vm457_vm0, %v1192_v24 }
  0x3e   : > { %562 = vmatmul.mubr.bf16.gmra.mrb[8].mxu0 %v1194_v25  ;;  %626 = vmatmul.mubr.bf16.gmra.mrb[8].mxu1 %v1195_v26 }
  0x3f   : > { %1056 = vmatprep.mubr.msk.bf16.mxu0 %vm457_vm0, %v1196_v27  ;;  %1064 = vmatprep.mubr.msk.bf16.mxu1 %vm457_vm0, %v1198_v28 }
  0x46   : > { %570 = vmatmul.mubr.bf16.gmra.mrb[12].mxu0 %v1200_v29  ;;  %634 = vmatmul.mubr.bf16.gmra.mrb[12].mxu1 %v1201_v30 }
  0x47   : > { %1057 = vmatprep.mubr.msk.bf16.mxu0 %vm457_vm0, %v1202_v31  ;;  %1065 = vmatprep.mubr.msk.bf16.mxu1 %vm457_vm0, %v1204_v32 }
  0x4e   : > { %578 = vmatmul.mubr.bf16.gmra.mrb[16].mxu0 %v1206_v33  ;;  %642 = vmatmul.mubr.bf16.gmra.mrb[16].mxu1 %v1207_v34 }
  0x4f   : > { %1058 = vmatprep.mubr.msk.bf16.mxu0 %vm457_vm0, %v1208_v35  ;;  %1066 = vmatprep.mubr.msk.bf16.mxu1 %vm457_vm0, %v1210_v36 }
  0x56   : > { %586 = vmatmul.mubr.bf16.gmra.mrb[20].mxu0 %v1212_v37  ;;  %650 = vmatmul.mubr.bf16.gmra.mrb[20].mxu1 %v1213_v38 }
  0x57   : > { %1059 = vmatprep.mubr.msk.bf16.mxu0 %vm457_vm0, %v1214_v39  ;;  %1067 = vmatprep.mubr.msk.bf16.mxu1 %vm457_vm0, %v1216_v40 }
  0x5e   : > { %594 = vmatmul.mubr.bf16.gmra.mrb[24].mxu0 %v1218_v41  ;;  %658 = vmatmul.mubr.bf16.gmra.mrb[24].mxu1 %v1219_v42 }
  0x5f   : > { %1060 = vmatprep.mubr.msk.bf16.mxu0 %vm457_vm0, %v1220_v43  ;;  %1068 = vmatprep.mubr.msk.bf16.mxu1 %vm457_vm0, %v1222_v44 }
  0x66   : > { %602 = vmatmul.mubr.bf16.gmra.mrb[28].mxu0 %v1224_v45  ;;  %666 = vmatmul.mubr.bf16.gmra.mrb[28].mxu1 %v1225_v46 }
 0x101   : > { %v547_v48 = vpop.f32.mrb[0].mxu0  ;;  %v611_v50 = vpop.f32.mrb[0].mxu1 }
 0x102   : > { %v681_v51 = vmul.f32 %v1358_v47, %v547_v48  ;;  %v697_v52 = vmul.f32 %v1358_v47, %v611_v50  ;;  %v549_v53 = vpop.f32.mrb[1].mxu0  ;;  %v613_v54 = vpop.f32.mrb[1].mxu1 }
 0x103   : > { %v550_v55 = vpop.f32.mrb[2].mxu0  ;;  %v614_v56 = vpop.f32.mrb[2].mxu1 }
 0x104   : > { %v720_v57 = vadd.f32 %v1363_v49, %v681_v51  ;;  %v736_v58 = vadd.f32 %v1363_v49, %v697_v52  ;;  %v682_v59 = vmul.f32 %v1358_v47, %v550_v55  ;;  %v698_v60 = vmul.f32 %v1358_v47, %v614_v56  ;;  %v552_v61 = vpop.f32.mrb[3].mxu0  ;;  %v616_v62 = vpop.f32.mrb[3].mxu1 }
 0x106   : > { %v752_v63 = vmax.f32 %v720_v57, 0.0  ;;  %v768_v0 = vmax.f32 %v736_v58, 0.0  ;;  %v721_v1 = vadd.f32 %v1363_v49, %v682_v59  ;;  %v737_v2 = vadd.f32 %v1363_v49, %v698_v60 }
 0x108   : > { %v1106_v3 = vpack.c.bf16 %v752_v63, %v752_v63  ;;  %v1122_v4 = vpack.c.bf16 %v768_v0, %v768_v0  ;;  %v753_v5 = vmax.f32 %v721_v1, 0.0  ;;  %v769_v6 = vmax.f32 %v737_v2, 0.0 }
 0x109   : > { %v555_v7 = vpop.f32.mrb[4].mxu0  ;;  %v619_v8 = vpop.f32.mrb[4].mxu1 }
 0x10a   : > { %913 = vst.msk [vmem:[%s1377_s23] sm:$0xf] %vm912_vm3, %v1106_v3  ;;  %929 = vst.msk [vmem:[%s1377_s23 + $0x40] sm:$0xf] %vm912_vm3, %v1122_v4  ;;  %v1107_v9 = vpack.c.bf16 %v753_v5, %v753_v5  ;;  %v1123_v10 = vpack.c.bf16 %v769_v6, %v769_v6  ;;  %v683_v11 = vmul.f32 %v1358_v47, %v555_v7  ;;  %v557_v13 = vpop.f32.mrb[5].mxu0  ;;  %v621_v14 = vpop.f32.mrb[5].mxu1 }
 0x10b   : > { %v699_v12 = vmul.f32 %v1358_v47, %v619_v8  ;;  %v558_v15 = vpop.f32.mrb[6].mxu0  ;;  %v622_v16 = vpop.f32.mrb[6].mxu1 }
 0x10c   : > { %914 = vst.msk [vmem:[%s1377_s23 + $0x4] sm:$0xf] %vm912_vm3, %v1107_v9  ;;  %930 = vst.msk [vmem:[%s1377_s23 + $0x44] sm:$0xf] %vm912_vm3, %v1123_v10  ;;  %v722_v17 = vadd.f32 %v1363_v49, %v683_v11  ;;  %v684_v19 = vmul.f32 %v1358_v47, %v558_v15  ;;  %v700_v20 = vmul.f32 %v1358_v47, %v622_v16  ;;  %v560_v21 = vpop.f32.mrb[7].mxu0  ;;  %v624_v22 = vpop.f32.mrb[7].mxu1 }
 0x10d   : > { %v738_v18 = vadd.f32 %v1363_v49, %v699_v12 }
 0x10e   : > { %v754_v23 = vmax.f32 %v722_v17, 0.0  ;;  %v723_v25 = vadd.f32 %v1363_v49, %v684_v19  ;;  %v739_v26 = vadd.f32 %v1363_v49, %v700_v20 }
 0x10f   : > { %v770_v24 = vmax.f32 %v738_v18, 0.0 }
 0x110   : > { %v1108_v27 = vpack.c.bf16 %v754_v23, %v754_v23  ;;  %v755_v29 = vmax.f32 %v723_v25, 0.0  ;;  %v771_v30 = vmax.f32 %v739_v26, 0.0 }
 0x111   : > { %v1124_v28 = vpack.c.bf16 %v770_v24, %v770_v24  ;;  %v563_v31 = vpop.f32.mrb[8].mxu0  ;;  %v627_v32 = vpop.f32.mrb[8].mxu1 }
 0x112   : > { %915 = vst.msk [vmem:[%s1377_s23 + $0x8] sm:$0xf] %vm912_vm3, %v1108_v27  ;;  %v1109_v33 = vpack.c.bf16 %v755_v29, %v755_v29  ;;  %v1125_v34 = vpack.c.bf16 %v771_v30, %v771_v30  ;;  %v685_v35 = vmul.f32 %v1358_v47, %v563_v31  ;;  %v701_v36 = vmul.f32 %v1358_v47, %v627_v32  ;;  %v565_v37 = vpop.f32.mrb[9].mxu0  ;;  %v629_v38 = vpop.f32.mrb[9].mxu1 }
 0x113   : > { %931 = vst.msk [vmem:[%s1377_s23 + $0x48] sm:$0xf] %vm912_vm3, %v1124_v28  ;;  %v566_v39 = vpop.f32.mrb[10].mxu0  ;;  %v630_v40 = vpop.f32.mrb[10].mxu1 }
 0x114   : > { %916 = vst.msk [vmem:[%s1377_s23 + $0xc] sm:$0xf] %vm912_vm3, %v1109_v33  ;;  %932 = vst.msk [vmem:[%s1377_s23 + $0x4c] sm:$0xf] %vm912_vm3, %v1125_v34  ;;  %v724_v41 = vadd.f32 %v1363_v49, %v685_v35  ;;  %v740_v42 = vadd.f32 %v1363_v49, %v701_v36  ;;  %v686_v43 = vmul.f32 %v1358_v47, %v566_v39  ;;  %v568_v45 = vpop.f32.mrb[11].mxu0  ;;  %v632_v46 = vpop.f32.mrb[11].mxu1 }
 0x115   : > { %v702_v44 = vmul.f32 %v1358_v47, %v630_v40 }
 0x116   : > { %v756_v48 = vmax.f32 %v724_v41, 0.0  ;;  %v772_v50 = vmax.f32 %v740_v42, 0.0  ;;  %v725_v51 = vadd.f32 %v1363_v49, %v686_v43 }
 0x117   : > { %v741_v52 = vadd.f32 %v1363_v49, %v702_v44 }
 0x118   : > { %v1110_v53 = vpack.c.bf16 %v756_v48, %v756_v48  ;;  %v1126_v54 = vpack.c.bf16 %v772_v50, %v772_v50  ;;  %v757_v55 = vmax.f32 %v725_v51, 0.0 }
 0x119   : > { %v773_v56 = vmax.f32 %v741_v52, 0.0  ;;  %v571_v57 = vpop.f32.mrb[12].mxu0  ;;  %v635_v58 = vpop.f32.mrb[12].mxu1 }
 0x11a   : > { %917 = vst.msk [vmem:[%s1377_s23 + $0x10] sm:$0xf] %vm912_vm3, %v1110_v53  ;;  %933 = vst.msk [vmem:[%s1377_s23 + $0x50] sm:$0xf] %vm912_vm3, %v1126_v54  ;;  %v1111_v59 = vpack.c.bf16 %v757_v55, %v757_v55  ;;  %v687_v61 = vmul.f32 %v1358_v47, %v571_v57  ;;  %v703_v62 = vmul.f32 %v1358_v47, %v635_v58  ;;  %v573_v63 = vpop.f32.mrb[13].mxu0  ;;  %v637_v0 = vpop.f32.mrb[13].mxu1 }
 0x11b   : > { %v1127_v60 = vpack.c.bf16 %v773_v56, %v773_v56  ;;  %v574_v1 = vpop.f32.mrb[14].mxu0  ;;  %v638_v2 = vpop.f32.mrb[14].mxu1 }
 0x11c   : > { %918 = vst.msk [vmem:[%s1377_s23 + $0x14] sm:$0xf] %vm912_vm3, %v1111_v59  ;;  %v726_v3 = vadd.f32 %v1363_v49, %v687_v61  ;;  %v742_v4 = vadd.f32 %v1363_v49, %v703_v62  ;;  %v688_v5 = vmul.f32 %v1358_v47, %v574_v1  ;;  %v704_v6 = vmul.f32 %v1358_v47, %v638_v2  ;;  %v576_v7 = vpop.f32.mrb[15].mxu0  ;;  %v640_v8 = vpop.f32.mrb[15].mxu1 }
 0x11d   : > { %934 = vst.msk [vmem:[%s1377_s23 + $0x54] sm:$0xf] %vm912_vm3, %v1127_v60 }
 0x11e   : > { %v758_v9 = vmax.f32 %v726_v3, 0.0  ;;  %v774_v10 = vmax.f32 %v742_v4, 0.0  ;;  %v727_v11 = vadd.f32 %v1363_v49, %v688_v5  ;;  %v743_v12 = vadd.f32 %v1363_v49, %v704_v6 }
 0x120   : > { %v1112_v13 = vpack.c.bf16 %v758_v9, %v758_v9  ;;  %v1128_v14 = vpack.c.bf16 %v774_v10, %v774_v10  ;;  %v759_v15 = vmax.f32 %v727_v11, 0.0  ;;  %v775_v16 = vmax.f32 %v743_v12, 0.0 }
 0x121   : > { %v579_v17 = vpop.f32.mrb[16].mxu0  ;;  %v643_v18 = vpop.f32.mrb[16].mxu1 }
 0x122   : > { %919 = vst.msk [vmem:[%s1377_s23 + $0x18] sm:$0xf] %vm912_vm3, %v1112_v13  ;;  %935 = vst.msk [vmem:[%s1377_s23 + $0x58] sm:$0xf] %vm912_vm3, %v1128_v14  ;;  %v1113_v19 = vpack.c.bf16 %v759_v15, %v759_v15  ;;  %v1129_v20 = vpack.c.bf16 %v775_v16, %v775_v16  ;;  %v689_v21 = vmul.f32 %v1358_v47, %v579_v17  ;;  %v581_v23 = vpop.f32.mrb[17].mxu0  ;;  %v645_v24 = vpop.f32.mrb[17].mxu1 }
 0x123   : > { %v705_v22 = vmul.f32 %v1358_v47, %v643_v18  ;;  %v582_v25 = vpop.f32.mrb[18].mxu0  ;;  %v646_v26 = vpop.f32.mrb[18].mxu1 }
 0x124   : > { %920 = vst.msk [vmem:[%s1377_s23 + $0x1c] sm:$0xf] %vm912_vm3, %v1113_v19  ;;  %936 = vst.msk [vmem:[%s1377_s23 + $0x5c] sm:$0xf] %vm912_vm3, %v1129_v20  ;;  %v728_v27 = vadd.f32 %v1363_v49, %v689_v21  ;;  %v690_v29 = vmul.f32 %v1358_v47, %v582_v25  ;;  %v706_v30 = vmul.f32 %v1358_v47, %v646_v26  ;;  %v584_v31 = vpop.f32.mrb[19].mxu0  ;;  %v648_v32 = vpop.f32.mrb[19].mxu1 }
 0x125   : > { %v744_v28 = vadd.f32 %v1363_v49, %v705_v22 }
 0x126   : > { %v760_v33 = vmax.f32 %v728_v27, 0.0  ;;  %v729_v35 = vadd.f32 %v1363_v49, %v690_v29  ;;  %v745_v36 = vadd.f32 %v1363_v49, %v706_v30 }
 0x127   : > { %v776_v34 = vmax.f32 %v744_v28, 0.0 }
 0x128   : > { %v1114_v37 = vpack.c.bf16 %v760_v33, %v760_v33  ;;  %v761_v39 = vmax.f32 %v729_v35, 0.0  ;;  %v777_v40 = vmax.f32 %v745_v36, 0.0 }
 0x129   : > { %v1130_v38 = vpack.c.bf16 %v776_v34, %v776_v34  ;;  %v587_v41 = vpop.f32.mrb[20].mxu0  ;;  %v651_v42 = vpop.f32.mrb[20].mxu1 }
 0x12a   : > { %921 = vst.msk [vmem:[%s1377_s23 + $0x20] sm:$0xf] %vm912_vm3, %v1114_v37  ;;  %v1115_v43 = vpack.c.bf16 %v761_v39, %v761_v39  ;;  %v1131_v44 = vpack.c.bf16 %v777_v40, %v777_v40  ;;  %v691_v45 = vmul.f32 %v1358_v47, %v587_v41  ;;  %v707_v46 = vmul.f32 %v1358_v47, %v651_v42  ;;  %v589_v48 = vpop.f32.mrb[21].mxu0  ;;  %v653_v50 = vpop.f32.mrb[21].mxu1 }
 0x12b   : > { %937 = vst.msk [vmem:[%s1377_s23 + $0x60] sm:$0xf] %vm912_vm3, %v1130_v38  ;;  %v590_v51 = vpop.f32.mrb[22].mxu0  ;;  %v654_v52 = vpop.f32.mrb[22].mxu1 }
 0x12c   : > { %922 = vst.msk [vmem:[%s1377_s23 + $0x24] sm:$0xf] %vm912_vm3, %v1115_v43  ;;  %938 = vst.msk [vmem:[%s1377_s23 + $0x64] sm:$0xf] %vm912_vm3, %v1131_v44  ;;  %v730_v53 = vadd.f32 %v1363_v49, %v691_v45  ;;  %v746_v54 = vadd.f32 %v1363_v49, %v707_v46  ;;  %v692_v55 = vmul.f32 %v1358_v47, %v590_v51  ;;  %v592_v57 = vpop.f32.mrb[23].mxu0  ;;  %v656_v58 = vpop.f32.mrb[23].mxu1 }
 0x12d   : > { %v708_v56 = vmul.f32 %v1358_v47, %v654_v52 }
 0x12e   : > { %v762_v59 = vmax.f32 %v730_v53, 0.0  ;;  %v778_v60 = vmax.f32 %v746_v54, 0.0  ;;  %v731_v61 = vadd.f32 %v1363_v49, %v692_v55 }
 0x12f   : > { %v747_v62 = vadd.f32 %v1363_v49, %v708_v56 }
 0x130   : > { %v1116_v63 = vpack.c.bf16 %v762_v59, %v762_v59  ;;  %v1132_v0 = vpack.c.bf16 %v778_v60, %v778_v60  ;;  %v763_v1 = vmax.f32 %v731_v61, 0.0 }
 0x131   : > { %v779_v2 = vmax.f32 %v747_v62, 0.0  ;;  %v595_v3 = vpop.f32.mrb[24].mxu0  ;;  %v659_v4 = vpop.f32.mrb[24].mxu1 }
 0x132   : > { %923 = vst.msk [vmem:[%s1377_s23 + $0x28] sm:$0xf] %vm912_vm3, %v1116_v63  ;;  %939 = vst.msk [vmem:[%s1377_s23 + $0x68] sm:$0xf] %vm912_vm3, %v1132_v0  ;;  %v1117_v5 = vpack.c.bf16 %v763_v1, %v763_v1  ;;  %v693_v7 = vmul.f32 %v1358_v47, %v595_v3  ;;  %v709_v8 = vmul.f32 %v1358_v47, %v659_v4  ;;  %v597_v9 = vpop.f32.mrb[25].mxu0  ;;  %v661_v10 = vpop.f32.mrb[25].mxu1 }
 0x133   : > { %v1133_v6 = vpack.c.bf16 %v779_v2, %v779_v2  ;;  %v598_v11 = vpop.f32.mrb[26].mxu0  ;;  %v662_v12 = vpop.f32.mrb[26].mxu1 }
 0x134   : > { %924 = vst.msk [vmem:[%s1377_s23 + $0x2c] sm:$0xf] %vm912_vm3, %v1117_v5  ;;  %v732_v13 = vadd.f32 %v1363_v49, %v693_v7  ;;  %v748_v14 = vadd.f32 %v1363_v49, %v709_v8  ;;  %v694_v15 = vmul.f32 %v1358_v47, %v598_v11  ;;  %v710_v16 = vmul.f32 %v1358_v47, %v662_v12  ;;  %v600_v17 = vpop.f32.mrb[27].mxu0  ;;  %v664_v18 = vpop.f32.mrb[27].mxu1 }
 0x135   : > { %940 = vst.msk [vmem:[%s1377_s23 + $0x6c] sm:$0xf] %vm912_vm3, %v1133_v6 }
 0x136   : > { %v764_v19 = vmax.f32 %v732_v13, 0.0  ;;  %v780_v20 = vmax.f32 %v748_v14, 0.0  ;;  %v733_v21 = vadd.f32 %v1363_v49, %v694_v15  ;;  %v749_v22 = vadd.f32 %v1363_v49, %v710_v16 }
 0x138   : > { %v1118_v23 = vpack.c.bf16 %v764_v19, %v764_v19  ;;  %v1134_v24 = vpack.c.bf16 %v780_v20, %v780_v20  ;;  %v765_v25 = vmax.f32 %v733_v21, 0.0  ;;  %v781_v26 = vmax.f32 %v749_v22, 0.0 }
 0x139   : > { %v603_v27 = vpop.f32.mrb[28].mxu0  ;;  %v667_v28 = vpop.f32.mrb[28].mxu1 }
 0x13a   : > { %925 = vst.msk [vmem:[%s1377_s23 + $0x30] sm:$0xf] %vm912_vm3, %v1118_v23  ;;  %941 = vst.msk [vmem:[%s1377_s23 + $0x70] sm:$0xf] %vm912_vm3, %v1134_v24  ;;  %v1119_v29 = vpack.c.bf16 %v765_v25, %v765_v25  ;;  %v1135_v30 = vpack.c.bf16 %v781_v26, %v781_v26  ;;  %v695_v31 = vmul.f32 %v1358_v47, %v603_v27  ;;  %v605_v33 = vpop.f32.mrb[29].mxu0  ;;  %v669_v34 = vpop.f32.mrb[29].mxu1 }
 0x13b   : > { %v711_v32 = vmul.f32 %v1358_v47, %v667_v28  ;;  %v606_v35 = vpop.f32.mrb[30].mxu0  ;;  %v670_v36 = vpop.f32.mrb[30].mxu1 }
 0x13c   : > { %926 = vst.msk [vmem:[%s1377_s23 + $0x34] sm:$0xf] %vm912_vm3, %v1119_v29  ;;  %942 = vst.msk [vmem:[%s1377_s23 + $0x74] sm:$0xf] %vm912_vm3, %v1135_v30  ;;  %v734_v37 = vadd.f32 %v1363_v49, %v695_v31  ;;  %v696_v39 = vmul.f32 %v1358_v47, %v606_v35  ;;  %v712_v40 = vmul.f32 %v1358_v47, %v670_v36  ;;  %v608_v41 = vpop.f32.mrb[31].mxu0  ;;  %v672_v42 = vpop.f32.mrb[31].mxu1 }
 0x13d   : > { %v750_v38 = vadd.f32 %v1363_v49, %v711_v32 }
 0x13e   : > { %v766_v43 = vmax.f32 %v734_v37, 0.0  ;;  %v735_v45 = vadd.f32 %v1363_v49, %v696_v39  ;;  %v751_v46 = vadd.f32 %v1363_v49, %v712_v40 }
 0x13f   : > { %v782_v44 = vmax.f32 %v750_v38, 0.0 }
 0x140   : > { %v1120_v48 = vpack.c.bf16 %v766_v43, %v766_v43  ;;  %v767_v51 = vmax.f32 %v735_v45, 0.0  ;;  %v783_v52 = vmax.f32 %v751_v46, 0.0 }
 0x141   : > { %v1136_v50 = vpack.c.bf16 %v782_v44, %v782_v44 }
 0x142   : > { %927 = vst.msk [vmem:[%s1377_s23 + $0x38] sm:$0xf] %vm912_vm3, %v1120_v48  ;;  %v1121_v53 = vpack.c.bf16 %v767_v51, %v767_v51  ;;  %v1137_v54 = vpack.c.bf16 %v783_v52, %v783_v52 }
 0x143   : > { %943 = vst.msk [vmem:[%s1377_s23 + $0x78] sm:$0xf] %vm912_vm3, %v1136_v50 }
 0x144   : > { %928 = vst.msk [vmem:[%s1377_s23 + $0x3c] sm:$0xf] %vm912_vm3, %v1121_v53  ;;  %944 = vst.msk [vmem:[%s1377_s23 + $0x7c] sm:$0xf] %vm912_vm3, %v1137_v54 }
 0x145 PF: > { %s14_s15 = sadd.s32 1, %s1232_s15  }
 0x146   : > { %p11_p4 = scmp.ge.s32.totalorder %s14_s15, 4  }
 0x148   :  { %13 = sbr.rel (!%p11_p4) target bundleno = 1 (0x1), region = 66 }

// kernel: densenet121_forward.124
= control target key start
LH: loop header
LB: loop body
LE: loop exit
PB: predicated region body
PF: predicated region fallthrough
CT: control target
= control target key end

     0   :  { %s3049_s9 = smov 0   ;;  %s3540_s0 = inlined_call_operand.vmem [shape: bf16[2,10,16,128], index: 0, kind: input, shape index: {}]   ;;  %s3541_s1 = inlined_call_operand.vmem [shape: bf16[9,128,32], index: 1, kind: input, shape index: {}]   ;;  %s3542_s2 = inlined_call_operand.vmem [shape: bf16[2,8,8,32], index: 2, kind: output, shape index: {}]  }
   0x1 LB: > { %s2206_s10 = sadd.s32 4294967295, %s3032_s9   ;;  %p2210_p0 = scmp.ge.s32.totalorder %s3032_s9, 1  ;;  %s3032_s9 = sphi %s3049_s9, %s12_s9  }
   0x2   : > { %p112_p1 = scmp.lt.s32.totalorder %s3032_s9, 3 }
   0x4   : > { %p113_p2 = pnand %p2210_p0, %p112_p1 }
   0x5   : > { %v2930_v0 = vld [vmem:[%s3541_s1] sm:$0xff] (!%p113_p2)   ;;  %p134_p3 = scmp.lt.s32.totalorder (!%p113_p2), %s2206_s10, 1  ;;  %v2932_v2 = vld [vmem:[%s3541_s1 + $0x8] sm:$0xff] (!%p113_p2)   ;;  %v2934_v4 = vld [vmem:[%s3541_s1 + $0x10] sm:$0xff] (!%p113_p2)   ;;  %vm548_vm0 = vcmask (!%p113_p2), 1046528   ;;  %vm767_vm1 = vcmask (!%p113_p2), 1045504  }
   0x6   : > { %116 = sbr.rel (%p113_p2) target bundleno = 398 (0x18e), region = 28  ;;  %v2931_v1 = vld [vmem:[%s3541_s1 + $0x40] sm:$0xff] (!%p113_p2)   ;;  %2617 = vmatprep.subr.bf16.mxu0 (!%p113_p2), %v2930_v0  ;;  %v2933_v3 = vld [vmem:[%s3541_s1 + $0x48] sm:$0xff] (!%p113_p2)   ;;  %v2935_v5 = vld [vmem:[%s3541_s1 + $0x50] sm:$0xff] (!%p113_p2)   ;;  %vm2142_vm2 = vcmask (!%p113_p2), 257024  }
   0x7   : > { %2649 = vmatprep.subr.bf16.mxu1 (!%p113_p2), %v2931_v1  ;;  %2618 = vmatpush3.bf16.msra.mxu0 (!%p113_p2), %v2930_v0  ;;  %v2936_v6 = vld [vmem:[%s3541_s1 + $0x18] sm:$0xff] (!%p113_p2)   ;;  %v2938_v8 = vld [vmem:[%s3541_s1 + $0x20] sm:$0xff] (!%p113_p2)   ;;  %v2940_v10 = vld [vmem:[%s3541_s1 + $0x28] sm:$0xff] (!%p113_p2)  }
   0x8   : > { %2650 = vmatpush3.bf16.msra.mxu1 (!%p113_p2), %v2931_v1  ;;  %2619 = vmatprep.subr.bf16.mxu0 (!%p113_p2), %v2932_v2  ;;  %v2937_v7 = vld [vmem:[%s3541_s1 + $0x58] sm:$0xff] (!%p113_p2)   ;;  %v2939_v9 = vld [vmem:[%s3541_s1 + $0x60] sm:$0xff] (!%p113_p2)   ;;  %v2941_v12 = vld [vmem:[%s3541_s1 + $0x68] sm:$0xff] (!%p113_p2)  }
   0x9   : > { %2651 = vmatprep.subr.bf16.mxu1 (!%p113_p2), %v2933_v3  ;;  %v2942_v13 = vld [vmem:[%s3541_s1 + $0x30] sm:$0xff] (!%p113_p2)   ;;  %v2944_v15 = vld [vmem:[%s3541_s1 + $0x38] sm:$0xff] (!%p113_p2)   ;;  %v2948_v17 = vld [vmem:[%s3541_s1 + $0x80] sm:$0xff] (!%p113_p2)  }
   0xa   : > { %v2943_v14 = vld [vmem:[%s3541_s1 + $0x70] sm:$0xff] (!%p113_p2)   ;;  %v2945_v16 = vld [vmem:[%s3541_s1 + $0x78] sm:$0xff] (!%p113_p2)   ;;  %v2949_v18 = vld [vmem:[%s3541_s1 + $0xc0] sm:$0xff] (!%p113_p2)  }
   0xb   : > { %2620 = vmatpush3.bf16.msra.mxu0 (!%p113_p2), %v2932_v2  ;;  %v2950_v20 = vld [vmem:[%s3541_s1 + $0x88] sm:$0xff] (!%p113_p2)   ;;  %v2954_v23 = vld [vmem:[%s3541_s1 + $0x90] sm:$0xff] (!%p113_p2)   ;;  %v2956_v26 = vld [vmem:[%s3541_s1 + $0x98] sm:$0xff] (!%p113_p2)  }
   0xc   : > { %2652 = vmatpush3.bf16.msra.mxu1 (!%p113_p2), %v2933_v3  ;;  %2621 = vmatprep.subr.bf16.mxu0 (!%p113_p2), %v2934_v4  ;;  %v2951_v21 = vld [vmem:[%s3541_s1 + $0xc8] sm:$0xff] (!%p113_p2)   ;;  %v2955_v24 = vld [vmem:[%s3541_s1 + $0xd0] sm:$0xff] (!%p113_p2)   ;;  %v2957_v27 = vld [vmem:[%s3541_s1 + $0xd8] sm:$0xff] (!%p113_p2)  }
   0xd   : > { %s3544_s10 = smov (!%p134_p3, %s2206_s10), 1  ;;  %2653 = vmatprep.subr.bf16.mxu1 %v2935_v5  ;;  %v2960_v29 = vld [vmem:[%s3541_s1 + $0xa0] sm:$0xff]   ;;  %v2962_v32 = vld [vmem:[%s3541_s1 + $0xa8] sm:$0xff]   ;;  %v2966_v35 = vld [vmem:[%s3541_s1 + $0xb0] sm:$0xff]  }
   0xe   : > { %s2921_s27 = smul.u32 80, %s3544_s10  ;;  %v2961_v30 = vld [vmem:[%s3541_s1 + $0xe0] sm:$0xff]   ;;  %v2963_v33 = vld [vmem:[%s3541_s1 + $0xe8] sm:$0xff]   ;;  %v2967_v36 = vld [vmem:[%s3541_s1 + $0xf0] sm:$0xff]  }
   0xf   : > { %2622 = vmatpush3.bf16.msra.mxu0 %v2934_v4  ;;  %v2968_v38 = vld [vmem:[%s3541_s1 + $0xb8] sm:$0xff]   ;;  %v2972_v41 = vld [vmem:[%s3541_s1 + $0x100] sm:$0xff]   ;;  %v2974_v44 = vld [vmem:[%s3541_s1 + $0x108] sm:$0xff]  }
  0x10   : > { %2654 = vmatpush3.bf16.msra.mxu1 %v2935_v5  ;;  %2623 = vmatprep.subr.bf16.mxu0 %v2936_v6  ;;  %s3093_s6 = scalar_lea.vmem %s3540_s0, %s2921_s27  ;;  %v2969_v39 = vld [vmem:[%s3541_s1 + $0xf8] sm:$0xff]   ;;  %v2973_v42 = vld [vmem:[%s3541_s1 + $0x140] sm:$0xff]   ;;  %v2975_v45 = vld [vmem:[%s3541_s1 + $0x148] sm:$0xff]  }
  0x11   : > { %2655 = vmatprep.subr.bf16.mxu1 %v2937_v7  ;;  %v3099_v11 = vld [vmem:[%s3093_s6] sm:$0xff]   ;;  %v3125_v19 = vld [vmem:[%s3093_s6 + $0x8] sm:$0xff]   ;;  %v3134_v22 = vld [vmem:[%s3093_s6 + $0x10] sm:$0xff]  }
  0x12   : > { %2633 = vmatprep.mubr.bf16.mxu0 %v3099_v11  ;;  %2665 = vmatprep.mubr.bf16.mxu1 %v3099_v11  ;;  %v3147_v25 = vld [vmem:[%s3093_s6 + $0x18] sm:$0xff]   ;;  %v3156_v28 = vld [vmem:[%s3093_s6 + $0x20] sm:$0xff]   ;;  %v3169_v31 = vld [vmem:[%s3093_s6 + $0x28] sm:$0xff]  }
  0x13   : > { %2624 = vmatpush3.bf16.msra.mxu0 %v2936_v6  ;;  %v3178_v34 = vld [vmem:[%s3093_s6 + $0x30] sm:$0xff]   ;;  %v3191_v37 = vld [vmem:[%s3093_s6 + $0x38] sm:$0xff]   ;;  %v3201_v40 = vld [vmem:[%s3093_s6 + $0x8] sm:$0xff]  }
  0x14   : > { %2656 = vmatpush3.bf16.msra.mxu1 %v2937_v7  ;;  %2625 = vmatprep.subr.bf16.mxu0 %v2938_v8  ;;  %v3213_v43 = vld [vmem:[%s3093_s6 + $0x10] sm:$0xff]   ;;  %v3223_v46 = vld [vmem:[%s3093_s6 + $0x18] sm:$0xff]   ;;  %v3235_v49 = vld [vmem:[%s3093_s6 + $0x20] sm:$0xff]  }
  0x15   : > { %2657 = vmatprep.subr.bf16.mxu1 %v2939_v9  ;;  %v2978_v47 = vld [vmem:[%s3541_s1 + $0x110] sm:$0xff]   ;;  %v2980_v50 = vld [vmem:[%s3541_s1 + $0x118] sm:$0xff]   ;;  %v3245_v52 = vld [vmem:[%s3093_s6 + $0x28] sm:$0xff]  }
  0x16   : > { %v2979_v48 = vld [vmem:[%s3541_s1 + $0x150] sm:$0xff]   ;;  %v2981_v51 = vld [vmem:[%s3541_s1 + $0x158] sm:$0xff]   ;;  %v2984_v53 = vld [vmem:[%s3541_s1 + $0x120] sm:$0xff]  }
  0x17   : > { %2626 = vmatpush3.bf16.msra.mxu0 %v2938_v8  ;;  %v2985_v54 = vld [vmem:[%s3541_s1 + $0x160] sm:$0xff]   ;;  %v3257_v55 = vld [vmem:[%s3093_s6 + $0x30] sm:$0xff]   ;;  %v2986_v56 = vld [vmem:[%s3541_s1 + $0x128] sm:$0xff]  }
  0x18   : > { %2658 = vmatpush3.bf16.msra.mxu1 %v2939_v9  ;;  %2627 = vmatprep.subr.bf16.mxu0 %v2940_v10  ;;  %v2987_v57 = vld [vmem:[%s3541_s1 + $0x168] sm:$0xff]   ;;  %v3267_v58 = vld [vmem:[%s3093_s6 + $0x38] sm:$0xff]   ;;  %v2990_v59 = vld [vmem:[%s3541_s1 + $0x130] sm:$0xff]  }
  0x19   : > { %2659 = vmatprep.subr.bf16.mxu1 %v2941_v12  ;;  %v2991_v60 = vld [vmem:[%s3541_s1 + $0x170] sm:$0xff]   ;;  %v3279_v61 = vld [vmem:[%s3093_s6 + $0x40] sm:$0xff]   ;;  %v2992_v62 = vld [vmem:[%s3541_s1 + $0x138] sm:$0xff]  }
  0x1a   : > { %v2993_v63 = vld [vmem:[%s3541_s1 + $0x178] sm:$0xff]   ;;  %v2994_v0 = vld [vmem:[%s3541_s1 + $0x180] sm:$0xff]   ;;  %v2996_v2 = vld [vmem:[%s3541_s1 + $0x188] sm:$0xff]  }
  0x1b   : > { %2628 = vmatpush3.bf16.msra.mxu0 %v2940_v10  ;;  %v2995_v1 = vld [vmem:[%s3541_s1 + $0x1c0] sm:$0xff]   ;;  %v2997_v3 = vld [vmem:[%s3541_s1 + $0x1c8] sm:$0xff]   ;;  %v2998_v4 = vld [vmem:[%s3541_s1 + $0x190] sm:$0xff]  }
  0x1c   : > { %2660 = vmatpush3.bf16.msra.mxu1 %v2941_v12  ;;  %2629 = vmatprep.subr.bf16.mxu0 %v2942_v13  ;;  %v2999_v5 = vld [vmem:[%s3541_s1 + $0x1d0] sm:$0xff]   ;;  %v3000_v6 = vld [vmem:[%s3541_s1 + $0x198] sm:$0xff]   ;;  %v3002_v8 = vld [vmem:[%s3541_s1 + $0x1a0] sm:$0xff]  }
  0x1d   : > { %2661 = vmatprep.subr.bf16.mxu1 %v2943_v14  ;;  %v3001_v7 = vld [vmem:[%s3541_s1 + $0x1d8] sm:$0xff]   ;;  %v3003_v9 = vld [vmem:[%s3541_s1 + $0x1e0] sm:$0xff]   ;;  %v3004_v10 = vld [vmem:[%s3541_s1 + $0x1a8] sm:$0xff]  }
  0x1e   : > { %v3006_v12 = vld [vmem:[%s3541_s1 + $0x1b0] sm:$0xff]  }
  0x1f   : > { %2630 = vmatpush3.bf16.msra.mxu0 %v2942_v13  ;;  %v3007_v13 = vld [vmem:[%s3541_s1 + $0x1f0] sm:$0xff]  }
  0x20   : > { %2662 = vmatpush3.bf16.msra.mxu1 %v2943_v14  ;;  %2631 = vmatprep.subr.bf16.mxu0 %v2944_v15  ;;  %v3008_v14 = vld [vmem:[%s3541_s1 + $0x1b8] sm:$0xff]  }
  0x21   : > { %2663 = vmatprep.subr.bf16.mxu1 %v2945_v16 }
  0x23   : > { %2632 = vmatpush3.bf16.msra.mxu0 %v2944_v15  ;;  %v3009_v15 = vld [vmem:[%s3541_s1 + $0x1f8] sm:$0xff]  }
  0x24   : > { %2664 = vmatpush3.bf16.msra.mxu1 %v2945_v16  ;;  %2681 = vmatprep.subr.bf16.mxu0 %v2948_v17  ;;  %v3352_v16 = vld [vmem:[%s3093_s6 + $0x10] sm:$0xff]  }
  0x25   : > { %2713 = vmatprep.subr.bf16.mxu1 %v2949_v18 }
  0x26   : > { %2634 = vmatmul.mubr.bf16.vlgmr.msra.gmra.mrb[0].mxu0 %v3125_v19 }
  0x27   : > { %2666 = vmatmul.mubr.bf16.vlgmr.msra.gmra.mrb[0].mxu1 %v3125_v19  ;;  %2682 = vmatpush3.bf16.msra.mxu0 %v2948_v17  ;;  %v3012_v17 = vld [vmem:[%s3541_s1 + $0x200] sm:$0xff]  }
  0x28   : > { %2714 = vmatpush3.bf16.msra.mxu1 %v2949_v18  ;;  %2683 = vmatprep.subr.bf16.mxu0 %v2950_v20  ;;  %v3362_v18 = vld [vmem:[%s3093_s6 + $0x18] sm:$0xff]  }
  0x29   : > { %2715 = vmatprep.subr.bf16.mxu1 %v2951_v21  ;;  %2637 = vmatprep.mubr.bf16.mxu0 %v3134_v22 }
  0x2a   : > { %2669 = vmatprep.mubr.bf16.mxu1 %v3134_v22 }
  0x2b   : > { %2684 = vmatpush3.bf16.msra.mxu0 %v2950_v20  ;;  %v3014_v20 = vld [vmem:[%s3093_s6 + $0x20] sm:$0xff]  }
  0x2c   : > { %2716 = vmatpush3.bf16.msra.mxu1 %v2951_v21  ;;  %2685 = vmatprep.subr.bf16.mxu0 %v2954_v23  ;;  %v3016_v21 = vld [vmem:[%s3541_s1 + $0x210] sm:$0xff]  }
  0x2d   : > { %2717 = vmatprep.subr.bf16.mxu1 %v2955_v24 }
  0x2e   : > { %2638 = vmatmul.mubr.bf16.gmra.mrb[4].mxu0 %v3147_v25 }
  0x2f   : > { %2670 = vmatmul.mubr.bf16.gmra.mrb[4].mxu1 %v3147_v25  ;;  %2686 = vmatpush3.bf16.msra.mxu0 %v2954_v23  ;;  %v3017_v23 = vld [vmem:[%s3541_s1 + $0x218] sm:$0xff]  }
  0x30   : > { %2718 = vmatpush3.bf16.msra.mxu1 %v2955_v24  ;;  %2687 = vmatprep.subr.bf16.mxu0 %v2956_v26  ;;  %v3018_v24 = vld [vmem:[%s3093_s6 + $0x30] sm:$0xff]  }
  0x31   : > { %2719 = vmatprep.subr.bf16.mxu1 %v2957_v27  ;;  %2641 = vmatprep.mubr.bf16.mxu0 %v3156_v28 }
  0x32   : > { %2673 = vmatprep.mubr.bf16.mxu1 %v3156_v28 }
  0x33   : > { %2688 = vmatpush3.bf16.msra.mxu0 %v2956_v26  ;;  %v3019_v26 = vld [vmem:[%s3093_s6 + $0x38] sm:$0xff]  }
  0x34   : > { %2720 = vmatpush3.bf16.msra.mxu1 %v2957_v27  ;;  %2689 = vmatprep.subr.bf16.mxu0 %v2960_v29  ;;  %v3021_v27 = vld [vmem:[%s3541_s1 + $0x228] sm:$0xff]  }
  0x35   : > { %2721 = vmatprep.subr.bf16.mxu1 %v2961_v30 }
  0x36   : > { %2642 = vmatmul.mubr.bf16.gmra.mrb[8].mxu0 %v3169_v31 }
  0x37   : > { %2674 = vmatmul.mubr.bf16.gmra.mrb[8].mxu1 %v3169_v31  ;;  %2690 = vmatpush3.bf16.msra.mxu0 %v2960_v29  ;;  %v3024_v29 = vld [vmem:[%s3541_s1 + $0x230] sm:$0xff]  }
  0x38   : > { %2722 = vmatpush3.bf16.msra.mxu1 %v2961_v30  ;;  %2691 = vmatprep.subr.bf16.mxu0 %v2962_v32  ;;  %v3023_v30 = vld [vmem:[%s3093_s6 + $0x48] sm:$0xff]  }
  0x39   : > { %2723 = vmatprep.subr.bf16.mxu1 %v2963_v33  ;;  %2645 = vmatprep.mubr.bf16.mxu0 %v3178_v34 }
  0x3a   : > { %2677 = vmatprep.mubr.bf16.mxu1 %v3178_v34 }
  0x3b   : > { %2692 = vmatpush3.bf16.msra.mxu0 %v2962_v32 }
  0x3c   : > { %2724 = vmatpush3.bf16.msra.mxu1 %v2963_v33  ;;  %2693 = vmatprep.subr.bf16.mxu0 %v2966_v35 }
  0x3d   : > { %2725 = vmatprep.subr.bf16.mxu1 %v2967_v36 }
  0x3e   : > { %2646 = vmatmul.mubr.bf16.gmra.mrb[12].mxu0 %v3191_v37 }
  0x3f   : > { %2678 = vmatmul.mubr.bf16.gmra.mrb[12].mxu1 %v3191_v37  ;;  %2694 = vmatpush3.bf16.msra.mxu0 %v2966_v35 }
  0x40   : > { %2726 = vmatpush3.bf16.msra.mxu1 %v2967_v36  ;;  %2695 = vmatprep.subr.bf16.mxu0 %v2968_v38 }
  0x41   : > { %2727 = vmatprep.subr.bf16.mxu1 %v2969_v39  ;;  %2697 = vmatprep.mubr.bf16.mxu0 %v3099_v11  ;;  %v3005_v11 = vld [vmem:[%s3541_s1 + $0x1e8] sm:$0xff]  }
  0x42   : > { %2729 = vmatprep.mubr.bf16.mxu1 %v3201_v40 }
  0x43   : > { %2696 = vmatpush3.bf16.msra.mxu0 %v2968_v38 }
  0x44   : > { %2728 = vmatpush3.bf16.msra.mxu1 %v2969_v39  ;;  %2745 = vmatprep.subr.bf16.mxu0 %v2972_v41 }
  0x45   : > { %2777 = vmatprep.subr.bf16.mxu1 %v2973_v42 }
  0x46   : > { %2698 = vmatmul.mubr.bf16.vlgmr.msra.gmra.mrb[16].mxu0 %v3125_v19  ;;  %v3013_v19 = vld [vmem:[%s3541_s1 + $0x208] sm:$0xff]  }
  0x47   : > { %2730 = vmatmul.mubr.bf16.vlgmr.msra.gmra.mrb[16].mxu1 %v3213_v43  ;;  %2746 = vmatpush3.bf16.msra.mxu0 %v2972_v41 }
  0x48   : > { %2778 = vmatpush3.bf16.msra.mxu1 %v2973_v42  ;;  %2747 = vmatprep.subr.bf16.mxu0 %v2974_v44 }
  0x49   : > { %2779 = vmatprep.subr.bf16.mxu1 %v2975_v45  ;;  %2701 = vmatprep.mubr.bf16.mxu0 %v3134_v22  ;;  %v3015_v22 = vld [vmem:[%s3093_s6 + $0x28] sm:$0xff]  }
  0x4a   : > { %2733 = vmatprep.mubr.bf16.mxu1 %v3223_v46 }
  0x4b   : > { %2748 = vmatpush3.bf16.msra.mxu0 %v2974_v44 }
  0x4c   : > { %2780 = vmatpush3.bf16.msra.mxu1 %v2975_v45  ;;  %2749 = vmatprep.subr.bf16.mxu0 %v2978_v47 }
  0x4d   : > { %2781 = vmatprep.subr.bf16.mxu1 %v2979_v48 }
  0x4e   : > { %2702 = vmatmul.mubr.bf16.gmra.mrb[20].mxu0 %v3147_v25  ;;  %v3020_v25 = vld [vmem:[%s3541_s1 + $0x220] sm:$0xff]  }
  0x4f   : > { %2734 = vmatmul.mubr.bf16.gmra.mrb[20].mxu1 %v3235_v49  ;;  %2750 = vmatpush3.bf16.msra.mxu0 %v2978_v47 }
  0x50   : > { %2782 = vmatpush3.bf16.msra.mxu1 %v2979_v48  ;;  %2751 = vmatprep.subr.bf16.mxu0 %v2980_v50 }
  0x51   : > { %2783 = vmatprep.subr.bf16.mxu1 %v2981_v51  ;;  %2705 = vmatprep.mubr.bf16.mxu0 %v3156_v28  ;;  %v3022_v28 = vld [vmem:[%s3093_s6 + $0x40] sm:$0xff]   ;;  %s2472_s6 = sshll.u32 %s3544_s10, 5 }
  0x52   : > { %2737 = vmatprep.mubr.bf16.mxu1 %v3245_v52  ;;  %s3511_s8 = scalar_lea.vmem %s3542_s2, %s2472_s6 }
  0x53   : > { %2752 = vmatpush3.bf16.msra.mxu0 %v2980_v50 }
  0x54   : > { %2784 = vmatpush3.bf16.msra.mxu1 %v2981_v51  ;;  %2753 = vmatprep.subr.bf16.mxu0 %v2984_v53 }
  0x55   : > { %2785 = vmatprep.subr.bf16.mxu1 %v2985_v54 }
  0x56   : > { %2706 = vmatmul.mubr.bf16.gmra.mrb[24].mxu0 %v3169_v31  ;;  %v3025_v31 = vld [vmem:[%s3541_s1 + $0x238] sm:$0xff]  }
  0x57   : > { %2738 = vmatmul.mubr.bf16.gmra.mrb[24].mxu1 %v3257_v55  ;;  %2754 = vmatpush3.bf16.msra.mxu0 %v2984_v53 }
  0x58   : > { %2786 = vmatpush3.bf16.msra.mxu1 %v2985_v54  ;;  %2755 = vmatprep.subr.bf16.mxu0 %v2986_v56 }
  0x59   : > { %2787 = vmatprep.subr.bf16.mxu1 %v2987_v57  ;;  %2709 = vmatprep.mubr.bf16.mxu0 %v3178_v34 }
  0x5a   : > { %2741 = vmatprep.mubr.bf16.mxu1 %v3267_v58 }
  0x5b   : > { %2756 = vmatpush3.bf16.msra.mxu0 %v2986_v56 }
  0x5c   : > { %2788 = vmatpush3.bf16.msra.mxu1 %v2987_v57  ;;  %2757 = vmatprep.subr.bf16.mxu0 %v2990_v59 }
  0x5d   : > { %2789 = vmatprep.subr.bf16.mxu1 %v2991_v60 }
  0x5e   : > { %2710 = vmatmul.mubr.bf16.gmra.mrb[28].mxu0 %v3191_v37 }
  0x5f   : > { %2742 = vmatmul.mubr.bf16.gmra.mrb[28].mxu1 %v3279_v61  ;;  %2758 = vmatpush3.bf16.msra.mxu0 %v2990_v59 }
  0x60   : > { %2790 = vmatpush3.bf16.msra.mxu1 %v2991_v60  ;;  %2759 = vmatprep.subr.bf16.mxu0 %v2992_v62 }
  0x61   : > { %2791 = vmatprep.subr.bf16.mxu1 %v2993_v63  ;;  %2761 = vmatprep.mubr.bf16.mxu0 %v3201_v40 }
  0x62   : > { %2793 = vmatprep.mubr.bf16.mxu1 %v3201_v40 }
  0x63   : > { %2760 = vmatpush3.bf16.msra.mxu0 %v2992_v62 }
  0x64   : > { %2792 = vmatpush3.bf16.msra.mxu1 %v2993_v63  ;;  %2809 = vmatprep.subr.bf16.mxu0 %v2994_v0 }
  0x65   : > { %2841 = vmatprep.subr.bf16.mxu1 %v2995_v1 }
  0x66   : > { %2762 = vmatmul.mubr.bf16.vlgmr.msra.gmra.mrb[32].mxu0 %v3213_v43 }
  0x67   : > { %2794 = vmatmul.mubr.bf16.vlgmr.msra.gmra.mrb[32].mxu1 %v3213_v43  ;;  %2810 = vmatpush3.bf16.msra.mxu0 %v2994_v0 }
  0x68   : > { %2842 = vmatpush3.bf16.msra.mxu1 %v2995_v1  ;;  %2811 = vmatprep.subr.bf16.mxu0 %v2996_v2 }
  0x69   : > { %2843 = vmatprep.subr.bf16.mxu1 %v2997_v3  ;;  %2765 = vmatprep.mubr.bf16.mxu0 %v3223_v46 }
  0x6a   : > { %2797 = vmatprep.mubr.bf16.mxu1 %v3223_v46 }
  0x6b   : > { %2812 = vmatpush3.bf16.msra.mxu0 %v2996_v2 }
  0x6c   : > { %2844 = vmatpush3.bf16.msra.mxu1 %v2997_v3  ;;  %2813 = vmatprep.subr.bf16.mxu0 %v2998_v4 }
  0x6d   : > { %2845 = vmatprep.subr.bf16.mxu1 %v2999_v5 }
  0x6e   : > { %2766 = vmatmul.mubr.bf16.gmra.mrb[36].mxu0 %v3235_v49 }
  0x6f   : > { %2798 = vmatmul.mubr.bf16.gmra.mrb[36].mxu1 %v3235_v49  ;;  %2814 = vmatpush3.bf16.msra.mxu0 %v2998_v4 }
  0x70   : > { %2846 = vmatpush3.bf16.msra.mxu1 %v2999_v5  ;;  %2815 = vmatprep.subr.bf16.mxu0 %v3000_v6 }
  0x71   : > { %2847 = vmatprep.subr.bf16.mxu1 %v3001_v7  ;;  %2769 = vmatprep.mubr.bf16.mxu0 %v3245_v52 }
  0x72   : > { %2801 = vmatprep.mubr.bf16.mxu1 %v3245_v52 }
  0x73   : > { %2816 = vmatpush3.bf16.msra.mxu0 %v3000_v6 }
  0x74   : > { %2848 = vmatpush3.bf16.msra.mxu1 %v3001_v7  ;;  %2817 = vmatprep.subr.bf16.mxu0 %v3002_v8 }
  0x75   : > { %2849 = vmatprep.subr.bf16.mxu1 %v3003_v9 }
  0x76   : > { %2770 = vmatmul.mubr.bf16.gmra.mrb[40].mxu0 %v3257_v55 }
  0x77   : > { %2802 = vmatmul.mubr.bf16.gmra.mrb[40].mxu1 %v3257_v55  ;;  %2818 = vmatpush3.bf16.msra.mxu0 %v3002_v8 }
  0x78   : > { %2850 = vmatpush3.bf16.msra.mxu1 %v3003_v9  ;;  %2819 = vmatprep.subr.bf16.mxu0 %v3004_v10 }
  0x79   : > { %2851 = vmatprep.subr.bf16.mxu1 %v3005_v11  ;;  %2773 = vmatprep.mubr.bf16.mxu0 %v3267_v58 }
  0x7a   : > { %2805 = vmatprep.mubr.bf16.mxu1 %v3267_v58 }
  0x7b   : > { %2820 = vmatpush3.bf16.msra.mxu0 %v3004_v10 }
  0x7c   : > { %2852 = vmatpush3.bf16.msra.mxu1 %v3005_v11  ;;  %2821 = vmatprep.subr.bf16.mxu0 %v3006_v12 }
  0x7d   : > { %2853 = vmatprep.subr.bf16.mxu1 %v3007_v13 }
  0x7e   : > { %2774 = vmatmul.mubr.bf16.gmra.mrb[44].mxu0 %v3279_v61 }
  0x7f   : > { %2806 = vmatmul.mubr.bf16.gmra.mrb[44].mxu1 %v3279_v61  ;;  %2822 = vmatpush3.bf16.msra.mxu0 %v3006_v12 }
  0x80   : > { %2854 = vmatpush3.bf16.msra.mxu1 %v3007_v13  ;;  %2823 = vmatprep.subr.bf16.mxu0 %v3008_v14 }
  0x81   : > { %2855 = vmatprep.subr.bf16.mxu1 %v3009_v15  ;;  %2825 = vmatprep.mubr.bf16.mxu0 %v3352_v16 }
  0x82   : > { %2857 = vmatprep.mubr.bf16.mxu1 %v3352_v16 }
  0x83   : > { %2824 = vmatpush3.bf16.msra.mxu0 %v3008_v14 }
  0x84   : > { %2856 = vmatpush3.bf16.msra.mxu1 %v3009_v15  ;;  %2873 = vmatprep.subr.bf16.mxu0 %v3012_v17 }
  0x85   : > { %2905 = vmatprep.subr.bf16.mxu1 %v3012_v17 }
  0x86   : > { %2826 = vmatmul.mubr.bf16.vlgmr.msra.gmra.mrb[48].mxu0 %v3362_v18 }
  0x87   : > { %2858 = vmatmul.mubr.bf16.vlgmr.msra.gmra.mrb[48].mxu1 %v3362_v18  ;;  %2874 = vmatpush3.bf16.msra.mxu0 %v3012_v17 }
  0x88   : > { %2913 = vmatpush3.bf16.msra.mxu1 %v3012_v17  ;;  %2875 = vmatprep.subr.bf16.mxu0 %v3013_v19 }
  0x89   : > { %2906 = vmatprep.subr.bf16.mxu1 %v3013_v19  ;;  %2829 = vmatprep.mubr.bf16.mxu0 %v3014_v20 }
  0x8a   : > { %2861 = vmatprep.mubr.bf16.mxu1 %v3014_v20 }
  0x8b   : > { %2876 = vmatpush3.bf16.msra.mxu0 %v3013_v19 }
  0x8c   : > { %2914 = vmatpush3.bf16.msra.mxu1 %v3013_v19  ;;  %2877 = vmatprep.subr.bf16.mxu0 %v3016_v21 }
  0x8d   : > { %2907 = vmatprep.subr.bf16.mxu1 %v3016_v21 }
  0x8e   : > { %2830 = vmatmul.mubr.bf16.gmra.mrb[52].mxu0 %v3015_v22 }
  0x8f   : > { %2862 = vmatmul.mubr.bf16.gmra.mrb[52].mxu1 %v3015_v22  ;;  %2878 = vmatpush3.bf16.msra.mxu0 %v3016_v21 }
  0x90   : > { %2915 = vmatpush3.bf16.msra.mxu1 %v3016_v21  ;;  %2879 = vmatprep.subr.bf16.mxu0 %v3017_v23 }
  0x91   : > { %2908 = vmatprep.subr.bf16.mxu1 %v3017_v23  ;;  %2833 = vmatprep.mubr.bf16.mxu0 %v3018_v24 }
  0x92   : > { %2865 = vmatprep.mubr.bf16.mxu1 %v3018_v24 }
  0x93   : > { %2880 = vmatpush3.bf16.msra.mxu0 %v3017_v23 }
  0x94   : > { %2916 = vmatpush3.bf16.msra.mxu1 %v3017_v23  ;;  %2881 = vmatprep.subr.bf16.mxu0 %v3020_v25 }
  0x95   : > { %2909 = vmatprep.subr.bf16.mxu1 %v3020_v25 }
  0x96   : > { %2834 = vmatmul.mubr.bf16.gmra.mrb[56].mxu0 %v3019_v26 }
  0x97   : > { %2866 = vmatmul.mubr.bf16.gmra.mrb[56].mxu1 %v3019_v26  ;;  %2882 = vmatpush3.bf16.msra.mxu0 %v3020_v25 }
  0x98   : > { %2917 = vmatpush3.bf16.msra.mxu1 %v3020_v25  ;;  %2883 = vmatprep.subr.bf16.mxu0 %v3021_v27 }
  0x99   : > { %2910 = vmatprep.subr.bf16.mxu1 %v3021_v27  ;;  %2837 = vmatprep.mubr.bf16.mxu0 %v3022_v28 }
  0x9a   : > { %2869 = vmatprep.mubr.bf16.mxu1 %v3022_v28 }
  0x9b   : > { %2884 = vmatpush3.bf16.msra.mxu0 %v3021_v27 }
  0x9c   : > { %2918 = vmatpush3.bf16.msra.mxu1 %v3021_v27  ;;  %2885 = vmatprep.subr.bf16.mxu0 %v3024_v29 }
  0x9d   : > { %2911 = vmatprep.subr.bf16.mxu1 %v3024_v29 }
  0x9e   : > { %2838 = vmatmul.mubr.bf16.gmra.mrb[60].mxu0 %v3023_v30 }
  0x9f   : > { %2870 = vmatmul.mubr.bf16.gmra.mrb[60].mxu1 %v3023_v30  ;;  %2886 = vmatpush3.bf16.msra.mxu0 %v3024_v29 }
  0xa0   : > { %2919 = vmatpush3.bf16.msra.mxu1 %v3024_v29  ;;  %2887 = vmatprep.subr.bf16.mxu0 %v3025_v31 }
  0xa1   : > { %2912 = vmatprep.subr.bf16.mxu1 %v3025_v31  ;;  %2889 = vmatprep.mubr.bf16.mxu0 %v3352_v16 }
  0xa2   : > { %2897 = vmatprep.mubr.bf16.mxu1 %v3018_v24 }
  0xa3   : > { %2888 = vmatpush3.bf16.msra.mxu0 %v3025_v31 }
  0xa4   : > { %2920 = vmatpush3.bf16.msra.mxu1 %v3025_v31 }
  0xa6   : > { %2890 = vmatmul.mubr.bf16.vlgmr.msra.gmra.mrb[64].mxu0 %v3362_v18 }
  0xa7   : > { %2898 = vmatmul.mubr.bf16.vlgmr.msra.gmra.mrb[64].mxu1 %v3019_v26  ;;  %2893 = vmatprep.mubr.bf16.mxu0 %v3014_v20 }
  0xa8   : > { %2901 = vmatprep.mubr.bf16.mxu1 %v3022_v28 }
  0xae   : > { %2894 = vmatmul.mubr.bf16.gmra.mrb[68].mxu0 %v3015_v22 }
  0xaf   : > { %2902 = vmatmul.mubr.bf16.gmra.mrb[68].mxu1 %v3023_v30 }
  0xf9   : > { %v2635_v32 = vpop.f32.mrb[0].mxu0 }
  0xfa   : > { %v2667_v33 = vpop.f32.mrb[0].mxu1  ;;  %v307_v34 = vpop.f32.mrb[1].mxu0 }
  0xfb   : > { %v469_v35 = vpop.f32.mrb[1].mxu1  ;;  %v2636_v36 = vpop.f32.mrb[2].mxu0  ;;  %v552_v39 = vrot.slane %v2667_v33, 1 }
  0xfc   : > { %v2668_v37 = vpop.f32.mrb[2].mxu1  ;;  %v310_v38 = vpop.f32.mrb[3].mxu0  ;;  %v549_v42 = vrot.slane %v469_v35, 1 }
  0xfd   : > { %v553_v40 = vrot.slane %v2668_v37, 1  ;;  %v472_v41 = vpop.f32.mrb[3].mxu1 }
  0xfe   : > { %v550_v43 = vrot.slane %v472_v41, 1 }
  0xff   : > { %v554_v44 = vsel %vm548_vm0, %v552_v39, %v553_v40 }
 0x100   : > { %v3396_v45 = vadd.f32 %v2635_v32, %v554_v44  ;;  %v551_v46 = vsel %vm548_vm0, %v549_v42, %v550_v43 }
 0x101   : > { %v3399_v47 = vadd.f32 %v551_v46, %v307_v34  ;;  %v2639_v48 = vpop.f32.mrb[4].mxu0 }
 0x102   : > { %v2671_v49 = vpop.f32.mrb[4].mxu1  ;;  %v321_v50 = vpop.f32.mrb[5].mxu0 }
 0x103   : > { %v485_v51 = vpop.f32.mrb[5].mxu1  ;;  %v2640_v52 = vpop.f32.mrb[6].mxu0  ;;  %v558_v55 = vrot.slane %v2671_v49, 1 }
 0x104   : > { %v2672_v53 = vpop.f32.mrb[6].mxu1  ;;  %v324_v54 = vpop.f32.mrb[7].mxu0  ;;  %v555_v58 = vrot.slane %v485_v51, 1 }
 0x105   : > { %v559_v56 = vrot.slane %v2672_v53, 1  ;;  %v488_v57 = vpop.f32.mrb[7].mxu1 }
 0x106   : > { %v556_v59 = vrot.slane %v488_v57, 1 }
 0x107   : > { %v560_v60 = vsel %vm548_vm0, %v558_v55, %v559_v56 }
 0x108   : > { %v3402_v61 = vadd.f32 %v2639_v48, %v560_v60  ;;  %v557_v62 = vsel %vm548_vm0, %v555_v58, %v556_v59 }
 0x109   : > { %v3405_v63 = vadd.f32 %v557_v62, %v321_v50  ;;  %v2643_v0 = vpop.f32.mrb[8].mxu0 }
 0x10a   : > { %v2675_v1 = vpop.f32.mrb[8].mxu1  ;;  %v335_v2 = vpop.f32.mrb[9].mxu0 }
 0x10b   : > { %v501_v3 = vpop.f32.mrb[9].mxu1  ;;  %v2644_v4 = vpop.f32.mrb[10].mxu0  ;;  %v564_v7 = vrot.slane %v2675_v1, 1 }
 0x10c   : > { %v2676_v5 = vpop.f32.mrb[10].mxu1  ;;  %v338_v6 = vpop.f32.mrb[11].mxu0  ;;  %v561_v10 = vrot.slane %v501_v3, 1 }
 0x10d   : > { %v565_v8 = vrot.slane %v2676_v5, 1  ;;  %v504_v9 = vpop.f32.mrb[11].mxu1 }
 0x10e   : > { %v562_v11 = vrot.slane %v504_v9, 1 }
 0x10f   : > { %v566_v12 = vsel %vm548_vm0, %v564_v7, %v565_v8 }
 0x110   : > { %v3408_v13 = vadd.f32 %v2643_v0, %v566_v12  ;;  %v563_v14 = vsel %vm548_vm0, %v561_v10, %v562_v11 }
 0x111   : > { %v3411_v15 = vadd.f32 %v563_v14, %v335_v2  ;;  %v2647_v16 = vpop.f32.mrb[12].mxu0 }
 0x112   : > { %v2679_v17 = vpop.f32.mrb[12].mxu1  ;;  %v349_v18 = vpop.f32.mrb[13].mxu0 }
 0x113   : > { %v517_v19 = vpop.f32.mrb[13].mxu1  ;;  %v2648_v20 = vpop.f32.mrb[14].mxu0  ;;  %v570_v23 = vrot.slane %v2679_v17, 1 }
 0x114   : > { %v2680_v21 = vpop.f32.mrb[14].mxu1  ;;  %v352_v22 = vpop.f32.mrb[15].mxu0  ;;  %v567_v26 = vrot.slane %v517_v19, 1 }
 0x115   : > { %v571_v24 = vrot.slane %v2680_v21, 1  ;;  %v520_v25 = vpop.f32.mrb[15].mxu1 }
 0x116   : > { %v568_v27 = vrot.slane %v520_v25, 1 }
 0x117   : > { %v572_v28 = vsel %vm548_vm0, %v570_v23, %v571_v24 }
 0x118   : > { %v3414_v29 = vadd.f32 %v2647_v16, %v572_v28  ;;  %v569_v30 = vsel %vm548_vm0, %v567_v26, %v568_v27 }
 0x119   : > { %v3417_v31 = vadd.f32 %v569_v30, %v349_v18  ;;  %v2699_v32 = vpop.f32.mrb[16].mxu0 }
 0x11a   : > { %v2731_v33 = vpop.f32.mrb[16].mxu1  ;;  %v688_v34 = vpop.f32.mrb[17].mxu0  ;;  %v771_v37 = vrot.slane %v2699_v32, 2 }
 0x11b   : > { %v972_v35 = vpop.f32.mrb[17].mxu1  ;;  %v2700_v36 = vpop.f32.mrb[18].mxu0  ;;  %v768_v41 = vrot.slane %v688_v34, 2 }
 0x11c   : > { %v772_v38 = vrot.slane %v2700_v36, 2  ;;  %v2732_v39 = vpop.f32.mrb[18].mxu1  ;;  %v691_v40 = vpop.f32.mrb[19].mxu0 }
 0x11d   : > { %v769_v42 = vrot.slane %v691_v40, 2  ;;  %v975_v43 = vpop.f32.mrb[19].mxu1 }
 0x11e   : > { %v773_v44 = vsel %vm767_vm1, %v771_v37, %v772_v38 }
 0x11f   : > { %v801_v46 = vadd.f32 %v773_v44, %v3396_v45  ;;  %v770_v48 = vsel %vm767_vm1, %v768_v41, %v769_v42 }
 0x120   : > { %v800_v49 = vadd.f32 %v770_v48, %v3399_v47 }
 0x121   : > { %v2703_v50 = vpop.f32.mrb[20].mxu0  ;;  %v3423_v51 = vadd.f32 %v2731_v33, %v801_v46 }
 0x122   : > { %v2735_v52 = vpop.f32.mrb[20].mxu1  ;;  %v704_v53 = vpop.f32.mrb[21].mxu0  ;;  %v3425_v54 = vadd.f32 %v972_v35, %v800_v49  ;;  %v777_v57 = vrot.slane %v2703_v50, 2 }
 0x123   : > { %v986_v55 = vpop.f32.mrb[21].mxu1  ;;  %v2704_v56 = vpop.f32.mrb[22].mxu0  ;;  %v774_v62 = vrot.slane %v704_v53, 2 }
 0x124   : > { %v778_v58 = vrot.slane %v2704_v56, 2  ;;  %v2736_v59 = vpop.f32.mrb[22].mxu1  ;;  %v707_v60 = vpop.f32.mrb[23].mxu0 }
 0x125   : > { %v775_v0 = vrot.slane %v707_v60, 2  ;;  %v989_v45 = vpop.f32.mrb[23].mxu1 }
 0x126   : > { %v779_v1 = vsel %vm767_vm1, %v777_v57, %v778_v58 }
 0x127   : > { %v803_v47 = vadd.f32 %v779_v1, %v3402_v61  ;;  %v776_v2 = vsel %vm767_vm1, %v774_v62, %v775_v0 }
 0x128   : > { %v802_v3 = vadd.f32 %v776_v2, %v3405_v63 }
 0x129   : > { %v2707_v4 = vpop.f32.mrb[24].mxu0  ;;  %v3431_v5 = vadd.f32 %v2735_v52, %v803_v47 }
 0x12a   : > { %v2739_v6 = vpop.f32.mrb[24].mxu1  ;;  %v720_v7 = vpop.f32.mrb[25].mxu0  ;;  %v3433_v8 = vadd.f32 %v986_v55, %v802_v3  ;;  %v783_v11 = vrot.slane %v2707_v4, 2 }
 0x12b   : > { %v1000_v9 = vpop.f32.mrb[25].mxu1  ;;  %v2708_v10 = vpop.f32.mrb[26].mxu0  ;;  %v780_v17 = vrot.slane %v720_v7, 2 }
 0x12c   : > { %v784_v12 = vrot.slane %v2708_v10, 2  ;;  %v2740_v14 = vpop.f32.mrb[26].mxu1  ;;  %v723_v16 = vpop.f32.mrb[27].mxu0 }
 0x12d   : > { %v781_v18 = vrot.slane %v723_v16, 2  ;;  %v1003_v61 = vpop.f32.mrb[27].mxu1 }
 0x12e   : > { %v785_v19 = vsel %vm767_vm1, %v783_v11, %v784_v12 }
 0x12f   : > { %v805_v63 = vadd.f32 %v785_v19, %v3408_v13  ;;  %v782_v20 = vsel %vm767_vm1, %v780_v17, %v781_v18 }
 0x130   : > { %v804_v21 = vadd.f32 %v782_v20, %v3411_v15 }
 0x131   : > { %v2711_v22 = vpop.f32.mrb[28].mxu0  ;;  %v3439_v23 = vadd.f32 %v2739_v6, %v805_v63 }
 0x132   : > { %v2743_v24 = vpop.f32.mrb[28].mxu1  ;;  %v736_v25 = vpop.f32.mrb[29].mxu0  ;;  %v3441_v26 = vadd.f32 %v1000_v9, %v804_v21  ;;  %v789_v30 = vrot.slane %v2711_v22, 2 }
 0x133   : > { %v1014_v27 = vpop.f32.mrb[29].mxu1  ;;  %v2712_v28 = vpop.f32.mrb[30].mxu0  ;;  %v786_v35 = vrot.slane %v736_v25, 2 }
 0x134   : > { %v790_v32 = vrot.slane %v2712_v28, 2  ;;  %v2744_v33 = vpop.f32.mrb[30].mxu1  ;;  %v739_v34 = vpop.f32.mrb[31].mxu0 }
 0x135   : > { %v787_v36 = vrot.slane %v739_v34, 2  ;;  %v1017_v13 = vpop.f32.mrb[31].mxu1 }
 0x136   : > { %v791_v37 = vsel %vm767_vm1, %v789_v30, %v790_v32 }
 0x137   : > { %v807_v15 = vadd.f32 %v791_v37, %v3414_v29  ;;  %v788_v38 = vsel %vm767_vm1, %v786_v35, %v787_v36 }
 0x138   : > { %v806_v39 = vadd.f32 %v788_v38, %v3417_v31 }
 0x139   : > { %v2763_v40 = vpop.f32.mrb[32].mxu0  ;;  %v3447_v41 = vadd.f32 %v2743_v24, %v807_v15 }
 0x13a   : > { %v2795_v42 = vpop.f32.mrb[32].mxu1  ;;  %v1134_v43 = vpop.f32.mrb[33].mxu0  ;;  %v3449_v44 = vadd.f32 %v1014_v27, %v806_v39  ;;  %v1216_v49 = vrot.slane %v2763_v40, 1 }
 0x13b   : > { %v1352_v46 = vpop.f32.mrb[33].mxu1  ;;  %v2764_v48 = vpop.f32.mrb[34].mxu0  ;;  %v1434_v55 = vrot.slane %v2795_v42, 2  ;;  %v1213_v56 = vrot.slane %v1134_v43, 1 }
 0x13c   : > { %v1217_v50 = vrot.slane %v2764_v48, 1  ;;  %v2796_v52 = vpop.f32.mrb[34].mxu1  ;;  %v1137_v53 = vpop.f32.mrb[35].mxu0  ;;  %v1431_v59 = vrot.slane %v1352_v46, 2 }
 0x13d   : > { %v1435_v29 = vrot.slane %v2796_v52, 2  ;;  %v1214_v57 = vrot.slane %v1137_v53, 1  ;;  %v1355_v58 = vpop.f32.mrb[35].mxu1 }
 0x13e   : > { %v1218_v31 = vsel %vm548_vm0, %v1216_v49, %v1217_v50  ;;  %v1432_v60 = vrot.slane %v1355_v58, 2 }
 0x13f   : > { %v1215_v62 = vsel %vm548_vm0, %v1213_v56, %v1214_v57  ;;  %v1246_v0 = vadd.f32 %v1218_v31, %v3423_v51  ;;  %v1436_v45 = vsel %vm767_vm1, %v1434_v55, %v1435_v29 }
 0x140   : > { %v1245_v1 = vadd.f32 %v1215_v62, %v3425_v54  ;;  %v1433_v47 = vsel %vm767_vm1, %v1431_v59, %v1432_v60 }
 0x141   : > { %v2767_v2 = vpop.f32.mrb[36].mxu0  ;;  %v3457_v3 = vadd.f32 %v1436_v45, %v1246_v0 }
 0x142   : > { %v2799_v4 = vpop.f32.mrb[36].mxu1  ;;  %v1150_v6 = vpop.f32.mrb[37].mxu0  ;;  %v3459_v7 = vadd.f32 %v1433_v47, %v1245_v1  ;;  %v1222_v11 = vrot.slane %v2767_v2, 1 }
 0x143   : > { %v1368_v9 = vpop.f32.mrb[37].mxu1  ;;  %v2768_v10 = vpop.f32.mrb[38].mxu0  ;;  %v1440_v51 = vrot.slane %v2799_v4, 2  ;;  %v1219_v17 = vrot.slane %v1150_v6, 1 }
 0x144   : > { %v1223_v12 = vrot.slane %v2768_v10, 1  ;;  %v2800_v14 = vpop.f32.mrb[38].mxu1  ;;  %v1153_v16 = vpop.f32.mrb[39].mxu0  ;;  %v1437_v19 = vrot.slane %v1368_v9, 2 }
 0x145   : > { %v1441_v18 = vrot.slane %v2800_v14, 2  ;;  %v1220_v61 = vrot.slane %v1153_v16, 1  ;;  %v1371_v54 = vpop.f32.mrb[39].mxu1 }
 0x146   : > { %v1224_v63 = vsel %vm548_vm0, %v1222_v11, %v1223_v12  ;;  %v1438_v20 = vrot.slane %v1371_v54, 2 }
 0x147   : > { %v1221_v21 = vsel %vm548_vm0, %v1219_v17, %v1220_v61  ;;  %v1248_v22 = vadd.f32 %v1224_v63, %v3431_v5  ;;  %v1442_v24 = vsel %vm767_vm1, %v1440_v51, %v1441_v18 }
 0x148   : > { %v1247_v25 = vadd.f32 %v1221_v21, %v3433_v8  ;;  %v1439_v27 = vsel %vm767_vm1, %v1437_v19, %v1438_v20 }
 0x149   : > { %v2771_v28 = vpop.f32.mrb[40].mxu0  ;;  %v3467_v30 = vadd.f32 %v1442_v24, %v1248_v22 }
 0x14a   : > { %v2803_v32 = vpop.f32.mrb[40].mxu1  ;;  %v1166_v33 = vpop.f32.mrb[41].mxu0  ;;  %v3469_v34 = vadd.f32 %v1439_v27, %v1247_v25  ;;  %v1228_v13 = vrot.slane %v2771_v28, 1 }
 0x14b   : > { %v1384_v35 = vpop.f32.mrb[41].mxu1  ;;  %v2772_v36 = vpop.f32.mrb[42].mxu0  ;;  %v1446_v5 = vrot.slane %v2803_v32, 2  ;;  %v1225_v39 = vrot.slane %v1166_v33, 1 }
 0x14c   : > { %v1229_v37 = vrot.slane %v2772_v36, 1  ;;  %v2804_v15 = vpop.f32.mrb[42].mxu1  ;;  %v1169_v38 = vpop.f32.mrb[43].mxu0  ;;  %v1443_v43 = vrot.slane %v1384_v35, 2 }
 0x14d   : > { %v1447_v40 = vrot.slane %v2804_v15, 2  ;;  %v1226_v42 = vrot.slane %v1169_v38, 1  ;;  %v1387_v8 = vpop.f32.mrb[43].mxu1 }
 0x14e   : > { %v1230_v46 = vsel %vm548_vm0, %v1228_v13, %v1229_v37  ;;  %v1444_v48 = vrot.slane %v1387_v8, 2 }
 0x14f   : > { %v1227_v49 = vsel %vm548_vm0, %v1225_v39, %v1226_v42  ;;  %v1250_v50 = vadd.f32 %v1230_v46, %v3439_v23  ;;  %v1448_v52 = vsel %vm767_vm1, %v1446_v5, %v1447_v40 }
 0x150   : > { %v1249_v53 = vadd.f32 %v1227_v49, %v3441_v26  ;;  %v1445_v55 = vsel %vm767_vm1, %v1443_v43, %v1444_v48 }
 0x151   : > { %v2775_v56 = vpop.f32.mrb[44].mxu0  ;;  %v1468_v29 = vadd.f32 %v1448_v52, %v1250_v50 }
 0x152   : > { %v2807_v57 = vpop.f32.mrb[44].mxu1  ;;  %v1182_v58 = vpop.f32.mrb[45].mxu0  ;;  %v1467_v59 = vadd.f32 %v1445_v55, %v1249_v53  ;;  %v1234_v62 = vrot.slane %v2775_v56, 1 }
 0x153   : > { %v1400_v31 = vpop.f32.mrb[45].mxu1  ;;  %v2776_v60 = vpop.f32.mrb[46].mxu0  ;;  %v1452_v47 = vrot.slane %v2807_v57, 2  ;;  %v1231_v2 = vrot.slane %v1182_v58, 1 }
 0x154   : > { %v1235_v0 = vrot.slane %v2776_v60, 1  ;;  %v2808_v45 = vpop.f32.mrb[46].mxu1  ;;  %v1185_v1 = vpop.f32.mrb[47].mxu0  ;;  %v1449_v9 = vrot.slane %v1400_v31, 2 }
 0x155   : > { %v1453_v23 = vrot.slane %v2808_v45, 2  ;;  %v1232_v4 = vrot.slane %v1185_v1, 1  ;;  %v1403_v6 = vpop.f32.mrb[47].mxu1 }
 0x156   : > { %v1236_v26 = vsel %vm548_vm0, %v1234_v62, %v1235_v0  ;;  %v1450_v10 = vrot.slane %v1403_v6, 2 }
 0x157   : > { %v1233_v11 = vsel %vm548_vm0, %v1231_v2, %v1232_v4  ;;  %v1252_v12 = vadd.f32 %v1236_v26, %v3447_v41  ;;  %v1454_v14 = vsel %vm767_vm1, %v1452_v47, %v1453_v23 }
 0x158   : > { %v1251_v16 = vadd.f32 %v1233_v11, %v3449_v44  ;;  %v1451_v51 = vsel %vm767_vm1, %v1449_v9, %v1450_v10 }
 0x159   : > { %v2827_v17 = vpop.f32.mrb[48].mxu0  ;;  %v1470_v18 = vadd.f32 %v1454_v14, %v1252_v12 }
 0x15a   : > { %v1691_v61 = vadd.f32 %v2827_v17, %v3457_v3  ;;  %v2859_v54 = vpop.f32.mrb[48].mxu1  ;;  %v1635_v19 = vpop.f32.mrb[49].mxu0  ;;  %v1469_v63 = vadd.f32 %v1451_v51, %v1251_v16 }
 0x15b   : > { %v1690_v20 = vadd.f32 %v1635_v19, %v3459_v7  ;;  %v1797_v21 = vpop.f32.mrb[49].mxu1  ;;  %v2828_v22 = vpop.f32.mrb[50].mxu0  ;;  %v1879_v41 = vrot.slane %v2859_v54, 1 }
 0x15c   : > { %v2860_v24 = vpop.f32.mrb[50].mxu1  ;;  %v1638_v25 = vpop.f32.mrb[51].mxu0  ;;  %v1876_v32 = vrot.slane %v1797_v21, 1 }
 0x15d   : > { %v1880_v27 = vrot.slane %v2860_v24, 1  ;;  %v1800_v28 = vpop.f32.mrb[51].mxu1 }
 0x15e   : > { %v1877_v44 = vrot.slane %v1800_v28, 1 }
 0x15f   : > { %v1881_v33 = vsel %vm548_vm0, %v1879_v41, %v1880_v27 }
 0x160   : > { %v3486_v35 = vadd.f32 %v1881_v33, %v1691_v61  ;;  %v1878_v3 = vsel %vm548_vm0, %v1876_v32, %v1877_v44 }
 0x161   : > { %v3489_v36 = vadd.f32 %v1878_v3, %v1690_v20  ;;  %v2831_v13 = vpop.f32.mrb[52].mxu0 }
 0x162   : > { %v1693_v7 = vadd.f32 %v2831_v13, %v3467_v30  ;;  %v2863_v37 = vpop.f32.mrb[52].mxu1  ;;  %v1649_v15 = vpop.f32.mrb[53].mxu0 }
 0x163   : > { %v1692_v38 = vadd.f32 %v1649_v15, %v3469_v34  ;;  %v1813_v5 = vpop.f32.mrb[53].mxu1  ;;  %v2832_v39 = vpop.f32.mrb[54].mxu0  ;;  %v1885_v8 = vrot.slane %v2863_v37, 1 }
 0x164   : > { %v2864_v40 = vpop.f32.mrb[54].mxu1  ;;  %v1652_v42 = vpop.f32.mrb[55].mxu0  ;;  %v1882_v48 = vrot.slane %v1813_v5, 1 }
 0x165   : > { %v1886_v43 = vrot.slane %v2864_v40, 1  ;;  %v1816_v46 = vpop.f32.mrb[55].mxu1 }
 0x166   : > { %v1883_v49 = vrot.slane %v1816_v46, 1 }
 0x167   : > { %v1887_v50 = vsel %vm548_vm0, %v1885_v8, %v1886_v43 }
 0x168   : > { %v3494_v52 = vadd.f32 %v1887_v50, %v1693_v7  ;;  %v1884_v53 = vsel %vm548_vm0, %v1882_v48, %v1883_v49 }
 0x169   : > { %v3497_v30 = vadd.f32 %v1884_v53, %v1692_v38  ;;  %v2835_v55 = vpop.f32.mrb[56].mxu0 }
 0x16a   : > { %v1695_v56 = vadd.f32 %v2835_v55, %v1468_v29  ;;  %v2867_v34 = vpop.f32.mrb[56].mxu1  ;;  %v1663_v57 = vpop.f32.mrb[57].mxu0 }
 0x16b   : > { %v1694_v58 = vadd.f32 %v1663_v57, %v1467_v59  ;;  %v1829_v31 = vpop.f32.mrb[57].mxu1  ;;  %v2836_v60 = vpop.f32.mrb[58].mxu0  ;;  %v1891_v45 = vrot.slane %v2867_v34, 1 }
 0x16c   : > { %v2868_v62 = vpop.f32.mrb[58].mxu1  ;;  %v1666_v0 = vpop.f32.mrb[59].mxu0  ;;  %v1888_v2 = vrot.slane %v1829_v31, 1 }
 0x16d   : > { %v1892_v1 = vrot.slane %v2868_v62, 1  ;;  %v1832_v47 = vpop.f32.mrb[59].mxu1 }
 0x16e   : > { %v1889_v23 = vrot.slane %v1832_v47, 1 }
 0x16f   : > { %v1893_v4 = vsel %vm548_vm0, %v1891_v45, %v1892_v1 }
 0x170   : > { %v1913_v6 = vadd.f32 %v1893_v4, %v1695_v56  ;;  %v1890_v9 = vsel %vm548_vm0, %v1888_v2, %v1889_v23 }
 0x171   : > { %v1912_v26 = vadd.f32 %v1890_v9, %v1694_v58  ;;  %v2839_v10 = vpop.f32.mrb[60].mxu0 }
 0x172   : > { %v1697_v29 = vadd.f32 %v2839_v10, %v1470_v18  ;;  %v2871_v11 = vpop.f32.mrb[60].mxu1  ;;  %v1677_v12 = vpop.f32.mrb[61].mxu0 }
 0x173   : > { %v1696_v59 = vadd.f32 %v1677_v12, %v1469_v63  ;;  %v1845_v14 = vpop.f32.mrb[61].mxu1  ;;  %v2840_v16 = vpop.f32.mrb[62].mxu0  ;;  %v1897_v61 = vrot.slane %v2871_v11, 1 }
 0x174   : > { %v2872_v51 = vpop.f32.mrb[62].mxu1  ;;  %v1680_v17 = vpop.f32.mrb[63].mxu0  ;;  %v1894_v20 = vrot.slane %v1845_v14, 1 }
 0x175   : > { %v1898_v54 = vrot.slane %v2872_v51, 1  ;;  %v1848_v19 = vpop.f32.mrb[63].mxu1 }
 0x176   : > { %v1895_v21 = vrot.slane %v1848_v19, 1 }
 0x177   : > { %v1899_v22 = vsel %vm548_vm0, %v1897_v61, %v1898_v54 }
 0x178   : > { %v1915_v24 = vadd.f32 %v1899_v22, %v1697_v29  ;;  %v1896_v25 = vsel %vm548_vm0, %v1894_v20, %v1895_v21 }
 0x179   : > { %v1914_v41 = vadd.f32 %v1896_v25, %v1696_v59  ;;  %v2891_v18 = vpop.f32.mrb[64].mxu0 }
 0x17a   : > { %v2899_v27 = vpop.f32.mrb[64].mxu1  ;;  %v2015_v28 = vpop.f32.mrb[65].mxu0  ;;  %v2097_v44 = vrot.slane %v2891_v18, 2 }
 0x17b   : > { %v2047_v63 = vpop.f32.mrb[65].mxu1  ;;  %v2892_v32 = vpop.f32.mrb[66].mxu0  ;;  %v2109_v7 = vrot.slane %v2899_v27, 2  ;;  %v2094_v37 = vrot.slane %v2015_v28, 2 }
 0x17c   : > { %v2098_v33 = vrot.slane %v2892_v32, 2  ;;  %v2900_v3 = vpop.f32.mrb[66].mxu1  ;;  %v2018_v13 = vpop.f32.mrb[67].mxu0  ;;  %v2106_v39 = vrot.slane %v2047_v63, 2 }
 0x17d   : > { %v2110_v15 = vrot.slane %v2900_v3, 2  ;;  %v2095_v38 = vrot.slane %v2018_v13, 2  ;;  %v2050_v5 = vpop.f32.mrb[67].mxu1 }
 0x17e   : > { %v2099_v40 = vsel %vm767_vm1, %v2097_v44, %v2098_v33  ;;  %v2107_v42 = vrot.slane %v2050_v5, 2 }
 0x17f   : > { %v2127_v8 = vadd.f32 %v2099_v40, %v3486_v35  ;;  %v2111_v43 = vsel %vm767_vm1, %v2109_v7, %v2110_v15  ;;  %v2096_v46 = vsel %vm767_vm1, %v2094_v37, %v2095_v38 }
 0x180   : > { %v2131_v48 = vadd.f32 %v2111_v43, %v1913_v6  ;;  %v2126_v49 = vadd.f32 %v2096_v46, %v3489_v36  ;;  %v2108_v50 = vsel %vm767_vm1, %v2106_v39, %v2107_v42 }
 0x181   : > { %v2135_v53 = vpack.c.bf16 %v2127_v8, %v2127_v8  ;;  %v2130_v35 = vadd.f32 %v2108_v50, %v1912_v26  ;;  %v2895_v55 = vpop.f32.mrb[68].mxu0 }
 0x182   : > { %v2139_v56 = vpack.c.bf16 %v2131_v48, %v2131_v48  ;;  %v2134_v34 = vpack.c.bf16 %v2126_v49, %v2126_v49  ;;  %v2903_v57 = vpop.f32.mrb[68].mxu1  ;;  %v2031_v58 = vpop.f32.mrb[69].mxu0  ;;  %v2103_v36 = vrot.slane %v2895_v55, 2 }
 0x183   : > { %2144 = vst.msk [vmem:[%s3511_s8 + $0x4] sm:$0xf] %vm2142_vm2, %v2135_v53  ;;  %v2138_v31 = vpack.c.bf16 %v2130_v35, %v2130_v35  ;;  %v2063_v60 = vpop.f32.mrb[69].mxu1  ;;  %v2896_v62 = vpop.f32.mrb[70].mxu0  ;;  %v2115_v47 = vrot.slane %v2903_v57, 2  ;;  %v2100_v2 = vrot.slane %v2031_v58, 2 }
 0x184   : > { %2148 = vst.msk [vmem:[%s3511_s8 + $0x14] sm:$0xf] %vm2142_vm2, %v2139_v56  ;;  %2143 = vst.msk [vmem:[%s3511_s8] sm:$0xf] %vm2142_vm2, %v2134_v34  ;;  %v2104_v0 = vrot.slane %v2896_v62, 2  ;;  %v2904_v45 = vpop.f32.mrb[70].mxu1 }
 0x185   : > { %v2034_v1 = vpop.f32.mrb[71].mxu0  ;;  %2147 = vst.msk [vmem:[%s3511_s8 + $0x10] sm:$0xf] %vm2142_vm2, %v2138_v31  ;;  %v2116_v23 = vrot.slane %v2904_v45, 2  ;;  %v2066_v6 = vpop.f32.mrb[71].mxu1  ;;  %v2112_v9 = vrot.slane %v2063_v60, 2 }
 0x186   : > { %v2101_v4 = vrot.slane %v2034_v1, 2  ;;  %v2105_v26 = vsel %vm767_vm1, %v2103_v36, %v2104_v0  ;;  %v2113_v10 = vrot.slane %v2066_v6, 2 }
 0x187   : > { %v2129_v29 = vadd.f32 %v2105_v26, %v3494_v52  ;;  %v2117_v11 = vsel %vm767_vm1, %v2115_v47, %v2116_v23 }
 0x188   : > { %v2102_v12 = vsel %vm767_vm1, %v2100_v2, %v2101_v4  ;;  %v2133_v59 = vadd.f32 %v2117_v11, %v1915_v24  ;;  %v2114_v16 = vsel %vm767_vm1, %v2112_v9, %v2113_v10 }
 0x189   : > { %v2128_v14 = vadd.f32 %v2102_v12, %v3497_v30  ;;  %v2137_v51 = vpack.c.bf16 %v2129_v29, %v2129_v29  ;;  %v2132_v17 = vadd.f32 %v2114_v16, %v1914_v41 }
 0x18a   : > { %v2141_v61 = vpack.c.bf16 %v2133_v59, %v2133_v59 }
 0x18b   : > { %v2136_v54 = vpack.c.bf16 %v2128_v14, %v2128_v14  ;;  %2146 = vst.msk [vmem:[%s3511_s8 + $0xc] sm:$0xf] %vm2142_vm2, %v2137_v51  ;;  %v2140_v19 = vpack.c.bf16 %v2132_v17, %v2132_v17 }
 0x18c   : > { %2150 = vst.msk [vmem:[%s3511_s8 + $0x1c] sm:$0xf] %vm2142_vm2, %v2141_v61 }
 0x18d   : > { %2145 = vst.msk [vmem:[%s3511_s8 + $0x8] sm:$0xf] %vm2142_vm2, %v2136_v54  ;;  %2149 = vst.msk [vmem:[%s3511_s8 + $0x18] sm:$0xf] %vm2142_vm2, %v2140_v19 }
 0x18e PF: > { %s12_s9 = sadd.s32 1, %s3032_s9  }
 0x18f   : > { %p9_p4 = scmp.ge.s32.totalorder %s12_s9, 4  }
 0x191   :  { %11 = sbr.rel (!%p9_p4) target bundleno = 1 (0x1), region = 68 }

// kernel: densenet121_forward.135
= control target key start
LH: loop header
LB: loop body
LE: loop exit
PB: predicated region body
PF: predicated region fallthrough
CT: control target
= control target key end

     0   :  { %s851_s15 = smov 0   ;;  %s926_s0 = inlined_call_operand.vmem [shape: bf16[128,256], index: 0, kind: input, shape index: {}]   ;;  %s927_s1 = inlined_call_operand.vmem [shape: bf16[256,128], index: 1, kind: input, shape index: {}]   ;;  %s928_s2 = inlined_call_operand.vmem [shape: bf16[1,256], index: 2, kind: input, shape index: {}]   ;;  %s929_s3 = inlined_call_operand.vmem [shape: bf16[1,256], index: 3, kind: input, shape index: {}]   ;;  %s930_s4 = inlined_call_operand.vmem [shape: bf16[128,128], index: 4, kind: output, shape index: {}]  }
   0x1 LB: > { %s654_s16 = sadd.s32 4294967295, %s822_s15   ;;  %p658_p0 = scmp.ge.s32.totalorder %s822_s15, 1  ;;  %s822_s15 = sphi %s851_s15, %s14_s15  }
   0x2   : > { %p164_p1 = scmp.lt.s32.totalorder %s822_s15, 3 }
   0x4   : > { %p165_p2 = pnand %p658_p0, %p164_p1 }
   0x5   : > { %v800_v0 = vld [vmem:[%s927_s1 + $0x40] sm:$0xff] (!%p165_p2)   ;;  %v802_v2 = vld [vmem:[%s927_s1 + $0x48] sm:$0xff] (!%p165_p2)   ;;  %v804_v4 = vld [vmem:[%s927_s1 + $0x50] sm:$0xff] (!%p165_p2)   ;;  %s659_s7 = sshll.u32 (!%p165_p2), %s654_s16, 3  ;;  %v226_v9 = vlaneseq (!%p165_p2)  ;;  %v824_v13 = vmov (!%p165_p2), 1966171168  }
   0x6   : > { %168 = sbr.rel (%p165_p2) target bundleno = 266 (0x10a), region = 36  ;;  %v801_v1 = vld [vmem:[%s927_s1] sm:$0xff] (!%p165_p2)   ;;  %734 = vmatprep.subr.bf16.mxu0 (!%p165_p2), %v800_v0  ;;  %774 = vmatprep.subr.bf16.mxu1 (!%p165_p2), %v800_v0  ;;  %v803_v3 = vld [vmem:[%s927_s1 + $0x8] sm:$0xff] (!%p165_p2)   ;;  %v805_v5 = vld [vmem:[%s927_s1 + $0x10] sm:$0xff] (!%p165_p2)   ;;  %p192_p3 = scmp.lt.s32.totalorder (!%p165_p2), %s659_s7, 15  ;;  %v224_v14 = vunpack.c.l.s4 (!%p165_p2), %v824_v13 }
   0x7   : > { %735 = vmatpush3.bf16.msra.mxu0 (!%p165_p2), %v801_v1  ;;  %782 = vmatpush3.bf16.msra.mxu1 (!%p165_p2), %v801_v1  ;;  %v806_v6 = vld [vmem:[%s927_s1 + $0x58] sm:$0xff] (!%p165_p2)   ;;  %v808_v8 = vld [vmem:[%s927_s1 + $0x60] sm:$0xff] (!%p165_p2)   ;;  %v810_v11 = vld [vmem:[%s927_s1 + $0x68] sm:$0xff] (!%p165_p2)   ;;  %v227_v15 = vshrl.u32 (!%p165_p2), %v226_v9, 7  ;;  %v825_v1 = vmov (!%p165_p2), 0  }
   0x8   : > { %736 = vmatprep.subr.bf16.mxu0 (!%p165_p2), %v802_v2  ;;  %775 = vmatprep.subr.bf16.mxu1 (!%p165_p2), %v802_v2  ;;  %v807_v7 = vld [vmem:[%s927_s1 + $0x18] sm:$0xff] (!%p165_p2)   ;;  %v809_v10 = vld [vmem:[%s927_s1 + $0x20] sm:$0xff] (!%p165_p2)   ;;  %v811_v17 = vld [vmem:[%s927_s1 + $0x28] sm:$0xff] (!%p165_p2)   ;;  %v225_v20 = vunpack.c.0.s8 (!%p165_p2), %v224_v14 }
   0x9   : > { %v664_v12 = vld.sshfl [vmem:[%s928_s2] sm:$0x11 pattern:$0x75316420] (!%p165_p2)  ;;  %v812_v18 = vld [vmem:[%s927_s1 + $0x70] sm:$0xff] (!%p165_p2)   ;;  %v814_v24 = vld [vmem:[%s927_s1 + $0x78] sm:$0xff] (!%p165_p2)  }
   0xa   : > { %v666_v16 = vld.sshfl [vmem:[%s929_s3] sm:$0x11 pattern:$0x75316420] (!%p165_p2)  ;;  %v222_v19 = vcombine.high (!%p165_p2), %v664_v12, %v664_v12  ;;  %v228_v22 = vsub.s32 (!%p165_p2), %v225_v20, %v227_v15  ;;  %v813_v23 = vld [vmem:[%s927_s1 + $0x30] sm:$0xff] (!%p165_p2)   ;;  %v242_v27 = vsub.s32 (!%p165_p2), 0, %v227_v15 }
   0xb   : > { %737 = vmatpush3.bf16.msra.mxu0 (!%p165_p2), %v803_v3  ;;  %783 = vmatpush3.bf16.msra.mxu1 (!%p165_p2), %v803_v3  ;;  %v274_v21 = vcombine.high (!%p165_p2), %v666_v16, %v666_v16  ;;  %v815_v33 = vld [vmem:[%s927_s1 + $0x38] sm:$0xff] (!%p165_p2)  }
   0xc   : > { %738 = vmatprep.subr.bf16.mxu0 (!%p165_p2), %v804_v4  ;;  %776 = vmatprep.subr.bf16.mxu1 (!%p165_p2), %v804_v4  ;;  %v229_v25 = vrot.slane (!%p165_p2), %v664_v12, %v228_v22  ;;  %v236_v26 = vrot.slane (!%p165_p2), %v222_v19, %v228_v22  ;;  %v281_v28 = vrot.slane (!%p165_p2), %v666_v16, %v228_v22 }
   0xd   : > { %s932_s7 = smov (!%p192_p3, %s659_s7), 15  ;;  %v288_v29 = vrot.slane %v274_v21, %v228_v22 }
   0xe   : > { %s702_s23 = sshll.u32 %s932_s7, 3  ;;  %v238_v30 = vpack.i.b16 %v229_v25, %v229_v25  ;;  %v245_v31 = vpack.i.b16 %v236_v26, %v236_v26  ;;  %v290_v32 = vpack.i.b16 %v281_v28, %v281_v28  ;;  %s663_s8 = sshll.u32 %s932_s7, 2 }
   0xf   : > { %739 = vmatpush3.bf16.msra.mxu0 %v805_v5  ;;  %784 = vmatpush3.bf16.msra.mxu1 %v805_v5  ;;  %s196_s30 = scalar_lea.vmem %s926_s0, %s702_s23  ;;  %v297_v34 = vpack.i.b16 %v288_v29, %v288_v29  ;;  %s202_s11 = scalar_lea.vmem %s930_s4, %s663_s8 }
  0x10   : > { %740 = vmatprep.subr.bf16.mxu0 %v806_v6  ;;  %777 = vmatprep.subr.bf16.mxu1 %v806_v6  ;;  %v205_v35 = vld [vmem:[%s196_s30] sm:$0xff]  ;;  %v206_v36 = vld [vmem:[%s196_s30 + $0x8] sm:$0xff]  ;;  %v243_v37 = vrot.slane %v238_v30, %v242_v27  ;;  %v250_v38 = vrot.slane %v245_v31, %v242_v27  ;;  %v295_v39 = vrot.slane %v290_v32, %v242_v27  ;;  %v207_v43 = vld [vmem:[%s196_s30 + $0x10] sm:$0xff] }
  0x11   : > { %v302_v40 = vrot.slane %v297_v34, %v242_v27  ;;  %v209_v41 = vld [vmem:[%s196_s30 + $0x20] sm:$0xff]  ;;  %v210_v42 = vld [vmem:[%s196_s30 + $0x28] sm:$0xff]  ;;  %v208_v45 = vld [vmem:[%s196_s30 + $0x18] sm:$0xff] }
  0x12   : > { %v665_v44 = vcombine.low %v243_v37, %v250_v38  ;;  %v211_v46 = vld [vmem:[%s196_s30 + $0x30] sm:$0xff]  ;;  %v212_v47 = vld [vmem:[%s196_s30 + $0x38] sm:$0xff] }
  0x13   : > { %741 = vmatpush3.bf16.msra.mxu0 %v807_v7  ;;  %785 = vmatpush3.bf16.msra.mxu1 %v807_v7  ;;  %v667_v48 = vcombine.low %v295_v39, %v302_v40 }
  0x14   : > { %742 = vmatprep.subr.bf16.mxu0 %v808_v8  ;;  %778 = vmatprep.subr.bf16.mxu1 %v808_v8  ;;  %v257_v49 = vmul.bf16 %v665_v44, %v205_v35  ;;  %v258_v50 = vmul.bf16 %v665_v44, %v206_v36  ;;  %v261_v51 = vmul.bf16 %v665_v44, %v209_v41 }
  0x15   : > { %v262_v52 = vmul.bf16 %v665_v44, %v210_v42  ;;  %v259_v53 = vmul.bf16 %v665_v44, %v207_v43  ;;  %v260_v54 = vmul.bf16 %v665_v44, %v208_v45  ;;  %v263_v55 = vmul.bf16 %v665_v44, %v211_v46 }
  0x16   : > { %v264_v56 = vmul.bf16 %v665_v44, %v212_v47  ;;  %v309_v57 = vadd.bf16 %v667_v48, %v257_v49  ;;  %v310_v58 = vadd.bf16 %v667_v48, %v258_v50  ;;  %v313_v59 = vadd.bf16 %v667_v48, %v261_v51 }
  0x17   : > { %743 = vmatpush3.bf16.msra.mxu0 %v809_v10  ;;  %786 = vmatpush3.bf16.msra.mxu1 %v809_v10  ;;  %v314_v60 = vadd.bf16 %v667_v48, %v262_v52  ;;  %v311_v61 = vadd.bf16 %v667_v48, %v259_v53  ;;  %v312_v62 = vadd.bf16 %v667_v48, %v260_v54 }
  0x18   : > { %744 = vmatprep.subr.bf16.mxu0 %v810_v11  ;;  %779 = vmatprep.subr.bf16.mxu1 %v810_v11  ;;  %v315_v63 = vadd.bf16 %v667_v48, %v263_v55  ;;  %v316_v0 = vadd.bf16 %v667_v48, %v264_v56  ;;  %v317_v2 = vmax.bf16 %v825_v1, %v309_v57 }
  0x19   : > { %v318_v3 = vmax.bf16 %v825_v1, %v310_v58  ;;  %v321_v4 = vmax.bf16 %v825_v1, %v313_v59  ;;  %v322_v5 = vmax.bf16 %v825_v1, %v314_v60  ;;  %v319_v6 = vmax.bf16 %v825_v1, %v311_v61 }
  0x1a   : > { %v320_v7 = vmax.bf16 %v825_v1, %v312_v62  ;;  %v323_v8 = vmax.bf16 %v825_v1, %v315_v63  ;;  %v324_v9 = vmax.bf16 %v825_v1, %v316_v0 }
  0x1b   : > { %745 = vmatpush3.bf16.msra.mxu0 %v811_v17  ;;  %787 = vmatpush3.bf16.msra.mxu1 %v811_v17  ;;  %v669_v10 = vcombine.high %v317_v2, %v318_v3  ;;  %v673_v11 = vcombine.high %v321_v4, %v322_v5  ;;  %v668_v12 = vcombine.low %v317_v2, %v318_v3 }
  0x1c   : > { %746 = vmatprep.subr.bf16.mxu0 %v812_v18  ;;  %780 = vmatprep.subr.bf16.mxu1 %v812_v18  ;;  %v672_v13 = vcombine.low %v321_v4, %v322_v5  ;;  %v671_v14 = vcombine.high %v319_v6, %v320_v7  ;;  %v675_v15 = vcombine.high %v323_v8, %v324_v9 }
  0x1d   : > { %525 = vmatprep.mubr.bf16.mxu0 %v669_v10  ;;  %541 = vmatprep.mubr.bf16.mxu1 %v673_v11  ;;  %v670_v16 = vcombine.low %v319_v6, %v320_v7  ;;  %v674_v17 = vcombine.low %v323_v8, %v324_v9 }
  0x1f   : > { %747 = vmatpush3.bf16.msra.mxu0 %v813_v23  ;;  %788 = vmatpush3.bf16.msra.mxu1 %v813_v23 }
  0x20   : > { %748 = vmatprep.subr.bf16.mxu0 %v814_v24  ;;  %781 = vmatprep.subr.bf16.mxu1 %v814_v24 }
  0x23   : > { %749 = vmatpush3.bf16.msra.mxu0 %v815_v33  ;;  %789 = vmatpush3.bf16.msra.mxu1 %v815_v33 }
  0x26   : > { %526 = vmatmul.mubr.bf16.vlgmr.msra.gmra.mrb[0].mxu0 %v668_v12  ;;  %542 = vmatmul.mubr.bf16.vlgmr.msra.gmra.mrb[0].mxu1 %v672_v13 }
  0x27   : > { %533 = vmatprep.mubr.bf16.mxu0 %v671_v14  ;;  %549 = vmatprep.mubr.bf16.mxu1 %v675_v15 }
  0x2e   : > { %534 = vmatmul.mubr.bf16.gmra.mrb[4].mxu0 %v670_v16  ;;  %550 = vmatmul.mubr.bf16.gmra.mrb[4].mxu1 %v674_v17 }
  0xf9   : > { %v750_v18 = vpop.f32.mrb[0].mxu0  ;;  %v762_v19 = vpop.f32.mrb[0].mxu1 }
  0xfa   : > { %v751_v20 = vpop.f32.mrb[1].mxu0  ;;  %v763_v21 = vpop.f32.mrb[1].mxu1 }
  0xfb   : > { %v752_v22 = vadd.f32 %v751_v20, %v750_v18  ;;  %v764_v23 = vadd.f32 %v763_v21, %v762_v19  ;;  %v753_v24 = vpop.f32.mrb[2].mxu0  ;;  %v765_v25 = vpop.f32.mrb[2].mxu1 }
  0xfc   : > { %v754_v26 = vpop.f32.mrb[3].mxu0  ;;  %v766_v27 = vpop.f32.mrb[3].mxu1 }
  0xfd   : > { %v755_v28 = vadd.f32 %v754_v26, %v753_v24  ;;  %v767_v29 = vadd.f32 %v766_v27, %v765_v25 }
  0xff   : > { %v714_v30 = vpack.c.bf16 %v755_v28, %v752_v22  ;;  %v724_v31 = vpack.c.bf16 %v767_v29, %v764_v23 }
 0x101   : > { %715 = vst [vmem:[%s202_s11] sm:$0xff] %v714_v30   ;;  %732 = vst [vmem:[%s202_s11 + $0x10] sm:$0xff] %v724_v31   ;;  %v756_v32 = vpop.f32.mrb[4].mxu0  ;;  %v768_v33 = vpop.f32.mrb[4].mxu1 }
 0x102   : > { %v757_v34 = vpop.f32.mrb[5].mxu0  ;;  %v769_v35 = vpop.f32.mrb[5].mxu1 }
 0x103   : > { %v758_v36 = vadd.f32 %v757_v34, %v756_v32  ;;  %v770_v37 = vadd.f32 %v769_v35, %v768_v33  ;;  %v759_v38 = vpop.f32.mrb[6].mxu0  ;;  %v771_v39 = vpop.f32.mrb[6].mxu1 }
 0x104   : > { %v760_v40 = vpop.f32.mrb[7].mxu0  ;;  %v772_v41 = vpop.f32.mrb[7].mxu1 }
 0x105   : > { %v761_v42 = vadd.f32 %v760_v40, %v759_v38  ;;  %v773_v43 = vadd.f32 %v772_v41, %v771_v39 }
 0x107   : > { %v719_v44 = vpack.c.bf16 %v761_v42, %v758_v36  ;;  %v729_v45 = vpack.c.bf16 %v773_v43, %v770_v37 }
 0x109   : > { %731 = vst [vmem:[%s202_s11 + $0x8] sm:$0xff] %v719_v44   ;;  %733 = vst [vmem:[%s202_s11 + $0x18] sm:$0xff] %v729_v45  }
 0x10a PF: > { %s14_s15 = sadd.s32 1, %s822_s15  }
 0x10b   : > { %p11_p4 = scmp.ge.s32.totalorder %s14_s15, 4  }
 0x10d   :  { %13 = sbr.rel (!%p11_p4) target bundleno = 1 (0x1), region = 66 }

// kernel: densenet121_forward.136
= control target key start
LH: loop header
LB: loop body
LE: loop exit
PB: predicated region body
PF: predicated region fallthrough
CT: control target
= control target key end

     0   :  { %s1048_s21 = smov 0   ;;  %s1179_s0 = inlined_call_operand.vmem [shape: bf16[32,512], index: 0, kind: input, shape index: {}]   ;;  %s1180_s1 = inlined_call_operand.vmem [shape: bf16[512,128], index: 1, kind: input, shape index: {}]   ;;  %s1181_s2 = inlined_call_operand.vmem [shape: bf16[1,512], index: 2, kind: input, shape index: {}]   ;;  %s1182_s3 = inlined_call_operand.vmem [shape: bf16[1,512], index: 3, kind: input, shape index: {}]   ;;  %s1183_s4 = inlined_call_operand.vmem [shape: f32[1,128], index: 4, kind: input, shape index: {}]   ;;  %s1184_s5 = inlined_call_operand.vmem [shape: f32[1,128], index: 5, kind: input, shape index: {}]   ;;  %s1185_s6 = inlined_call_operand.vmem [shape: bf16[32,128], index: 6, kind: output, shape index: {}]  }
   0x1 LB: > { %s851_s22 = sadd.s32 4294967295, %s1009_s21   ;;  %p855_p0 = scmp.ge.s32.totalorder %s1009_s21, 1  ;;  %s1009_s21 = sphi %s1048_s21, %s16_s21  }
   0x2   : > { %p214_p1 = scmp.lt.s32.totalorder %s1009_s21, 3 }
   0x4   : > { %p215_p2 = pnand %p855_p0, %p214_p1 }
   0x5   : > { %v971_v0 = vld [vmem:[%s1180_s1 + $0x40] sm:$0xff] (!%p215_p2)   ;;  %v975_v4 = vld [vmem:[%s1180_s1 + $0x48] sm:$0xff] (!%p215_p2)   ;;  %v979_v8 = vld [vmem:[%s1180_s1 + $0x50] sm:$0xff] (!%p215_p2)   ;;  %s856_s13 = sshll.u32 (!%p215_p2), %s851_s22, 1  ;;  %v276_v31 = vlaneseq (!%p215_p2)  ;;  %v1011_v35 = vmov (!%p215_p2), 1966171168  }
   0x6   : > { %218 = sbr.rel (%p215_p2) target bundleno = 268 (0x10c), region = 44  ;;  %v972_v1 = vld [vmem:[%s1180_s1 + $0xc0] sm:$0xff] (!%p215_p2)   ;;  %917 = vmatprep.subr.bf16.mxu0 (!%p215_p2), %v971_v0  ;;  %v976_v5 = vld [vmem:[%s1180_s1 + $0xc8] sm:$0xff] (!%p215_p2)   ;;  %v980_v9 = vld [vmem:[%s1180_s1 + $0xd0] sm:$0xff] (!%p215_p2)   ;;  %p246_p3 = scmp.lt.s32.totalorder (!%p215_p2), %s856_s13, 3  ;;  %v274_v36 = vunpack.c.l.s4 (!%p215_p2), %v1011_v35 }
   0x7   : > { %v973_v2 = vld [vmem:[%s1180_s1] sm:$0xff] (!%p215_p2)   ;;  %939 = vmatprep.subr.bf16.mxu1 (!%p215_p2), %v972_v1  ;;  %v977_v6 = vld [vmem:[%s1180_s1 + $0x8] sm:$0xff] (!%p215_p2)   ;;  %v981_v10 = vld [vmem:[%s1180_s1 + $0x10] sm:$0xff] (!%p215_p2)   ;;  %v277_v37 = vshrl.u32 (!%p215_p2), %v276_v31, 7 }
   0x8   : > { %v974_v3 = vld [vmem:[%s1180_s1 + $0x80] sm:$0xff] (!%p215_p2)   ;;  %918 = vmatpush3.bf16.msra.mxu0 (!%p215_p2), %v973_v2  ;;  %v978_v7 = vld [vmem:[%s1180_s1 + $0x88] sm:$0xff] (!%p215_p2)   ;;  %v982_v11 = vld [vmem:[%s1180_s1 + $0x90] sm:$0xff] (!%p215_p2)   ;;  %v275_v39 = vunpack.c.0.s8 (!%p215_p2), %v274_v36 }
   0x9   : > { %940 = vmatpush3.bf16.msra.mxu1 (!%p215_p2), %v974_v3  ;;  %919 = vmatprep.subr.bf16.mxu0 (!%p215_p2), %v975_v4  ;;  %v983_v12 = vld [vmem:[%s1180_s1 + $0x58] sm:$0xff] (!%p215_p2)   ;;  %v987_v16 = vld [vmem:[%s1180_s1 + $0x60] sm:$0xff] (!%p215_p2)   ;;  %v991_v20 = vld [vmem:[%s1180_s1 + $0x68] sm:$0xff] (!%p215_p2)   ;;  %v294_v42 = vsub.s32 (!%p215_p2), 0, %v277_v37 }
   0xa   : > { %941 = vmatprep.subr.bf16.mxu1 (!%p215_p2), %v976_v5  ;;  %v984_v13 = vld [vmem:[%s1180_s1 + $0xd8] sm:$0xff] (!%p215_p2)   ;;  %v988_v17 = vld [vmem:[%s1180_s1 + $0xe0] sm:$0xff] (!%p215_p2)   ;;  %v992_v21 = vld [vmem:[%s1180_s1 + $0xe8] sm:$0xff] (!%p215_p2)   ;;  %v278_v41 = vsub.s32 (!%p215_p2), %v275_v39, %v277_v37 }
   0xb   : > { %v985_v14 = vld [vmem:[%s1180_s1 + $0x18] sm:$0xff] (!%p215_p2)   ;;  %v989_v18 = vld [vmem:[%s1180_s1 + $0x20] sm:$0xff] (!%p215_p2)   ;;  %v993_v22 = vld [vmem:[%s1180_s1 + $0x28] sm:$0xff] (!%p215_p2)  }
   0xc   : > { %920 = vmatpush3.bf16.msra.mxu0 (!%p215_p2), %v977_v6  ;;  %v986_v15 = vld [vmem:[%s1180_s1 + $0x98] sm:$0xff] (!%p215_p2)   ;;  %v990_v19 = vld [vmem:[%s1180_s1 + $0xa0] sm:$0xff] (!%p215_p2)   ;;  %v994_v23 = vld [vmem:[%s1180_s1 + $0xa8] sm:$0xff] (!%p215_p2)  }
   0xd   : > { %942 = vmatpush3.bf16.msra.mxu1 %v978_v7  ;;  %921 = vmatprep.subr.bf16.mxu0 %v979_v8  ;;  %v995_v24 = vld [vmem:[%s1180_s1 + $0x70] sm:$0xff]   ;;  %v999_v28 = vld [vmem:[%s1180_s1 + $0x78] sm:$0xff]   ;;  %v861_v33 = vld.sshfl [vmem:[%s1181_s2] sm:$0x33 pattern:$0x75316420] }
   0xe   : > { %943 = vmatprep.subr.bf16.mxu1 %v980_v9  ;;  %v996_v25 = vld [vmem:[%s1180_s1 + $0xf0] sm:$0xff]   ;;  %v1000_v29 = vld [vmem:[%s1180_s1 + $0xf8] sm:$0xff]   ;;  %v864_v34 = vld.sshfl [vmem:[%s1182_s3] sm:$0x33 pattern:$0x75316420]  ;;  %v272_v38 = vcombine.high %v861_v33, %v861_v33  ;;  %v279_v43 = vrot.slane %v861_v33, %v278_v41 }
   0xf   : > { %v997_v26 = vld [vmem:[%s1180_s1 + $0x30] sm:$0xff]   ;;  %v1001_v30 = vld [vmem:[%s1180_s1 + $0x38] sm:$0xff]   ;;  %s1187_s13 = smov (!%p246_p3, %s856_s13), 3  ;;  %v342_v40 = vcombine.high %v864_v34, %v864_v34  ;;  %v349_v45 = vrot.slane %v864_v34, %v278_v41 }
  0x10   : > { %922 = vmatpush3.bf16.msra.mxu0 %v981_v10  ;;  %v998_v27 = vld [vmem:[%s1180_s1 + $0xb0] sm:$0xff]   ;;  %v1002_v32 = vld [vmem:[%s1180_s1 + $0xb8] sm:$0xff]   ;;  %s909_s25 = sshll.u32 %s1187_s13, 4  ;;  %v286_v44 = vrot.slane %v272_v38, %v278_v41  ;;  %v290_v47 = vpack.i.b16 %v279_v43, %v279_v43  ;;  %v287_v51 = vcombine.high %v279_v43, %v279_v43  ;;  %v903_v38 = vld [vmem:[%s1183_s4] ss:$0 sm:$0xff]  ;;  %s860_s9 = sshll.u32 %s1187_s13, 2 }
  0x11   : > { %944 = vmatpush3.bf16.msra.mxu1 %v982_v11  ;;  %923 = vmatprep.subr.bf16.mxu0 %v983_v12  ;;  %v356_v46 = vrot.slane %v342_v40, %v278_v41  ;;  %s250_s28 = scalar_lea.vmem %s1179_s0, %s909_s25  ;;  %v360_v49 = vpack.i.b16 %v349_v45, %v349_v45  ;;  %v357_v53 = vcombine.high %v349_v45, %v349_v45  ;;  %s256_s12 = scalar_lea.vmem %s1185_s6, %s860_s9 }
  0x12   : > { %945 = vmatprep.subr.bf16.mxu1 %v984_v13  ;;  %v297_v48 = vpack.i.b16 %v286_v44, %v286_v44  ;;  %v288_v52 = vcombine.high %v286_v44, %v286_v44  ;;  %v295_v55 = vrot.slane %v290_v47, %v294_v42  ;;  %v259_v59 = vld [vmem:[%s250_s28] sm:$0xff]  ;;  %v261_v60 = vld [vmem:[%s250_s28 + $0x10] sm:$0xff]  ;;  %v304_v61 = vpack.i.b16 %v287_v51, %v287_v51  ;;  %v260_v9 = vld [vmem:[%s250_s28 + $0x8] sm:$0xff] }
  0x13   : > { %v367_v50 = vpack.i.b16 %v356_v46, %v356_v46  ;;  %v358_v54 = vcombine.high %v356_v46, %v356_v46  ;;  %v365_v57 = vrot.slane %v360_v49, %v294_v42  ;;  %v374_v63 = vpack.i.b16 %v357_v53, %v357_v53  ;;  %v262_v10 = vld [vmem:[%s250_s28 + $0x18] sm:$0xff] }
  0x14   : > { %924 = vmatpush3.bf16.msra.mxu0 %v985_v14  ;;  %v302_v56 = vrot.slane %v297_v48, %v294_v42  ;;  %v311_v62 = vpack.i.b16 %v288_v52, %v288_v52  ;;  %v309_v3 = vrot.slane %v304_v61, %v294_v42 }
  0x15   : > { %946 = vmatpush3.bf16.msra.mxu1 %v986_v15  ;;  %925 = vmatprep.subr.bf16.mxu0 %v987_v16  ;;  %v372_v58 = vrot.slane %v367_v50, %v294_v42  ;;  %v381_v0 = vpack.i.b16 %v358_v54, %v358_v54  ;;  %v379_v5 = vrot.slane %v374_v63, %v294_v42 }
  0x16   : > { %947 = vmatprep.subr.bf16.mxu1 %v988_v17  ;;  %v862_v1 = vcombine.low %v295_v55, %v302_v56  ;;  %v316_v4 = vrot.slane %v311_v62, %v294_v42  ;;  %v1012_v17 = vmov 0  }
  0x17   : > { %v865_v2 = vcombine.low %v365_v57, %v372_v58  ;;  %v386_v6 = vrot.slane %v381_v0, %v294_v42  ;;  %v904_v42 = vld [vmem:[%s1184_s5] ss:$0 sm:$0xff] }
  0x18   : > { %926 = vmatpush3.bf16.msra.mxu0 %v989_v18  ;;  %v329_v7 = vmul.bf16 %v862_v1, %v259_v59  ;;  %v331_v8 = vmul.bf16 %v862_v1, %v261_v60  ;;  %v863_v11 = vcombine.low %v309_v3, %v316_v4 }
  0x19   : > { %948 = vmatpush3.bf16.msra.mxu1 %v990_v19  ;;  %927 = vmatprep.subr.bf16.mxu0 %v991_v20  ;;  %v866_v12 = vcombine.low %v379_v5, %v386_v6 }
  0x1a   : > { %949 = vmatprep.subr.bf16.mxu1 %v992_v21  ;;  %v399_v13 = vadd.bf16 %v865_v2, %v329_v7  ;;  %v401_v14 = vadd.bf16 %v865_v2, %v331_v8  ;;  %v330_v15 = vmul.bf16 %v863_v11, %v260_v9  ;;  %v332_v16 = vmul.bf16 %v863_v11, %v262_v10 }
  0x1c   : > { %928 = vmatpush3.bf16.msra.mxu0 %v993_v22  ;;  %v403_v18 = vmax.bf16 %v1012_v17, %v399_v13  ;;  %v405_v19 = vmax.bf16 %v1012_v17, %v401_v14  ;;  %v400_v20 = vadd.bf16 %v866_v12, %v330_v15  ;;  %v402_v21 = vadd.bf16 %v866_v12, %v332_v16 }
  0x1d   : > { %950 = vmatpush3.bf16.msra.mxu1 %v994_v23  ;;  %929 = vmatprep.subr.bf16.mxu0 %v995_v24 }
  0x1e   : > { %951 = vmatprep.subr.bf16.mxu1 %v996_v25  ;;  %v868_v22 = vcombine.high %v403_v18, %v405_v19  ;;  %v867_v23 = vcombine.low %v403_v18, %v405_v19  ;;  %v404_v24 = vmax.bf16 %v1012_v17, %v400_v20  ;;  %v406_v25 = vmax.bf16 %v1012_v17, %v402_v21 }
  0x20   : > { %930 = vmatpush3.bf16.msra.mxu0 %v997_v26  ;;  %715 = vmatprep.mubr.bf16.mxu0 %v868_v22  ;;  %v870_v26 = vcombine.high %v404_v24, %v406_v25 }
  0x21   : > { %952 = vmatpush3.bf16.msra.mxu1 %v998_v27  ;;  %931 = vmatprep.subr.bf16.mxu0 %v999_v28  ;;  %v869_v27 = vcombine.low %v404_v24, %v406_v25 }
  0x22   : > { %953 = vmatprep.subr.bf16.mxu1 %v1000_v29  ;;  %756 = vmatprep.mubr.bf16.mxu1 %v870_v26 }
  0x24   : > { %932 = vmatpush3.bf16.msra.mxu0 %v1001_v30 }
  0x25   : > { %954 = vmatpush3.bf16.msra.mxu1 %v1002_v32 }
  0x27   : > { %716 = vmatmul.mubr.bf16.vlgmr.msra.gmra.mrb[0].mxu0 %v867_v23 }
  0x28   : > { %757 = vmatmul.mubr.bf16.vlgmr.msra.gmra.mrb[0].mxu1 %v869_v27 }
  0xfa   : > { %v933_v28 = vpop.f32.mrb[0].mxu0 }
  0xfb   : > { %v934_v29 = vpop.f32.mrb[1].mxu0  ;;  %v955_v32 = vpop.f32.mrb[0].mxu1 }
  0xfc   : > { %v935_v30 = vadd.f32 %v934_v29, %v933_v28  ;;  %v936_v31 = vpop.f32.mrb[2].mxu0  ;;  %v956_v34 = vpop.f32.mrb[1].mxu1 }
  0xfd   : > { %v937_v33 = vpop.f32.mrb[3].mxu0  ;;  %v957_v36 = vadd.f32 %v956_v34, %v955_v32  ;;  %v958_v37 = vpop.f32.mrb[2].mxu1 }
  0xfe   : > { %v938_v35 = vadd.f32 %v937_v33, %v936_v31  ;;  %v959_v39 = vpop.f32.mrb[3].mxu1 }
  0xff   : > { %v759_v40 = vadd.f32 %v957_v36, %v935_v30  ;;  %v960_v41 = vadd.f32 %v959_v39, %v958_v37 }
 0x101   : > { %v772_v43 = vmul.f32 %v903_v38, %v759_v40  ;;  %v762_v44 = vadd.f32 %v960_v41, %v938_v35 }
 0x103   : > { %v781_v45 = vadd.f32 %v904_v42, %v772_v43  ;;  %v773_v46 = vmul.f32 %v903_v38, %v762_v44 }
 0x105   : > { %v782_v47 = vadd.f32 %v904_v42, %v773_v46  ;;  %v783_v48 = vmax.f32 %v781_v45, 0.0 }
 0x107   : > { %v784_v49 = vmax.f32 %v782_v47, 0.0 }
 0x109   : > { %v915_v50 = vpack.c.bf16 %v784_v49, %v783_v48 }
 0x10b   : > { %916 = vst [vmem:[%s256_s12] sm:$0xff] %v915_v50  }
 0x10c PF: > { %s16_s21 = sadd.s32 1, %s1009_s21  }
 0x10d   : > { %p13_p4 = scmp.ge.s32.totalorder %s16_s21, 4  }
 0x10f   :  { %15 = sbr.rel (!%p13_p4) target bundleno = 1 (0x1), region = 74 }

// kernel: densenet121_forward.137
= control target key start
LH: loop header
LB: loop body
LE: loop exit
PB: predicated region body
PF: predicated region fallthrough
CT: control target
= control target key end

     0   :  { %s2021_s9 = smov 0   ;;  %s2266_s0 = inlined_call_operand.vmem [shape: bf16[2,6,8,128], index: 0, kind: input, shape index: {}]   ;;  %s2267_s1 = inlined_call_operand.vmem [shape: bf16[9,128,32], index: 1, kind: input, shape index: {}]   ;;  %s2268_s2 = inlined_call_operand.vmem [shape: bf16[2,4,4,32], index: 2, kind: output, shape index: {}]  }
   0x1 LB: > { %s1392_s10 = sadd.s32 4294967295, %s2004_s9   ;;  %p1396_p0 = scmp.ge.s32.totalorder %s2004_s9, 1  ;;  %s2004_s9 = sphi %s2021_s9, %s12_s9  }
   0x2   : > { %p112_p1 = scmp.lt.s32.totalorder %s2004_s9, 3 }
   0x4   : > { %p113_p2 = pnand %p1396_p0, %p112_p1 }
   0x5   : > { %v1920_v0 = vld [vmem:[%s2267_s1] sm:$0xff] (!%p113_p2)   ;;  %p134_p3 = scmp.lt.s32.totalorder (!%p113_p2), %s1392_s10, 1  ;;  %v1922_v2 = vld [vmem:[%s2267_s1 + $0x8] sm:$0xff] (!%p113_p2)   ;;  %v1924_v4 = vld [vmem:[%s2267_s1 + $0x10] sm:$0xff] (!%p113_p2)   ;;  %vm1332_vm0 = vcmask (!%p113_p2), 254976  }
   0x6   : > { %116 = sbr.rel (%p113_p2) target bundleno = 388 (0x184), region = 28  ;;  %v1921_v1 = vld [vmem:[%s2267_s1 + $0x40] sm:$0xff] (!%p113_p2)   ;;  %1707 = vmatprep.subr.bf16.mxu0 (!%p113_p2), %v1920_v0  ;;  %v1923_v3 = vld [vmem:[%s2267_s1 + $0x48] sm:$0xff] (!%p113_p2)   ;;  %v1925_v5 = vld [vmem:[%s2267_s1 + $0x50] sm:$0xff] (!%p113_p2)  }
   0x7   : > { %1727 = vmatprep.subr.bf16.mxu1 (!%p113_p2), %v1921_v1  ;;  %1708 = vmatpush3.bf16.msra.mxu0 (!%p113_p2), %v1920_v0  ;;  %v1926_v6 = vld [vmem:[%s2267_s1 + $0x18] sm:$0xff] (!%p113_p2)   ;;  %v1928_v8 = vld [vmem:[%s2267_s1 + $0x20] sm:$0xff] (!%p113_p2)   ;;  %v1930_v10 = vld [vmem:[%s2267_s1 + $0x28] sm:$0xff] (!%p113_p2)  }
   0x8   : > { %1728 = vmatpush3.bf16.msra.mxu1 (!%p113_p2), %v1921_v1  ;;  %1709 = vmatprep.subr.bf16.mxu0 (!%p113_p2), %v1922_v2  ;;  %v1927_v7 = vld [vmem:[%s2267_s1 + $0x58] sm:$0xff] (!%p113_p2)   ;;  %v1929_v9 = vld [vmem:[%s2267_s1 + $0x60] sm:$0xff] (!%p113_p2)   ;;  %v1931_v12 = vld [vmem:[%s2267_s1 + $0x68] sm:$0xff] (!%p113_p2)  }
   0x9   : > { %1729 = vmatprep.subr.bf16.mxu1 (!%p113_p2), %v1923_v3  ;;  %v1932_v13 = vld [vmem:[%s2267_s1 + $0x30] sm:$0xff] (!%p113_p2)   ;;  %v1934_v15 = vld [vmem:[%s2267_s1 + $0x38] sm:$0xff] (!%p113_p2)   ;;  %v1937_v17 = vld [vmem:[%s2267_s1 + $0x80] sm:$0xff] (!%p113_p2)  }
   0xa   : > { %v1933_v14 = vld [vmem:[%s2267_s1 + $0x70] sm:$0xff] (!%p113_p2)   ;;  %v1935_v16 = vld [vmem:[%s2267_s1 + $0x78] sm:$0xff] (!%p113_p2)   ;;  %v1938_v18 = vld [vmem:[%s2267_s1 + $0x100] sm:$0xff] (!%p113_p2)  }
   0xb   : > { %1710 = vmatpush3.bf16.msra.mxu0 (!%p113_p2), %v1922_v2  ;;  %v1940_v20 = vld [vmem:[%s2267_s1 + $0x88] sm:$0xff] (!%p113_p2)   ;;  %v1942_v23 = vld [vmem:[%s2267_s1 + $0x90] sm:$0xff] (!%p113_p2)   ;;  %v1944_v25 = vld [vmem:[%s2267_s1 + $0x98] sm:$0xff] (!%p113_p2)  }
   0xc   : > { %1730 = vmatpush3.bf16.msra.mxu1 (!%p113_p2), %v1923_v3  ;;  %1711 = vmatprep.subr.bf16.mxu0 (!%p113_p2), %v1924_v4  ;;  %v1941_v21 = vld [vmem:[%s2267_s1 + $0x108] sm:$0xff] (!%p113_p2)   ;;  %v1943_v24 = vld [vmem:[%s2267_s1 + $0x110] sm:$0xff] (!%p113_p2)   ;;  %v1945_v26 = vld [vmem:[%s2267_s1 + $0x118] sm:$0xff] (!%p113_p2)  }
   0xd   : > { %s2270_s10 = smov (!%p134_p3, %s1392_s10), 1  ;;  %1731 = vmatprep.subr.bf16.mxu1 %v1925_v5  ;;  %v1946_v27 = vld [vmem:[%s2267_s1 + $0xa0] sm:$0xff]   ;;  %v1948_v29 = vld [vmem:[%s2267_s1 + $0xa8] sm:$0xff]   ;;  %v1950_v31 = vld [vmem:[%s2267_s1 + $0xb0] sm:$0xff]  }
   0xe   : > { %s1911_s27 = smul.u32 24, %s2270_s10  ;;  %v1947_v28 = vld [vmem:[%s2267_s1 + $0x120] sm:$0xff]   ;;  %v1949_v30 = vld [vmem:[%s2267_s1 + $0x128] sm:$0xff]   ;;  %v1951_v32 = vld [vmem:[%s2267_s1 + $0x130] sm:$0xff]   ;;  %s1616_s4 = sshll.u32 %s2270_s10, 3 }
   0xf   : > { %1712 = vmatpush3.bf16.msra.mxu0 %v1924_v4  ;;  %v1952_v33 = vld [vmem:[%s2267_s1 + $0xb8] sm:$0xff]   ;;  %v1954_v35 = vld [vmem:[%s2267_s1 + $0xc0] sm:$0xff]   ;;  %v1958_v38 = vld [vmem:[%s2267_s1 + $0xc8] sm:$0xff]   ;;  %s143_s8 = scalar_lea.vmem %s2268_s2, %s1616_s4 }
  0x10   : > { %1732 = vmatpush3.bf16.msra.mxu1 %v1925_v5  ;;  %1713 = vmatprep.subr.bf16.mxu0 %v1926_v6  ;;  %s2065_s6 = scalar_lea.vmem %s2266_s0, %s1911_s27  ;;  %v1953_v34 = vld [vmem:[%s2267_s1 + $0x138] sm:$0xff]   ;;  %v1956_v36 = vld [vmem:[%s2267_s1 + $0x140] sm:$0xff]   ;;  %v1959_v39 = vld [vmem:[%s2267_s1 + $0x148] sm:$0xff]  }
  0x11   : > { %1733 = vmatprep.subr.bf16.mxu1 %v1927_v7  ;;  %v1936_v11 = vld [vmem:[%s2065_s6] sm:$0xff]   ;;  %v1939_v19 = vld [vmem:[%s2065_s6 + $0x8] sm:$0xff]   ;;  %v1960_v40 = vld [vmem:[%s2267_s1 + $0xd0] sm:$0xff]  }
  0x12   : > { %1723 = vmatprep.mubr.bf16.mxu0 %v1936_v11  ;;  %1743 = vmatprep.mubr.bf16.mxu1 %v1936_v11  ;;  %v1955_v22 = vld [vmem:[%s2065_s6 + $0x4] sm:$0xff]   ;;  %v1957_v37 = vld [vmem:[%s2065_s6 + $0xc] sm:$0xff]   ;;  %v1962_v42 = vld [vmem:[%s2267_s1 + $0xd8] sm:$0xff]  }
  0x13   : > { %1714 = vmatpush3.bf16.msra.mxu0 %v1926_v6  ;;  %v1961_v41 = vld [vmem:[%s2267_s1 + $0x150] sm:$0xff]   ;;  %v1963_v43 = vld [vmem:[%s2267_s1 + $0x158] sm:$0xff]   ;;  %v1964_v44 = vld [vmem:[%s2267_s1 + $0xe0] sm:$0xff]  }
  0x14   : > { %1734 = vmatpush3.bf16.msra.mxu1 %v1927_v7  ;;  %1715 = vmatprep.subr.bf16.mxu0 %v1928_v8  ;;  %v1965_v45 = vld [vmem:[%s2267_s1 + $0x160] sm:$0xff]   ;;  %v1966_v46 = vld [vmem:[%s2267_s1 + $0xe8] sm:$0xff]   ;;  %v1968_v48 = vld [vmem:[%s2267_s1 + $0xf0] sm:$0xff]  }
  0x15   : > { %1735 = vmatprep.subr.bf16.mxu1 %v1929_v9  ;;  %v1967_v47 = vld [vmem:[%s2267_s1 + $0x168] sm:$0xff]   ;;  %v1969_v49 = vld [vmem:[%s2267_s1 + $0x170] sm:$0xff]   ;;  %v1970_v50 = vld [vmem:[%s2267_s1 + $0xf8] sm:$0xff]  }
  0x16   : > { %v1971_v51 = vld [vmem:[%s2267_s1 + $0x178] sm:$0xff]   ;;  %v1972_v52 = vld [vmem:[%s2267_s1 + $0x180] sm:$0xff]   ;;  %v1974_v54 = vld [vmem:[%s2267_s1 + $0x188] sm:$0xff]  }
  0x17   : > { %1716 = vmatpush3.bf16.msra.mxu0 %v1928_v8  ;;  %v1973_v53 = vld [vmem:[%s2267_s1 + $0x1c0] sm:$0xff]   ;;  %v1975_v55 = vld [vmem:[%s2267_s1 + $0x1c8] sm:$0xff]   ;;  %v1976_v57 = vld [vmem:[%s2267_s1 + $0x190] sm:$0xff]  }
  0x18   : > { %1736 = vmatpush3.bf16.msra.mxu1 %v1929_v9  ;;  %1717 = vmatprep.subr.bf16.mxu0 %v1930_v10  ;;  %v1988_v56 = vld [vmem:[%s2065_s6 + $0x8] sm:$0xff]   ;;  %v1977_v58 = vld [vmem:[%s2267_s1 + $0x1d0] sm:$0xff]   ;;  %v1978_v59 = vld [vmem:[%s2267_s1 + $0x198] sm:$0xff]  }
  0x19   : > { %1737 = vmatprep.subr.bf16.mxu1 %v1931_v12  ;;  %v1979_v60 = vld [vmem:[%s2267_s1 + $0x1d8] sm:$0xff]   ;;  %v1980_v61 = vld [vmem:[%s2267_s1 + $0x1a0] sm:$0xff]   ;;  %v1982_v63 = vld [vmem:[%s2267_s1 + $0x1a8] sm:$0xff]  }
  0x1a   : > { %v1981_v62 = vld [vmem:[%s2267_s1 + $0x1e0] sm:$0xff]   ;;  %v1983_v0 = vld [vmem:[%s2267_s1 + $0x1e8] sm:$0xff]   ;;  %v1984_v1 = vld [vmem:[%s2267_s1 + $0x1b0] sm:$0xff]  }
  0x1b   : > { %1718 = vmatpush3.bf16.msra.mxu0 %v1930_v10  ;;  %v1985_v2 = vld [vmem:[%s2267_s1 + $0x1f0] sm:$0xff]   ;;  %v1986_v3 = vld [vmem:[%s2267_s1 + $0x1b8] sm:$0xff]   ;;  %v1990_v5 = vld [vmem:[%s2267_s1 + $0x200] sm:$0xff]  }
  0x1c   : > { %1738 = vmatpush3.bf16.msra.mxu1 %v1931_v12  ;;  %1719 = vmatprep.subr.bf16.mxu0 %v1932_v13  ;;  %v1987_v4 = vld [vmem:[%s2267_s1 + $0x1f8] sm:$0xff]   ;;  %v1989_v6 = vld [vmem:[%s2065_s6 + $0x10] sm:$0xff]   ;;  %v1991_v7 = vld [vmem:[%s2267_s1 + $0x208] sm:$0xff]  }
  0x1d   : > { %1739 = vmatprep.subr.bf16.mxu1 %v1933_v14  ;;  %v1992_v8 = vld [vmem:[%s2267_s1 + $0x210] sm:$0xff]   ;;  %v1993_v9 = vld [vmem:[%s2267_s1 + $0x218] sm:$0xff]   ;;  %v1994_v10 = vld [vmem:[%s2267_s1 + $0x220] sm:$0xff]  }
  0x1e   : > { %v1996_v12 = vld [vmem:[%s2267_s1 + $0x230] sm:$0xff]  }
  0x1f   : > { %1720 = vmatpush3.bf16.msra.mxu0 %v1932_v13  ;;  %v1997_v13 = vld [vmem:[%s2267_s1 + $0x238] sm:$0xff]  }
  0x20   : > { %1740 = vmatpush3.bf16.msra.mxu1 %v1933_v14  ;;  %1721 = vmatprep.subr.bf16.mxu0 %v1934_v15 }
  0x21   : > { %1741 = vmatprep.subr.bf16.mxu1 %v1935_v16 }
  0x23   : > { %1722 = vmatpush3.bf16.msra.mxu0 %v1934_v15 }
  0x24   : > { %1742 = vmatpush3.bf16.msra.mxu1 %v1935_v16  ;;  %1747 = vmatprep.subr.bf16.mxu0 %v1937_v17 }
  0x25   : > { %1787 = vmatprep.subr.bf16.mxu1 %v1938_v18 }
  0x26   : > { %1724 = vmatmul.mubr.bf16.vlgmr.msra.gmra.mrb[0].mxu0 %v1939_v19 }
  0x27   : > { %1744 = vmatmul.mubr.bf16.vlgmr.msra.gmra.mrb[0].mxu1 %v1939_v19  ;;  %1748 = vmatpush3.bf16.msra.mxu0 %v1937_v17 }
  0x28   : > { %1788 = vmatpush3.bf16.msra.mxu1 %v1938_v18  ;;  %1749 = vmatprep.subr.bf16.mxu0 %v1940_v20 }
  0x29   : > { %1789 = vmatprep.subr.bf16.mxu1 %v1941_v21  ;;  %1763 = vmatprep.mubr.bf16.mxu0 %v1936_v11  ;;  %v1995_v11 = vld [vmem:[%s2267_s1 + $0x228] sm:$0xff]  }
  0x2a   : > { %1803 = vmatprep.mubr.bf16.mxu1 %v1955_v22 }
  0x2b   : > { %1750 = vmatpush3.bf16.msra.mxu0 %v1940_v20 }
  0x2c   : > { %1790 = vmatpush3.bf16.msra.mxu1 %v1941_v21  ;;  %1751 = vmatprep.subr.bf16.mxu0 %v1942_v23 }
  0x2d   : > { %1791 = vmatprep.subr.bf16.mxu1 %v1943_v24 }
  0x2f   : > { %1752 = vmatpush3.bf16.msra.mxu0 %v1942_v23 }
  0x30   : > { %1792 = vmatpush3.bf16.msra.mxu1 %v1943_v24  ;;  %1753 = vmatprep.subr.bf16.mxu0 %v1944_v25 }
  0x31   : > { %1793 = vmatprep.subr.bf16.mxu1 %v1945_v26 }
  0x33   : > { %1754 = vmatpush3.bf16.msra.mxu0 %v1944_v25 }
  0x34   : > { %1794 = vmatpush3.bf16.msra.mxu1 %v1945_v26  ;;  %1755 = vmatprep.subr.bf16.mxu0 %v1946_v27 }
  0x35   : > { %1795 = vmatprep.subr.bf16.mxu1 %v1947_v28 }
  0x37   : > { %1756 = vmatpush3.bf16.msra.mxu0 %v1946_v27 }
  0x38   : > { %1796 = vmatpush3.bf16.msra.mxu1 %v1947_v28  ;;  %1757 = vmatprep.subr.bf16.mxu0 %v1948_v29 }
  0x39   : > { %1797 = vmatprep.subr.bf16.mxu1 %v1949_v30 }
  0x3b   : > { %1758 = vmatpush3.bf16.msra.mxu0 %v1948_v29 }
  0x3c   : > { %1798 = vmatpush3.bf16.msra.mxu1 %v1949_v30  ;;  %1759 = vmatprep.subr.bf16.mxu0 %v1950_v31 }
  0x3d   : > { %1799 = vmatprep.subr.bf16.mxu1 %v1951_v32 }
  0x3f   : > { %1760 = vmatpush3.bf16.msra.mxu0 %v1950_v31 }
  0x40   : > { %1800 = vmatpush3.bf16.msra.mxu1 %v1951_v32  ;;  %1761 = vmatprep.subr.bf16.mxu0 %v1952_v33 }
  0x41   : > { %1801 = vmatprep.subr.bf16.mxu1 %v1953_v34 }
  0x43   : > { %1762 = vmatpush3.bf16.msra.mxu0 %v1952_v33 }
  0x44   : > { %1802 = vmatpush3.bf16.msra.mxu1 %v1953_v34  ;;  %1767 = vmatprep.subr.bf16.mxu0 %v1954_v35 }
  0x45   : > { %1807 = vmatprep.subr.bf16.mxu1 %v1956_v36 }
  0x46   : > { %1764 = vmatmul.mubr.bf16.vlgmr.msra.gmra.mrb[4].mxu0 %v1939_v19 }
  0x47   : > { %1768 = vmatpush3.bf16.msra.mxu0 %v1954_v35  ;;  %1804 = vmatmul.mubr.bf16.vlgmr.msra.gmra.mrb[4].mxu1 %v1957_v37 }
  0x48   : > { %1808 = vmatpush3.bf16.msra.mxu1 %v1956_v36  ;;  %1769 = vmatprep.subr.bf16.mxu0 %v1958_v38 }
  0x49   : > { %1809 = vmatprep.subr.bf16.mxu1 %v1959_v39  ;;  %1823 = vmatprep.mubr.bf16.mxu1 %v1955_v22 }
  0x4a   : > { %1783 = vmatprep.mubr.bf16.mxu0 %v1955_v22 }
  0x4b   : > { %1770 = vmatpush3.bf16.msra.mxu0 %v1958_v38 }
  0x4c   : > { %1810 = vmatpush3.bf16.msra.mxu1 %v1959_v39  ;;  %1771 = vmatprep.subr.bf16.mxu0 %v1960_v40 }
  0x4d   : > { %1811 = vmatprep.subr.bf16.mxu1 %v1961_v41 }
  0x4f   : > { %1772 = vmatpush3.bf16.msra.mxu0 %v1960_v40 }
  0x50   : > { %1812 = vmatpush3.bf16.msra.mxu1 %v1961_v41  ;;  %1773 = vmatprep.subr.bf16.mxu0 %v1962_v42 }
  0x51   : > { %1813 = vmatprep.subr.bf16.mxu1 %v1963_v43 }
  0x53   : > { %1774 = vmatpush3.bf16.msra.mxu0 %v1962_v42 }
  0x54   : > { %1814 = vmatpush3.bf16.msra.mxu1 %v1963_v43  ;;  %1775 = vmatprep.subr.bf16.mxu0 %v1964_v44 }
  0x55   : > { %1815 = vmatprep.subr.bf16.mxu1 %v1965_v45 }
  0x57   : > { %1776 = vmatpush3.bf16.msra.mxu0 %v1964_v44 }
  0x58   : > { %1816 = vmatpush3.bf16.msra.mxu1 %v1965_v45  ;;  %1777 = vmatprep.subr.bf16.mxu0 %v1966_v46 }
  0x59   : > { %1817 = vmatprep.subr.bf16.mxu1 %v1967_v47 }
  0x5b   : > { %1778 = vmatpush3.bf16.msra.mxu0 %v1966_v46 }
  0x5c   : > { %1818 = vmatpush3.bf16.msra.mxu1 %v1967_v47  ;;  %1779 = vmatprep.subr.bf16.mxu0 %v1968_v48 }
  0x5d   : > { %1819 = vmatprep.subr.bf16.mxu1 %v1969_v49 }
  0x5f   : > { %1780 = vmatpush3.bf16.msra.mxu0 %v1968_v48 }
  0x60   : > { %1820 = vmatpush3.bf16.msra.mxu1 %v1969_v49  ;;  %1781 = vmatprep.subr.bf16.mxu0 %v1970_v50 }
  0x61   : > { %1821 = vmatprep.subr.bf16.mxu1 %v1971_v51 }
  0x63   : > { %1782 = vmatpush3.bf16.msra.mxu0 %v1970_v50 }
  0x64   : > { %1822 = vmatpush3.bf16.msra.mxu1 %v1971_v51  ;;  %1827 = vmatprep.subr.bf16.mxu0 %v1972_v52 }
  0x65   : > { %1847 = vmatprep.subr.bf16.mxu1 %v1973_v53 }
  0x66   : > { %1784 = vmatmul.mubr.bf16.vlgmr.msra.gmra.mrb[0].mxu0 %v1957_v37 }
  0x67   : > { %1824 = vmatmul.mubr.bf16.vlgmr.msra.gmra.mrb[8].mxu1 %v1957_v37  ;;  %1828 = vmatpush3.bf16.msra.mxu0 %v1972_v52 }
  0x68   : > { %1848 = vmatpush3.bf16.msra.mxu1 %v1973_v53  ;;  %1829 = vmatprep.subr.bf16.mxu0 %v1974_v54 }
  0x69   : > { %1849 = vmatprep.subr.bf16.mxu1 %v1975_v55  ;;  %1843 = vmatprep.mubr.bf16.mxu0 %v1988_v56 }
  0x6a   : > { %1863 = vmatprep.mubr.bf16.mxu1 %v1988_v56 }
  0x6b   : > { %1830 = vmatpush3.bf16.msra.mxu0 %v1974_v54 }
  0x6c   : > { %1850 = vmatpush3.bf16.msra.mxu1 %v1975_v55  ;;  %1831 = vmatprep.subr.bf16.mxu0 %v1976_v57 }
  0x6d   : > { %1851 = vmatprep.subr.bf16.mxu1 %v1977_v58 }
  0x6f   : > { %1832 = vmatpush3.bf16.msra.mxu0 %v1976_v57 }
  0x70   : > { %1852 = vmatpush3.bf16.msra.mxu1 %v1977_v58  ;;  %1833 = vmatprep.subr.bf16.mxu0 %v1978_v59 }
  0x71   : > { %1853 = vmatprep.subr.bf16.mxu1 %v1979_v60 }
  0x73   : > { %1834 = vmatpush3.bf16.msra.mxu0 %v1978_v59 }
  0x74   : > { %1854 = vmatpush3.bf16.msra.mxu1 %v1979_v60  ;;  %1835 = vmatprep.subr.bf16.mxu0 %v1980_v61 }
  0x75   : > { %1855 = vmatprep.subr.bf16.mxu1 %v1981_v62 }
  0x77   : > { %1836 = vmatpush3.bf16.msra.mxu0 %v1980_v61 }
  0x78   : > { %1856 = vmatpush3.bf16.msra.mxu1 %v1981_v62  ;;  %1837 = vmatprep.subr.bf16.mxu0 %v1982_v63 }
  0x79   : > { %1857 = vmatprep.subr.bf16.mxu1 %v1983_v0 }
  0x7b   : > { %1838 = vmatpush3.bf16.msra.mxu0 %v1982_v63 }
  0x7c   : > { %1858 = vmatpush3.bf16.msra.mxu1 %v1983_v0  ;;  %1839 = vmatprep.subr.bf16.mxu0 %v1984_v1 }
  0x7d   : > { %1859 = vmatprep.subr.bf16.mxu1 %v1985_v2 }
  0x7f   : > { %1840 = vmatpush3.bf16.msra.mxu0 %v1984_v1 }
  0x80   : > { %1860 = vmatpush3.bf16.msra.mxu1 %v1985_v2  ;;  %1841 = vmatprep.subr.bf16.mxu0 %v1986_v3 }
  0x81   : > { %1861 = vmatprep.subr.bf16.mxu1 %v1987_v4 }
  0x83   : > { %1842 = vmatpush3.bf16.msra.mxu0 %v1986_v3 }
  0x84   : > { %1862 = vmatpush3.bf16.msra.mxu1 %v1987_v4  ;;  %1867 = vmatprep.subr.bf16.mxu0 %v1990_v5 }
  0x86   : > { %1844 = vmatmul.mubr.bf16.vlgmr.msra.gmra.mrb[0].mxu0 %v1989_v6 }
  0x87   : > { %1864 = vmatmul.mubr.bf16.vlgmr.msra.gmra.mrb[12].mxu1 %v1989_v6  ;;  %1868 = vmatpush3.bf16.msra.mxu0 %v1990_v5 }
  0x88   : > { %1869 = vmatprep.subr.bf16.mxu0 %v1991_v7  ;;  %1883 = vmatprep.mubr.bf16.mxu0 %v1988_v56 }
  0x8b   : > { %1870 = vmatpush3.bf16.msra.mxu0 %v1991_v7 }
  0x8c   : > { %1871 = vmatprep.subr.bf16.mxu0 %v1992_v8 }
  0x8f   : > { %1872 = vmatpush3.bf16.msra.mxu0 %v1992_v8 }
  0x90   : > { %1873 = vmatprep.subr.bf16.mxu0 %v1993_v9 }
  0x93   : > { %1874 = vmatpush3.bf16.msra.mxu0 %v1993_v9 }
  0x94   : > { %1875 = vmatprep.subr.bf16.mxu0 %v1994_v10 }
  0x97   : > { %1876 = vmatpush3.bf16.msra.mxu0 %v1994_v10 }
  0x98   : > { %1877 = vmatprep.subr.bf16.mxu0 %v1995_v11 }
  0x9b   : > { %1878 = vmatpush3.bf16.msra.mxu0 %v1995_v11 }
  0x9c   : > { %1879 = vmatprep.subr.bf16.mxu0 %v1996_v12 }
  0x9f   : > { %1880 = vmatpush3.bf16.msra.mxu0 %v1996_v12 }
  0xa0   : > { %1881 = vmatprep.subr.bf16.mxu0 %v1997_v13 }
  0xa3   : > { %1882 = vmatpush3.bf16.msra.mxu0 %v1997_v13 }
  0xa6   : > { %1884 = vmatmul.mubr.bf16.vlgmr.msra.gmra.mrb[8].mxu0 %v1989_v6 }
  0xfa   : > { %v1745_v14 = vpop.f32.mrb[0].mxu1 }
  0xfb   : > { %v377_v15 = vpop.f32.mrb[1].mxu1  ;;  %v398_v18 = vrot.slane %v1745_v14, 1 }
  0xfc   : > { %v1746_v16 = vpop.f32.mrb[2].mxu1  ;;  %v396_v23 = vrot.slane %v377_v15, 1 }
  0xfd   : > { %v380_v17 = vpop.f32.mrb[3].mxu1  ;;  %v399_v28 = vrot.slane %v1746_v16, 1 }
  0xfe   : > { %v397_v34 = vrot.slane %v380_v17, 1 }
 0x119   : > { %v1765_v19 = vpop.f32.mrb[4].mxu0 }
 0x11a   : > { %v528_v20 = vrot.slane %v1765_v19, 2  ;;  %v507_v21 = vpop.f32.mrb[5].mxu0  ;;  %v1805_v22 = vpop.f32.mrb[4].mxu1 }
 0x11b   : > { %v526_v24 = vrot.slane %v507_v21, 2  ;;  %v1766_v25 = vpop.f32.mrb[6].mxu0  ;;  %v793_v26 = vrot.slane %v1805_v22, 1  ;;  %v772_v27 = vpop.f32.mrb[5].mxu1 }
 0x11c   : > { %v1887_v29 = vadd.f32 %v528_v20, %v398_v18  ;;  %v529_v30 = vrot.slane %v1766_v25, 2  ;;  %v510_v31 = vpop.f32.mrb[7].mxu0  ;;  %v791_v32 = vrot.slane %v772_v27, 1  ;;  %v1806_v33 = vpop.f32.mrb[6].mxu1 }
 0x11d   : > { %v1891_v35 = vadd.f32 %v526_v24, %v396_v23  ;;  %v527_v36 = vrot.slane %v510_v31, 2  ;;  %v794_v37 = vrot.slane %v1806_v33, 1  ;;  %v775_v38 = vpop.f32.mrb[7].mxu1 }
 0x11e   : > { %v1895_v39 = vadd.f32 %v529_v30, %v399_v28  ;;  %v1888_v40 = vadd.f32 %v1887_v29, %v793_v26  ;;  %v792_v41 = vrot.slane %v775_v38, 1 }
 0x11f   : > { %v1899_v42 = vadd.f32 %v527_v36, %v397_v34  ;;  %v1892_v43 = vadd.f32 %v1891_v35, %v791_v32 }
 0x120   : > { %v1896_v44 = vadd.f32 %v1895_v39, %v794_v37 }
 0x121   : > { %v1900_v45 = vadd.f32 %v1899_v42, %v792_v41 }
 0x13a   : > { %v1825_v46 = vpop.f32.mrb[8].mxu1 }
 0x13b   : > { %v923_v47 = vrot.slane %v1825_v46, 2  ;;  %v902_v48 = vpop.f32.mrb[9].mxu1 }
 0x13c   : > { %v921_v49 = vrot.slane %v902_v48, 2  ;;  %v1826_v50 = vpop.f32.mrb[10].mxu1 }
 0x13d   : > { %v924_v51 = vrot.slane %v1826_v50, 2  ;;  %v905_v52 = vpop.f32.mrb[11].mxu1  ;;  %v1889_v53 = vadd.f32 %v1888_v40, %v923_v47 }
 0x13e   : > { %v922_v54 = vrot.slane %v905_v52, 2  ;;  %v1893_v55 = vadd.f32 %v1892_v43, %v921_v49 }
 0x13f   : > { %v1897_v56 = vadd.f32 %v1896_v44, %v924_v51 }
 0x140   : > { %v1901_v57 = vadd.f32 %v1900_v45, %v922_v54 }
 0x159   : > { %v1845_v58 = vpop.f32.mrb[0].mxu0 }
 0x15a   : > { %v1890_v59 = vadd.f32 %v1889_v53, %v1845_v58  ;;  %v1865_v60 = vpop.f32.mrb[12].mxu1  ;;  %v1049_v61 = vpop.f32.mrb[1].mxu0 }
 0x15b   : > { %v1188_v62 = vrot.slane %v1865_v60, 1  ;;  %v1894_v63 = vadd.f32 %v1893_v55, %v1049_v61  ;;  %v1167_v0 = vpop.f32.mrb[13].mxu1  ;;  %v1846_v1 = vpop.f32.mrb[2].mxu0 }
 0x15c   : > { %v1186_v2 = vrot.slane %v1167_v0, 1  ;;  %v1898_v3 = vadd.f32 %v1897_v56, %v1846_v1  ;;  %v1866_v4 = vpop.f32.mrb[14].mxu1  ;;  %v1052_v5 = vpop.f32.mrb[3].mxu0 }
 0x15d   : > { %v1196_v6 = vadd.f32 %v1890_v59, %v1188_v62  ;;  %v1189_v7 = vrot.slane %v1866_v4, 1  ;;  %v1902_v8 = vadd.f32 %v1901_v57, %v1052_v5  ;;  %v1170_v9 = vpop.f32.mrb[15].mxu1 }
 0x15e   : > { %v1194_v10 = vadd.f32 %v1894_v63, %v1186_v2  ;;  %v1187_v11 = vrot.slane %v1170_v9, 1 }
 0x15f   : > { %v1197_v12 = vadd.f32 %v1898_v3, %v1189_v7 }
 0x160   : > { %v1195_v13 = vadd.f32 %v1902_v8, %v1187_v11 }
 0x179   : > { %v1885_v14 = vpop.f32.mrb[8].mxu0 }
 0x17a   : > { %v1318_v15 = vrot.slane %v1885_v14, 2  ;;  %v1297_v16 = vpop.f32.mrb[9].mxu0 }
 0x17b   : > { %v1316_v17 = vrot.slane %v1297_v16, 2  ;;  %v1886_v18 = vpop.f32.mrb[10].mxu0 }
 0x17c   : > { %v1326_v19 = vadd.f32 %v1318_v15, %v1196_v6  ;;  %v1319_v20 = vrot.slane %v1886_v18, 2  ;;  %v1300_v21 = vpop.f32.mrb[11].mxu0 }
 0x17d   : > { %v1324_v22 = vadd.f32 %v1316_v17, %v1194_v10  ;;  %v1317_v23 = vrot.slane %v1300_v21, 2 }
 0x17e   : > { %v1330_v24 = vpack.c.bf16 %v1326_v19, %v1326_v19  ;;  %v1327_v25 = vadd.f32 %v1319_v20, %v1197_v12 }
 0x17f   : > { %v1328_v26 = vpack.c.bf16 %v1324_v22, %v1324_v22  ;;  %v1325_v27 = vadd.f32 %v1317_v23, %v1195_v13 }
 0x180   : > { %1335 = vst.msk [vmem:[%s143_s8 + $0x4] sm:$0x3] %vm1332_vm0, %v1330_v24  ;;  %v1331_v28 = vpack.c.bf16 %v1327_v25, %v1327_v25 }
 0x181   : > { %1333 = vst.msk [vmem:[%s143_s8] sm:$0x3] %vm1332_vm0, %v1328_v26  ;;  %v1329_v29 = vpack.c.bf16 %v1325_v27, %v1325_v27 }
 0x182   : > { %1336 = vst.msk [vmem:[%s143_s8 + $0x6] sm:$0x3] %vm1332_vm0, %v1331_v28 }
 0x183   : > { %1334 = vst.msk [vmem:[%s143_s8 + $0x2] sm:$0x3] %vm1332_vm0, %v1329_v29 }
 0x184 PF: > { %s12_s9 = sadd.s32 1, %s2004_s9  }
 0x185   : > { %p9_p4 = scmp.ge.s32.totalorder %s12_s9, 4  }
 0x187   :  { %11 = sbr.rel (!%p9_p4) target bundleno = 1 (0x1), region = 68 }

// kernel: densenet121_forward.160
= control target key start
LH: loop header
LB: loop body
LE: loop exit
PB: predicated region body
PF: predicated region fallthrough
CT: control target
= control target key end

     0   :  { %s1155_s15 = smov 0   ;;  %s1392_s0 = inlined_call_operand.vmem [shape: bf16[32,512], index: 0, kind: input, shape index: {}]   ;;  %s1393_s1 = inlined_call_operand.vmem [shape: bf16[512,256], index: 1, kind: input, shape index: {}]   ;;  %s1394_s2 = inlined_call_operand.vmem [shape: bf16[1,512], index: 2, kind: input, shape index: {}]   ;;  %s1395_s3 = inlined_call_operand.vmem [shape: bf16[1,512], index: 3, kind: input, shape index: {}]   ;;  %s1396_s4 = inlined_call_operand.vmem [shape: bf16[32,256], index: 4, kind: output, shape index: {}]  }
   0x1 LB: > { %s917_s16 = sadd.s32 4294967295, %s1126_s15   ;;  %p921_p0 = scmp.ge.s32.totalorder %s1126_s15, 1  ;;  %s1126_s15 = sphi %s1155_s15, %s14_s15  }
   0x2   : > { %p164_p1 = scmp.lt.s32.totalorder %s1126_s15, 3 }
   0x4   : > { %p165_p2 = pnand %p921_p0, %p164_p1 }
   0x5   : > { %v1024_v0 = vld [vmem:[%s1393_s1 + $0x4] ss:$8 sps:$4 sm:$0xff] (!%p165_p2)   ;;  %v1028_v2 = vld [vmem:[%s1393_s1] ss:$8 sps:$4 sm:$0xff] (!%p165_p2)   ;;  %v1030_v4 = vld [vmem:[%s1393_s1 + $0x14] ss:$8 sps:$4 sm:$0xff] (!%p165_p2)   ;;  %v224_v39 = vlaneseq (!%p165_p2) }
   0x6   : > { %168 = sbr.rel (%p165_p2) target bundleno = 291 (0x123), region = 36  ;;  %v1026_v1 = vld [vmem:[%s1393_s1 + $0x104] ss:$8 sps:$4 sm:$0xff] (!%p165_p2)   ;;  %759 = vmatprep.subr.bf16.mxu1 (!%p165_p2), %v1024_v0  ;;  %v1029_v3 = vld [vmem:[%s1393_s1 + $0x100] ss:$8 sps:$4 sm:$0xff] (!%p165_p2)   ;;  %s922_s21 = sshll.u32 (!%p165_p2), %s917_s16, 1 }
   0x7   : > { %802 = vmatprep.subr.bf16.mxu0 (!%p165_p2), %v1026_v1  ;;  %760 = vmatpush1.bf16.msra.mxu1 (!%p165_p2), %v1028_v2  ;;  %v1032_v5 = vld [vmem:[%s1393_s1 + $0x114] ss:$8 sps:$4 sm:$0xff] (!%p165_p2)   ;;  %v1034_v6 = vld [vmem:[%s1393_s1 + $0x10] ss:$8 sps:$4 sm:$0xff] (!%p165_p2)   ;;  %v1036_v8 = vld [vmem:[%s1393_s1 + $0x24] ss:$8 sps:$4 sm:$0xff] (!%p165_p2)  }
   0x8   : > { %803 = vmatpush1.bf16.msra.mxu0 (!%p165_p2), %v1029_v3  ;;  %761 = vmatprep.subr.bf16.mxu1 (!%p165_p2), %v1030_v4  ;;  %v1035_v7 = vld [vmem:[%s1393_s1 + $0x110] ss:$8 sps:$4 sm:$0xff] (!%p165_p2)   ;;  %v1038_v9 = vld [vmem:[%s1393_s1 + $0x124] ss:$8 sps:$4 sm:$0xff] (!%p165_p2)   ;;  %v1040_v10 = vld [vmem:[%s1393_s1 + $0x20] ss:$8 sps:$4 sm:$0xff] (!%p165_p2)  }
   0x9   : > { %804 = vmatprep.subr.bf16.mxu0 (!%p165_p2), %v1032_v5  ;;  %v1041_v11 = vld [vmem:[%s1393_s1 + $0x120] ss:$8 sps:$4 sm:$0xff] (!%p165_p2)   ;;  %v1042_v12 = vld [vmem:[%s1393_s1 + $0x34] ss:$8 sps:$4 sm:$0xff] (!%p165_p2)   ;;  %v1046_v14 = vld [vmem:[%s1393_s1 + $0x30] ss:$8 sps:$4 sm:$0xff] (!%p165_p2)  }
   0xa   : > { %v1044_v13 = vld [vmem:[%s1393_s1 + $0x134] ss:$8 sps:$4 sm:$0xff] (!%p165_p2)   ;;  %v1047_v15 = vld [vmem:[%s1393_s1 + $0x130] ss:$8 sps:$4 sm:$0xff] (!%p165_p2)   ;;  %v1048_v16 = vld [vmem:[%s1393_s1 + $0x44] ss:$8 sps:$4 sm:$0xff] (!%p165_p2)  }
   0xb   : > { %762 = vmatpush1.bf16.msra.mxu1 (!%p165_p2), %v1034_v6  ;;  %v1050_v17 = vld [vmem:[%s1393_s1 + $0x144] ss:$8 sps:$4 sm:$0xff] (!%p165_p2)   ;;  %v1052_v18 = vld [vmem:[%s1393_s1 + $0x40] ss:$8 sps:$4 sm:$0xff] (!%p165_p2)   ;;  %v1054_v20 = vld [vmem:[%s1393_s1 + $0x54] ss:$8 sps:$4 sm:$0xff] (!%p165_p2)  }
   0xc   : > { %805 = vmatpush1.bf16.msra.mxu0 (!%p165_p2), %v1035_v7  ;;  %763 = vmatprep.subr.bf16.mxu1 (!%p165_p2), %v1036_v8  ;;  %v1053_v19 = vld [vmem:[%s1393_s1 + $0x140] ss:$8 sps:$4 sm:$0xff] (!%p165_p2)   ;;  %v1056_v21 = vld [vmem:[%s1393_s1 + $0x154] ss:$8 sps:$4 sm:$0xff] (!%p165_p2)   ;;  %v1058_v22 = vld [vmem:[%s1393_s1 + $0x50] ss:$8 sps:$4 sm:$0xff] (!%p165_p2)  }
   0xd   : > { %806 = vmatprep.subr.bf16.mxu0 %v1038_v9  ;;  %v1059_v23 = vld [vmem:[%s1393_s1 + $0x150] ss:$8 sps:$4 sm:$0xff]   ;;  %v1060_v24 = vld [vmem:[%s1393_s1 + $0x64] ss:$8 sps:$4 sm:$0xff]   ;;  %v1064_v26 = vld [vmem:[%s1393_s1 + $0x60] ss:$8 sps:$4 sm:$0xff]  }
   0xe   : > { %v1062_v25 = vld [vmem:[%s1393_s1 + $0x164] ss:$8 sps:$4 sm:$0xff]   ;;  %v1065_v27 = vld [vmem:[%s1393_s1 + $0x160] ss:$8 sps:$4 sm:$0xff]   ;;  %v1066_v28 = vld [vmem:[%s1393_s1 + $0x74] ss:$8 sps:$4 sm:$0xff]  }
   0xf   : > { %764 = vmatpush1.bf16.msra.mxu1 %v1040_v10  ;;  %v1068_v29 = vld [vmem:[%s1393_s1 + $0x174] ss:$8 sps:$4 sm:$0xff]   ;;  %v1070_v30 = vld [vmem:[%s1393_s1 + $0x70] ss:$8 sps:$4 sm:$0xff]   ;;  %v1072_v32 = vld [vmem:[%s1393_s1 + $0x84] ss:$8 sps:$4 sm:$0xff]  }
  0x10   : > { %807 = vmatpush1.bf16.msra.mxu0 %v1041_v11  ;;  %765 = vmatprep.subr.bf16.mxu1 %v1042_v12  ;;  %v1071_v31 = vld [vmem:[%s1393_s1 + $0x170] ss:$8 sps:$4 sm:$0xff]   ;;  %v1074_v33 = vld [vmem:[%s1393_s1 + $0x184] ss:$8 sps:$4 sm:$0xff]   ;;  %v1076_v34 = vld [vmem:[%s1393_s1 + $0x80] ss:$8 sps:$4 sm:$0xff]  }
  0x11   : > { %808 = vmatprep.subr.bf16.mxu0 %v1044_v13  ;;  %v1077_v35 = vld [vmem:[%s1393_s1 + $0x180] ss:$8 sps:$4 sm:$0xff]   ;;  %v1078_v36 = vld [vmem:[%s1393_s1 + $0x94] ss:$8 sps:$4 sm:$0xff]   ;;  %v1128_v37 = vmov 1966171168  }
  0x12   : > { %v222_v38 = vunpack.c.l.s4 %v1128_v37  ;;  %v1080_v40 = vld [vmem:[%s1393_s1 + $0x194] ss:$8 sps:$4 sm:$0xff]   ;;  %v1082_v41 = vld [vmem:[%s1393_s1 + $0x90] ss:$8 sps:$4 sm:$0xff]   ;;  %v1084_v43 = vld [vmem:[%s1393_s1 + $0xa4] ss:$8 sps:$4 sm:$0xff]  }
  0x13   : > { %766 = vmatpush1.bf16.msra.mxu1 %v1046_v14  ;;  %v1083_v42 = vld [vmem:[%s1393_s1 + $0x190] ss:$8 sps:$4 sm:$0xff]   ;;  %v225_v45 = vshrl.u32 %v224_v39, 7  ;;  %v1086_v46 = vld [vmem:[%s1393_s1 + $0x1a4] ss:$8 sps:$4 sm:$0xff]   ;;  %p193_p3 = scmp.lt.s32.totalorder %s922_s21, 3 }
  0x14   : > { %809 = vmatpush1.bf16.msra.mxu0 %v1047_v15  ;;  %767 = vmatprep.subr.bf16.mxu1 %v1048_v16  ;;  %v223_v44 = vunpack.c.0.s8 %v222_v38  ;;  %v1088_v47 = vld [vmem:[%s1393_s1 + $0xa0] ss:$8 sps:$4 sm:$0xff]   ;;  %v1090_v49 = vld [vmem:[%s1393_s1 + $0xb4] ss:$8 sps:$4 sm:$0xff]   ;;  %v1094_v53 = vld [vmem:[%s1393_s1 + $0xb0] ss:$8 sps:$4 sm:$0xff]  }
  0x15   : > { %810 = vmatprep.subr.bf16.mxu0 %v1050_v17  ;;  %v1089_v48 = vld [vmem:[%s1393_s1 + $0x1a0] ss:$8 sps:$4 sm:$0xff]   ;;  %v1092_v51 = vld [vmem:[%s1393_s1 + $0x1b4] ss:$8 sps:$4 sm:$0xff]   ;;  %s1398_s21 = smov (!%p193_p3, %s922_s21), 3  ;;  %v1305_v52 = vsub.s32 0, %v225_v45 }
  0x16   : > { %v226_v50 = vsub.s32 %v223_v44, %v225_v45  ;;  %v928_v54 = vld.sshfl [vmem:[%s1394_s2] sm:$0x33 pattern:$0x75316420]  ;;  %v1095_v55 = vld [vmem:[%s1393_s1 + $0x1b0] ss:$8 sps:$4 sm:$0xff]  }
  0x17   : > { %768 = vmatpush1.bf16.msra.mxu1 %v1052_v18  ;;  %v220_v56 = vcombine.high %v928_v54, %v928_v54  ;;  %v931_v58 = vld.sshfl [vmem:[%s1395_s3] sm:$0x33 pattern:$0x75316420]  ;;  %v1096_v59 = vld [vmem:[%s1393_s1 + $0xc4] ss:$8 sps:$4 sm:$0xff]  }
  0x18   : > { %811 = vmatpush1.bf16.msra.mxu0 %v1053_v19  ;;  %769 = vmatprep.subr.bf16.mxu1 %v1054_v20  ;;  %v227_v57 = vrot.slane %v928_v54, %v226_v50  ;;  %v1098_v60 = vld [vmem:[%s1393_s1 + $0x1c4] ss:$8 sps:$4 sm:$0xff]   ;;  %s1006_s26 = sshll.u32 %s1398_s21, 4  ;;  %v290_v61 = vcombine.high %v931_v58, %v931_v58  ;;  %v297_v62 = vrot.slane %v931_v58, %v226_v50  ;;  %v1100_v5 = vld [vmem:[%s1393_s1 + $0xc0] ss:$8 sps:$4 sm:$0xff]   ;;  %s1007_s7 = sshll.u32 %s1398_s21, 3 }
  0x19   : > { %812 = vmatprep.subr.bf16.mxu0 %v1056_v21  ;;  %v234_v63 = vrot.slane %v220_v56, %v226_v50  ;;  %v1101_v6 = vld [vmem:[%s1393_s1 + $0x1c0] ss:$8 sps:$4 sm:$0xff]   ;;  %s1335_s6 = scalar_lea.vmem %s1392_s0, %s1006_s26  ;;  %v1102_v10 = vld [vmem:[%s1393_s1 + $0xd4] ss:$8 sps:$4 sm:$0xff]   ;;  %s204_s10 = scalar_lea.vmem %s1396_s4, %s1007_s7 }
  0x1a   : > { %v238_v0 = vpack.i.b16 %v227_v57, %v227_v57  ;;  %v235_v1 = vcombine.high %v227_v57, %v227_v57  ;;  %v304_v2 = vrot.slane %v290_v61, %v226_v50  ;;  %v308_v3 = vpack.i.b16 %v297_v62, %v297_v62  ;;  %v1104_v11 = vld [vmem:[%s1393_s1 + $0x1d4] ss:$8 sps:$4 sm:$0xff]   ;;  %v207_v19 = vld [vmem:[%s1335_s6] sm:$0xff] }
  0x1b   : > { %770 = vmatpush1.bf16.msra.mxu1 %v1058_v22  ;;  %v305_v4 = vcombine.high %v297_v62, %v297_v62  ;;  %v245_v8 = vpack.i.b16 %v234_v63, %v234_v63  ;;  %v236_v9 = vcombine.high %v234_v63, %v234_v63  ;;  %v209_v20 = vld [vmem:[%s1335_s6 + $0x10] sm:$0xff]  ;;  %v1112_v38 = vld [vmem:[%s1393_s1 + $0xe0] ss:$8 sps:$4 sm:$0xff]  }
  0x1c   : > { %813 = vmatpush1.bf16.msra.mxu0 %v1059_v23  ;;  %771 = vmatprep.subr.bf16.mxu1 %v1060_v24  ;;  %v243_v7 = vrot.slane %v238_v0, %v1305_v52  ;;  %v313_v12 = vrot.slane %v308_v3, %v1305_v52  ;;  %v315_v13 = vpack.i.b16 %v304_v2, %v304_v2  ;;  %v1106_v23 = vld [vmem:[%s1393_s1 + $0xd0] ss:$8 sps:$4 sm:$0xff]   ;;  %v1113_v39 = vld [vmem:[%s1393_s1 + $0x1e0] ss:$8 sps:$4 sm:$0xff]   ;;  %v1116_v44 = vld [vmem:[%s1393_s1 + $0x1f4] ss:$8 sps:$4 sm:$0xff]  }
  0x1d   : > { %814 = vmatprep.subr.bf16.mxu0 %v1062_v25  ;;  %v252_v14 = vpack.i.b16 %v235_v1, %v235_v1  ;;  %v250_v15 = vrot.slane %v245_v8, %v1305_v52  ;;  %v259_v16 = vpack.i.b16 %v236_v9, %v236_v9  ;;  %v306_v17 = vcombine.high %v304_v2, %v304_v2  ;;  %v1107_v24 = vld [vmem:[%s1393_s1 + $0x1d0] ss:$8 sps:$4 sm:$0xff]  }
  0x1e   : > { %v322_v18 = vpack.i.b16 %v305_v4, %v305_v4  ;;  %v320_v21 = vrot.slane %v315_v13, %v1305_v52 }
  0x1f   : > { %772 = vmatpush1.bf16.msra.mxu1 %v1064_v26  ;;  %v257_v22 = vrot.slane %v252_v14, %v1305_v52  ;;  %v929_v25 = vcombine.low %v243_v7, %v250_v15  ;;  %v264_v26 = vrot.slane %v259_v16, %v1305_v52 }
  0x20   : > { %815 = vmatpush1.bf16.msra.mxu0 %v1065_v27  ;;  %773 = vmatprep.subr.bf16.mxu1 %v1066_v28  ;;  %v1108_v27 = vld [vmem:[%s1393_s1 + $0xe4] ss:$8 sps:$4 sm:$0xff]  }
  0x21   : > { %816 = vmatprep.subr.bf16.mxu0 %v1068_v29  ;;  %v1110_v28 = vld [vmem:[%s1393_s1 + $0x1e4] ss:$8 sps:$4 sm:$0xff]   ;;  %v932_v29 = vcombine.low %v313_v12, %v320_v21 }
  0x23   : > { %774 = vmatpush1.bf16.msra.mxu1 %v1070_v30  ;;  %v208_v30 = vld [vmem:[%s1335_s6 + $0x8] sm:$0xff] }
  0x24   : > { %817 = vmatpush1.bf16.msra.mxu0 %v1071_v31  ;;  %775 = vmatprep.subr.bf16.mxu1 %v1072_v32  ;;  %v327_v31 = vrot.slane %v322_v18, %v1305_v52  ;;  %v329_v32 = vpack.i.b16 %v306_v17, %v306_v17 }
  0x25   : > { %818 = vmatprep.subr.bf16.mxu0 %v1074_v33  ;;  %v277_v33 = vmul.bf16 %v929_v25, %v207_v19 }
  0x26   : > { %v334_v37 = vrot.slane %v329_v32, %v1305_v52  ;;  %v1118_v52 = vld [vmem:[%s1393_s1 + $0xf0] ss:$8 sps:$4 sm:$0xff]  }
  0x27   : > { %776 = vmatpush1.bf16.msra.mxu1 %v1076_v34  ;;  %v279_v34 = vmul.bf16 %v929_v25, %v209_v20 }
  0x28   : > { %819 = vmatpush1.bf16.msra.mxu0 %v1077_v35  ;;  %777 = vmatprep.subr.bf16.mxu1 %v1078_v36  ;;  %v210_v35 = vld [vmem:[%s1335_s6 + $0x18] sm:$0xff]  ;;  %v930_v36 = vcombine.low %v257_v22, %v264_v26 }
  0x29   : > { %820 = vmatprep.subr.bf16.mxu0 %v1080_v40  ;;  %v347_v40 = vadd.bf16 %v932_v29, %v277_v33 }
  0x2a   : > { %v280_v45 = vmul.bf16 %v930_v36, %v210_v35 }
  0x2b   : > { %778 = vmatpush1.bf16.msra.mxu1 %v1082_v41  ;;  %v349_v41 = vadd.bf16 %v932_v29, %v279_v34 }
  0x2c   : > { %821 = vmatpush1.bf16.msra.mxu0 %v1083_v42  ;;  %779 = vmatprep.subr.bf16.mxu1 %v1084_v43  ;;  %v278_v42 = vmul.bf16 %v930_v36, %v208_v30  ;;  %v1114_v43 = vld [vmem:[%s1393_s1 + $0xf4] ss:$8 sps:$4 sm:$0xff]  }
  0x2d   : > { %822 = vmatprep.subr.bf16.mxu0 %v1086_v46  ;;  %v933_v46 = vcombine.low %v327_v31, %v334_v37 }
  0x2f   : > { %780 = vmatpush1.bf16.msra.mxu1 %v1088_v47  ;;  %v1129_v47 = vmov 0   ;;  %v348_v50 = vadd.bf16 %v933_v46, %v278_v42 }
  0x30   : > { %823 = vmatpush1.bf16.msra.mxu0 %v1089_v48  ;;  %781 = vmatprep.subr.bf16.mxu1 %v1090_v49  ;;  %v351_v48 = vmax.bf16 %v1129_v47, %v347_v40  ;;  %v353_v49 = vmax.bf16 %v1129_v47, %v349_v41 }
  0x31   : > { %824 = vmatprep.subr.bf16.mxu0 %v1092_v51  ;;  %v350_v51 = vadd.bf16 %v933_v46, %v280_v45 }
  0x32   : > { %v935_v54 = vcombine.high %v351_v48, %v353_v49  ;;  %v934_v58 = vcombine.low %v351_v48, %v353_v49 }
  0x33   : > { %782 = vmatpush1.bf16.msra.mxu1 %v1094_v53  ;;  %v1119_v53 = vld [vmem:[%s1393_s1 + $0x1f0] ss:$8 sps:$4 sm:$0xff]   ;;  %v354_v56 = vmax.bf16 %v1129_v47, %v350_v51 }
  0x34   : > { %825 = vmatpush1.bf16.msra.mxu0 %v1095_v55  ;;  %783 = vmatprep.subr.bf16.mxu1 %v1096_v59  ;;  %v352_v55 = vmax.bf16 %v1129_v47, %v348_v50 }
  0x35   : > { %826 = vmatprep.subr.bf16.mxu0 %v1098_v60  ;;  %791 = vmatprep.mubr.bf16.mxu1 %v935_v54 }
  0x36   : > { %v937_v57 = vcombine.high %v352_v55, %v354_v56  ;;  %v936_v59 = vcombine.low %v352_v55, %v354_v56 }
  0x37   : > { %784 = vmatpush1.bf16.msra.mxu1 %v1100_v5 }
  0x38   : > { %827 = vmatpush1.bf16.msra.mxu0 %v1101_v6  ;;  %785 = vmatprep.subr.bf16.mxu1 %v1102_v10 }
  0x39   : > { %828 = vmatprep.subr.bf16.mxu0 %v1104_v11  ;;  %834 = vmatprep.mubr.bf16.mxu0 %v937_v57 }
  0x3b   : > { %786 = vmatpush1.bf16.msra.mxu1 %v1106_v23 }
  0x3c   : > { %829 = vmatpush1.bf16.msra.mxu0 %v1107_v24  ;;  %787 = vmatprep.subr.bf16.mxu1 %v1108_v27 }
  0x3d   : > { %830 = vmatprep.subr.bf16.mxu0 %v1110_v28 }
  0x3f   : > { %788 = vmatpush1.bf16.msra.mxu1 %v1112_v38 }
  0x40   : > { %831 = vmatpush1.bf16.msra.mxu0 %v1113_v39  ;;  %789 = vmatprep.subr.bf16.mxu1 %v1114_v43 }
  0x41   : > { %832 = vmatprep.subr.bf16.mxu0 %v1116_v44 }
  0x43   : > { %790 = vmatpush1.bf16.msra.mxu1 %v1118_v52 }
  0x44   : > { %833 = vmatpush1.bf16.msra.mxu0 %v1119_v53 }
  0x46   : > { %792 = vmatmul.mubr.bf16.vlgmr.msra.gmra.mrb[0].mxu1 %v934_v58 }
  0x47   : > { %835 = vmatmul.mubr.bf16.vlgmr.msra.gmra.mrb[0].mxu0 %v936_v59 }
 0x119   : > { %v793_v60 = vpop.f32.mrb[0].mxu1 }
 0x11a   : > { %v836_v61 = vpop.f32.mrb[0].mxu0  ;;  %v795_v63 = vpop.f32.mrb[1].mxu1 }
 0x11b   : > { %v837_v62 = vadd.f32 %v836_v61, %v793_v60  ;;  %v838_v0 = vpop.f32.mrb[1].mxu0  ;;  %v797_v2 = vpop.f32.mrb[2].mxu1 }
 0x11c   : > { %v839_v1 = vadd.f32 %v838_v0, %v795_v63  ;;  %v840_v3 = vpop.f32.mrb[2].mxu0  ;;  %v799_v5 = vpop.f32.mrb[3].mxu1 }
 0x11d   : > { %v841_v4 = vadd.f32 %v840_v3, %v797_v2  ;;  %v842_v6 = vpop.f32.mrb[3].mxu0 }
 0x11e   : > { %v1008_v7 = vpack.c.bf16 %v839_v1, %v837_v62  ;;  %v843_v8 = vadd.f32 %v842_v6, %v799_v5 }
 0x120   : > { %857 = vst [vmem:[%s204_s10] sm:$0xff] %v1008_v7  ;;  %v1009_v9 = vpack.c.bf16 %v843_v8, %v841_v4 }
 0x122   : > { %858 = vst [vmem:[%s204_s10 + $0x8] sm:$0xff] %v1009_v9 }
 0x123 PF: > { %s14_s15 = sadd.s32 1, %s1126_s15  }
 0x124   : > { %p11_p4 = scmp.ge.s32.totalorder %s14_s15, 4  }
 0x126   :  { %13 = sbr.rel (!%p11_p4) target bundleno = 1 (0x1), region = 66 }

// kernel: densenet121_forward.161
= control target key start
LH: loop header
LB: loop body
LE: loop exit
PB: predicated region body
PF: predicated region fallthrough
CT: control target
= control target key end

     0   :  { %v1263_v22 = vmov 1966171168   ;;  %v34_v24 = vlaneseq  ;;  %s1541_s1 = inlined_call_operand.vmem [shape: bf16[1024,128], index: 1, kind: input, shape index: {}]   ;;  %s1542_s2 = inlined_call_operand.vmem [shape: bf16[1,1024], index: 2, kind: input, shape index: {}]   ;;  %s1543_s3 = inlined_call_operand.vmem [shape: bf16[1,1024], index: 3, kind: input, shape index: {}]   ;;  %s1544_s0 = inlined_call_operand.vmem [shape: bf16[8,1024], index: 0, kind: input, shape index: {}]   ;;  %s1545_s4 = inlined_call_operand.vmem [shape: f32[1,128], index: 4, kind: input, shape index: {}]   ;;  %s1546_s5 = inlined_call_operand.vmem [shape: f32[1,128], index: 5, kind: input, shape index: {}]   ;;  %s1547_s6 = inlined_call_operand.vmem [shape: bf16[8,128], index: 6, kind: output, shape index: {}]  }
   0x1   :  { %v1197_v0 = vld [vmem:[%s1541_s1 + $0x40] sm:$0xff]   ;;  %v1201_v4 = vld [vmem:[%s1541_s1 + $0x48] sm:$0xff]   ;;  %v1205_v8 = vld [vmem:[%s1541_s1 + $0x50] sm:$0xff]   ;;  %v32_v23 = vunpack.c.l.s4 %v1263_v22 }
   0x2   :  { %v1198_v1 = vld [vmem:[%s1541_s1 + $0xc0] sm:$0xff]   ;;  %1107 = vmatprep.subr.bf16.mxu0 %v1197_v0  ;;  %v1202_v5 = vld [vmem:[%s1541_s1 + $0xc8] sm:$0xff]   ;;  %v1206_v9 = vld [vmem:[%s1541_s1 + $0xd0] sm:$0xff]   ;;  %v35_v30 = vshrl.u32 %v34_v24, 7 }
   0x3   :  { %v1199_v2 = vld [vmem:[%s1541_s1] sm:$0xff]   ;;  %1129 = vmatprep.subr.bf16.mxu1 %v1198_v1  ;;  %v1203_v6 = vld [vmem:[%s1541_s1 + $0x8] sm:$0xff]   ;;  %v1207_v10 = vld [vmem:[%s1541_s1 + $0x10] sm:$0xff]   ;;  %v33_v29 = vunpack.c.0.s8 %v32_v23 }
   0x4   :  { %v1200_v3 = vld [vmem:[%s1541_s1 + $0x80] sm:$0xff]   ;;  %1108 = vmatpush3.bf16.msra.mxu0 %v1199_v2  ;;  %v1204_v7 = vld [vmem:[%s1541_s1 + $0x88] sm:$0xff]   ;;  %v1208_v11 = vld [vmem:[%s1541_s1 + $0x90] sm:$0xff]   ;;  %v1402_v43 = vsub.s32 0, %v35_v30 }
   0x5   :  { %1130 = vmatpush3.bf16.msra.mxu1 %v1200_v3  ;;  %1109 = vmatprep.subr.bf16.mxu0 %v1201_v4  ;;  %v1209_v12 = vld [vmem:[%s1541_s1 + $0x58] sm:$0xff]   ;;  %v1213_v16 = vld [vmem:[%s1541_s1 + $0x60] sm:$0xff]   ;;  %v1217_v20 = vld [vmem:[%s1541_s1 + $0x68] sm:$0xff]   ;;  %v36_v35 = vsub.s32 %v33_v29, %v35_v30 }
   0x6   :  { %1131 = vmatprep.subr.bf16.mxu1 %v1202_v5  ;;  %v1210_v13 = vld [vmem:[%s1541_s1 + $0xd8] sm:$0xff]   ;;  %v1214_v17 = vld [vmem:[%s1541_s1 + $0xe0] sm:$0xff]   ;;  %v1218_v21 = vld [vmem:[%s1541_s1 + $0xe8] sm:$0xff]  }
   0x7   :  { %v1211_v14 = vld [vmem:[%s1541_s1 + $0x18] sm:$0xff]   ;;  %v1215_v18 = vld [vmem:[%s1541_s1 + $0x20] sm:$0xff]   ;;  %v1219_v25 = vld [vmem:[%s1541_s1 + $0x28] sm:$0xff]  }
   0x8   :  { %1110 = vmatpush3.bf16.msra.mxu0 %v1203_v6  ;;  %v1212_v15 = vld [vmem:[%s1541_s1 + $0x98] sm:$0xff]   ;;  %v1216_v19 = vld [vmem:[%s1541_s1 + $0xa0] sm:$0xff]   ;;  %v1220_v26 = vld [vmem:[%s1541_s1 + $0xa8] sm:$0xff]  }
   0x9   :  { %1132 = vmatpush3.bf16.msra.mxu1 %v1204_v7  ;;  %1111 = vmatprep.subr.bf16.mxu0 %v1205_v8  ;;  %v1221_v27 = vld [vmem:[%s1541_s1 + $0x70] sm:$0xff]   ;;  %v1225_v33 = vld [vmem:[%s1541_s1 + $0x78] sm:$0xff]   ;;  %v28_v38 = vld [vmem:[%s1542_s2] sm:$0xff] }
   0xa   :  { %1133 = vmatprep.subr.bf16.mxu1 %v1206_v9  ;;  %v1222_v28 = vld [vmem:[%s1541_s1 + $0xf0] sm:$0xff]   ;;  %v1226_v34 = vld [vmem:[%s1541_s1 + $0xf8] sm:$0xff]   ;;  %v163_v39 = vld [vmem:[%s1543_s3] sm:$0xff]  ;;  %v30_v40 = vcombine.high %v28_v38, %v28_v38  ;;  %v37_v41 = vrot.slane %v28_v38, %v36_v35 }
   0xb   :  { %v1223_v31 = vld [vmem:[%s1541_s1 + $0x30] sm:$0xff]   ;;  %v1227_v36 = vld [vmem:[%s1541_s1 + $0x38] sm:$0xff]   ;;  %v172_v42 = vrot.slane %v163_v39, %v36_v35  ;;  %v165_v44 = vcombine.high %v163_v39, %v163_v39  ;;  %v1231_v45 = vld [vmem:[%s1541_s1 + $0x140] sm:$0xff]  }
   0xc   :  { %1112 = vmatpush3.bf16.msra.mxu0 %v1207_v10  ;;  %v1224_v32 = vld [vmem:[%s1541_s1 + $0xb0] sm:$0xff]   ;;  %v1228_v37 = vld [vmem:[%s1541_s1 + $0xb8] sm:$0xff]   ;;  %v45_v46 = vcombine.high %v37_v41, %v37_v41  ;;  %v53_v47 = vrot.slane %v37_v41, %v36_v35  ;;  %v1232_v50 = vld [vmem:[%s1541_s1 + $0x1c0] sm:$0xff]   ;;  %v44_v51 = vrot.slane %v30_v40, %v36_v35 }
   0xd   :  { %1134 = vmatpush3.bf16.msra.mxu1 %v1208_v11  ;;  %1113 = vmatprep.subr.bf16.mxu0 %v1209_v12  ;;  %v180_v48 = vcombine.high %v172_v42, %v172_v42  ;;  %v188_v49 = vrot.slane %v172_v42, %v36_v35  ;;  %v179_v58 = vrot.slane %v165_v44, %v36_v35  ;;  %v24_v6 = vld [vmem:[%s1544_s0] sm:$0xff]  ;;  %v1236_v44 = vld [vmem:[%s1541_s1 + $0x1c8] sm:$0xff]  }
   0xe   :  { %1135 = vmatprep.subr.bf16.mxu1 %v1210_v13  ;;  %v67_v52 = vrot.slane %v45_v46, %v36_v35  ;;  %v80_v53 = vpack.i.b16 %v53_v47, %v53_v47  ;;  %v75_v56 = vcombine.high %v53_v47, %v53_v47  ;;  %v46_v5 = vcombine.high %v44_v51, %v44_v51  ;;  %v1234_v38 = vld [vmem:[%s1541_s1 + $0x180] sm:$0xff]   ;;  %v1237_v47 = vld [vmem:[%s1541_s1 + $0x108] sm:$0xff]  }
   0xf   :  { %v202_v54 = vrot.slane %v180_v48, %v36_v35  ;;  %v215_v55 = vpack.i.b16 %v188_v49, %v188_v49  ;;  %v210_v57 = vcombine.high %v188_v49, %v188_v49  ;;  %v195_v24 = vrot.slane %v179_v58, %v36_v35  ;;  %v1239_v49 = vld [vmem:[%s1541_s1 + $0x150] sm:$0xff]  }
  0x10   :  { %1114 = vmatpush3.bf16.msra.mxu0 %v1211_v14  ;;  %v85_v59 = vrot.slane %v80_v53, %v1402_v43  ;;  %v87_v60 = vpack.i.b16 %v67_v52, %v67_v52  ;;  %v77_v63 = vcombine.high %v67_v52, %v67_v52  ;;  %v94_v0 = vpack.i.b16 %v75_v56, %v75_v56  ;;  %v1238_v53 = vld [vmem:[%s1541_s1 + $0x188] sm:$0xff]  }
  0x11   :  { %1136 = vmatpush3.bf16.msra.mxu1 %v1212_v15  ;;  %1115 = vmatprep.subr.bf16.mxu0 %v1213_v16  ;;  %v220_v61 = vrot.slane %v215_v55, %v1402_v43  ;;  %v222_v62 = vpack.i.b16 %v202_v54, %v202_v54  ;;  %v212_v1 = vcombine.high %v202_v54, %v202_v54  ;;  %v1240_v54 = vld [vmem:[%s1541_s1 + $0x1d0] sm:$0xff]  }
  0x12   :  { %1137 = vmatprep.subr.bf16.mxu1 %v1214_v17  ;;  %v229_v2 = vpack.i.b16 %v210_v57, %v210_v57  ;;  %v92_v3 = vrot.slane %v87_v60, %v1402_v43  ;;  %v99_v7 = vrot.slane %v94_v0, %v1402_v43  ;;  %v101_v8 = vpack.i.b16 %v77_v63, %v77_v63  ;;  %v25_v17 = vld [vmem:[%s1544_s0 + $0x8] sm:$0xff]  ;;  %v1243_v60 = vld [vmem:[%s1541_s1 + $0x158] sm:$0xff]  }
  0x13   :  { %v227_v4 = vrot.slane %v222_v62, %v1402_v43  ;;  %v236_v10 = vpack.i.b16 %v212_v1, %v212_v1  ;;  %v181_v15 = vcombine.high %v179_v58, %v179_v58  ;;  %v243_v48 = vpack.i.b16 %v195_v24, %v195_v24  ;;  %v1242_v1 = vld [vmem:[%s1541_s1 + $0x190] sm:$0xff]  }
  0x14   :  { %1116 = vmatpush3.bf16.msra.mxu0 %v1215_v18  ;;  %v234_v9 = vrot.slane %v229_v2, %v1402_v43  ;;  %v1025_v11 = vcombine.low %v85_v59, %v92_v3  ;;  %v106_v13 = vrot.slane %v101_v8, %v1402_v43  ;;  %v1241_v59 = vld [vmem:[%s1541_s1 + $0x110] sm:$0xff]   ;;  %v1244_v2 = vld [vmem:[%s1541_s1 + $0x1d8] sm:$0xff]  }
  0x15   :  { %1138 = vmatpush3.bf16.msra.mxu1 %v1216_v19  ;;  %1117 = vmatprep.subr.bf16.mxu0 %v1217_v20  ;;  %v1029_v12 = vcombine.low %v220_v61, %v227_v4  ;;  %v241_v14 = vrot.slane %v236_v10, %v1402_v43  ;;  %v60_v20 = vrot.slane %v44_v51, %v36_v35  ;;  %v26_v8 = vld [vmem:[%s1544_s0 + $0x10] sm:$0xff]  ;;  %v1246_v10 = vld [vmem:[%s1541_s1 + $0x198] sm:$0xff]  }
  0x16   :  { %1139 = vmatprep.subr.bf16.mxu1 %v1218_v21  ;;  %v159_v16 = vmul.bf16 %v1025_v11, %v24_v6  ;;  %v1026_v18 = vcombine.low %v99_v7, %v106_v13  ;;  %v74_v21 = vrot.slane %v46_v5, %v36_v35  ;;  %v248_v61 = vrot.slane %v243_v48, %v1402_v43  ;;  %v1245_v5 = vld [vmem:[%s1541_s1 + $0x118] sm:$0xff]   ;;  %v1248_v13 = vld [vmem:[%s1541_s1 + $0x1e0] sm:$0xff]  }
  0x17   :  { %v1030_v19 = vcombine.low %v234_v9, %v241_v14  ;;  %v76_v29 = vcombine.high %v60_v20, %v60_v20  ;;  %v108_v39 = vpack.i.b16 %v60_v20, %v60_v20  ;;  %v27_v9 = vld [vmem:[%s1544_s0 + $0x18] sm:$0xff]  ;;  %v1249_v14 = vld [vmem:[%s1541_s1 + $0x120] sm:$0xff]  }
  0x18   :  { %1118 = vmatpush3.bf16.msra.mxu0 %v1219_v25  ;;  %v294_v22 = vadd.bf16 %v1029_v12, %v159_v16  ;;  %v160_v23 = vmul.bf16 %v1026_v18, %v25_v17  ;;  %v209_v25 = vrot.slane %v181_v15, %v36_v35  ;;  %v78_v30 = vcombine.high %v74_v21, %v74_v21  ;;  %v1251_v15 = vld [vmem:[%s1541_s1 + $0x168] sm:$0xff]   ;;  %v1250_v18 = vld [vmem:[%s1541_s1 + $0x1a0] sm:$0xff]  }
  0x19   :  { %1140 = vmatpush3.bf16.msra.mxu1 %v1220_v26  ;;  %1119 = vmatprep.subr.bf16.mxu0 %v1221_v27  ;;  %v1264_v26 = vmov 0   ;;  %v115_v40 = vpack.i.b16 %v74_v21, %v74_v21  ;;  %v113_v55 = vrot.slane %v108_v39, %v1402_v43  ;;  %v1252_v21 = vld [vmem:[%s1541_s1 + $0x1e8] sm:$0xff]  }
  0x1a   :  { %1141 = vmatprep.subr.bf16.mxu1 %v1222_v28  ;;  %v298_v27 = vmax.bf16 %v1264_v26, %v294_v22  ;;  %v295_v28 = vadd.bf16 %v1030_v19, %v160_v23  ;;  %v213_v35 = vcombine.high %v209_v25, %v209_v25  ;;  %v129_v46 = vpack.i.b16 %v78_v30, %v78_v30  ;;  %v1253_v22 = vld [vmem:[%s1541_s1 + $0x128] sm:$0xff]   ;;  %v1255_v23 = vld [vmem:[%s1541_s1 + $0x170] sm:$0xff]  }
  0x1b   :  { %v120_v56 = vrot.slane %v115_v40, %v1402_v43  ;;  %v1258_v30 = vld [vmem:[%s1541_s1 + $0x1b0] sm:$0xff]  }
  0x1c   :  { %1120 = vmatpush3.bf16.msra.mxu0 %v1223_v31  ;;  %v1034_v31 = vcombine.high %v298_v27, %v298_v27  ;;  %v264_v52 = vpack.i.b16 %v213_v35, %v213_v35  ;;  %v134_v58 = vrot.slane %v129_v46, %v1402_v43 }
  0x1d   :  { %1142 = vmatpush3.bf16.msra.mxu1 %v1224_v32  ;;  %1121 = vmatprep.subr.bf16.mxu0 %v1225_v33  ;;  %v1033_v32 = vcombine.low %v298_v27, %v298_v27  ;;  %v1233_v33 = vld [vmem:[%s1541_s1 + $0x100] sm:$0xff]   ;;  %v1027_v3 = vcombine.low %v113_v55, %v120_v56  ;;  %v1256_v27 = vld [vmem:[%s1541_s1 + $0x1f0] sm:$0xff]  }
  0x1e   :  { %1143 = vmatprep.subr.bf16.mxu1 %v1226_v34  ;;  %v299_v34 = vmax.bf16 %v1264_v26, %v295_v28  ;;  %874 = vmatprep.mubr.bf16.mxu0 %v1034_v31  ;;  %v269_v0 = vrot.slane %v264_v52, %v1402_v43  ;;  %v1257_v28 = vld [vmem:[%s1541_s1 + $0x130] sm:$0xff]   ;;  %v1260_v31 = vld [vmem:[%s1541_s1 + $0x1f8] sm:$0xff]  }
  0x1f   :  { %v161_v11 = vmul.bf16 %v1027_v3, %v26_v8 }
  0x20   :  { %1122 = vmatpush3.bf16.msra.mxu0 %v1227_v36  ;;  %v1235_v36 = vld [vmem:[%s1541_s1 + $0x148] sm:$0xff]   ;;  %v1036_v41 = vcombine.high %v299_v34, %v299_v34  ;;  %v1035_v42 = vcombine.low %v299_v34, %v299_v34 }
  0x21   :  { %1144 = vmatpush3.bf16.msra.mxu1 %v1228_v37  ;;  %1151 = vmatprep.subr.bf16.mxu0 %v1231_v45  ;;  %v211_v37 = vcombine.high %v195_v24, %v195_v24  ;;  %v122_v45 = vpack.i.b16 %v76_v29, %v76_v29  ;;  %v1259_v29 = vld [vmem:[%s1541_s1 + $0x178] sm:$0xff]  }
  0x22   :  { %1173 = vmatprep.subr.bf16.mxu1 %v1232_v50  ;;  %914 = vmatprep.mubr.bf16.mxu1 %v1036_v41  ;;  %v250_v50 = vpack.i.b16 %v209_v25, %v209_v25 }
  0x23   :  { %875 = vmatmul.mubr.bf16.vlgmr.msra.gmra.mrb[0].mxu0 %v1033_v32  ;;  %v257_v51 = vpack.i.b16 %v211_v37, %v211_v37  ;;  %v127_v57 = vrot.slane %v122_v45, %v1402_v43  ;;  %v1261_v32 = vld [vmem:[%s1541_s1 + $0x138] sm:$0xff]  }
  0x24   :  { %1152 = vmatpush3.bf16.msra.mxu0 %v1233_v33  ;;  %915 = vmatmul.mubr.bf16.vlgmr.msra.gmra.mrb[0].mxu1 %v1035_v42  ;;  %v255_v62 = vrot.slane %v250_v50, %v1402_v43  ;;  %v1262_v33 = vld [vmem:[%s1541_s1 + $0x1b8] sm:$0xff]  }
  0x25   :  { %1153 = vmatprep.subr.bf16.mxu0 %v1235_v36  ;;  %1174 = vmatpush3.bf16.msra.mxu1 %v1234_v38  ;;  %v262_v63 = vrot.slane %v257_v51, %v1402_v43  ;;  %v1028_v4 = vcombine.low %v127_v57, %v134_v58  ;;  %v1247_v43 = vld [vmem:[%s1541_s1 + $0x160] sm:$0xff]  }
  0x26   :  { %1175 = vmatprep.subr.bf16.mxu1 %v1236_v44  ;;  %v1031_v6 = vcombine.low %v248_v61, %v255_v62  ;;  %v1105_v58 = vld [vmem:[%s1545_s4] ss:$0 sm:$0xff] }
  0x27   :  { %v1032_v7 = vcombine.low %v262_v63, %v269_v0  ;;  %v162_v12 = vmul.bf16 %v1028_v4, %v27_v9  ;;  %v1106_v61 = vld [vmem:[%s1546_s5] ss:$0 sm:$0xff] }
  0x28   :  { %1154 = vmatpush3.bf16.msra.mxu0 %v1237_v47  ;;  %v296_v16 = vadd.bf16 %v1031_v6, %v161_v11 }
  0x29   :  { %1155 = vmatprep.subr.bf16.mxu0 %v1239_v49  ;;  %1176 = vmatpush3.bf16.msra.mxu1 %v1238_v53  ;;  %v297_v17 = vadd.bf16 %v1032_v7, %v162_v12 }
  0x2a   :  { %1177 = vmatprep.subr.bf16.mxu1 %v1240_v54  ;;  %v300_v19 = vmax.bf16 %v1264_v26, %v296_v16 }
  0x2b   :  { %v301_v20 = vmax.bf16 %v1264_v26, %v297_v17  ;;  %v1254_v26 = vld [vmem:[%s1541_s1 + $0x1a8] sm:$0xff]  }
  0x2c   :  { %1156 = vmatpush3.bf16.msra.mxu0 %v1241_v59  ;;  %v1038_v24 = vcombine.high %v300_v19, %v300_v19  ;;  %v1037_v34 = vcombine.low %v300_v19, %v300_v19 }
  0x2d   :  { %1157 = vmatprep.subr.bf16.mxu0 %v1243_v60  ;;  %1178 = vmatpush3.bf16.msra.mxu1 %v1242_v1  ;;  %v1040_v25 = vcombine.high %v301_v20, %v301_v20  ;;  %v1039_v36 = vcombine.low %v301_v20, %v301_v20 }
  0x2e   :  { %1179 = vmatprep.subr.bf16.mxu1 %v1244_v2  ;;  %954 = vmatprep.mubr.bf16.mxu0 %v1038_v24 }
  0x2f   :  { %994 = vmatprep.mubr.bf16.mxu1 %v1040_v25 }
  0x30   :  { %1158 = vmatpush3.bf16.msra.mxu0 %v1245_v5 }
  0x31   :  { %1159 = vmatprep.subr.bf16.mxu0 %v1247_v43  ;;  %1180 = vmatpush3.bf16.msra.mxu1 %v1246_v10 }
  0x32   :  { %1181 = vmatprep.subr.bf16.mxu1 %v1248_v13 }
  0x34   :  { %1160 = vmatpush3.bf16.msra.mxu0 %v1249_v14 }
  0x35   :  { %1161 = vmatprep.subr.bf16.mxu0 %v1251_v15  ;;  %1182 = vmatpush3.bf16.msra.mxu1 %v1250_v18 }
  0x36   :  { %1183 = vmatprep.subr.bf16.mxu1 %v1252_v21 }
  0x38   :  { %1162 = vmatpush3.bf16.msra.mxu0 %v1253_v22 }
  0x39   :  { %1163 = vmatprep.subr.bf16.mxu0 %v1255_v23  ;;  %1184 = vmatpush3.bf16.msra.mxu1 %v1254_v26 }
  0x3a   :  { %1185 = vmatprep.subr.bf16.mxu1 %v1256_v27 }
  0x3c   :  { %1164 = vmatpush3.bf16.msra.mxu0 %v1257_v28 }
  0x3d   :  { %1165 = vmatprep.subr.bf16.mxu0 %v1259_v29  ;;  %1186 = vmatpush3.bf16.msra.mxu1 %v1258_v30 }
  0x3e   :  { %1187 = vmatprep.subr.bf16.mxu1 %v1260_v31 }
  0x40   :  { %1166 = vmatpush3.bf16.msra.mxu0 %v1261_v32 }
  0x41   :  { %1188 = vmatpush3.bf16.msra.mxu1 %v1262_v33 }
  0x43   :  { %955 = vmatmul.mubr.bf16.vlgmr.msra.gmra.mrb[4].mxu0 %v1037_v34 }
  0x44   :  { %995 = vmatmul.mubr.bf16.vlgmr.msra.gmra.mrb[4].mxu1 %v1039_v36 }
  0xf6   :  { %v1123_v37 = vpop.f32.mrb[0].mxu0 }
  0xf7   :  { %v1124_v35 = vpop.f32.mrb[1].mxu0  ;;  %v1145_v40 = vpop.f32.mrb[0].mxu1 }
  0xf8   :  { %v1125_v38 = vadd.f32 %v1124_v35, %v1123_v37  ;;  %v1126_v39 = vpop.f32.mrb[2].mxu0  ;;  %v1146_v42 = vpop.f32.mrb[1].mxu1 }
  0xf9   :  { %v1127_v41 = vpop.f32.mrb[3].mxu0  ;;  %v1147_v44 = vadd.f32 %v1146_v42, %v1145_v40  ;;  %v1148_v45 = vpop.f32.mrb[2].mxu1 }
  0xfa   :  { %v1149_v46 = vpop.f32.mrb[3].mxu1 }
  0xfb   :  { %v917_v47 = vadd.f32 %v1147_v44, %v1125_v38 }
 0x116   :  { %v1167_v48 = vpop.f32.mrb[4].mxu0 }
 0x117   :  { %v1168_v49 = vpop.f32.mrb[5].mxu0  ;;  %v1189_v52 = vpop.f32.mrb[4].mxu1 }
 0x118   :  { %v1169_v50 = vadd.f32 %v1168_v49, %v1167_v48  ;;  %v1170_v51 = vpop.f32.mrb[6].mxu0  ;;  %v1190_v55 = vpop.f32.mrb[5].mxu1 }
 0x119   :  { %v1171_v53 = vpop.f32.mrb[7].mxu0  ;;  %v1191_v56 = vadd.f32 %v1190_v55, %v1189_v52  ;;  %v1192_v57 = vpop.f32.mrb[6].mxu1 }
 0x11a   :  { %v957_v54 = vadd.f32 %v1169_v50, %v917_v47  ;;  %v1193_v59 = vpop.f32.mrb[7].mxu1 }
 0x11c   :  { %v997_v60 = vadd.f32 %v1191_v56, %v957_v54 }
 0x11e   :  { %v1009_v62 = vmul.f32 %v1105_v58, %v997_v60 }
 0x120   :  { %v1017_v63 = vadd.f32 %v1106_v61, %v1009_v62 }
 0x122   :  { %v1018_v0 = vmax.f32 %v1017_v63, 0.0 }
 0x124   :  { %v1019_v1 = vpack.c.bf16 %v1018_v0, %v1018_v0 }
 0x126   :  { %1020 = vst [vmem:[%s1547_s6] sm:$0xf] %v1019_v1 }

// kernel: densenet121_forward.162
= control target key start
LH: loop header
LB: loop body
LE: loop exit
PB: predicated region body
PF: predicated region fallthrough
CT: control target
= control target key end

     0   :  { %s1823_s9 = smov 0   ;;  %s2155_s0 = inlined_call_operand.vmem [shape: bf16[2,4,8,128], index: 0, kind: input, shape index: {}]   ;;  %s2156_s1 = inlined_call_operand.vmem [shape: bf16[9,128,32], index: 1, kind: input, shape index: {}]   ;;  %s2157_s2 = inlined_call_operand.vmem [shape: bf16[2,2,2,32], index: 2, kind: output, shape index: {}]  }
   0x1 LB: > { %s1234_s10 = sadd.s32 4294967295, %s1804_s9   ;;  %p1238_p0 = scmp.ge.s32.totalorder %s1804_s9, 1  ;;  %s1804_s9 = sphi %s1823_s9, %s12_s9  }
   0x2   : > { %p112_p1 = scmp.lt.s32.totalorder %s1804_s9, 3 }
   0x4   : > { %p113_p2 = pnand %p1238_p0, %p112_p1 }
   0x5   : > { %v1723_v0 = vld [vmem:[%s2156_s1] sm:$0xff] (!%p113_p2)   ;;  %v1806_v1 = vmov (!%p113_p2), 0.0   ;;  %v1725_v3 = vld [vmem:[%s2156_s1 + $0x8] sm:$0xff] (!%p113_p2)   ;;  %vm1807_vm0 = vmmov (!%p113_p2), 0   ;;  %p133_p3 = scmp.lt.s32.totalorder (!%p113_p2), %s1234_s10, 1  ;;  %v1727_v5 = vld [vmem:[%s2156_s1 + $0x10] sm:$0xff] (!%p113_p2)  }
   0x6   : > { %116 = sbr.rel (%p113_p2) target bundleno = 387 (0x183), region = 28  ;;  %1533 = vmatprep.subr.bf16.mxu0 (!%p113_p2), %v1806_v1  ;;  %1553 = vmatprep.subr.bf16.mxu1 (!%p113_p2), %v1806_v1  ;;  %v1724_v2 = vld [vmem:[%s2156_s1 + $0x40] sm:$0xff] (!%p113_p2)   ;;  %v1726_v4 = vld [vmem:[%s2156_s1 + $0x48] sm:$0xff] (!%p113_p2)   ;;  %v1728_v6 = vld [vmem:[%s2156_s1 + $0x50] sm:$0xff] (!%p113_p2)   ;;  %vm1178_vm1 = vcmask (!%p113_p2), 253952  }
   0x7   : > { %1534 = vmatpush3.bf16.msra.mxu0 (!%p113_p2), %v1723_v0  ;;  %1549 = vmatprep.mubr.msk.bf16.mxu0 (!%p113_p2), %vm1807_vm0, %v1806_v1  ;;  %v1729_v7 = vld [vmem:[%s2156_s1 + $0x18] sm:$0xff] (!%p113_p2)   ;;  %v1731_v9 = vld [vmem:[%s2156_s1 + $0x20] sm:$0xff] (!%p113_p2)   ;;  %v1733_v11 = vld [vmem:[%s2156_s1 + $0x28] sm:$0xff] (!%p113_p2)  }
   0x8   : > { %1554 = vmatpush3.bf16.msra.mxu1 (!%p113_p2), %v1724_v2  ;;  %1535 = vmatprep.subr.bf16.mxu0 (!%p113_p2), %v1806_v1  ;;  %v1730_v8 = vld [vmem:[%s2156_s1 + $0x58] sm:$0xff] (!%p113_p2)   ;;  %v1732_v10 = vld [vmem:[%s2156_s1 + $0x60] sm:$0xff] (!%p113_p2)   ;;  %v1734_v12 = vld [vmem:[%s2156_s1 + $0x68] sm:$0xff] (!%p113_p2)  }
   0x9   : > { %1555 = vmatprep.subr.bf16.mxu1 (!%p113_p2), %v1806_v1  ;;  %1569 = vmatprep.mubr.msk.bf16.mxu1 (!%p113_p2), %vm1807_vm0, %v1806_v1  ;;  %v1735_v13 = vld [vmem:[%s2156_s1 + $0x30] sm:$0xff] (!%p113_p2)   ;;  %v1737_v15 = vld [vmem:[%s2156_s1 + $0x38] sm:$0xff] (!%p113_p2)   ;;  %v1740_v18 = vld [vmem:[%s2156_s1 + $0x80] sm:$0xff] (!%p113_p2)  }
   0xa   : > { %v1736_v14 = vld [vmem:[%s2156_s1 + $0x70] sm:$0xff] (!%p113_p2)   ;;  %v1738_v16 = vld [vmem:[%s2156_s1 + $0x78] sm:$0xff] (!%p113_p2)   ;;  %v1741_v19 = vld [vmem:[%s2156_s1 + $0xc0] sm:$0xff] (!%p113_p2)  }
   0xb   : > { %1536 = vmatpush3.bf16.msra.mxu0 (!%p113_p2), %v1725_v3  ;;  %v1742_v20 = vld [vmem:[%s2156_s1 + $0x88] sm:$0xff] (!%p113_p2)   ;;  %v1744_v22 = vld [vmem:[%s2156_s1 + $0x90] sm:$0xff] (!%p113_p2)   ;;  %v1746_v24 = vld [vmem:[%s2156_s1 + $0x98] sm:$0xff] (!%p113_p2)  }
   0xc   : > { %1556 = vmatpush3.bf16.msra.mxu1 (!%p113_p2), %v1726_v4  ;;  %1537 = vmatprep.subr.bf16.mxu0 (!%p113_p2), %v1806_v1  ;;  %v1743_v21 = vld [vmem:[%s2156_s1 + $0xc8] sm:$0xff] (!%p113_p2)   ;;  %v1745_v23 = vld [vmem:[%s2156_s1 + $0xd0] sm:$0xff] (!%p113_p2)   ;;  %v1747_v25 = vld [vmem:[%s2156_s1 + $0xd8] sm:$0xff] (!%p113_p2)  }
   0xd   : > { %1557 = vmatprep.subr.bf16.mxu1 %v1806_v1  ;;  %s2159_s10 = smov (!%p133_p3, %s1234_s10), 1  ;;  %v1748_v26 = vld [vmem:[%s2156_s1 + $0xa0] sm:$0xff]   ;;  %v1750_v28 = vld [vmem:[%s2156_s1 + $0xa8] sm:$0xff]   ;;  %v1752_v30 = vld [vmem:[%s2156_s1 + $0xb0] sm:$0xff]  }
   0xe   : > { %s1451_s27 = sshll.u32 %s2159_s10, 4  ;;  %v1749_v27 = vld [vmem:[%s2156_s1 + $0xe0] sm:$0xff]   ;;  %v1751_v29 = vld [vmem:[%s2156_s1 + $0xe8] sm:$0xff]   ;;  %v1753_v31 = vld [vmem:[%s2156_s1 + $0xf0] sm:$0xff]   ;;  %s1241_s4 = sshll.u32 %s2159_s10, 1 }
   0xf   : > { %1538 = vmatpush3.bf16.msra.mxu0 %v1727_v5  ;;  %s1880_s6 = scalar_lea.vmem %s2155_s0, %s1451_s27  ;;  %v1754_v32 = vld [vmem:[%s2156_s1 + $0xb8] sm:$0xff]   ;;  %v1757_v35 = vld [vmem:[%s2156_s1 + $0x100] sm:$0xff]   ;;  %v1759_v37 = vld [vmem:[%s2156_s1 + $0x108] sm:$0xff]   ;;  %s141_s8 = scalar_lea.vmem %s2157_s2, %s1241_s4 }
  0x10   : > { %1558 = vmatpush3.bf16.msra.mxu1 %v1728_v6  ;;  %1539 = vmatprep.subr.bf16.mxu0 %v1806_v1  ;;  %v1739_v17 = vld [vmem:[%s1880_s6] sm:$0xff]   ;;  %v1755_v33 = vld [vmem:[%s2156_s1 + $0xf8] sm:$0xff]   ;;  %v1760_v38 = vld [vmem:[%s2156_s1 + $0x148] sm:$0xff]  }
  0x11   : > { %1559 = vmatprep.subr.bf16.mxu1 %v1806_v1  ;;  %v1756_v34 = vld [vmem:[%s1880_s6 + $0x4] sm:$0xff]   ;;  %v1761_v39 = vld [vmem:[%s2156_s1 + $0x110] sm:$0xff]   ;;  %v1763_v41 = vld [vmem:[%s2156_s1 + $0x118] sm:$0xff]  }
  0x12   : > { %v1758_v36 = vld [vmem:[%s2156_s1 + $0x140] sm:$0xff]   ;;  %v1762_v40 = vld [vmem:[%s2156_s1 + $0x150] sm:$0xff]   ;;  %v1764_v42 = vld [vmem:[%s2156_s1 + $0x158] sm:$0xff]  }
  0x13   : > { %1540 = vmatpush3.bf16.msra.mxu0 %v1729_v7  ;;  %v1765_v43 = vld [vmem:[%s2156_s1 + $0x120] sm:$0xff]   ;;  %v1767_v45 = vld [vmem:[%s2156_s1 + $0x128] sm:$0xff]   ;;  %v1769_v47 = vld [vmem:[%s2156_s1 + $0x130] sm:$0xff]  }
  0x14   : > { %1560 = vmatpush3.bf16.msra.mxu1 %v1730_v8  ;;  %1541 = vmatprep.subr.bf16.mxu0 %v1806_v1  ;;  %v1766_v44 = vld [vmem:[%s2156_s1 + $0x160] sm:$0xff]   ;;  %v1768_v46 = vld [vmem:[%s2156_s1 + $0x168] sm:$0xff]   ;;  %v1770_v48 = vld [vmem:[%s2156_s1 + $0x170] sm:$0xff]  }
  0x15   : > { %1561 = vmatprep.subr.bf16.mxu1 %v1806_v1  ;;  %v1771_v49 = vld [vmem:[%s2156_s1 + $0x138] sm:$0xff]   ;;  %v1773_v51 = vld [vmem:[%s2156_s1 + $0x180] sm:$0xff]   ;;  %v1775_v53 = vld [vmem:[%s2156_s1 + $0x188] sm:$0xff]  }
  0x16   : > { %v1772_v50 = vld [vmem:[%s2156_s1 + $0x178] sm:$0xff]   ;;  %v1774_v52 = vld [vmem:[%s2156_s1 + $0x1c0] sm:$0xff]   ;;  %v1776_v54 = vld [vmem:[%s2156_s1 + $0x1c8] sm:$0xff]  }
  0x17   : > { %1542 = vmatpush3.bf16.msra.mxu0 %v1731_v9  ;;  %v1777_v55 = vld [vmem:[%s2156_s1 + $0x190] sm:$0xff]   ;;  %v1779_v57 = vld [vmem:[%s2156_s1 + $0x198] sm:$0xff]   ;;  %v1781_v59 = vld [vmem:[%s2156_s1 + $0x1a0] sm:$0xff]  }
  0x18   : > { %1562 = vmatpush3.bf16.msra.mxu1 %v1732_v10  ;;  %1543 = vmatprep.subr.bf16.mxu0 %v1806_v1  ;;  %v1778_v56 = vld [vmem:[%s2156_s1 + $0x1d0] sm:$0xff]   ;;  %v1780_v58 = vld [vmem:[%s2156_s1 + $0x1d8] sm:$0xff]   ;;  %v1782_v60 = vld [vmem:[%s2156_s1 + $0x1e0] sm:$0xff]  }
  0x19   : > { %1563 = vmatprep.subr.bf16.mxu1 %v1806_v1  ;;  %v1783_v61 = vld [vmem:[%s2156_s1 + $0x1a8] sm:$0xff]   ;;  %v1785_v63 = vld [vmem:[%s2156_s1 + $0x1b0] sm:$0xff]   ;;  %v1787_v2 = vld [vmem:[%s2156_s1 + $0x1b8] sm:$0xff]  }
  0x1a   : > { %v1784_v62 = vld [vmem:[%s2156_s1 + $0x1e8] sm:$0xff]   ;;  %v1786_v0 = vld [vmem:[%s2156_s1 + $0x1f0] sm:$0xff]   ;;  %v1788_v3 = vld [vmem:[%s2156_s1 + $0x1f8] sm:$0xff]  }
  0x1b   : > { %1544 = vmatpush3.bf16.msra.mxu0 %v1733_v11  ;;  %v1789_v4 = vld [vmem:[%s1880_s6 + $0x8] sm:$0xff]   ;;  %v1790_v5 = vld [vmem:[%s2156_s1 + $0x200] sm:$0xff]   ;;  %v1792_v7 = vld [vmem:[%s2156_s1 + $0x210] sm:$0xff]  }
  0x1c   : > { %1564 = vmatpush3.bf16.msra.mxu1 %v1734_v12  ;;  %1545 = vmatprep.subr.bf16.mxu0 %v1806_v1  ;;  %v1791_v6 = vld [vmem:[%s2156_s1 + $0x208] sm:$0xff]   ;;  %v1793_v8 = vld [vmem:[%s2156_s1 + $0x218] sm:$0xff]   ;;  %v1794_v9 = vld [vmem:[%s2156_s1 + $0x220] sm:$0xff]  }
  0x1d   : > { %1565 = vmatprep.subr.bf16.mxu1 %v1806_v1  ;;  %v1795_v10 = vld [vmem:[%s2156_s1 + $0x228] sm:$0xff]   ;;  %v1796_v11 = vld [vmem:[%s2156_s1 + $0x230] sm:$0xff]   ;;  %v1797_v12 = vld [vmem:[%s2156_s1 + $0x238] sm:$0xff]  }
  0x1f   : > { %1546 = vmatpush3.bf16.msra.mxu0 %v1735_v13 }
  0x20   : > { %1566 = vmatpush3.bf16.msra.mxu1 %v1736_v14  ;;  %1547 = vmatprep.subr.bf16.mxu0 %v1806_v1 }
  0x21   : > { %1567 = vmatprep.subr.bf16.mxu1 %v1806_v1 }
  0x23   : > { %1548 = vmatpush3.bf16.msra.mxu0 %v1737_v15 }
  0x24   : > { %1568 = vmatpush3.bf16.msra.mxu1 %v1738_v16  ;;  %1573 = vmatprep.subr.bf16.mxu0 %v1806_v1 }
  0x25   : > { %1593 = vmatprep.subr.bf16.mxu1 %v1806_v1 }
  0x26   : > { %1550 = vmatmul.mubr.bf16.vlgmr.msra.gmra.mrb[0].mxu0 %v1739_v17 }
  0x27   : > { %1570 = vmatmul.mubr.bf16.vlgmr.msra.gmra.mrb[0].mxu1 %v1739_v17  ;;  %1574 = vmatpush3.bf16.msra.mxu0 %v1740_v18 }
  0x28   : > { %1594 = vmatpush3.bf16.msra.mxu1 %v1741_v19  ;;  %1575 = vmatprep.subr.bf16.mxu0 %v1806_v1 }
  0x29   : > { %1595 = vmatprep.subr.bf16.mxu1 %v1806_v1  ;;  %1589 = vmatprep.mubr.msk.bf16.mxu0 %vm1807_vm0, %v1806_v1 }
  0x2a   : > { %1609 = vmatprep.mubr.msk.bf16.mxu1 %vm1807_vm0, %v1806_v1 }
  0x2b   : > { %1576 = vmatpush3.bf16.msra.mxu0 %v1742_v20 }
  0x2c   : > { %1596 = vmatpush3.bf16.msra.mxu1 %v1743_v21  ;;  %1577 = vmatprep.subr.bf16.mxu0 %v1806_v1 }
  0x2d   : > { %1597 = vmatprep.subr.bf16.mxu1 %v1806_v1 }
  0x2f   : > { %1578 = vmatpush3.bf16.msra.mxu0 %v1744_v22 }
  0x30   : > { %1598 = vmatpush3.bf16.msra.mxu1 %v1745_v23  ;;  %1579 = vmatprep.subr.bf16.mxu0 %v1806_v1 }
  0x31   : > { %1599 = vmatprep.subr.bf16.mxu1 %v1806_v1 }
  0x33   : > { %1580 = vmatpush3.bf16.msra.mxu0 %v1746_v24 }
  0x34   : > { %1600 = vmatpush3.bf16.msra.mxu1 %v1747_v25  ;;  %1581 = vmatprep.subr.bf16.mxu0 %v1806_v1 }
  0x35   : > { %1601 = vmatprep.subr.bf16.mxu1 %v1806_v1 }
  0x37   : > { %1582 = vmatpush3.bf16.msra.mxu0 %v1748_v26 }
  0x38   : > { %1602 = vmatpush3.bf16.msra.mxu1 %v1749_v27  ;;  %1583 = vmatprep.subr.bf16.mxu0 %v1806_v1 }
  0x39   : > { %1603 = vmatprep.subr.bf16.mxu1 %v1806_v1 }
  0x3b   : > { %1584 = vmatpush3.bf16.msra.mxu0 %v1750_v28 }
  0x3c   : > { %1604 = vmatpush3.bf16.msra.mxu1 %v1751_v29  ;;  %1585 = vmatprep.subr.bf16.mxu0 %v1806_v1 }
  0x3d   : > { %1605 = vmatprep.subr.bf16.mxu1 %v1806_v1 }
  0x3f   : > { %1586 = vmatpush3.bf16.msra.mxu0 %v1752_v30 }
  0x40   : > { %1606 = vmatpush3.bf16.msra.mxu1 %v1753_v31  ;;  %1587 = vmatprep.subr.bf16.mxu0 %v1806_v1 }
  0x41   : > { %1607 = vmatprep.subr.bf16.mxu1 %v1806_v1 }
  0x43   : > { %1588 = vmatpush3.bf16.msra.mxu0 %v1754_v32 }
  0x44   : > { %1608 = vmatpush3.bf16.msra.mxu1 %v1755_v33  ;;  %1613 = vmatprep.subr.bf16.mxu0 %v1806_v1 }
  0x45   : > { %1633 = vmatprep.subr.bf16.mxu1 %v1806_v1 }
  0x46   : > { %1590 = vmatmul.mubr.bf16.vlgmr.msra.gmra.mrb[4].mxu0 %v1739_v17 }
  0x47   : > { %1610 = vmatmul.mubr.bf16.vlgmr.msra.gmra.mrb[4].mxu1 %v1756_v34  ;;  %1614 = vmatpush3.bf16.msra.mxu0 %v1757_v35 }
  0x48   : > { %1634 = vmatpush3.bf16.msra.mxu1 %v1758_v36  ;;  %1615 = vmatprep.subr.bf16.mxu0 %v1806_v1 }
  0x49   : > { %1635 = vmatprep.subr.bf16.mxu1 %v1806_v1  ;;  %1629 = vmatprep.mubr.msk.bf16.mxu0 %vm1807_vm0, %v1806_v1 }
  0x4a   : > { %1649 = vmatprep.mubr.msk.bf16.mxu1 %vm1807_vm0, %v1806_v1 }
  0x4b   : > { %1616 = vmatpush3.bf16.msra.mxu0 %v1759_v37 }
  0x4c   : > { %1636 = vmatpush3.bf16.msra.mxu1 %v1760_v38  ;;  %1617 = vmatprep.subr.bf16.mxu0 %v1806_v1 }
  0x4d   : > { %1637 = vmatprep.subr.bf16.mxu1 %v1806_v1 }
  0x4f   : > { %1618 = vmatpush3.bf16.msra.mxu0 %v1761_v39 }
  0x50   : > { %1638 = vmatpush3.bf16.msra.mxu1 %v1762_v40  ;;  %1619 = vmatprep.subr.bf16.mxu0 %v1806_v1 }
  0x51   : > { %1639 = vmatprep.subr.bf16.mxu1 %v1806_v1 }
  0x53   : > { %1620 = vmatpush3.bf16.msra.mxu0 %v1763_v41 }
  0x54   : > { %1640 = vmatpush3.bf16.msra.mxu1 %v1764_v42  ;;  %1621 = vmatprep.subr.bf16.mxu0 %v1806_v1 }
  0x55   : > { %1641 = vmatprep.subr.bf16.mxu1 %v1806_v1 }
  0x57   : > { %1622 = vmatpush3.bf16.msra.mxu0 %v1765_v43 }
  0x58   : > { %1642 = vmatpush3.bf16.msra.mxu1 %v1766_v44  ;;  %1623 = vmatprep.subr.bf16.mxu0 %v1806_v1 }
  0x59   : > { %1643 = vmatprep.subr.bf16.mxu1 %v1806_v1 }
  0x5b   : > { %1624 = vmatpush3.bf16.msra.mxu0 %v1767_v45 }
  0x5c   : > { %1644 = vmatpush3.bf16.msra.mxu1 %v1768_v46  ;;  %1625 = vmatprep.subr.bf16.mxu0 %v1806_v1 }
  0x5d   : > { %1645 = vmatprep.subr.bf16.mxu1 %v1806_v1 }
  0x5f   : > { %1626 = vmatpush3.bf16.msra.mxu0 %v1769_v47 }
  0x60   : > { %1646 = vmatpush3.bf16.msra.mxu1 %v1770_v48  ;;  %1627 = vmatprep.subr.bf16.mxu0 %v1806_v1 }
  0x61   : > { %1647 = vmatprep.subr.bf16.mxu1 %v1806_v1 }
  0x63   : > { %1628 = vmatpush3.bf16.msra.mxu0 %v1771_v49 }
  0x64   : > { %1648 = vmatpush3.bf16.msra.mxu1 %v1772_v50  ;;  %1653 = vmatprep.subr.bf16.mxu0 %v1806_v1 }
  0x65   : > { %1673 = vmatprep.subr.bf16.mxu1 %v1806_v1 }
  0x66   : > { %1630 = vmatmul.mubr.bf16.vlgmr.msra.gmra.mrb[8].mxu0 %v1756_v34 }
  0x67   : > { %1650 = vmatmul.mubr.bf16.vlgmr.msra.gmra.mrb[8].mxu1 %v1756_v34  ;;  %1654 = vmatpush3.bf16.msra.mxu0 %v1773_v51 }
  0x68   : > { %1674 = vmatpush3.bf16.msra.mxu1 %v1774_v52  ;;  %1655 = vmatprep.subr.bf16.mxu0 %v1806_v1 }
  0x69   : > { %1675 = vmatprep.subr.bf16.mxu1 %v1806_v1  ;;  %1669 = vmatprep.mubr.msk.bf16.mxu0 %vm1807_vm0, %v1806_v1 }
  0x6a   : > { %1689 = vmatprep.mubr.msk.bf16.mxu1 %vm1807_vm0, %v1806_v1 }
  0x6b   : > { %1656 = vmatpush3.bf16.msra.mxu0 %v1775_v53 }
  0x6c   : > { %1676 = vmatpush3.bf16.msra.mxu1 %v1776_v54  ;;  %1657 = vmatprep.subr.bf16.mxu0 %v1806_v1 }
  0x6d   : > { %1677 = vmatprep.subr.bf16.mxu1 %v1806_v1 }
  0x6f   : > { %1658 = vmatpush3.bf16.msra.mxu0 %v1777_v55 }
  0x70   : > { %1678 = vmatpush3.bf16.msra.mxu1 %v1778_v56  ;;  %1659 = vmatprep.subr.bf16.mxu0 %v1806_v1 }
  0x71   : > { %1679 = vmatprep.subr.bf16.mxu1 %v1806_v1 }
  0x73   : > { %1660 = vmatpush3.bf16.msra.mxu0 %v1779_v57 }
  0x74   : > { %1680 = vmatpush3.bf16.msra.mxu1 %v1780_v58  ;;  %1661 = vmatprep.subr.bf16.mxu0 %v1806_v1 }
  0x75   : > { %1681 = vmatprep.subr.bf16.mxu1 %v1806_v1 }
  0x77   : > { %1662 = vmatpush3.bf16.msra.mxu0 %v1781_v59 }
  0x78   : > { %1682 = vmatpush3.bf16.msra.mxu1 %v1782_v60  ;;  %1663 = vmatprep.subr.bf16.mxu0 %v1806_v1 }
  0x79   : > { %1683 = vmatprep.subr.bf16.mxu1 %v1806_v1 }
  0x7b   : > { %1664 = vmatpush3.bf16.msra.mxu0 %v1783_v61 }
  0x7c   : > { %1684 = vmatpush3.bf16.msra.mxu1 %v1784_v62  ;;  %1665 = vmatprep.subr.bf16.mxu0 %v1806_v1 }
  0x7d   : > { %1685 = vmatprep.subr.bf16.mxu1 %v1806_v1 }
  0x7f   : > { %1666 = vmatpush3.bf16.msra.mxu0 %v1785_v63 }
  0x80   : > { %1686 = vmatpush3.bf16.msra.mxu1 %v1786_v0  ;;  %1667 = vmatprep.subr.bf16.mxu0 %v1806_v1 }
  0x81   : > { %1687 = vmatprep.subr.bf16.mxu1 %v1806_v1 }
  0x83   : > { %1668 = vmatpush3.bf16.msra.mxu0 %v1787_v2 }
  0x84   : > { %1688 = vmatpush3.bf16.msra.mxu1 %v1788_v3  ;;  %1693 = vmatprep.subr.bf16.mxu0 %v1806_v1 }
  0x86   : > { %1670 = vmatmul.mubr.bf16.vlgmr.msra.gmra.mrb[12].mxu0 %v1789_v4 }
  0x87   : > { %1690 = vmatmul.mubr.bf16.vlgmr.msra.gmra.mrb[12].mxu1 %v1789_v4  ;;  %1694 = vmatpush3.bf16.msra.mxu0 %v1790_v5 }
  0x88   : > { %1695 = vmatprep.subr.bf16.mxu0 %v1806_v1  ;;  %1709 = vmatprep.mubr.msk.bf16.mxu0 %vm1807_vm0, %v1806_v1 }
  0x8b   : > { %1696 = vmatpush3.bf16.msra.mxu0 %v1791_v6 }
  0x8c   : > { %1697 = vmatprep.subr.bf16.mxu0 %v1806_v1 }
  0x8f   : > { %1698 = vmatpush3.bf16.msra.mxu0 %v1792_v7 }
  0x90   : > { %1699 = vmatprep.subr.bf16.mxu0 %v1806_v1 }
  0x93   : > { %1700 = vmatpush3.bf16.msra.mxu0 %v1793_v8 }
  0x94   : > { %1701 = vmatprep.subr.bf16.mxu0 %v1806_v1 }
  0x97   : > { %1702 = vmatpush3.bf16.msra.mxu0 %v1794_v9 }
  0x98   : > { %1703 = vmatprep.subr.bf16.mxu0 %v1806_v1 }
  0x9b   : > { %1704 = vmatpush3.bf16.msra.mxu0 %v1795_v10 }
  0x9c   : > { %1705 = vmatprep.subr.bf16.mxu0 %v1806_v1 }
  0x9f   : > { %1706 = vmatpush3.bf16.msra.mxu0 %v1796_v11 }
  0xa0   : > { %1707 = vmatprep.subr.bf16.mxu0 %v1806_v1 }
  0xa3   : > { %1708 = vmatpush3.bf16.msra.mxu0 %v1797_v12 }
  0xa6   : > { %1710 = vmatmul.mubr.bf16.vlgmr.msra.gmra.mrb[16].mxu0 %v1789_v4 }
  0xf9   : > { %v249_v13 = vpop.f32.mrb[0].mxu0 }
  0xfa   : > { %v357_v14 = vpop.f32.mrb[0].mxu1  ;;  %v1551_v15 = vpop.f32.mrb[1].mxu0 }
  0xfb   : > { %v366_v16 = vrot.slane %v357_v14, 1  ;;  %v1571_v17 = vpop.f32.mrb[1].mxu1  ;;  %v252_v18 = vpop.f32.mrb[2].mxu0 }
  0xfc   : > { %v360_v19 = vpop.f32.mrb[2].mxu1  ;;  %v1552_v20 = vpop.f32.mrb[3].mxu0 }
  0xfd   : > { %v370_v21 = vadd.f32 %v366_v16, %v249_v13  ;;  %v367_v22 = vrot.slane %v360_v19, 1  ;;  %v1572_v23 = vpop.f32.mrb[3].mxu1 }
  0xff   : > { %v371_v24 = vadd.f32 %v367_v22, %v252_v18 }
 0x119   : > { %v471_v25 = vpop.f32.mrb[4].mxu0 }
 0x11a   : > { %v480_v26 = vrot.slane %v471_v25, 2  ;;  %v1591_v27 = vpop.f32.mrb[5].mxu0  ;;  %v594_v28 = vpop.f32.mrb[4].mxu1 }
 0x11b   : > { %v474_v29 = vpop.f32.mrb[6].mxu0  ;;  %v1611_v1 = vpop.f32.mrb[5].mxu1 }
 0x11c   : > { %v481_v30 = vrot.slane %v474_v29, 2  ;;  %v1592_v31 = vpop.f32.mrb[7].mxu0  ;;  %v484_v32 = vadd.f32 %v480_v26, %v370_v21  ;;  %v597_v33 = vpop.f32.mrb[6].mxu1 }
 0x11d   : > { %v1612_v34 = vpop.f32.mrb[7].mxu1 }
 0x11e   : > { %v601_v35 = vadd.f32 %v594_v28, %v484_v32  ;;  %v485_v36 = vadd.f32 %v481_v30, %v371_v24 }
 0x120   : > { %v602_v37 = vadd.f32 %v597_v33, %v485_v36 }
 0x139   : > { %v702_v38 = vpop.f32.mrb[8].mxu0 }
 0x13a   : > { %v711_v39 = vrot.slane %v702_v38, 1  ;;  %v1631_v40 = vpop.f32.mrb[9].mxu0  ;;  %v816_v41 = vpop.f32.mrb[8].mxu1 }
 0x13b   : > { %v705_v42 = vpop.f32.mrb[10].mxu0  ;;  %v825_v43 = vrot.slane %v816_v41, 2  ;;  %v1651_v44 = vpop.f32.mrb[9].mxu1 }
 0x13c   : > { %v715_v45 = vadd.f32 %v711_v39, %v601_v35  ;;  %v712_v46 = vrot.slane %v705_v42, 1  ;;  %v1632_v47 = vpop.f32.mrb[11].mxu0  ;;  %v819_v48 = vpop.f32.mrb[10].mxu1 }
 0x13d   : > { %v826_v49 = vrot.slane %v819_v48, 2  ;;  %v1652_v50 = vpop.f32.mrb[11].mxu1 }
 0x13e   : > { %v716_v51 = vadd.f32 %v712_v46, %v602_v37  ;;  %v829_v52 = vadd.f32 %v825_v43, %v715_v45 }
 0x140   : > { %v830_v53 = vadd.f32 %v826_v49, %v716_v51 }
 0x159   : > { %v939_v54 = vpop.f32.mrb[12].mxu0 }
 0x15a   : > { %v946_v55 = vadd.f32 %v939_v54, %v829_v52  ;;  %v1047_v56 = vpop.f32.mrb[12].mxu1  ;;  %v1671_v57 = vpop.f32.mrb[13].mxu0 }
 0x15b   : > { %v1056_v58 = vrot.slane %v1047_v56, 1  ;;  %v1691_v59 = vpop.f32.mrb[13].mxu1  ;;  %v942_v60 = vpop.f32.mrb[14].mxu0 }
 0x15c   : > { %v947_v61 = vadd.f32 %v942_v60, %v830_v53  ;;  %v1050_v62 = vpop.f32.mrb[14].mxu1  ;;  %v1672_v63 = vpop.f32.mrb[15].mxu0 }
 0x15d   : > { %v1060_v0 = vadd.f32 %v1056_v58, %v946_v55  ;;  %v1057_v2 = vrot.slane %v1050_v62, 1  ;;  %v1692_v3 = vpop.f32.mrb[15].mxu1 }
 0x15f   : > { %v1061_v4 = vadd.f32 %v1057_v2, %v947_v61 }
 0x179   : > { %v1161_v5 = vpop.f32.mrb[16].mxu0 }
 0x17a   : > { %v1170_v6 = vrot.slane %v1161_v5, 2  ;;  %v1711_v7 = vpop.f32.mrb[17].mxu0 }
 0x17b   : > { %v1164_v8 = vpop.f32.mrb[18].mxu0 }
 0x17c   : > { %v1174_v9 = vadd.f32 %v1170_v6, %v1060_v0  ;;  %v1171_v10 = vrot.slane %v1164_v8, 2  ;;  %v1712_v11 = vpop.f32.mrb[19].mxu0 }
 0x17e   : > { %v1176_v12 = vpack.c.bf16 %v1174_v9, %v1174_v9  ;;  %v1175_v13 = vadd.f32 %v1171_v10, %v1061_v4 }
 0x180   : > { %1179 = vst.msk [vmem:[%s141_s8] sm:$0x1] %vm1178_vm1, %v1176_v12  ;;  %v1177_v14 = vpack.c.bf16 %v1175_v13, %v1175_v13 }
 0x182   : > { %1180 = vst.msk [vmem:[%s141_s8 + $0x1] sm:$0x1] %vm1178_vm1, %v1177_v14 }
 0x183 PF: > { %s12_s9 = sadd.s32 1, %s1804_s9  }
 0x184   : > { %p9_p4 = scmp.ge.s32.totalorder %s12_s9, 4  }
 0x186   :  { %11 = sbr.rel (!%p9_p4) target bundleno = 1 (0x1), region = 68 }

// kernel: densenet121_forward.209
= control target key start
LH: loop header
LB: loop body
LE: loop exit
PB: predicated region body
PF: predicated region fallthrough
CT: control target
= control target key end

     0   :  { %v2898_v37 = vmov 1966171168   ;;  %v28_v39 = vlaneseq  ;;  %s3855_s1 = inlined_call_operand.vmem [shape: bf16[1024,512], index: 1, kind: input, shape index: {}]   ;;  %s3856_s2 = inlined_call_operand.vmem [shape: bf16[1,1024], index: 2, kind: input, shape index: {}]   ;;  %s3857_s3 = inlined_call_operand.vmem [shape: bf16[1,1024], index: 3, kind: input, shape index: {}]   ;;  %s3858_s0 = inlined_call_operand.vmem [shape: bf16[8,1024], index: 0, kind: input, shape index: {}]   ;;  %s3859_s4 = inlined_call_operand.vmem [shape: bf16[8,512], index: 4, kind: output, shape index: {}]  }
   0x1   :  { %v2512_v0 = vld [vmem:[%s3855_s1 + $0x4] ss:$16 sps:$4 sm:$0xff]   ;;  %v2514_v1 = vld [vmem:[%s3855_s1 + $0xc] ss:$16 sps:$4 sm:$0xff]   ;;  %v2516_v2 = vld [vmem:[%s3855_s1] ss:$16 sps:$4 sm:$0xff]   ;;  %v26_v38 = vunpack.c.l.s4 %v2898_v37 }
   0x2   :  { %1860 = vmatprep.subr.bf16.mxu0 %v2512_v0  ;;  %v2517_v3 = vld [vmem:[%s3855_s1 + $0x8] ss:$16 sps:$4 sm:$0xff]   ;;  %2024 = vmatprep.subr.bf16.mxu1 %v2514_v1  ;;  %v2518_v4 = vld [vmem:[%s3855_s1 + $0x24] ss:$16 sps:$4 sm:$0xff]   ;;  %v2520_v5 = vld [vmem:[%s3855_s1 + $0x2c] ss:$16 sps:$4 sm:$0xff]  }
   0x3   :  { %1861 = vmatpush1.bf16.msra.mxu0 %v2516_v2  ;;  %2025 = vmatpush1.bf16.msra.mxu1 %v2517_v3  ;;  %v2522_v6 = vld [vmem:[%s3855_s1 + $0x20] ss:$16 sps:$4 sm:$0xff]   ;;  %v2523_v7 = vld [vmem:[%s3855_s1 + $0x28] ss:$16 sps:$4 sm:$0xff]   ;;  %v2524_v8 = vld [vmem:[%s3855_s1 + $0x44] ss:$16 sps:$4 sm:$0xff]   ;;  %v27_v44 = vunpack.c.0.s8 %v26_v38 }
   0x4   :  { %1862 = vmatprep.subr.bf16.mxu0 %v2518_v4  ;;  %2026 = vmatprep.subr.bf16.mxu1 %v2520_v5  ;;  %v2526_v9 = vld [vmem:[%s3855_s1 + $0x4c] ss:$16 sps:$4 sm:$0xff]   ;;  %v2528_v10 = vld [vmem:[%s3855_s1 + $0x40] ss:$16 sps:$4 sm:$0xff]   ;;  %v2529_v11 = vld [vmem:[%s3855_s1 + $0x48] ss:$16 sps:$4 sm:$0xff]  }
   0x5   :  { %v2530_v12 = vld [vmem:[%s3855_s1 + $0x64] ss:$16 sps:$4 sm:$0xff]   ;;  %v2532_v13 = vld [vmem:[%s3855_s1 + $0x6c] ss:$16 sps:$4 sm:$0xff]   ;;  %v2534_v14 = vld [vmem:[%s3855_s1 + $0x60] ss:$16 sps:$4 sm:$0xff]  }
   0x6   :  { %v2535_v15 = vld [vmem:[%s3855_s1 + $0x68] ss:$16 sps:$4 sm:$0xff]   ;;  %v2536_v16 = vld [vmem:[%s3855_s1 + $0x84] ss:$16 sps:$4 sm:$0xff]   ;;  %v2538_v17 = vld [vmem:[%s3855_s1 + $0x8c] ss:$16 sps:$4 sm:$0xff]  }
   0x7   :  { %1863 = vmatpush1.bf16.msra.mxu0 %v2522_v6  ;;  %2027 = vmatpush1.bf16.msra.mxu1 %v2523_v7  ;;  %v2540_v18 = vld [vmem:[%s3855_s1 + $0x80] ss:$16 sps:$4 sm:$0xff]   ;;  %v2541_v19 = vld [vmem:[%s3855_s1 + $0x88] ss:$16 sps:$4 sm:$0xff]   ;;  %v2542_v20 = vld [vmem:[%s3855_s1 + $0xa4] ss:$16 sps:$4 sm:$0xff]  }
   0x8   :  { %1864 = vmatprep.subr.bf16.mxu0 %v2524_v8  ;;  %2028 = vmatprep.subr.bf16.mxu1 %v2526_v9  ;;  %v2544_v21 = vld [vmem:[%s3855_s1 + $0xac] ss:$16 sps:$4 sm:$0xff]   ;;  %v2546_v22 = vld [vmem:[%s3855_s1 + $0xa0] ss:$16 sps:$4 sm:$0xff]   ;;  %v2547_v23 = vld [vmem:[%s3855_s1 + $0xa8] ss:$16 sps:$4 sm:$0xff]  }
   0x9   :  { %v2548_v24 = vld [vmem:[%s3855_s1 + $0xc4] ss:$16 sps:$4 sm:$0xff]   ;;  %v2550_v25 = vld [vmem:[%s3855_s1 + $0xcc] ss:$16 sps:$4 sm:$0xff]   ;;  %v2552_v26 = vld [vmem:[%s3855_s1 + $0xc0] ss:$16 sps:$4 sm:$0xff]  }
   0xa   :  { %v2553_v27 = vld [vmem:[%s3855_s1 + $0xc8] ss:$16 sps:$4 sm:$0xff]   ;;  %v2554_v28 = vld [vmem:[%s3855_s1 + $0xe4] ss:$16 sps:$4 sm:$0xff]   ;;  %v2556_v29 = vld [vmem:[%s3855_s1 + $0xec] ss:$16 sps:$4 sm:$0xff]  }
   0xb   :  { %1865 = vmatpush1.bf16.msra.mxu0 %v2528_v10  ;;  %2029 = vmatpush1.bf16.msra.mxu1 %v2529_v11  ;;  %v2558_v30 = vld [vmem:[%s3855_s1 + $0xe0] ss:$16 sps:$4 sm:$0xff]   ;;  %v2559_v31 = vld [vmem:[%s3855_s1 + $0xe8] ss:$16 sps:$4 sm:$0xff]   ;;  %v2560_v32 = vld [vmem:[%s3855_s1 + $0x104] ss:$16 sps:$4 sm:$0xff]  }
   0xc   :  { %1866 = vmatprep.subr.bf16.mxu0 %v2530_v12  ;;  %2030 = vmatprep.subr.bf16.mxu1 %v2532_v13  ;;  %v2562_v33 = vld [vmem:[%s3855_s1 + $0x10c] ss:$16 sps:$4 sm:$0xff]   ;;  %v2564_v34 = vld [vmem:[%s3855_s1 + $0x100] ss:$16 sps:$4 sm:$0xff]   ;;  %v2565_v35 = vld [vmem:[%s3855_s1 + $0x108] ss:$16 sps:$4 sm:$0xff]  }
   0xd   :  { %v2566_v36 = vld [vmem:[%s3855_s1 + $0x124] ss:$16 sps:$4 sm:$0xff]   ;;  %v2568_v40 = vld [vmem:[%s3855_s1 + $0x12c] ss:$16 sps:$4 sm:$0xff]   ;;  %v2570_v41 = vld [vmem:[%s3855_s1 + $0x120] ss:$16 sps:$4 sm:$0xff]  }
   0xe   :  { %v2571_v42 = vld [vmem:[%s3855_s1 + $0x128] ss:$16 sps:$4 sm:$0xff]   ;;  %v2572_v43 = vld [vmem:[%s3855_s1 + $0x144] ss:$16 sps:$4 sm:$0xff]   ;;  %v29_v45 = vshrl.u32 %v28_v39, 7 }
   0xf   :  { %1867 = vmatpush1.bf16.msra.mxu0 %v2534_v14  ;;  %2031 = vmatpush1.bf16.msra.mxu1 %v2535_v15  ;;  %v2574_v46 = vld [vmem:[%s3855_s1 + $0x14c] ss:$16 sps:$4 sm:$0xff]   ;;  %v2576_v47 = vld [vmem:[%s3855_s1 + $0x140] ss:$16 sps:$4 sm:$0xff]   ;;  %v2577_v48 = vld [vmem:[%s3855_s1 + $0x148] ss:$16 sps:$4 sm:$0xff]  }
  0x10   :  { %1868 = vmatprep.subr.bf16.mxu0 %v2536_v16  ;;  %2032 = vmatprep.subr.bf16.mxu1 %v2538_v17  ;;  %v2578_v49 = vld [vmem:[%s3855_s1 + $0x164] ss:$16 sps:$4 sm:$0xff]   ;;  %v3060_v50 = vsub.s32 %v27_v44, %v29_v45  ;;  %v2580_v51 = vld [vmem:[%s3855_s1 + $0x16c] ss:$16 sps:$4 sm:$0xff]   ;;  %v2582_v52 = vld [vmem:[%s3855_s1 + $0x160] ss:$16 sps:$4 sm:$0xff]  }
  0x11   :  { %v22_v53 = vld [vmem:[%s3856_s2] sm:$0xff]  ;;  %v2583_v55 = vld [vmem:[%s3855_s1 + $0x168] ss:$16 sps:$4 sm:$0xff]   ;;  %v2586_v59 = vld [vmem:[%s3855_s1 + $0x18c] ss:$16 sps:$4 sm:$0xff]   ;;  %v3088_v63 = vsub.s32 0, %v29_v45 }
  0x12   :  { %v157_v54 = vld [vmem:[%s3857_s3] sm:$0xff]  ;;  %v24_v57 = vcombine.high %v22_v53, %v22_v53  ;;  %v31_v58 = vrot.slane %v22_v53, %v3060_v50  ;;  %v2589_v4 = vld [vmem:[%s3855_s1 + $0x188] ss:$16 sps:$4 sm:$0xff]   ;;  %v2592_v8 = vld [vmem:[%s3855_s1 + $0x1ac] ss:$16 sps:$4 sm:$0xff]  }
  0x13   :  { %1869 = vmatpush1.bf16.msra.mxu0 %v2540_v18  ;;  %2033 = vmatpush1.bf16.msra.mxu1 %v2541_v19  ;;  %v2584_v56 = vld [vmem:[%s3855_s1 + $0x184] ss:$16 sps:$4 sm:$0xff]   ;;  %v166_v60 = vrot.slane %v157_v54, %v3060_v50  ;;  %v2588_v0 = vld [vmem:[%s3855_s1 + $0x180] ss:$16 sps:$4 sm:$0xff]   ;;  %v2595_v14 = vld [vmem:[%s3855_s1 + $0x1a8] ss:$16 sps:$4 sm:$0xff]   ;;  %v159_v15 = vcombine.high %v157_v54, %v157_v54 }
  0x14   :  { %1870 = vmatprep.subr.bf16.mxu0 %v2542_v20  ;;  %2034 = vmatprep.subr.bf16.mxu1 %v2544_v21  ;;  %v39_v61 = vcombine.high %v31_v58, %v31_v58  ;;  %v3086_v62 = vrot.slane %v31_v58, %v3060_v50  ;;  %v38_v3 = vrot.slane %v24_v57, %v3060_v50  ;;  %v2590_v5 = vld [vmem:[%s3855_s1 + $0x1a4] ss:$16 sps:$4 sm:$0xff]   ;;  %v2594_v13 = vld [vmem:[%s3855_s1 + $0x1a0] ss:$16 sps:$4 sm:$0xff]   ;;  %v2598_v19 = vld [vmem:[%s3855_s1 + $0x1cc] ss:$16 sps:$4 sm:$0xff]  }
  0x15   :  { %v174_v1 = vcombine.high %v166_v60, %v166_v60  ;;  %v3094_v2 = vrot.slane %v166_v60, %v3060_v50  ;;  %v2596_v18 = vld [vmem:[%s3855_s1 + $0x1c4] ss:$16 sps:$4 sm:$0xff]   ;;  %v2610_v53 = vld [vmem:[%s3855_s1 + $0x200] ss:$16 sps:$4 sm:$0xff]   ;;  %v2621_v58 = vld [vmem:[%s3855_s1 + $0x22c] ss:$16 sps:$4 sm:$0xff]  }
  0x16   :  { %v3104_v6 = vrot.slane %v39_v61, %v3060_v50  ;;  %v74_v7 = vpack.i.b16 %v3086_v62, %v3086_v62  ;;  %v18_v21 = vld [vmem:[%s3858_s0] sm:$0xff]  ;;  %v2619_v61 = vld [vmem:[%s3855_s1 + $0x228] ss:$16 sps:$4 sm:$0xff]  }
  0x17   :  { %1871 = vmatpush1.bf16.msra.mxu0 %v2546_v22  ;;  %2035 = vmatpush1.bf16.msra.mxu1 %v2547_v23  ;;  %v3112_v9 = vrot.slane %v174_v1, %v3060_v50  ;;  %v209_v10 = vpack.i.b16 %v3094_v2, %v3094_v2  ;;  %v2618_v57 = vld [vmem:[%s3855_s1 + $0x224] ss:$16 sps:$4 sm:$0xff]   ;;  %v2616_v60 = vld [vmem:[%s3855_s1 + $0x220] ss:$16 sps:$4 sm:$0xff]   ;;  %v2627_v1 = vld [vmem:[%s3855_s1 + $0x24c] ss:$16 sps:$4 sm:$0xff]  }
  0x18   :  { %1872 = vmatprep.subr.bf16.mxu0 %v2548_v24  ;;  %2036 = vmatprep.subr.bf16.mxu1 %v2550_v25  ;;  %v79_v11 = vrot.slane %v74_v7, %v3088_v63  ;;  %v81_v12 = vpack.i.b16 %v3104_v6, %v3104_v6  ;;  %v40_v24 = vcombine.high %v38_v3, %v38_v3  ;;  %v2625_v7 = vld [vmem:[%s3855_s1 + $0x248] ss:$16 sps:$4 sm:$0xff]  }
  0x19   :  { %v214_v16 = vrot.slane %v209_v10, %v3088_v63  ;;  %v216_v17 = vpack.i.b16 %v3112_v9, %v3112_v9  ;;  %v3140_v25 = vrot.slane %v38_v3, %v3060_v50  ;;  %v2622_v3 = vld [vmem:[%s3855_s1 + $0x240] ss:$16 sps:$4 sm:$0xff]   ;;  %v2633_v10 = vld [vmem:[%s3855_s1 + $0x26c] ss:$16 sps:$4 sm:$0xff]  }
  0x1a   :  { %v86_v20 = vrot.slane %v81_v12, %v3088_v63 }
  0x1b   :  { %1873 = vmatpush1.bf16.msra.mxu0 %v2552_v26  ;;  %2037 = vmatpush1.bf16.msra.mxu1 %v2553_v27  ;;  %v221_v22 = vrot.slane %v216_v17, %v3088_v63  ;;  %v2600_v26 = vld [vmem:[%s3855_s1 + $0x1c0] ss:$16 sps:$4 sm:$0xff]  }
  0x1c   :  { %1874 = vmatprep.subr.bf16.mxu0 %v2554_v28  ;;  %2038 = vmatprep.subr.bf16.mxu1 %v2556_v29  ;;  %v2210_v23 = vcombine.low %v79_v11, %v86_v20  ;;  %v173_v28 = vrot.slane %v159_v15, %v3060_v50  ;;  %v2601_v29 = vld [vmem:[%s3855_s1 + $0x1c8] ss:$16 sps:$4 sm:$0xff]   ;;  %v2628_v11 = vld [vmem:[%s3855_s1 + $0x260] ss:$16 sps:$4 sm:$0xff]   ;;  %v2636_v15 = vld [vmem:[%s3855_s1 + $0x284] ss:$16 sps:$4 sm:$0xff]  }
  0x1d   :  { %v2214_v27 = vcombine.low %v214_v16, %v221_v22  ;;  %v2634_v17 = vld [vmem:[%s3855_s1 + $0x280] ss:$16 sps:$4 sm:$0xff]   ;;  %v2637_v20 = vld [vmem:[%s3855_s1 + $0x288] ss:$16 sps:$4 sm:$0xff]   ;;  %v2645_v22 = vld [vmem:[%s3855_s1 + $0x2ac] ss:$16 sps:$4 sm:$0xff]  }
  0x1e   :  { %v3163_v38 = vrot.slane %v173_v28, %v3060_v50 }
  0x1f   :  { %1875 = vmatpush1.bf16.msra.mxu0 %v2558_v30  ;;  %2039 = vmatpush1.bf16.msra.mxu1 %v2559_v31  ;;  %v2602_v30 = vld [vmem:[%s3855_s1 + $0x1e4] ss:$16 sps:$4 sm:$0xff]   ;;  %v153_v31 = vmul.bf16 %v2210_v23, %v18_v21 }
  0x20   :  { %1876 = vmatprep.subr.bf16.mxu0 %v2560_v32  ;;  %2040 = vmatprep.subr.bf16.mxu1 %v2562_v33  ;;  %v3153_v32 = vrot.slane %v40_v24, %v3060_v50  ;;  %v2604_v33 = vld [vmem:[%s3855_s1 + $0x1ec] ss:$16 sps:$4 sm:$0xff]   ;;  %v2642_v21 = vld [vmem:[%s3855_s1 + $0x2a4] ss:$16 sps:$4 sm:$0xff]  }
  0x22   :  { %v109_v37 = vpack.i.b16 %v3153_v32, %v3153_v32 }
  0x23   :  { %1877 = vmatpush1.bf16.msra.mxu0 %v2564_v34  ;;  %2041 = vmatpush1.bf16.msra.mxu1 %v2565_v35  ;;  %v102_v34 = vpack.i.b16 %v3140_v25, %v3140_v25  ;;  %v175_v35 = vcombine.high %v173_v28, %v173_v28  ;;  %v2643_v28 = vld [vmem:[%s3855_s1 + $0x2a8] ss:$16 sps:$4 sm:$0xff]  }
  0x24   :  { %1878 = vmatprep.subr.bf16.mxu0 %v2566_v36  ;;  %2042 = vmatprep.subr.bf16.mxu1 %v2568_v40  ;;  %v288_v36 = vadd.bf16 %v2214_v27, %v153_v31  ;;  %v3179_v45 = vrot.slane %v109_v37, %v3088_v63  ;;  %v2654_v37 = vld [vmem:[%s3855_s1 + $0x2e4] ss:$16 sps:$4 sm:$0xff]  }
  0x25   :  { %v3166_v39 = vrot.slane %v102_v34, %v3088_v63  ;;  %v3169_v40 = vrot.slane %v175_v35, %v3060_v50  ;;  %v2615_v50 = vld [vmem:[%s3855_s1 + $0x20c] ss:$16 sps:$4 sm:$0xff]   ;;  %v2646_v34 = vld [vmem:[%s3855_s1 + $0x2c0] ss:$16 sps:$4 sm:$0xff]   ;;  %v2649_v35 = vld [vmem:[%s3855_s1 + $0x2c8] ss:$16 sps:$4 sm:$0xff]  }
  0x27   :  { %1879 = vmatpush1.bf16.msra.mxu0 %v2570_v41  ;;  %2043 = vmatpush1.bf16.msra.mxu1 %v2571_v42  ;;  %v2606_v41 = vld [vmem:[%s3855_s1 + $0x1e0] ss:$16 sps:$4 sm:$0xff]   ;;  %v2607_v42 = vld [vmem:[%s3855_s1 + $0x1e8] ss:$16 sps:$4 sm:$0xff]  }
  0x28   :  { %1880 = vmatprep.subr.bf16.mxu0 %v2572_v43  ;;  %2044 = vmatprep.subr.bf16.mxu1 %v2574_v46  ;;  %v2899_v43 = vmov 0   ;;  %v237_v46 = vpack.i.b16 %v3163_v38, %v3163_v38 }
  0x29   :  { %v292_v44 = vmax.bf16 %v2899_v43, %v288_v36 }
  0x2b   :  { %1881 = vmatpush1.bf16.msra.mxu0 %v2576_v47  ;;  %2045 = vmatpush1.bf16.msra.mxu1 %v2577_v48  ;;  %v2612_v47 = vld [vmem:[%s3855_s1 + $0x204] ss:$16 sps:$4 sm:$0xff]   ;;  %v244_v48 = vpack.i.b16 %v3169_v40, %v3169_v40  ;;  %v2218_v54 = vcombine.low %v292_v44, %v292_v44 }
  0x2c   :  { %1882 = vmatprep.subr.bf16.mxu0 %v2578_v49  ;;  %2046 = vmatprep.subr.bf16.mxu1 %v2580_v51  ;;  %v2219_v49 = vcombine.high %v292_v44, %v292_v44  ;;  %v2212_v51 = vcombine.low %v3166_v39, %v3179_v45  ;;  %v2652_v44 = vld [vmem:[%s3855_s1 + $0x2e0] ss:$16 sps:$4 sm:$0xff]   ;;  %v2720_v39 = vld [vmem:[%s3855_s1 + $0x444] ss:$16 sps:$4 sm:$0xff]   ;;  %v2723_v45 = vld [vmem:[%s3855_s1 + $0x44c] ss:$16 sps:$4 sm:$0xff]  }
  0x2e   :  { %1892 = vmatprep.mubr.bf16.mxu0 %v2219_v49  ;;  %2056 = vmatprep.mubr.bf16.mxu1 %v2219_v49  ;;  %v2663_v49 = vld [vmem:[%s3855_s1 + $0x30c] ss:$16 sps:$4 sm:$0xff]  }
  0x2f   :  { %1883 = vmatpush1.bf16.msra.mxu0 %v2582_v52  ;;  %2047 = vmatpush1.bf16.msra.mxu1 %v2583_v55  ;;  %v3194_v52 = vrot.slane %v237_v46, %v3088_v63  ;;  %v3200_v55 = vrot.slane %v244_v48, %v3088_v63  ;;  %v2655_v46 = vld [vmem:[%s3855_s1 + $0x2e8] ss:$16 sps:$4 sm:$0xff]   ;;  %v2660_v48 = vld [vmem:[%s3855_s1 + $0x304] ss:$16 sps:$4 sm:$0xff]  }
  0x30   :  { %1884 = vmatprep.subr.bf16.mxu0 %v2584_v56  ;;  %2048 = vmatprep.subr.bf16.mxu1 %v2586_v59  ;;  %v2613_v56 = vld [vmem:[%s3855_s1 + $0x208] ss:$16 sps:$4 sm:$0xff]  }
  0x31   :  { %v2216_v59 = vcombine.low %v3194_v52, %v3200_v55  ;;  %v2721_v52 = vld [vmem:[%s3855_s1 + $0x448] ss:$16 sps:$4 sm:$0xff]  }
  0x33   :  { %1885 = vmatpush1.bf16.msra.mxu0 %v2588_v0  ;;  %2049 = vmatpush1.bf16.msra.mxu1 %v2589_v4  ;;  %v2624_v0 = vld [vmem:[%s3855_s1 + $0x244] ss:$16 sps:$4 sm:$0xff]   ;;  %v69_v4 = vcombine.high %v3086_v62, %v3086_v62  ;;  %v204_v62 = vcombine.high %v3094_v2, %v3094_v2  ;;  %v2639_v2 = vld [vmem:[%s3855_s1 + $0x28c] ss:$16 sps:$4 sm:$0xff]  }
  0x34   :  { %1886 = vmatprep.subr.bf16.mxu0 %v2590_v5  ;;  %2050 = vmatprep.subr.bf16.mxu1 %v2592_v8  ;;  %v71_v5 = vcombine.high %v3104_v6, %v3104_v6  ;;  %v2630_v8 = vld [vmem:[%s3855_s1 + $0x264] ss:$16 sps:$4 sm:$0xff]   ;;  %v206_v6 = vcombine.high %v3112_v9, %v3112_v9 }
  0x35   :  { %v88_v12 = vpack.i.b16 %v69_v4, %v69_v4  ;;  %v223_v9 = vpack.i.b16 %v204_v62, %v204_v62  ;;  %v2678_v4 = vld [vmem:[%s3855_s1 + $0x364] ss:$16 sps:$4 sm:$0xff]   ;;  %v2687_v62 = vld [vmem:[%s3855_s1 + $0x38c] ss:$16 sps:$4 sm:$0xff]  }
  0x36   :  { %v230_v16 = vpack.i.b16 %v206_v6, %v206_v6  ;;  %v2682_v6 = vld [vmem:[%s3855_s1 + $0x380] ss:$16 sps:$4 sm:$0xff]  }
  0x37   :  { %1887 = vmatpush1.bf16.msra.mxu0 %v2594_v13  ;;  %2051 = vmatpush1.bf16.msra.mxu1 %v2595_v14  ;;  %v95_v13 = vpack.i.b16 %v71_v5, %v71_v5  ;;  %v2631_v14 = vld [vmem:[%s3855_s1 + $0x268] ss:$16 sps:$4 sm:$0xff]   ;;  %v228_v23 = vrot.slane %v223_v9, %v3088_v63  ;;  %v2681_v5 = vld [vmem:[%s3855_s1 + $0x36c] ss:$16 sps:$4 sm:$0xff]  }
  0x38   :  { %1888 = vmatprep.subr.bf16.mxu0 %v2596_v18  ;;  %2052 = vmatprep.subr.bf16.mxu1 %v2598_v19  ;;  %v93_v18 = vrot.slane %v88_v12, %v3088_v63  ;;  %v235_v24 = vrot.slane %v230_v16, %v3088_v63  ;;  %v2690_v12 = vld [vmem:[%s3855_s1 + $0x3a4] ss:$16 sps:$4 sm:$0xff]   ;;  %v2691_v9 = vld [vmem:[%s3855_s1 + $0x3a8] ss:$16 sps:$4 sm:$0xff]  }
  0x39   :  { %v100_v19 = vrot.slane %v95_v13, %v3088_v63  ;;  %v2693_v13 = vld [vmem:[%s3855_s1 + $0x3ac] ss:$16 sps:$4 sm:$0xff]   ;;  %v2696_v16 = vld [vmem:[%s3855_s1 + $0x3c4] ss:$16 sps:$4 sm:$0xff]  }
  0x3a   :  { %v2215_v31 = vcombine.low %v228_v23, %v235_v24  ;;  %v2697_v23 = vld [vmem:[%s3855_s1 + $0x3c8] ss:$16 sps:$4 sm:$0xff]  }
  0x3b   :  { %1889 = vmatpush1.bf16.msra.mxu0 %v2600_v26  ;;  %2053 = vmatpush1.bf16.msra.mxu1 %v2601_v29  ;;  %v2640_v26 = vld [vmem:[%s3855_s1 + $0x2a0] ss:$16 sps:$4 sm:$0xff]   ;;  %v2211_v27 = vcombine.low %v93_v18, %v100_v19  ;;  %v2648_v29 = vld [vmem:[%s3855_s1 + $0x2c4] ss:$16 sps:$4 sm:$0xff]   ;;  %v207_v19 = vcombine.high %v3169_v40, %v3169_v40 }
  0x3c   :  { %1890 = vmatprep.subr.bf16.mxu0 %v2602_v30  ;;  %2054 = vmatprep.subr.bf16.mxu1 %v2604_v33  ;;  %v2651_v30 = vld [vmem:[%s3855_s1 + $0x2cc] ss:$16 sps:$4 sm:$0xff]   ;;  %v2702_v40 = vld [vmem:[%s3855_s1 + $0x3e4] ss:$16 sps:$4 sm:$0xff]  }
  0x3d   :  { %v19_v33 = vld [vmem:[%s3858_s0 + $0x8] sm:$0xff]  ;;  %v258_v24 = vpack.i.b16 %v207_v19, %v207_v19  ;;  %v2766_v19 = vld [vmem:[%s3855_s1 + $0x540] ss:$16 sps:$4 sm:$0xff]  }
  0x3e   :  { %v154_v36 = vmul.bf16 %v2211_v27, %v19_v33 }
  0x3f   :  { %1891 = vmatpush1.bf16.msra.mxu0 %v2606_v41  ;;  %2055 = vmatpush1.bf16.msra.mxu1 %v2607_v42  ;;  %v2657_v41 = vld [vmem:[%s3855_s1 + $0x2ec] ss:$16 sps:$4 sm:$0xff]  }
  0x40   :  { %1901 = vmatprep.subr.bf16.mxu0 %v2612_v47  ;;  %2065 = vmatprep.subr.bf16.mxu1 %v2615_v50  ;;  %v289_v42 = vadd.bf16 %v2215_v31, %v154_v36  ;;  %v2703_v31 = vld [vmem:[%s3855_s1 + $0x3e8] ss:$16 sps:$4 sm:$0xff]  }
  0x41   :  { %v2709_v36 = vld [vmem:[%s3855_s1 + $0x408] ss:$16 sps:$4 sm:$0xff]  }
  0x42   :  { %1893 = vmatmul.mubr.bf16.vlgmr.msra.gmra.mrb[0].mxu0 %v2218_v54  ;;  %2057 = vmatmul.mubr.bf16.vlgmr.msra.gmra.mrb[0].mxu1 %v2218_v54  ;;  %v3307_v47 = vmax.bf16 %v2899_v43, %v289_v42  ;;  %v2661_v54 = vld [vmem:[%s3855_s1 + $0x308] ss:$16 sps:$4 sm:$0xff]   ;;  %v2717_v42 = vld [vmem:[%s3855_s1 + $0x42c] ss:$16 sps:$4 sm:$0xff]  }
  0x43   :  { %1902 = vmatpush1.bf16.msra.mxu0 %v2610_v53  ;;  %2066 = vmatpush1.bf16.msra.mxu1 %v2613_v56  ;;  %v2658_v53 = vld [vmem:[%s3855_s1 + $0x300] ss:$16 sps:$4 sm:$0xff]   ;;  %v2666_v56 = vld [vmem:[%s3855_s1 + $0x324] ss:$16 sps:$4 sm:$0xff]  }
  0x44   :  { %1903 = vmatprep.subr.bf16.mxu0 %v2618_v57  ;;  %2067 = vmatprep.subr.bf16.mxu1 %v2621_v58  ;;  %v2221_v50 = vcombine.high %v3307_v47, %v3307_v47  ;;  %v2669_v57 = vld [vmem:[%s3855_s1 + $0x32c] ss:$16 sps:$4 sm:$0xff]   ;;  %v2664_v58 = vld [vmem:[%s3855_s1 + $0x320] ss:$16 sps:$4 sm:$0xff]  }
  0x46   :  { %1933 = vmatprep.mubr.bf16.mxu0 %v2221_v50  ;;  %2097 = vmatprep.mubr.bf16.mxu1 %v2221_v50  ;;  %v2718_v50 = vld [vmem:[%s3855_s1 + $0x440] ss:$16 sps:$4 sm:$0xff]  }
  0x47   :  { %1904 = vmatpush1.bf16.msra.mxu0 %v2616_v60  ;;  %2068 = vmatpush1.bf16.msra.mxu1 %v2619_v61  ;;  %v2667_v60 = vld [vmem:[%s3855_s1 + $0x328] ss:$16 sps:$4 sm:$0xff]   ;;  %v2672_v61 = vld [vmem:[%s3855_s1 + $0x344] ss:$16 sps:$4 sm:$0xff]  }
  0x48   :  { %1905 = vmatprep.subr.bf16.mxu0 %v2624_v0  ;;  %2069 = vmatprep.subr.bf16.mxu1 %v2627_v1  ;;  %v2675_v0 = vld [vmem:[%s3855_s1 + $0x34c] ss:$16 sps:$4 sm:$0xff]   ;;  %v2670_v1 = vld [vmem:[%s3855_s1 + $0x340] ss:$16 sps:$4 sm:$0xff]  }
  0x4b   :  { %1906 = vmatpush1.bf16.msra.mxu0 %v2622_v3  ;;  %2070 = vmatpush1.bf16.msra.mxu1 %v2625_v7  ;;  %v2673_v3 = vld [vmem:[%s3855_s1 + $0x348] ss:$16 sps:$4 sm:$0xff]   ;;  %v2676_v7 = vld [vmem:[%s3855_s1 + $0x360] ss:$16 sps:$4 sm:$0xff]  }
  0x4c   :  { %1907 = vmatprep.subr.bf16.mxu0 %v2630_v8  ;;  %2071 = vmatprep.subr.bf16.mxu1 %v2633_v10  ;;  %v2679_v8 = vld [vmem:[%s3855_s1 + $0x368] ss:$16 sps:$4 sm:$0xff]   ;;  %v2684_v10 = vld [vmem:[%s3855_s1 + $0x384] ss:$16 sps:$4 sm:$0xff]  }
  0x4f   :  { %1908 = vmatpush1.bf16.msra.mxu0 %v2628_v11  ;;  %2072 = vmatpush1.bf16.msra.mxu1 %v2631_v14  ;;  %v2685_v11 = vld [vmem:[%s3855_s1 + $0x388] ss:$16 sps:$4 sm:$0xff]   ;;  %v70_v14 = vcombine.high %v3140_v25, %v3140_v25  ;;  %v205_v25 = vcombine.high %v3163_v38, %v3163_v38  ;;  %v2694_v38 = vld [vmem:[%s3855_s1 + $0x3c0] ss:$16 sps:$4 sm:$0xff]  }
  0x50   :  { %1909 = vmatprep.subr.bf16.mxu0 %v2636_v15  ;;  %2073 = vmatprep.subr.bf16.mxu1 %v2639_v2  ;;  %v72_v15 = vcombine.high %v3153_v32, %v3153_v32  ;;  %v2688_v2 = vld [vmem:[%s3855_s1 + $0x3a0] ss:$16 sps:$4 sm:$0xff]   ;;  %v2699_v32 = vld [vmem:[%s3855_s1 + $0x3cc] ss:$16 sps:$4 sm:$0xff]  }
  0x52   :  { %v123_v18 = vpack.i.b16 %v72_v15, %v72_v15  ;;  %v2754_v15 = vld [vmem:[%s3855_s1 + $0x500] ss:$16 sps:$4 sm:$0xff]  }
  0x53   :  { %1910 = vmatpush1.bf16.msra.mxu0 %v2634_v17  ;;  %2074 = vmatpush1.bf16.msra.mxu1 %v2637_v20  ;;  %v116_v17 = vpack.i.b16 %v70_v14, %v70_v14  ;;  %v2759_v14 = vld [vmem:[%s3855_s1 + $0x50c] ss:$16 sps:$4 sm:$0xff]  }
  0x54   :  { %1911 = vmatprep.subr.bf16.mxu0 %v2642_v21  ;;  %2075 = vmatprep.subr.bf16.mxu1 %v2645_v22  ;;  %v3401_v21 = vrot.slane %v123_v18, %v3088_v63  ;;  %v251_v22 = vpack.i.b16 %v205_v25, %v205_v25  ;;  %v2763_v18 = vld [vmem:[%s3855_s1 + $0x528] ss:$16 sps:$4 sm:$0xff]   ;;  %v2768_v25 = vld [vmem:[%s3855_s1 + $0x544] ss:$16 sps:$4 sm:$0xff]  }
  0x55   :  { %v3398_v20 = vrot.slane %v116_v17, %v3088_v63  ;;  %v2760_v17 = vld [vmem:[%s3855_s1 + $0x520] ss:$16 sps:$4 sm:$0xff]  }
  0x56   :  { %v3415_v27 = vrot.slane %v251_v22, %v3088_v63  ;;  %v2769_v22 = vld [vmem:[%s3855_s1 + $0x548] ss:$16 sps:$4 sm:$0xff]  }
  0x57   :  { %1912 = vmatpush1.bf16.msra.mxu0 %v2640_v26  ;;  %2076 = vmatpush1.bf16.msra.mxu1 %v2643_v28  ;;  %v2213_v26 = vcombine.low %v3398_v20, %v3401_v21  ;;  %v2705_v28 = vld [vmem:[%s3855_s1 + $0x3ec] ss:$16 sps:$4 sm:$0xff]   ;;  %v2786_v20 = vld [vmem:[%s3855_s1 + $0x5a4] ss:$16 sps:$4 sm:$0xff]  }
  0x58   :  { %1913 = vmatprep.subr.bf16.mxu0 %v2648_v29  ;;  %2077 = vmatprep.subr.bf16.mxu1 %v2651_v30  ;;  %v3421_v29 = vrot.slane %v258_v24, %v3088_v63  ;;  %v2700_v30 = vld [vmem:[%s3855_s1 + $0x3e0] ss:$16 sps:$4 sm:$0xff]   ;;  %v2711_v63 = vld [vmem:[%s3855_s1 + $0x40c] ss:$16 sps:$4 sm:$0xff]  }
  0x59   :  { %v2772_v24 = vld [vmem:[%s3855_s1 + $0x560] ss:$16 sps:$4 sm:$0xff]   ;;  %v2789_v21 = vld [vmem:[%s3855_s1 + $0x5ac] ss:$16 sps:$4 sm:$0xff]  }
  0x5a   :  { %v2217_v33 = vcombine.low %v3415_v27, %v3421_v29  ;;  %v2787_v27 = vld [vmem:[%s3855_s1 + $0x5a8] ss:$16 sps:$4 sm:$0xff]   ;;  %v2792_v29 = vld [vmem:[%s3855_s1 + $0x5c4] ss:$16 sps:$4 sm:$0xff]  }
  0x5b   :  { %1914 = vmatpush1.bf16.msra.mxu0 %v2646_v34  ;;  %2078 = vmatpush1.bf16.msra.mxu1 %v2649_v35  ;;  %v2708_v34 = vld [vmem:[%s3855_s1 + $0x404] ss:$16 sps:$4 sm:$0xff]   ;;  %v2706_v35 = vld [vmem:[%s3855_s1 + $0x400] ss:$16 sps:$4 sm:$0xff]  }
  0x5c   :  { %1915 = vmatprep.subr.bf16.mxu0 %v2654_v37  ;;  %2079 = vmatprep.subr.bf16.mxu1 %v2657_v41  ;;  %v2220_v37 = vcombine.low %v3307_v47, %v3307_v47  ;;  %v2714_v41 = vld [vmem:[%s3855_s1 + $0x424] ss:$16 sps:$4 sm:$0xff]   ;;  %v2712_v47 = vld [vmem:[%s3855_s1 + $0x420] ss:$16 sps:$4 sm:$0xff]  }
  0x5f   :  { %1916 = vmatpush1.bf16.msra.mxu0 %v2652_v44  ;;  %2080 = vmatpush1.bf16.msra.mxu1 %v2655_v46  ;;  %v20_v44 = vld [vmem:[%s3858_s0 + $0x10] sm:$0xff] }
  0x60   :  { %1917 = vmatprep.subr.bf16.mxu0 %v2660_v48  ;;  %2081 = vmatprep.subr.bf16.mxu1 %v2663_v49  ;;  %v155_v46 = vmul.bf16 %v2212_v51, %v20_v44  ;;  %v2715_v48 = vld [vmem:[%s3855_s1 + $0x428] ss:$16 sps:$4 sm:$0xff]   ;;  %v2801_v44 = vld [vmem:[%s3855_s1 + $0x5ec] ss:$16 sps:$4 sm:$0xff]  }
  0x62   :  { %v290_v49 = vadd.bf16 %v2216_v59, %v155_v46  ;;  %v2726_v59 = vld [vmem:[%s3855_s1 + $0x464] ss:$16 sps:$4 sm:$0xff]   ;;  %v2796_v46 = vld [vmem:[%s3855_s1 + $0x5e0] ss:$16 sps:$4 sm:$0xff]  }
  0x63   :  { %1918 = vmatpush1.bf16.msra.mxu0 %v2658_v53  ;;  %2082 = vmatpush1.bf16.msra.mxu1 %v2661_v54  ;;  %v2729_v53 = vld [vmem:[%s3855_s1 + $0x46c] ss:$16 sps:$4 sm:$0xff]   ;;  %v2724_v54 = vld [vmem:[%s3855_s1 + $0x460] ss:$16 sps:$4 sm:$0xff]  }
  0x64   :  { %1919 = vmatprep.subr.bf16.mxu0 %v2666_v56  ;;  %2083 = vmatprep.subr.bf16.mxu1 %v2669_v57  ;;  %v3473_v51 = vmax.bf16 %v2899_v43, %v290_v49  ;;  %v2727_v56 = vld [vmem:[%s3855_s1 + $0x468] ss:$16 sps:$4 sm:$0xff]   ;;  %v2732_v57 = vld [vmem:[%s3855_s1 + $0x484] ss:$16 sps:$4 sm:$0xff]   ;;  %v2807_v49 = vld [vmem:[%s3855_s1 + $0x60c] ss:$16 sps:$4 sm:$0xff]  }
  0x66   :  { %v2223_v55 = vcombine.high %v3473_v51, %v3473_v51 }
  0x67   :  { %1920 = vmatpush1.bf16.msra.mxu0 %v2664_v58  ;;  %2084 = vmatpush1.bf16.msra.mxu1 %v2667_v60  ;;  %v2735_v58 = vld [vmem:[%s3855_s1 + $0x48c] ss:$16 sps:$4 sm:$0xff]   ;;  %v2730_v60 = vld [vmem:[%s3855_s1 + $0x480] ss:$16 sps:$4 sm:$0xff]  }
  0x68   :  { %1921 = vmatprep.subr.bf16.mxu0 %v2672_v61  ;;  %2085 = vmatprep.subr.bf16.mxu1 %v2675_v0  ;;  %v2733_v61 = vld [vmem:[%s3855_s1 + $0x488] ss:$16 sps:$4 sm:$0xff]   ;;  %v2738_v0 = vld [vmem:[%s3855_s1 + $0x4a4] ss:$16 sps:$4 sm:$0xff]  }
  0x6b   :  { %1922 = vmatpush1.bf16.msra.mxu0 %v2670_v1  ;;  %2086 = vmatpush1.bf16.msra.mxu1 %v2673_v3  ;;  %v2741_v1 = vld [vmem:[%s3855_s1 + $0x4ac] ss:$16 sps:$4 sm:$0xff]   ;;  %v2736_v3 = vld [vmem:[%s3855_s1 + $0x4a0] ss:$16 sps:$4 sm:$0xff]  }
  0x6c   :  { %1923 = vmatprep.subr.bf16.mxu0 %v2678_v4  ;;  %2087 = vmatprep.subr.bf16.mxu1 %v2681_v5  ;;  %v2739_v4 = vld [vmem:[%s3855_s1 + $0x4a8] ss:$16 sps:$4 sm:$0xff]   ;;  %v2744_v5 = vld [vmem:[%s3855_s1 + $0x4c4] ss:$16 sps:$4 sm:$0xff]  }
  0x6f   :  { %1924 = vmatpush1.bf16.msra.mxu0 %v2676_v7  ;;  %2088 = vmatpush1.bf16.msra.mxu1 %v2679_v8  ;;  %v2747_v7 = vld [vmem:[%s3855_s1 + $0x4cc] ss:$16 sps:$4 sm:$0xff]   ;;  %v2742_v8 = vld [vmem:[%s3855_s1 + $0x4c0] ss:$16 sps:$4 sm:$0xff]  }
  0x70   :  { %1925 = vmatprep.subr.bf16.mxu0 %v2684_v10  ;;  %2089 = vmatprep.subr.bf16.mxu1 %v2687_v62  ;;  %v2745_v10 = vld [vmem:[%s3855_s1 + $0x4c8] ss:$16 sps:$4 sm:$0xff]   ;;  %v2750_v62 = vld [vmem:[%s3855_s1 + $0x4e4] ss:$16 sps:$4 sm:$0xff]  }
  0x73   :  { %1926 = vmatpush1.bf16.msra.mxu0 %v2682_v6  ;;  %2090 = vmatpush1.bf16.msra.mxu1 %v2685_v11  ;;  %v2753_v6 = vld [vmem:[%s3855_s1 + $0x4ec] ss:$16 sps:$4 sm:$0xff]   ;;  %v2748_v11 = vld [vmem:[%s3855_s1 + $0x4e0] ss:$16 sps:$4 sm:$0xff]  }
  0x74   :  { %1927 = vmatprep.subr.bf16.mxu0 %v2690_v12  ;;  %2091 = vmatprep.subr.bf16.mxu1 %v2693_v13  ;;  %v2751_v12 = vld [vmem:[%s3855_s1 + $0x4e8] ss:$16 sps:$4 sm:$0xff]   ;;  %v2756_v13 = vld [vmem:[%s3855_s1 + $0x504] ss:$16 sps:$4 sm:$0xff]  }
  0x77   :  { %1928 = vmatpush1.bf16.msra.mxu0 %v2688_v2  ;;  %2092 = vmatpush1.bf16.msra.mxu1 %v2691_v9  ;;  %v2757_v2 = vld [vmem:[%s3855_s1 + $0x508] ss:$16 sps:$4 sm:$0xff]   ;;  %v2762_v9 = vld [vmem:[%s3855_s1 + $0x524] ss:$16 sps:$4 sm:$0xff]  }
  0x78   :  { %1929 = vmatprep.subr.bf16.mxu0 %v2696_v16  ;;  %2093 = vmatprep.subr.bf16.mxu1 %v2699_v32  ;;  %v2765_v16 = vld [vmem:[%s3855_s1 + $0x52c] ss:$16 sps:$4 sm:$0xff]  }
  0x79   :  { %v2771_v32 = vld [vmem:[%s3855_s1 + $0x54c] ss:$16 sps:$4 sm:$0xff]  }
  0x7b   :  { %1930 = vmatpush1.bf16.msra.mxu0 %v2694_v38  ;;  %2094 = vmatpush1.bf16.msra.mxu1 %v2697_v23  ;;  %v2774_v38 = vld [vmem:[%s3855_s1 + $0x564] ss:$16 sps:$4 sm:$0xff]   ;;  %v2777_v23 = vld [vmem:[%s3855_s1 + $0x56c] ss:$16 sps:$4 sm:$0xff]  }
  0x7c   :  { %1931 = vmatprep.subr.bf16.mxu0 %v2702_v40  ;;  %2095 = vmatprep.subr.bf16.mxu1 %v2705_v28  ;;  %v2775_v40 = vld [vmem:[%s3855_s1 + $0x568] ss:$16 sps:$4 sm:$0xff]  }
  0x7d   :  { %v21_v28 = vld [vmem:[%s3858_s0 + $0x18] sm:$0xff] }
  0x7f   :  { %1932 = vmatpush1.bf16.msra.mxu0 %v2700_v30  ;;  %2096 = vmatpush1.bf16.msra.mxu1 %v2703_v31  ;;  %v2780_v30 = vld [vmem:[%s3855_s1 + $0x584] ss:$16 sps:$4 sm:$0xff]   ;;  %v2783_v31 = vld [vmem:[%s3855_s1 + $0x58c] ss:$16 sps:$4 sm:$0xff]  }
  0x80   :  { %1942 = vmatprep.subr.bf16.mxu0 %v2708_v34  ;;  %2106 = vmatprep.subr.bf16.mxu1 %v2711_v63  ;;  %v156_v34 = vmul.bf16 %v2213_v26, %v21_v28  ;;  %v2784_v26 = vld [vmem:[%s3855_s1 + $0x5a0] ss:$16 sps:$4 sm:$0xff]  }
  0x81   :  { %v2862_v28 = vld [vmem:[%s3855_s1 + $0x740] ss:$16 sps:$4 sm:$0xff]  }
  0x82   :  { %1934 = vmatmul.mubr.bf16.vlgmr.msra.gmra.mrb[0].mxu0 %v2220_v37  ;;  %2098 = vmatmul.mubr.bf16.vlgmr.msra.gmra.mrb[0].mxu1 %v2220_v37  ;;  %v291_v63 = vadd.bf16 %v2217_v33, %v156_v34  ;;  %v2795_v33 = vld [vmem:[%s3855_s1 + $0x5cc] ss:$16 sps:$4 sm:$0xff]   ;;  %v2790_v37 = vld [vmem:[%s3855_s1 + $0x5c0] ss:$16 sps:$4 sm:$0xff]  }
  0x83   :  { %1943 = vmatpush1.bf16.msra.mxu0 %v2706_v35  ;;  %2107 = vmatpush1.bf16.msra.mxu1 %v2709_v36  ;;  %v2778_v35 = vld [vmem:[%s3855_s1 + $0x580] ss:$16 sps:$4 sm:$0xff]   ;;  %v2781_v36 = vld [vmem:[%s3855_s1 + $0x588] ss:$16 sps:$4 sm:$0xff]   ;;  %v2873_v34 = vld [vmem:[%s3855_s1 + $0x76c] ss:$16 sps:$4 sm:$0xff]  }
  0x84   :  { %1944 = vmatprep.subr.bf16.mxu0 %v2714_v41  ;;  %2108 = vmatprep.subr.bf16.mxu1 %v2717_v42  ;;  %v2793_v41 = vld [vmem:[%s3855_s1 + $0x5c8] ss:$16 sps:$4 sm:$0xff]   ;;  %v2798_v42 = vld [vmem:[%s3855_s1 + $0x5e4] ss:$16 sps:$4 sm:$0xff]  }
  0x85   :  { %1974 = vmatprep.mubr.bf16.mxu0 %v2223_v55  ;;  %2138 = vmatprep.mubr.bf16.mxu1 %v2223_v55 }
  0x87   :  { %1945 = vmatpush1.bf16.msra.mxu0 %v2712_v47  ;;  %2109 = vmatpush1.bf16.msra.mxu1 %v2715_v48  ;;  %v2799_v47 = vld [vmem:[%s3855_s1 + $0x5e8] ss:$16 sps:$4 sm:$0xff]   ;;  %v2804_v48 = vld [vmem:[%s3855_s1 + $0x604] ss:$16 sps:$4 sm:$0xff]  }
  0x88   :  { %1946 = vmatprep.subr.bf16.mxu0 %v2720_v39  ;;  %2110 = vmatprep.subr.bf16.mxu1 %v2723_v45  ;;  %v3655_v39 = vmax.bf16 %v2899_v43, %v291_v63  ;;  %v2222_v45 = vcombine.low %v3473_v51, %v3473_v51  ;;  %v2810_v43 = vld [vmem:[%s3855_s1 + $0x624] ss:$16 sps:$4 sm:$0xff]   ;;  %v2813_v51 = vld [vmem:[%s3855_s1 + $0x62c] ss:$16 sps:$4 sm:$0xff]   ;;  %v2868_v63 = vld [vmem:[%s3855_s1 + $0x760] ss:$16 sps:$4 sm:$0xff]  }
  0x8a   :  { %v2225_v55 = vcombine.high %v3655_v39, %v3655_v39 }
  0x8b   :  { %1947 = vmatpush1.bf16.msra.mxu0 %v2718_v50  ;;  %2111 = vmatpush1.bf16.msra.mxu1 %v2721_v52  ;;  %v2802_v50 = vld [vmem:[%s3855_s1 + $0x600] ss:$16 sps:$4 sm:$0xff]   ;;  %v2805_v52 = vld [vmem:[%s3855_s1 + $0x608] ss:$16 sps:$4 sm:$0xff]  }
  0x8c   :  { %1948 = vmatprep.subr.bf16.mxu0 %v2726_v59  ;;  %2112 = vmatprep.subr.bf16.mxu1 %v2729_v53  ;;  %v2808_v59 = vld [vmem:[%s3855_s1 + $0x620] ss:$16 sps:$4 sm:$0xff]   ;;  %v2811_v53 = vld [vmem:[%s3855_s1 + $0x628] ss:$16 sps:$4 sm:$0xff]  }
  0x8f   :  { %1949 = vmatpush1.bf16.msra.mxu0 %v2724_v54  ;;  %2113 = vmatpush1.bf16.msra.mxu1 %v2727_v56  ;;  %v2816_v54 = vld [vmem:[%s3855_s1 + $0x644] ss:$16 sps:$4 sm:$0xff]   ;;  %v2819_v56 = vld [vmem:[%s3855_s1 + $0x64c] ss:$16 sps:$4 sm:$0xff]  }
  0x90   :  { %1950 = vmatprep.subr.bf16.mxu0 %v2732_v57  ;;  %2114 = vmatprep.subr.bf16.mxu1 %v2735_v58  ;;  %v2814_v57 = vld [vmem:[%s3855_s1 + $0x640] ss:$16 sps:$4 sm:$0xff]   ;;  %v2817_v58 = vld [vmem:[%s3855_s1 + $0x648] ss:$16 sps:$4 sm:$0xff]  }
  0x93   :  { %1951 = vmatpush1.bf16.msra.mxu0 %v2730_v60  ;;  %2115 = vmatpush1.bf16.msra.mxu1 %v2733_v61  ;;  %v2822_v60 = vld [vmem:[%s3855_s1 + $0x664] ss:$16 sps:$4 sm:$0xff]   ;;  %v2825_v61 = vld [vmem:[%s3855_s1 + $0x66c] ss:$16 sps:$4 sm:$0xff]  }
  0x94   :  { %1952 = vmatprep.subr.bf16.mxu0 %v2738_v0  ;;  %2116 = vmatprep.subr.bf16.mxu1 %v2741_v1  ;;  %v2820_v0 = vld [vmem:[%s3855_s1 + $0x660] ss:$16 sps:$4 sm:$0xff]   ;;  %v2823_v1 = vld [vmem:[%s3855_s1 + $0x668] ss:$16 sps:$4 sm:$0xff]  }
  0x97   :  { %1953 = vmatpush1.bf16.msra.mxu0 %v2736_v3  ;;  %2117 = vmatpush1.bf16.msra.mxu1 %v2739_v4  ;;  %v2828_v3 = vld [vmem:[%s3855_s1 + $0x684] ss:$16 sps:$4 sm:$0xff]   ;;  %v2831_v4 = vld [vmem:[%s3855_s1 + $0x68c] ss:$16 sps:$4 sm:$0xff]  }
  0x98   :  { %1954 = vmatprep.subr.bf16.mxu0 %v2744_v5  ;;  %2118 = vmatprep.subr.bf16.mxu1 %v2747_v7  ;;  %v2826_v5 = vld [vmem:[%s3855_s1 + $0x680] ss:$16 sps:$4 sm:$0xff]   ;;  %v2829_v7 = vld [vmem:[%s3855_s1 + $0x688] ss:$16 sps:$4 sm:$0xff]  }
  0x9b   :  { %1955 = vmatpush1.bf16.msra.mxu0 %v2742_v8  ;;  %2119 = vmatpush1.bf16.msra.mxu1 %v2745_v10  ;;  %v2834_v8 = vld [vmem:[%s3855_s1 + $0x6a4] ss:$16 sps:$4 sm:$0xff]   ;;  %v2837_v10 = vld [vmem:[%s3855_s1 + $0x6ac] ss:$16 sps:$4 sm:$0xff]  }
  0x9c   :  { %1956 = vmatprep.subr.bf16.mxu0 %v2750_v62  ;;  %2120 = vmatprep.subr.bf16.mxu1 %v2753_v6  ;;  %v2832_v62 = vld [vmem:[%s3855_s1 + $0x6a0] ss:$16 sps:$4 sm:$0xff]   ;;  %v2835_v6 = vld [vmem:[%s3855_s1 + $0x6a8] ss:$16 sps:$4 sm:$0xff]  }
  0x9f   :  { %1957 = vmatpush1.bf16.msra.mxu0 %v2748_v11  ;;  %2121 = vmatpush1.bf16.msra.mxu1 %v2751_v12  ;;  %v2840_v11 = vld [vmem:[%s3855_s1 + $0x6c4] ss:$16 sps:$4 sm:$0xff]   ;;  %v2843_v12 = vld [vmem:[%s3855_s1 + $0x6cc] ss:$16 sps:$4 sm:$0xff]  }
  0xa0   :  { %1958 = vmatprep.subr.bf16.mxu0 %v2756_v13  ;;  %2122 = vmatprep.subr.bf16.mxu1 %v2759_v14  ;;  %v2838_v13 = vld [vmem:[%s3855_s1 + $0x6c0] ss:$16 sps:$4 sm:$0xff]   ;;  %v2841_v14 = vld [vmem:[%s3855_s1 + $0x6c8] ss:$16 sps:$4 sm:$0xff]  }
  0xa3   :  { %1959 = vmatpush1.bf16.msra.mxu0 %v2754_v15  ;;  %2123 = vmatpush1.bf16.msra.mxu1 %v2757_v2  ;;  %v2846_v15 = vld [vmem:[%s3855_s1 + $0x6e4] ss:$16 sps:$4 sm:$0xff]   ;;  %v2849_v2 = vld [vmem:[%s3855_s1 + $0x6ec] ss:$16 sps:$4 sm:$0xff]  }
  0xa4   :  { %1960 = vmatprep.subr.bf16.mxu0 %v2762_v9  ;;  %2124 = vmatprep.subr.bf16.mxu1 %v2765_v16  ;;  %v2844_v9 = vld [vmem:[%s3855_s1 + $0x6e0] ss:$16 sps:$4 sm:$0xff]   ;;  %v2847_v16 = vld [vmem:[%s3855_s1 + $0x6e8] ss:$16 sps:$4 sm:$0xff]  }
  0xa7   :  { %1961 = vmatpush1.bf16.msra.mxu0 %v2760_v17  ;;  %2125 = vmatpush1.bf16.msra.mxu1 %v2763_v18  ;;  %v2852_v17 = vld [vmem:[%s3855_s1 + $0x704] ss:$16 sps:$4 sm:$0xff]   ;;  %v2855_v18 = vld [vmem:[%s3855_s1 + $0x70c] ss:$16 sps:$4 sm:$0xff]  }
  0xa8   :  { %1962 = vmatprep.subr.bf16.mxu0 %v2768_v25  ;;  %2126 = vmatprep.subr.bf16.mxu1 %v2771_v32  ;;  %v2850_v25 = vld [vmem:[%s3855_s1 + $0x700] ss:$16 sps:$4 sm:$0xff]   ;;  %v2853_v32 = vld [vmem:[%s3855_s1 + $0x708] ss:$16 sps:$4 sm:$0xff]  }
  0xab   :  { %1963 = vmatpush1.bf16.msra.mxu0 %v2766_v19  ;;  %2127 = vmatpush1.bf16.msra.mxu1 %v2769_v22  ;;  %v2858_v19 = vld [vmem:[%s3855_s1 + $0x724] ss:$16 sps:$4 sm:$0xff]   ;;  %v2861_v22 = vld [vmem:[%s3855_s1 + $0x72c] ss:$16 sps:$4 sm:$0xff]  }
  0xac   :  { %1964 = vmatprep.subr.bf16.mxu0 %v2774_v38  ;;  %2128 = vmatprep.subr.bf16.mxu1 %v2777_v23  ;;  %v2856_v38 = vld [vmem:[%s3855_s1 + $0x720] ss:$16 sps:$4 sm:$0xff]   ;;  %v2859_v23 = vld [vmem:[%s3855_s1 + $0x728] ss:$16 sps:$4 sm:$0xff]  }
  0xaf   :  { %1965 = vmatpush1.bf16.msra.mxu0 %v2772_v24  ;;  %2129 = vmatpush1.bf16.msra.mxu1 %v2775_v40  ;;  %v2864_v24 = vld [vmem:[%s3855_s1 + $0x744] ss:$16 sps:$4 sm:$0xff]   ;;  %v2867_v40 = vld [vmem:[%s3855_s1 + $0x74c] ss:$16 sps:$4 sm:$0xff]  }
  0xb0   :  { %1966 = vmatprep.subr.bf16.mxu0 %v2780_v30  ;;  %2130 = vmatprep.subr.bf16.mxu1 %v2783_v31  ;;  %v2865_v30 = vld [vmem:[%s3855_s1 + $0x748] ss:$16 sps:$4 sm:$0xff]   ;;  %v2870_v31 = vld [vmem:[%s3855_s1 + $0x764] ss:$16 sps:$4 sm:$0xff]  }
  0xb3   :  { %1967 = vmatpush1.bf16.msra.mxu0 %v2778_v35  ;;  %2131 = vmatpush1.bf16.msra.mxu1 %v2781_v36  ;;  %v2871_v35 = vld [vmem:[%s3855_s1 + $0x768] ss:$16 sps:$4 sm:$0xff]   ;;  %v2876_v36 = vld [vmem:[%s3855_s1 + $0x784] ss:$16 sps:$4 sm:$0xff]  }
  0xb4   :  { %1968 = vmatprep.subr.bf16.mxu0 %v2786_v20  ;;  %2132 = vmatprep.subr.bf16.mxu1 %v2789_v21  ;;  %v2879_v20 = vld [vmem:[%s3855_s1 + $0x78c] ss:$16 sps:$4 sm:$0xff]   ;;  %v2874_v21 = vld [vmem:[%s3855_s1 + $0x780] ss:$16 sps:$4 sm:$0xff]  }
  0xb7   :  { %1969 = vmatpush1.bf16.msra.mxu0 %v2784_v26  ;;  %2133 = vmatpush1.bf16.msra.mxu1 %v2787_v27  ;;  %v2877_v26 = vld [vmem:[%s3855_s1 + $0x788] ss:$16 sps:$4 sm:$0xff]   ;;  %v2882_v27 = vld [vmem:[%s3855_s1 + $0x7a4] ss:$16 sps:$4 sm:$0xff]  }
  0xb8   :  { %1970 = vmatprep.subr.bf16.mxu0 %v2792_v29  ;;  %2134 = vmatprep.subr.bf16.mxu1 %v2795_v33  ;;  %v2885_v29 = vld [vmem:[%s3855_s1 + $0x7ac] ss:$16 sps:$4 sm:$0xff]   ;;  %v2880_v33 = vld [vmem:[%s3855_s1 + $0x7a0] ss:$16 sps:$4 sm:$0xff]  }
  0xbb   :  { %1971 = vmatpush1.bf16.msra.mxu0 %v2790_v37  ;;  %2135 = vmatpush1.bf16.msra.mxu1 %v2793_v41  ;;  %v2883_v37 = vld [vmem:[%s3855_s1 + $0x7a8] ss:$16 sps:$4 sm:$0xff]   ;;  %v2888_v41 = vld [vmem:[%s3855_s1 + $0x7c4] ss:$16 sps:$4 sm:$0xff]  }
  0xbc   :  { %1972 = vmatprep.subr.bf16.mxu0 %v2798_v42  ;;  %2136 = vmatprep.subr.bf16.mxu1 %v2801_v44  ;;  %v2891_v42 = vld [vmem:[%s3855_s1 + $0x7cc] ss:$16 sps:$4 sm:$0xff]   ;;  %v2886_v44 = vld [vmem:[%s3855_s1 + $0x7c0] ss:$16 sps:$4 sm:$0xff]  }
  0xbf   :  { %1973 = vmatpush1.bf16.msra.mxu0 %v2796_v46  ;;  %2137 = vmatpush1.bf16.msra.mxu1 %v2799_v47  ;;  %v2889_v46 = vld [vmem:[%s3855_s1 + $0x7c8] ss:$16 sps:$4 sm:$0xff]   ;;  %v2894_v47 = vld [vmem:[%s3855_s1 + $0x7e4] ss:$16 sps:$4 sm:$0xff]  }
  0xc0   :  { %1983 = vmatprep.subr.bf16.mxu0 %v2804_v48  ;;  %2147 = vmatprep.subr.bf16.mxu1 %v2807_v49  ;;  %v2897_v48 = vld [vmem:[%s3855_s1 + $0x7ec] ss:$16 sps:$4 sm:$0xff]   ;;  %v2892_v49 = vld [vmem:[%s3855_s1 + $0x7e0] ss:$16 sps:$4 sm:$0xff]  }
  0xc2   :  { %1975 = vmatmul.mubr.bf16.vlgmr.msra.gmra.mrb[0].mxu0 %v2222_v45  ;;  %2139 = vmatmul.mubr.bf16.vlgmr.msra.gmra.mrb[0].mxu1 %v2222_v45  ;;  %v2895_v45 = vld [vmem:[%s3855_s1 + $0x7e8] ss:$16 sps:$4 sm:$0xff]  }
  0xc3   :  { %1984 = vmatpush1.bf16.msra.mxu0 %v2802_v50  ;;  %2148 = vmatpush1.bf16.msra.mxu1 %v2805_v52  ;;  %v2224_v50 = vcombine.low %v3655_v39, %v3655_v39 }
  0xc4   :  { %1985 = vmatprep.subr.bf16.mxu0 %v2810_v43  ;;  %2149 = vmatprep.subr.bf16.mxu1 %v2813_v51 }
  0xc5   :  { %2015 = vmatprep.mubr.bf16.mxu0 %v2225_v55  ;;  %2179 = vmatprep.mubr.bf16.mxu1 %v2225_v55 }
  0xc7   :  { %1986 = vmatpush1.bf16.msra.mxu0 %v2808_v59  ;;  %2150 = vmatpush1.bf16.msra.mxu1 %v2811_v53 }
  0xc8   :  { %1987 = vmatprep.subr.bf16.mxu0 %v2816_v54  ;;  %2151 = vmatprep.subr.bf16.mxu1 %v2819_v56 }
  0xcb   :  { %1988 = vmatpush1.bf16.msra.mxu0 %v2814_v57  ;;  %2152 = vmatpush1.bf16.msra.mxu1 %v2817_v58 }
  0xcc   :  { %1989 = vmatprep.subr.bf16.mxu0 %v2822_v60  ;;  %2153 = vmatprep.subr.bf16.mxu1 %v2825_v61 }
  0xcf   :  { %1990 = vmatpush1.bf16.msra.mxu0 %v2820_v0  ;;  %2154 = vmatpush1.bf16.msra.mxu1 %v2823_v1 }
  0xd0   :  { %1991 = vmatprep.subr.bf16.mxu0 %v2828_v3  ;;  %2155 = vmatprep.subr.bf16.mxu1 %v2831_v4 }
  0xd3   :  { %1992 = vmatpush1.bf16.msra.mxu0 %v2826_v5  ;;  %2156 = vmatpush1.bf16.msra.mxu1 %v2829_v7 }
  0xd4   :  { %1993 = vmatprep.subr.bf16.mxu0 %v2834_v8  ;;  %2157 = vmatprep.subr.bf16.mxu1 %v2837_v10 }
  0xd7   :  { %1994 = vmatpush1.bf16.msra.mxu0 %v2832_v62  ;;  %2158 = vmatpush1.bf16.msra.mxu1 %v2835_v6 }
  0xd8   :  { %1995 = vmatprep.subr.bf16.mxu0 %v2840_v11  ;;  %2159 = vmatprep.subr.bf16.mxu1 %v2843_v12 }
  0xdb   :  { %1996 = vmatpush1.bf16.msra.mxu0 %v2838_v13  ;;  %2160 = vmatpush1.bf16.msra.mxu1 %v2841_v14 }
  0xdc   :  { %1997 = vmatprep.subr.bf16.mxu0 %v2846_v15  ;;  %2161 = vmatprep.subr.bf16.mxu1 %v2849_v2 }
  0xdf   :  { %1998 = vmatpush1.bf16.msra.mxu0 %v2844_v9  ;;  %2162 = vmatpush1.bf16.msra.mxu1 %v2847_v16 }
  0xe0   :  { %1999 = vmatprep.subr.bf16.mxu0 %v2852_v17  ;;  %2163 = vmatprep.subr.bf16.mxu1 %v2855_v18 }
  0xe3   :  { %2000 = vmatpush1.bf16.msra.mxu0 %v2850_v25  ;;  %2164 = vmatpush1.bf16.msra.mxu1 %v2853_v32 }
  0xe4   :  { %2001 = vmatprep.subr.bf16.mxu0 %v2858_v19  ;;  %2165 = vmatprep.subr.bf16.mxu1 %v2861_v22 }
  0xe7   :  { %2002 = vmatpush1.bf16.msra.mxu0 %v2856_v38  ;;  %2166 = vmatpush1.bf16.msra.mxu1 %v2859_v23 }
  0xe8   :  { %2003 = vmatprep.subr.bf16.mxu0 %v2864_v24  ;;  %2167 = vmatprep.subr.bf16.mxu1 %v2867_v40 }
  0xeb   :  { %2004 = vmatpush1.bf16.msra.mxu0 %v2862_v28  ;;  %2168 = vmatpush1.bf16.msra.mxu1 %v2865_v30 }
  0xec   :  { %2005 = vmatprep.subr.bf16.mxu0 %v2870_v31  ;;  %2169 = vmatprep.subr.bf16.mxu1 %v2873_v34 }
  0xef   :  { %2006 = vmatpush1.bf16.msra.mxu0 %v2868_v63  ;;  %2170 = vmatpush1.bf16.msra.mxu1 %v2871_v35 }
  0xf0   :  { %2007 = vmatprep.subr.bf16.mxu0 %v2876_v36  ;;  %2171 = vmatprep.subr.bf16.mxu1 %v2879_v20 }
  0xf3   :  { %2008 = vmatpush1.bf16.msra.mxu0 %v2874_v21  ;;  %2172 = vmatpush1.bf16.msra.mxu1 %v2877_v26 }
  0xf4   :  { %2009 = vmatprep.subr.bf16.mxu0 %v2882_v27  ;;  %2173 = vmatprep.subr.bf16.mxu1 %v2885_v29 }
  0xf7   :  { %2010 = vmatpush1.bf16.msra.mxu0 %v2880_v33  ;;  %2174 = vmatpush1.bf16.msra.mxu1 %v2883_v37 }
  0xf8   :  { %2011 = vmatprep.subr.bf16.mxu0 %v2888_v41  ;;  %2175 = vmatprep.subr.bf16.mxu1 %v2891_v42 }
  0xfb   :  { %2012 = vmatpush1.bf16.msra.mxu0 %v2886_v44  ;;  %2176 = vmatpush1.bf16.msra.mxu1 %v2889_v46 }
  0xfc   :  { %2013 = vmatprep.subr.bf16.mxu0 %v2894_v47  ;;  %2177 = vmatprep.subr.bf16.mxu1 %v2897_v48 }
  0xff   :  { %2014 = vmatpush1.bf16.msra.mxu0 %v2892_v49  ;;  %2178 = vmatpush1.bf16.msra.mxu1 %v2895_v45 }
 0x102   :  { %2016 = vmatmul.mubr.bf16.vlgmr.msra.gmra.mrb[0].mxu0 %v2224_v50  ;;  %2180 = vmatmul.mubr.bf16.vlgmr.msra.gmra.mrb[0].mxu1 %v2224_v50 }
 0x1d5   :  { %v2017_v52 = vpop.f32.mrb[0].mxu0  ;;  %v2181_v43 = vpop.f32.mrb[0].mxu1 }
 0x1d6   :  { %v2019_v51 = vpop.f32.mrb[1].mxu0  ;;  %v2183_v55 = vpop.f32.mrb[1].mxu1 }
 0x1d7   :  { %v2484_v59 = vpack.c.bf16 %v2019_v51, %v2017_v52  ;;  %v2485_v53 = vpack.c.bf16 %v2183_v55, %v2181_v43  ;;  %v2021_v54 = vpop.f32.mrb[2].mxu0  ;;  %v2185_v56 = vpop.f32.mrb[2].mxu1 }
 0x1d8   :  { %v2022_v57 = vpop.f32.mrb[3].mxu0  ;;  %v2186_v58 = vpop.f32.mrb[3].mxu1 }
 0x1d9   :  { %2204 = vst [vmem:[%s3859_s4] sm:$0xff] %v2484_v59  ;;  %2205 = vst [vmem:[%s3859_s4 + $0x8] sm:$0xff] %v2485_v53 }

// kernel: densenet121_forward.211
= control target key start
LH: loop header
LB: loop body
LE: loop exit
PB: predicated region body
PF: predicated region fallthrough
CT: control target
= control target key end

     0   :  { %s1750_s9 = smov 0   ;;  %s2086_s0 = inlined_call_operand.vmem [shape: bf16[2,3,8,128], index: 0, kind: input, shape index: {}]   ;;  %s2087_s1 = inlined_call_operand.vmem [shape: bf16[9,128,32], index: 1, kind: input, shape index: {}]   ;;  %s2088_s2 = inlined_call_operand.vmem [shape: bf16[2,1,1,32], index: 2, kind: output, shape index: {}]  }
   0x1 LB: > { %s1171_s10 = sadd.s32 4294967295, %s1731_s9   ;;  %p1175_p0 = scmp.ge.s32.totalorder %s1731_s9, 1  ;;  %s1731_s9 = sphi %s1750_s9, %s12_s9  }
   0x2   : > { %p112_p1 = scmp.lt.s32.totalorder %s1731_s9, 3 }
   0x4   : > { %p113_p2 = pnand %p1175_p0, %p112_p1 }
   0x5   : > { %v1653_v0 = vld [vmem:[%s2087_s1] sm:$0xff] (!%p113_p2)   ;;  %v1733_v1 = vmov (!%p113_p2), 0.0   ;;  %v1655_v3 = vld [vmem:[%s2087_s1 + $0x8] sm:$0xff] (!%p113_p2)   ;;  %vm1734_vm0 = vmmov (!%p113_p2), 0   ;;  %v1657_v5 = vld [vmem:[%s2087_s1 + $0x10] sm:$0xff] (!%p113_p2)   ;;  %p132_p3 = scmp.lt.s32.totalorder (!%p113_p2), %s1171_s10, 1 }
   0x6   : > { %116 = sbr.rel (%p113_p2) target bundleno = 386 (0x182), region = 28  ;;  %1462 = vmatprep.subr.bf16.mxu0 (!%p113_p2), %v1733_v1  ;;  %1482 = vmatprep.subr.bf16.mxu1 (!%p113_p2), %v1733_v1  ;;  %v1654_v2 = vld [vmem:[%s2087_s1 + $0x40] sm:$0xff] (!%p113_p2)   ;;  %v1656_v4 = vld [vmem:[%s2087_s1 + $0x48] sm:$0xff] (!%p113_p2)   ;;  %v1658_v6 = vld [vmem:[%s2087_s1 + $0x50] sm:$0xff] (!%p113_p2)   ;;  %vm1118_vm1 = vcmask (!%p113_p2), 253952  }
   0x7   : > { %1463 = vmatpush3.bf16.msra.mxu0 (!%p113_p2), %v1653_v0  ;;  %1478 = vmatprep.mubr.msk.bf16.mxu0 (!%p113_p2), %vm1734_vm0, %v1733_v1  ;;  %v1659_v7 = vld [vmem:[%s2087_s1 + $0x18] sm:$0xff] (!%p113_p2)   ;;  %v1661_v9 = vld [vmem:[%s2087_s1 + $0x20] sm:$0xff] (!%p113_p2)   ;;  %v1663_v11 = vld [vmem:[%s2087_s1 + $0x28] sm:$0xff] (!%p113_p2)   ;;  %vm1119_vm2 = vsmask.f32 (!%p113_p2), 256 }
   0x8   : > { %1483 = vmatpush3.bf16.msra.mxu1 (!%p113_p2), %v1654_v2  ;;  %1464 = vmatprep.subr.bf16.mxu0 (!%p113_p2), %v1733_v1  ;;  %v1660_v8 = vld [vmem:[%s2087_s1 + $0x58] sm:$0xff] (!%p113_p2)   ;;  %v1662_v10 = vld [vmem:[%s2087_s1 + $0x60] sm:$0xff] (!%p113_p2)   ;;  %v1664_v12 = vld [vmem:[%s2087_s1 + $0x68] sm:$0xff] (!%p113_p2)  }
   0x9   : > { %1484 = vmatprep.subr.bf16.mxu1 (!%p113_p2), %v1733_v1  ;;  %1498 = vmatprep.mubr.msk.bf16.mxu1 (!%p113_p2), %vm1734_vm0, %v1733_v1  ;;  %v1665_v13 = vld [vmem:[%s2087_s1 + $0x30] sm:$0xff] (!%p113_p2)   ;;  %v1667_v15 = vld [vmem:[%s2087_s1 + $0x38] sm:$0xff] (!%p113_p2)   ;;  %v1669_v18 = vld [vmem:[%s2087_s1 + $0x80] sm:$0xff] (!%p113_p2)  }
   0xa   : > { %v1666_v14 = vld [vmem:[%s2087_s1 + $0x70] sm:$0xff] (!%p113_p2)   ;;  %v1668_v16 = vld [vmem:[%s2087_s1 + $0x78] sm:$0xff] (!%p113_p2)   ;;  %v1670_v19 = vld [vmem:[%s2087_s1 + $0xc0] sm:$0xff] (!%p113_p2)  }
   0xb   : > { %1465 = vmatpush3.bf16.msra.mxu0 (!%p113_p2), %v1655_v3  ;;  %v1671_v20 = vld [vmem:[%s2087_s1 + $0x88] sm:$0xff] (!%p113_p2)   ;;  %v1673_v22 = vld [vmem:[%s2087_s1 + $0x90] sm:$0xff] (!%p113_p2)   ;;  %v1675_v24 = vld [vmem:[%s2087_s1 + $0x98] sm:$0xff] (!%p113_p2)  }
   0xc   : > { %1485 = vmatpush3.bf16.msra.mxu1 (!%p113_p2), %v1656_v4  ;;  %1466 = vmatprep.subr.bf16.mxu0 (!%p113_p2), %v1733_v1  ;;  %v1672_v21 = vld [vmem:[%s2087_s1 + $0xc8] sm:$0xff] (!%p113_p2)   ;;  %v1674_v23 = vld [vmem:[%s2087_s1 + $0xd0] sm:$0xff] (!%p113_p2)   ;;  %v1676_v25 = vld [vmem:[%s2087_s1 + $0xd8] sm:$0xff] (!%p113_p2)  }
   0xd   : > { %1486 = vmatprep.subr.bf16.mxu1 %v1733_v1  ;;  %s2090_s10 = smov (!%p132_p3, %s1171_s10), 1  ;;  %v1677_v26 = vld [vmem:[%s2087_s1 + $0xa0] sm:$0xff]   ;;  %v1679_v28 = vld [vmem:[%s2087_s1 + $0xa8] sm:$0xff]   ;;  %v1681_v30 = vld [vmem:[%s2087_s1 + $0xb0] sm:$0xff]  }
   0xe   : > { %s1642_s11 = smul.u32 12, %s2090_s10  ;;  %v1678_v27 = vld [vmem:[%s2087_s1 + $0xe0] sm:$0xff]   ;;  %v1680_v29 = vld [vmem:[%s2087_s1 + $0xe8] sm:$0xff]   ;;  %v1682_v31 = vld [vmem:[%s2087_s1 + $0xf0] sm:$0xff]   ;;  %s139_s6 = scalar_lea.vmem %s2088_s2, %s2090_s10 }
   0xf   : > { %1467 = vmatpush3.bf16.msra.mxu0 %v1657_v5  ;;  %v1683_v32 = vld [vmem:[%s2087_s1 + $0xb8] sm:$0xff]   ;;  %v1685_v35 = vld [vmem:[%s2087_s1 + $0x100] sm:$0xff]   ;;  %v1687_v37 = vld [vmem:[%s2087_s1 + $0x108] sm:$0xff]  }
  0x10   : > { %1487 = vmatpush3.bf16.msra.mxu1 %v1658_v6  ;;  %1468 = vmatprep.subr.bf16.mxu0 %v1733_v1  ;;  %s1831_s18 = scalar_lea.vmem %s2086_s0, %s1642_s11  ;;  %v1684_v33 = vld [vmem:[%s2087_s1 + $0xf8] sm:$0xff]   ;;  %v1686_v36 = vld [vmem:[%s2087_s1 + $0x140] sm:$0xff]   ;;  %v1688_v38 = vld [vmem:[%s2087_s1 + $0x148] sm:$0xff]  }
  0x11   : > { %1488 = vmatprep.subr.bf16.mxu1 %v1733_v1  ;;  %v141_v17 = vld [vmem:[%s1831_s18] sm:$0xf]  ;;  %v1233_v34 = vld [vmem:[%s1831_s18 + $0x4] sm:$0xf]  ;;  %v1689_v39 = vld [vmem:[%s2087_s1 + $0x110] sm:$0xff]  }
  0x12   : > { %v1690_v40 = vld [vmem:[%s2087_s1 + $0x150] sm:$0xff]   ;;  %v1691_v41 = vld [vmem:[%s2087_s1 + $0x118] sm:$0xff]   ;;  %v1693_v43 = vld [vmem:[%s2087_s1 + $0x120] sm:$0xff]  }
  0x13   : > { %1469 = vmatpush3.bf16.msra.mxu0 %v1659_v7  ;;  %v1692_v42 = vld [vmem:[%s2087_s1 + $0x158] sm:$0xff]   ;;  %v1694_v44 = vld [vmem:[%s2087_s1 + $0x160] sm:$0xff]   ;;  %v1695_v45 = vld [vmem:[%s2087_s1 + $0x128] sm:$0xff]  }
  0x14   : > { %1489 = vmatpush3.bf16.msra.mxu1 %v1660_v8  ;;  %1470 = vmatprep.subr.bf16.mxu0 %v1733_v1  ;;  %v1696_v46 = vld [vmem:[%s2087_s1 + $0x168] sm:$0xff]   ;;  %v1697_v47 = vld [vmem:[%s2087_s1 + $0x130] sm:$0xff]   ;;  %v1699_v49 = vld [vmem:[%s2087_s1 + $0x138] sm:$0xff]  }
  0x15   : > { %1490 = vmatprep.subr.bf16.mxu1 %v1733_v1  ;;  %v1698_v48 = vld [vmem:[%s2087_s1 + $0x170] sm:$0xff]   ;;  %v1700_v50 = vld [vmem:[%s2087_s1 + $0x178] sm:$0xff]   ;;  %v1701_v51 = vld [vmem:[%s2087_s1 + $0x180] sm:$0xff]  }
  0x16   : > { %v1702_v52 = vld [vmem:[%s2087_s1 + $0x1c0] sm:$0xff]   ;;  %v1703_v53 = vld [vmem:[%s2087_s1 + $0x188] sm:$0xff]   ;;  %v1705_v55 = vld [vmem:[%s2087_s1 + $0x190] sm:$0xff]  }
  0x17   : > { %1471 = vmatpush3.bf16.msra.mxu0 %v1661_v9  ;;  %v1704_v54 = vld [vmem:[%s2087_s1 + $0x1c8] sm:$0xff]   ;;  %v1706_v56 = vld [vmem:[%s2087_s1 + $0x1d0] sm:$0xff]   ;;  %v1707_v57 = vld [vmem:[%s2087_s1 + $0x198] sm:$0xff]  }
  0x18   : > { %1491 = vmatpush3.bf16.msra.mxu1 %v1662_v10  ;;  %1472 = vmatprep.subr.bf16.mxu0 %v1733_v1  ;;  %v1708_v58 = vld [vmem:[%s2087_s1 + $0x1d8] sm:$0xff]   ;;  %v1709_v59 = vld [vmem:[%s2087_s1 + $0x1a0] sm:$0xff]   ;;  %v1711_v61 = vld [vmem:[%s2087_s1 + $0x1a8] sm:$0xff]  }
  0x19   : > { %1492 = vmatprep.subr.bf16.mxu1 %v1733_v1  ;;  %v1710_v60 = vld [vmem:[%s2087_s1 + $0x1e0] sm:$0xff]   ;;  %v1712_v62 = vld [vmem:[%s2087_s1 + $0x1e8] sm:$0xff]   ;;  %v1713_v63 = vld [vmem:[%s2087_s1 + $0x1b0] sm:$0xff]  }
  0x1a   : > { %v1714_v0 = vld [vmem:[%s2087_s1 + $0x1f0] sm:$0xff]   ;;  %v1715_v2 = vld [vmem:[%s2087_s1 + $0x1b8] sm:$0xff]   ;;  %v1306_v4 = vld [vmem:[%s1831_s18 + $0x8] sm:$0xf] }
  0x1b   : > { %1473 = vmatpush3.bf16.msra.mxu0 %v1663_v11  ;;  %v1716_v3 = vld [vmem:[%s2087_s1 + $0x1f8] sm:$0xff]   ;;  %v1717_v5 = vld [vmem:[%s2087_s1 + $0x200] sm:$0xff]   ;;  %v1718_v6 = vld [vmem:[%s2087_s1 + $0x208] sm:$0xff]  }
  0x1c   : > { %1493 = vmatpush3.bf16.msra.mxu1 %v1664_v12  ;;  %1474 = vmatprep.subr.bf16.mxu0 %v1733_v1  ;;  %v1719_v7 = vld [vmem:[%s2087_s1 + $0x210] sm:$0xff]   ;;  %v1720_v8 = vld [vmem:[%s2087_s1 + $0x218] sm:$0xff]   ;;  %v1721_v9 = vld [vmem:[%s2087_s1 + $0x220] sm:$0xff]  }
  0x1d   : > { %1494 = vmatprep.subr.bf16.mxu1 %v1733_v1  ;;  %v1722_v10 = vld [vmem:[%s2087_s1 + $0x228] sm:$0xff]   ;;  %v1723_v11 = vld [vmem:[%s2087_s1 + $0x230] sm:$0xff]   ;;  %v1724_v12 = vld [vmem:[%s2087_s1 + $0x238] sm:$0xff]  }
  0x1e   : > { %vm1120_vm3 = vmand %vm1118_vm1, %vm1119_vm2 }
  0x1f   : > { %1475 = vmatpush3.bf16.msra.mxu0 %v1665_v13 }
  0x20   : > { %1495 = vmatpush3.bf16.msra.mxu1 %v1666_v14  ;;  %1476 = vmatprep.subr.bf16.mxu0 %v1733_v1 }
  0x21   : > { %1496 = vmatprep.subr.bf16.mxu1 %v1733_v1 }
  0x23   : > { %1477 = vmatpush3.bf16.msra.mxu0 %v1667_v15 }
  0x24   : > { %1497 = vmatpush3.bf16.msra.mxu1 %v1668_v16  ;;  %1502 = vmatprep.subr.bf16.mxu0 %v1733_v1 }
  0x25   : > { %1522 = vmatprep.subr.bf16.mxu1 %v1733_v1 }
  0x26   : > { %1479 = vmatmul.mubr.bf16.vlgmr.msra.gmra.mrb[0].mxu0 %v141_v17 }
  0x27   : > { %1499 = vmatmul.mubr.bf16.vlgmr.msra.gmra.mrb[0].mxu1 %v141_v17  ;;  %1503 = vmatpush3.bf16.msra.mxu0 %v1669_v18 }
  0x28   : > { %1523 = vmatpush3.bf16.msra.mxu1 %v1670_v19  ;;  %1504 = vmatprep.subr.bf16.mxu0 %v1733_v1 }
  0x29   : > { %1524 = vmatprep.subr.bf16.mxu1 %v1733_v1  ;;  %1518 = vmatprep.mubr.msk.bf16.mxu0 %vm1734_vm0, %v1733_v1 }
  0x2a   : > { %1538 = vmatprep.mubr.msk.bf16.mxu1 %vm1734_vm0, %v1733_v1 }
  0x2b   : > { %1505 = vmatpush3.bf16.msra.mxu0 %v1671_v20 }
  0x2c   : > { %1525 = vmatpush3.bf16.msra.mxu1 %v1672_v21  ;;  %1506 = vmatprep.subr.bf16.mxu0 %v1733_v1 }
  0x2d   : > { %1526 = vmatprep.subr.bf16.mxu1 %v1733_v1 }
  0x2f   : > { %1507 = vmatpush3.bf16.msra.mxu0 %v1673_v22 }
  0x30   : > { %1527 = vmatpush3.bf16.msra.mxu1 %v1674_v23  ;;  %1508 = vmatprep.subr.bf16.mxu0 %v1733_v1 }
  0x31   : > { %1528 = vmatprep.subr.bf16.mxu1 %v1733_v1 }
  0x33   : > { %1509 = vmatpush3.bf16.msra.mxu0 %v1675_v24 }
  0x34   : > { %1529 = vmatpush3.bf16.msra.mxu1 %v1676_v25  ;;  %1510 = vmatprep.subr.bf16.mxu0 %v1733_v1 }
  0x35   : > { %1530 = vmatprep.subr.bf16.mxu1 %v1733_v1 }
  0x37   : > { %1511 = vmatpush3.bf16.msra.mxu0 %v1677_v26 }
  0x38   : > { %1531 = vmatpush3.bf16.msra.mxu1 %v1678_v27  ;;  %1512 = vmatprep.subr.bf16.mxu0 %v1733_v1 }
  0x39   : > { %1532 = vmatprep.subr.bf16.mxu1 %v1733_v1 }
  0x3b   : > { %1513 = vmatpush3.bf16.msra.mxu0 %v1679_v28 }
  0x3c   : > { %1533 = vmatpush3.bf16.msra.mxu1 %v1680_v29  ;;  %1514 = vmatprep.subr.bf16.mxu0 %v1733_v1 }
  0x3d   : > { %1534 = vmatprep.subr.bf16.mxu1 %v1733_v1 }
  0x3f   : > { %1515 = vmatpush3.bf16.msra.mxu0 %v1681_v30 }
  0x40   : > { %1535 = vmatpush3.bf16.msra.mxu1 %v1682_v31  ;;  %1516 = vmatprep.subr.bf16.mxu0 %v1733_v1 }
  0x41   : > { %1536 = vmatprep.subr.bf16.mxu1 %v1733_v1 }
  0x43   : > { %1517 = vmatpush3.bf16.msra.mxu0 %v1683_v32 }
  0x44   : > { %1537 = vmatpush3.bf16.msra.mxu1 %v1684_v33  ;;  %1542 = vmatprep.subr.bf16.mxu0 %v1733_v1 }
  0x45   : > { %1562 = vmatprep.subr.bf16.mxu1 %v1733_v1 }
  0x46   : > { %1519 = vmatmul.mubr.bf16.vlgmr.msra.gmra.mrb[4].mxu0 %v141_v17 }
  0x47   : > { %1539 = vmatmul.mubr.bf16.vlgmr.msra.gmra.mrb[4].mxu1 %v1233_v34  ;;  %1543 = vmatpush3.bf16.msra.mxu0 %v1685_v35 }
  0x48   : > { %1563 = vmatpush3.bf16.msra.mxu1 %v1686_v36  ;;  %1544 = vmatprep.subr.bf16.mxu0 %v1733_v1 }
  0x49   : > { %1564 = vmatprep.subr.bf16.mxu1 %v1733_v1  ;;  %1558 = vmatprep.mubr.msk.bf16.mxu0 %vm1734_vm0, %v1733_v1 }
  0x4a   : > { %1578 = vmatprep.mubr.msk.bf16.mxu1 %vm1734_vm0, %v1733_v1 }
  0x4b   : > { %1545 = vmatpush3.bf16.msra.mxu0 %v1687_v37 }
  0x4c   : > { %1565 = vmatpush3.bf16.msra.mxu1 %v1688_v38  ;;  %1546 = vmatprep.subr.bf16.mxu0 %v1733_v1 }
  0x4d   : > { %1566 = vmatprep.subr.bf16.mxu1 %v1733_v1 }
  0x4f   : > { %1547 = vmatpush3.bf16.msra.mxu0 %v1689_v39 }
  0x50   : > { %1567 = vmatpush3.bf16.msra.mxu1 %v1690_v40  ;;  %1548 = vmatprep.subr.bf16.mxu0 %v1733_v1 }
  0x51   : > { %1568 = vmatprep.subr.bf16.mxu1 %v1733_v1 }
  0x53   : > { %1549 = vmatpush3.bf16.msra.mxu0 %v1691_v41 }
  0x54   : > { %1569 = vmatpush3.bf16.msra.mxu1 %v1692_v42  ;;  %1550 = vmatprep.subr.bf16.mxu0 %v1733_v1 }
  0x55   : > { %1570 = vmatprep.subr.bf16.mxu1 %v1733_v1 }
  0x57   : > { %1551 = vmatpush3.bf16.msra.mxu0 %v1693_v43 }
  0x58   : > { %1571 = vmatpush3.bf16.msra.mxu1 %v1694_v44  ;;  %1552 = vmatprep.subr.bf16.mxu0 %v1733_v1 }
  0x59   : > { %1572 = vmatprep.subr.bf16.mxu1 %v1733_v1 }
  0x5b   : > { %1553 = vmatpush3.bf16.msra.mxu0 %v1695_v45 }
  0x5c   : > { %1573 = vmatpush3.bf16.msra.mxu1 %v1696_v46  ;;  %1554 = vmatprep.subr.bf16.mxu0 %v1733_v1 }
  0x5d   : > { %1574 = vmatprep.subr.bf16.mxu1 %v1733_v1 }
  0x5f   : > { %1555 = vmatpush3.bf16.msra.mxu0 %v1697_v47 }
  0x60   : > { %1575 = vmatpush3.bf16.msra.mxu1 %v1698_v48  ;;  %1556 = vmatprep.subr.bf16.mxu0 %v1733_v1 }
  0x61   : > { %1576 = vmatprep.subr.bf16.mxu1 %v1733_v1 }
  0x63   : > { %1557 = vmatpush3.bf16.msra.mxu0 %v1699_v49 }
  0x64   : > { %1577 = vmatpush3.bf16.msra.mxu1 %v1700_v50  ;;  %1582 = vmatprep.subr.bf16.mxu0 %v1733_v1 }
  0x65   : > { %1602 = vmatprep.subr.bf16.mxu1 %v1733_v1 }
  0x66   : > { %1559 = vmatmul.mubr.bf16.vlgmr.msra.gmra.mrb[8].mxu0 %v1233_v34 }
  0x67   : > { %1579 = vmatmul.mubr.bf16.vlgmr.msra.gmra.mrb[8].mxu1 %v1233_v34  ;;  %1583 = vmatpush3.bf16.msra.mxu0 %v1701_v51 }
  0x68   : > { %1603 = vmatpush3.bf16.msra.mxu1 %v1702_v52  ;;  %1584 = vmatprep.subr.bf16.mxu0 %v1733_v1 }
  0x69   : > { %1604 = vmatprep.subr.bf16.mxu1 %v1733_v1  ;;  %1598 = vmatprep.mubr.msk.bf16.mxu0 %vm1734_vm0, %v1733_v1 }
  0x6a   : > { %1618 = vmatprep.mubr.msk.bf16.mxu1 %vm1734_vm0, %v1733_v1 }
  0x6b   : > { %1585 = vmatpush3.bf16.msra.mxu0 %v1703_v53 }
  0x6c   : > { %1605 = vmatpush3.bf16.msra.mxu1 %v1704_v54  ;;  %1586 = vmatprep.subr.bf16.mxu0 %v1733_v1 }
  0x6d   : > { %1606 = vmatprep.subr.bf16.mxu1 %v1733_v1 }
  0x6f   : > { %1587 = vmatpush3.bf16.msra.mxu0 %v1705_v55 }
  0x70   : > { %1607 = vmatpush3.bf16.msra.mxu1 %v1706_v56  ;;  %1588 = vmatprep.subr.bf16.mxu0 %v1733_v1 }
  0x71   : > { %1608 = vmatprep.subr.bf16.mxu1 %v1733_v1 }
  0x73   : > { %1589 = vmatpush3.bf16.msra.mxu0 %v1707_v57 }
  0x74   : > { %1609 = vmatpush3.bf16.msra.mxu1 %v1708_v58  ;;  %1590 = vmatprep.subr.bf16.mxu0 %v1733_v1 }
  0x75   : > { %1610 = vmatprep.subr.bf16.mxu1 %v1733_v1 }
  0x77   : > { %1591 = vmatpush3.bf16.msra.mxu0 %v1709_v59 }
  0x78   : > { %1611 = vmatpush3.bf16.msra.mxu1 %v1710_v60  ;;  %1592 = vmatprep.subr.bf16.mxu0 %v1733_v1 }
  0x79   : > { %1612 = vmatprep.subr.bf16.mxu1 %v1733_v1 }
  0x7b   : > { %1593 = vmatpush3.bf16.msra.mxu0 %v1711_v61 }
  0x7c   : > { %1613 = vmatpush3.bf16.msra.mxu1 %v1712_v62  ;;  %1594 = vmatprep.subr.bf16.mxu0 %v1733_v1  ;;  %v1121_v62 = vld [vmem:[%s139_s6] sm:$0x1] }
  0x7d   : > { %1614 = vmatprep.subr.bf16.mxu1 %v1733_v1 }
  0x7f   : > { %1595 = vmatpush3.bf16.msra.mxu0 %v1713_v63 }
  0x80   : > { %1615 = vmatpush3.bf16.msra.mxu1 %v1714_v0  ;;  %1596 = vmatprep.subr.bf16.mxu0 %v1733_v1 }
  0x81   : > { %1616 = vmatprep.subr.bf16.mxu1 %v1733_v1 }
  0x83   : > { %1597 = vmatpush3.bf16.msra.mxu0 %v1715_v2 }
  0x84   : > { %1617 = vmatpush3.bf16.msra.mxu1 %v1716_v3  ;;  %1622 = vmatprep.subr.bf16.mxu0 %v1733_v1 }
  0x86   : > { %1599 = vmatmul.mubr.bf16.vlgmr.msra.gmra.mrb[12].mxu0 %v1306_v4 }
  0x87   : > { %1619 = vmatmul.mubr.bf16.vlgmr.msra.gmra.mrb[12].mxu1 %v1306_v4  ;;  %1623 = vmatpush3.bf16.msra.mxu0 %v1717_v5 }
  0x88   : > { %1624 = vmatprep.subr.bf16.mxu0 %v1733_v1  ;;  %1638 = vmatprep.mubr.msk.bf16.mxu0 %vm1734_vm0, %v1733_v1 }
  0x8b   : > { %1625 = vmatpush3.bf16.msra.mxu0 %v1718_v6 }
  0x8c   : > { %1626 = vmatprep.subr.bf16.mxu0 %v1733_v1 }
  0x8f   : > { %1627 = vmatpush3.bf16.msra.mxu0 %v1719_v7 }
  0x90   : > { %1628 = vmatprep.subr.bf16.mxu0 %v1733_v1 }
  0x93   : > { %1629 = vmatpush3.bf16.msra.mxu0 %v1720_v8 }
  0x94   : > { %1630 = vmatprep.subr.bf16.mxu0 %v1733_v1 }
  0x97   : > { %1631 = vmatpush3.bf16.msra.mxu0 %v1721_v9 }
  0x98   : > { %1632 = vmatprep.subr.bf16.mxu0 %v1733_v1 }
  0x9b   : > { %1633 = vmatpush3.bf16.msra.mxu0 %v1722_v10 }
  0x9c   : > { %1634 = vmatprep.subr.bf16.mxu0 %v1733_v1 }
  0x9f   : > { %1635 = vmatpush3.bf16.msra.mxu0 %v1723_v11 }
  0xa0   : > { %1636 = vmatprep.subr.bf16.mxu0 %v1733_v1 }
  0xa3   : > { %1637 = vmatpush3.bf16.msra.mxu0 %v1724_v12 }
  0xa6   : > { %1639 = vmatmul.mubr.bf16.vlgmr.msra.gmra.mrb[16].mxu0 %v1306_v4 }
  0xf9   : > { %v240_v13 = vpop.f32.mrb[0].mxu0 }
  0xfa   : > { %v346_v14 = vpop.f32.mrb[0].mxu1  ;;  %v1480_v15 = vpop.f32.mrb[1].mxu0 }
  0xfb   : > { %v353_v16 = vrot.slane %v346_v14, 1  ;;  %v243_v17 = vpop.f32.mrb[2].mxu0  ;;  %v1500_v18 = vpop.f32.mrb[1].mxu1 }
  0xfc   : > { %v1481_v19 = vpop.f32.mrb[3].mxu0  ;;  %v349_v20 = vpop.f32.mrb[2].mxu1 }
  0xfd   : > { %v355_v21 = vadd.f32 %v353_v16, %v240_v13  ;;  %v1501_v22 = vpop.f32.mrb[3].mxu1 }
 0x119   : > { %v455_v23 = vpop.f32.mrb[4].mxu0 }
 0x11a   : > { %v462_v24 = vrot.slane %v455_v23, 2  ;;  %v1520_v25 = vpop.f32.mrb[5].mxu0  ;;  %v566_v26 = vpop.f32.mrb[4].mxu1 }
 0x11b   : > { %v458_v27 = vpop.f32.mrb[6].mxu0  ;;  %v1540_v28 = vpop.f32.mrb[5].mxu1 }
 0x11c   : > { %v1521_v29 = vpop.f32.mrb[7].mxu0  ;;  %v464_v1 = vadd.f32 %v462_v24, %v355_v21  ;;  %v569_v30 = vpop.f32.mrb[6].mxu1 }
 0x11d   : > { %v1541_v31 = vpop.f32.mrb[7].mxu1 }
 0x11e   : > { %v572_v32 = vadd.f32 %v566_v26, %v464_v1 }
 0x139   : > { %v672_v33 = vpop.f32.mrb[8].mxu0 }
 0x13a   : > { %v679_v34 = vrot.slane %v672_v33, 1  ;;  %v1560_v35 = vpop.f32.mrb[9].mxu0  ;;  %v781_v36 = vpop.f32.mrb[8].mxu1 }
 0x13b   : > { %v675_v37 = vpop.f32.mrb[10].mxu0  ;;  %v788_v38 = vrot.slane %v781_v36, 2  ;;  %v1580_v39 = vpop.f32.mrb[9].mxu1 }
 0x13c   : > { %v681_v40 = vadd.f32 %v679_v34, %v572_v32  ;;  %v1561_v41 = vpop.f32.mrb[11].mxu0  ;;  %v784_v42 = vpop.f32.mrb[10].mxu1 }
 0x13d   : > { %v1581_v43 = vpop.f32.mrb[11].mxu1 }
 0x13e   : > { %v790_v44 = vadd.f32 %v788_v38, %v681_v40 }
 0x159   : > { %v892_v45 = vpop.f32.mrb[12].mxu0 }
 0x15a   : > { %v898_v46 = vadd.f32 %v892_v45, %v790_v44  ;;  %v998_v47 = vpop.f32.mrb[12].mxu1  ;;  %v1600_v48 = vpop.f32.mrb[13].mxu0 }
 0x15b   : > { %v1005_v49 = vrot.slane %v998_v47, 1  ;;  %v895_v50 = vpop.f32.mrb[14].mxu0  ;;  %v1620_v51 = vpop.f32.mrb[13].mxu1 }
 0x15c   : > { %v1601_v52 = vpop.f32.mrb[15].mxu0  ;;  %v1001_v53 = vpop.f32.mrb[14].mxu1 }
 0x15d   : > { %v1007_v54 = vadd.f32 %v1005_v49, %v898_v46  ;;  %v1621_v55 = vpop.f32.mrb[15].mxu1 }
 0x179   : > { %v1107_v56 = vpop.f32.mrb[16].mxu0 }
 0x17a   : > { %v1114_v57 = vrot.slane %v1107_v56, 2  ;;  %v1640_v58 = vpop.f32.mrb[17].mxu0 }
 0x17b   : > { %v1110_v59 = vpop.f32.mrb[18].mxu0 }
 0x17c   : > { %v1116_v60 = vadd.f32 %v1114_v57, %v1007_v54  ;;  %v1641_v61 = vpop.f32.mrb[19].mxu0 }
 0x17e   : > { %v1117_v63 = vpack.c.bf16 %v1116_v60, %v1116_v60 }
 0x180   : > { %v1122_v0 = vsel %vm1120_vm3, %v1117_v63, %v1121_v62 }
 0x181   : > { %1123 = vst [vmem:[%s139_s6] sm:$0x1] %v1122_v0 }
 0x182 PF: > { %s12_s9 = sadd.s32 1, %s1731_s9  }
 0x183   : > { %p9_p4 = scmp.ge.s32.totalorder %s12_s9, 4  }
 0x185   :  { %11 = sbr.rel (!%p9_p4) target bundleno = 1 (0x1), region = 68 }

// kernel: densenet121_forward.242
= control target key start
LH: loop header
LB: loop body
LE: loop exit
PB: predicated region body
PF: predicated region fallthrough
CT: control target
= control target key end

     0   :  { %v28_v0 = vlaneseq  ;;  %s232_s0 = inlined_call_operand.vmem [shape: bf16[8,1024], index: 0, kind: input, shape index: {}]   ;;  %s233_s1 = inlined_call_operand.vmem [shape: f32[1,1024], index: 1, kind: input, shape index: {}]   ;;  %s234_s2 = inlined_call_operand.vmem [shape: f32[1,1024], index: 2, kind: input, shape index: {}]   ;;  %s235_s3 = inlined_call_operand.vmem [shape: bf16[8,1024], index: 3, kind: output, shape index: {}]  }
   0x1   :  { %v14_v1 = vld [vmem:[%s232_s0] sm:$0xff]  ;;  %v15_v5 = vld [vmem:[%s232_s0 + $0x8] sm:$0xff]  ;;  %v16_v6 = vld [vmem:[%s232_s0 + $0x10] sm:$0xff] }
   0x2   :  { %v18_v2 = vunpack.c.l.bf16 %v14_v1  ;;  %v19_v3 = vunpack.c.h.bf16 %v14_v1  ;;  %v29_v4 = vshrl.u32 %v28_v0, 7  ;;  %v17_v7 = vld [vmem:[%s232_s0 + $0x18] sm:$0xff]  ;;  %v26_v8 = vld [vmem:[%s233_s1] sm:$0xff]  ;;  %v20_v10 = vunpack.c.l.bf16 %v15_v5 }
   0x3   :  { %v76_v9 = vld [vmem:[%s234_s2] sm:$0xff]  ;;  %v21_v11 = vunpack.c.h.bf16 %v15_v5  ;;  %v22_v12 = vunpack.c.l.bf16 %v16_v6  ;;  %v23_v13 = vunpack.c.h.bf16 %v16_v6  ;;  %v24_v20 = vunpack.c.l.bf16 %v17_v7 }
   0x4   :  { %v30_v14 = vsub.s32 0, %v29_v4  ;;  %v34_v15 = vsub.s32 1, %v29_v4  ;;  %v38_v16 = vsub.s32 2, %v29_v4  ;;  %v42_v17 = vsub.s32 3, %v29_v4 }
   0x5   :  { %v46_v18 = vsub.s32 4, %v29_v4  ;;  %v50_v19 = vsub.s32 5, %v29_v4  ;;  %v25_v21 = vunpack.c.h.bf16 %v17_v7  ;;  %v54_v44 = vsub.s32 6, %v29_v4 }
   0x6   :  { %v31_v22 = vrot.slane %v26_v8, %v30_v14  ;;  %v35_v23 = vrot.slane %v26_v8, %v34_v15  ;;  %v81_v24 = vrot.slane %v76_v9, %v30_v14  ;;  %v85_v25 = vrot.slane %v76_v9, %v34_v15 }
   0x7   :  { %v39_v26 = vrot.slane %v26_v8, %v38_v16  ;;  %v43_v27 = vrot.slane %v26_v8, %v42_v17  ;;  %v89_v28 = vrot.slane %v76_v9, %v38_v16  ;;  %v93_v29 = vrot.slane %v76_v9, %v42_v17 }
   0x8   :  { %v68_v30 = vmul.f32 %v31_v22, %v18_v2  ;;  %v69_v31 = vmul.f32 %v35_v23, %v19_v3  ;;  %v47_v32 = vrot.slane %v26_v8, %v46_v18  ;;  %v51_v33 = vrot.slane %v26_v8, %v50_v19 }
   0x9   :  { %v70_v34 = vmul.f32 %v39_v26, %v20_v10  ;;  %v71_v35 = vmul.f32 %v43_v27, %v21_v11  ;;  %v97_v36 = vrot.slane %v76_v9, %v46_v18  ;;  %v101_v37 = vrot.slane %v76_v9, %v50_v19 }
   0xa   :  { %v118_v38 = vadd.f32 %v81_v24, %v68_v30  ;;  %v119_v39 = vadd.f32 %v85_v25, %v69_v31  ;;  %v72_v40 = vmul.f32 %v47_v32, %v22_v12  ;;  %v73_v41 = vmul.f32 %v51_v33, %v23_v13 }
   0xb   :  { %v120_v42 = vadd.f32 %v89_v28, %v70_v34  ;;  %v121_v43 = vadd.f32 %v93_v29, %v71_v35  ;;  %v58_v45 = vsub.s32 7, %v29_v4  ;;  %v55_v52 = vrot.slane %v26_v8, %v54_v44 }
   0xc   :  { %v126_v46 = vmax.f32 %v118_v38, 0.0  ;;  %v127_v47 = vmax.f32 %v119_v39, 0.0  ;;  %v122_v48 = vadd.f32 %v97_v36, %v72_v40  ;;  %v123_v49 = vadd.f32 %v101_v37, %v73_v41 }
   0xd   :  { %v128_v50 = vmax.f32 %v120_v42, 0.0  ;;  %v129_v51 = vmax.f32 %v121_v43, 0.0  ;;  %v59_v53 = vrot.slane %v26_v8, %v58_v45  ;;  %v105_v57 = vrot.slane %v76_v9, %v54_v44 }
   0xe   :  { %v178_v54 = vpack.c.bf16 %v127_v47, %v126_v46  ;;  %v130_v55 = vmax.f32 %v122_v48, 0.0  ;;  %v131_v56 = vmax.f32 %v123_v49, 0.0  ;;  %v74_v59 = vmul.f32 %v55_v52, %v24_v20 }
   0xf   :  { %v179_v58 = vpack.c.bf16 %v129_v51, %v128_v50  ;;  %v75_v60 = vmul.f32 %v59_v53, %v25_v21  ;;  %v109_v61 = vrot.slane %v76_v9, %v58_v45 }
  0x10   :  { %166 = vst [vmem:[%s235_s3] sm:$0xff] %v178_v54  ;;  %v180_v62 = vpack.c.bf16 %v131_v56, %v130_v55  ;;  %v124_v63 = vadd.f32 %v105_v57, %v74_v59 }
  0x11   :  { %167 = vst [vmem:[%s235_s3 + $0x8] sm:$0xff] %v179_v58  ;;  %v125_v0 = vadd.f32 %v109_v61, %v75_v60 }
  0x12   :  { %168 = vst [vmem:[%s235_s3 + $0x10] sm:$0xff] %v180_v62  ;;  %v132_v1 = vmax.f32 %v124_v63, 0.0 }
  0x13   :  { %v133_v2 = vmax.f32 %v125_v0, 0.0 }
  0x15   :  { %v181_v3 = vpack.c.bf16 %v133_v2, %v132_v1 }
  0x17   :  { %169 = vst [vmem:[%s235_s3 + $0x18] sm:$0xff] %v181_v3 }

// kernel: densenet121_forward.243
= control target key start
LH: loop header
LB: loop body
LE: loop exit
PB: predicated region body
PF: predicated region fallthrough
CT: control target
= control target key end

     0   :  { %vm991_vm0 = vcmask 588800   ;;  %s1782_s1 = inlined_call_operand.vmem [shape: bf16[1024,200], index: 1, kind: input, shape index: {}]   ;;  %s1783_s0 = inlined_call_operand.vmem [shape: bf16[8,1024], index: 0, kind: input, shape index: {}]   ;;  %s1784_s2 = inlined_call_operand.vmem [shape: f32[1,200], index: 2, kind: input, shape index: {}]   ;;  %s1785_s3 = inlined_call_operand.vmem [shape: f32[8,200], index: 3, kind: output, shape index: {}]  }
   0x1   :  { %v1145_v0 = vld [vmem:[%s1782_s1 + $0x4] ss:$8 sps:$4 sm:$0xff]   ;;  %v1149_v2 = vld [vmem:[%s1782_s1] ss:$8 sps:$4 sm:$0xff]   ;;  %v1151_v4 = vld [vmem:[%s1782_s1 + $0x14] ss:$8 sps:$4 sm:$0xff]  }
   0x2   :  { %v1147_v1 = vld [vmem:[%s1782_s1 + $0x204] ss:$8 sps:$4 sm:$0xff]   ;;  %826 = vmatprep.subr.bf16.mxu1 %v1145_v0  ;;  %v1150_v3 = vld [vmem:[%s1782_s1 + $0x200] ss:$8 sps:$4 sm:$0xff]   ;;  %v1153_v5 = vld [vmem:[%s1782_s1 + $0x214] ss:$8 sps:$4 sm:$0xff]  }
   0x3   :  { %908 = vmatprep.subr.bf16.mxu0 %v1147_v1  ;;  %827 = vmatpush1.bf16.msra.mxu1 %v1149_v2  ;;  %v1155_v6 = vld [vmem:[%s1782_s1 + $0x10] ss:$8 sps:$4 sm:$0xff]   ;;  %v1157_v8 = vld [vmem:[%s1782_s1 + $0x24] ss:$8 sps:$4 sm:$0xff]   ;;  %v1161_v10 = vld [vmem:[%s1782_s1 + $0x20] ss:$8 sps:$4 sm:$0xff]  }
   0x4   :  { %909 = vmatpush1.bf16.msra.mxu0 %v1150_v3  ;;  %828 = vmatprep.subr.bf16.mxu1 %v1151_v4  ;;  %v1156_v7 = vld [vmem:[%s1782_s1 + $0x210] ss:$8 sps:$4 sm:$0xff]   ;;  %v1159_v9 = vld [vmem:[%s1782_s1 + $0x224] ss:$8 sps:$4 sm:$0xff]   ;;  %v1162_v11 = vld [vmem:[%s1782_s1 + $0x220] ss:$8 sps:$4 sm:$0xff]  }
   0x5   :  { %910 = vmatprep.subr.bf16.mxu0 %v1153_v5  ;;  %v1163_v12 = vld [vmem:[%s1782_s1 + $0x34] ss:$8 sps:$4 sm:$0xff]   ;;  %v1167_v14 = vld [vmem:[%s1782_s1 + $0x30] ss:$8 sps:$4 sm:$0xff]   ;;  %v1169_v16 = vld [vmem:[%s1782_s1 + $0x44] ss:$8 sps:$4 sm:$0xff]  }
   0x6   :  { %v1165_v13 = vld [vmem:[%s1782_s1 + $0x234] ss:$8 sps:$4 sm:$0xff]   ;;  %v1168_v15 = vld [vmem:[%s1782_s1 + $0x230] ss:$8 sps:$4 sm:$0xff]   ;;  %v1171_v17 = vld [vmem:[%s1782_s1 + $0x244] ss:$8 sps:$4 sm:$0xff]  }
   0x7   :  { %829 = vmatpush1.bf16.msra.mxu1 %v1155_v6  ;;  %v1173_v18 = vld [vmem:[%s1782_s1 + $0x40] ss:$8 sps:$4 sm:$0xff]   ;;  %v1175_v20 = vld [vmem:[%s1782_s1 + $0x54] ss:$8 sps:$4 sm:$0xff]   ;;  %v1179_v22 = vld [vmem:[%s1782_s1 + $0x50] ss:$8 sps:$4 sm:$0xff]  }
   0x8   :  { %911 = vmatpush1.bf16.msra.mxu0 %v1156_v7  ;;  %830 = vmatprep.subr.bf16.mxu1 %v1157_v8  ;;  %v1174_v19 = vld [vmem:[%s1782_s1 + $0x240] ss:$8 sps:$4 sm:$0xff]   ;;  %v1177_v21 = vld [vmem:[%s1782_s1 + $0x254] ss:$8 sps:$4 sm:$0xff]   ;;  %v1180_v23 = vld [vmem:[%s1782_s1 + $0x250] ss:$8 sps:$4 sm:$0xff]  }
   0x9   :  { %912 = vmatprep.subr.bf16.mxu0 %v1159_v9  ;;  %v1181_v24 = vld [vmem:[%s1782_s1 + $0x64] ss:$8 sps:$4 sm:$0xff]   ;;  %v1185_v26 = vld [vmem:[%s1782_s1 + $0x60] ss:$8 sps:$4 sm:$0xff]   ;;  %v1187_v28 = vld [vmem:[%s1782_s1 + $0x74] ss:$8 sps:$4 sm:$0xff]  }
   0xa   :  { %v1183_v25 = vld [vmem:[%s1782_s1 + $0x264] ss:$8 sps:$4 sm:$0xff]   ;;  %v1186_v27 = vld [vmem:[%s1782_s1 + $0x260] ss:$8 sps:$4 sm:$0xff]   ;;  %v1189_v29 = vld [vmem:[%s1782_s1 + $0x274] ss:$8 sps:$4 sm:$0xff]  }
   0xb   :  { %831 = vmatpush1.bf16.msra.mxu1 %v1161_v10  ;;  %v1191_v30 = vld [vmem:[%s1782_s1 + $0x70] ss:$8 sps:$4 sm:$0xff]   ;;  %v1193_v32 = vld [vmem:[%s1782_s1 + $0x84] ss:$8 sps:$4 sm:$0xff]   ;;  %v1197_v34 = vld [vmem:[%s1782_s1 + $0x80] ss:$8 sps:$4 sm:$0xff]  }
   0xc   :  { %913 = vmatpush1.bf16.msra.mxu0 %v1162_v11  ;;  %832 = vmatprep.subr.bf16.mxu1 %v1163_v12  ;;  %v1192_v31 = vld [vmem:[%s1782_s1 + $0x270] ss:$8 sps:$4 sm:$0xff]   ;;  %v1195_v33 = vld [vmem:[%s1782_s1 + $0x284] ss:$8 sps:$4 sm:$0xff]   ;;  %v1198_v35 = vld [vmem:[%s1782_s1 + $0x280] ss:$8 sps:$4 sm:$0xff]  }
   0xd   :  { %914 = vmatprep.subr.bf16.mxu0 %v1165_v13  ;;  %v1199_v36 = vld [vmem:[%s1782_s1 + $0x94] ss:$8 sps:$4 sm:$0xff]   ;;  %v1203_v38 = vld [vmem:[%s1782_s1 + $0x90] ss:$8 sps:$4 sm:$0xff]   ;;  %v1205_v40 = vld [vmem:[%s1782_s1 + $0xa4] ss:$8 sps:$4 sm:$0xff]  }
   0xe   :  { %v1201_v37 = vld [vmem:[%s1782_s1 + $0x294] ss:$8 sps:$4 sm:$0xff]   ;;  %v1204_v39 = vld [vmem:[%s1782_s1 + $0x290] ss:$8 sps:$4 sm:$0xff]   ;;  %v1207_v41 = vld [vmem:[%s1782_s1 + $0x2a4] ss:$8 sps:$4 sm:$0xff]  }
   0xf   :  { %833 = vmatpush1.bf16.msra.mxu1 %v1167_v14  ;;  %v1209_v42 = vld [vmem:[%s1782_s1 + $0xa0] ss:$8 sps:$4 sm:$0xff]   ;;  %v1211_v44 = vld [vmem:[%s1782_s1 + $0xb4] ss:$8 sps:$4 sm:$0xff]   ;;  %v1215_v47 = vld [vmem:[%s1782_s1 + $0xb0] ss:$8 sps:$4 sm:$0xff]  }
  0x10   :  { %915 = vmatpush1.bf16.msra.mxu0 %v1168_v15  ;;  %834 = vmatprep.subr.bf16.mxu1 %v1169_v16  ;;  %v1210_v43 = vld [vmem:[%s1782_s1 + $0x2a0] ss:$8 sps:$4 sm:$0xff]   ;;  %v1213_v45 = vld [vmem:[%s1782_s1 + $0x2b4] ss:$8 sps:$4 sm:$0xff]   ;;  %v1216_v49 = vld [vmem:[%s1782_s1 + $0x2b0] ss:$8 sps:$4 sm:$0xff]  }
  0x11   :  { %916 = vmatprep.subr.bf16.mxu0 %v1171_v17  ;;  %v14_v46 = vld [vmem:[%s1783_s0] sm:$0xff]  ;;  %v16_v50 = vld [vmem:[%s1783_s0 + $0x10] sm:$0xff] }
  0x12   :  { %v998_v48 = vcombine.high %v14_v46, %v14_v46  ;;  %v1217_v51 = vld [vmem:[%s1782_s1 + $0xc4] ss:$8 sps:$4 sm:$0xff]   ;;  %v1002_v53 = vcombine.high %v16_v50, %v16_v50  ;;  %v1221_v54 = vld [vmem:[%s1782_s1 + $0xc0] ss:$8 sps:$4 sm:$0xff]   ;;  %v1223_v56 = vld [vmem:[%s1782_s1 + $0xd4] ss:$8 sps:$4 sm:$0xff]   ;;  %v997_v6 = vcombine.low %v14_v46, %v14_v46  ;;  %v1001_v7 = vcombine.low %v16_v50, %v16_v50 }
  0x13   :  { %835 = vmatpush1.bf16.msra.mxu1 %v1173_v18  ;;  %v1219_v52 = vld [vmem:[%s1782_s1 + $0x2c4] ss:$8 sps:$4 sm:$0xff]   ;;  %v1222_v55 = vld [vmem:[%s1782_s1 + $0x2c0] ss:$8 sps:$4 sm:$0xff]   ;;  %v1225_v57 = vld [vmem:[%s1782_s1 + $0x2d4] ss:$8 sps:$4 sm:$0xff]  }
  0x14   :  { %917 = vmatpush1.bf16.msra.mxu0 %v1174_v19  ;;  %836 = vmatprep.subr.bf16.mxu1 %v1175_v20  ;;  %v1227_v58 = vld [vmem:[%s1782_s1 + $0xd0] ss:$8 sps:$4 sm:$0xff]   ;;  %v1229_v60 = vld [vmem:[%s1782_s1 + $0xe4] ss:$8 sps:$4 sm:$0xff]   ;;  %v1233_v62 = vld [vmem:[%s1782_s1 + $0xe0] ss:$8 sps:$4 sm:$0xff]  }
  0x15   :  { %918 = vmatprep.subr.bf16.mxu0 %v1177_v21  ;;  %858 = vmatprep.mubr.bf16.mxu1 %v998_v48  ;;  %v1228_v59 = vld [vmem:[%s1782_s1 + $0x2d0] ss:$8 sps:$4 sm:$0xff]   ;;  %v1231_v61 = vld [vmem:[%s1782_s1 + $0x2e4] ss:$8 sps:$4 sm:$0xff]   ;;  %v1234_v63 = vld [vmem:[%s1782_s1 + $0x2e0] ss:$8 sps:$4 sm:$0xff]  }
  0x16   :  { %940 = vmatprep.mubr.bf16.mxu0 %v1002_v53  ;;  %v1235_v0 = vld [vmem:[%s1782_s1 + $0xf4] ss:$8 sps:$4 sm:$0xff]   ;;  %v1239_v2 = vld [vmem:[%s1782_s1 + $0xf0] ss:$8 sps:$4 sm:$0xff]   ;;  %v1245_v4 = vld [vmem:[%s1782_s1 + $0x104] ss:$8 sps:$4 sm:$0xff]  }
  0x17   :  { %837 = vmatpush1.bf16.msra.mxu1 %v1179_v22  ;;  %v1237_v1 = vld [vmem:[%s1782_s1 + $0x2f4] ss:$8 sps:$4 sm:$0xff]   ;;  %v1240_v3 = vld [vmem:[%s1782_s1 + $0x2f0] ss:$8 sps:$4 sm:$0xff]   ;;  %v1250_v5 = vld [vmem:[%s1782_s1 + $0x304] ss:$8 sps:$4 sm:$0xff]  }
  0x18   :  { %919 = vmatpush1.bf16.msra.mxu0 %v1180_v23  ;;  %838 = vmatprep.subr.bf16.mxu1 %v1181_v24  ;;  %v1243_v8 = vld [vmem:[%s1782_s1 + $0x100] ss:$8 sps:$4 sm:$0xff]   ;;  %v1253_v10 = vld [vmem:[%s1782_s1 + $0x114] ss:$8 sps:$4 sm:$0xff]   ;;  %v1251_v12 = vld [vmem:[%s1782_s1 + $0x110] ss:$8 sps:$4 sm:$0xff]  }
  0x19   :  { %920 = vmatprep.subr.bf16.mxu0 %v1183_v25  ;;  %v1248_v9 = vld [vmem:[%s1782_s1 + $0x300] ss:$8 sps:$4 sm:$0xff]   ;;  %v1256_v11 = vld [vmem:[%s1782_s1 + $0x314] ss:$8 sps:$4 sm:$0xff]   ;;  %v1254_v13 = vld [vmem:[%s1782_s1 + $0x310] ss:$8 sps:$4 sm:$0xff]  }
  0x1a   :  { %v1259_v14 = vld [vmem:[%s1782_s1 + $0x124] ss:$8 sps:$4 sm:$0xff]   ;;  %v1257_v16 = vld [vmem:[%s1782_s1 + $0x120] ss:$8 sps:$4 sm:$0xff]   ;;  %v1265_v18 = vld [vmem:[%s1782_s1 + $0x134] ss:$8 sps:$4 sm:$0xff]  }
  0x1b   :  { %839 = vmatpush1.bf16.msra.mxu1 %v1185_v26  ;;  %v1262_v15 = vld [vmem:[%s1782_s1 + $0x324] ss:$8 sps:$4 sm:$0xff]   ;;  %v1260_v17 = vld [vmem:[%s1782_s1 + $0x320] ss:$8 sps:$4 sm:$0xff]   ;;  %v1268_v19 = vld [vmem:[%s1782_s1 + $0x334] ss:$8 sps:$4 sm:$0xff]  }
  0x1c   :  { %921 = vmatpush1.bf16.msra.mxu0 %v1186_v27  ;;  %840 = vmatprep.subr.bf16.mxu1 %v1187_v28  ;;  %v1263_v20 = vld [vmem:[%s1782_s1 + $0x130] ss:$8 sps:$4 sm:$0xff]   ;;  %v1271_v22 = vld [vmem:[%s1782_s1 + $0x144] ss:$8 sps:$4 sm:$0xff]   ;;  %v1269_v24 = vld [vmem:[%s1782_s1 + $0x140] ss:$8 sps:$4 sm:$0xff]  }
  0x1d   :  { %922 = vmatprep.subr.bf16.mxu0 %v1189_v29  ;;  %v1266_v21 = vld [vmem:[%s1782_s1 + $0x330] ss:$8 sps:$4 sm:$0xff]   ;;  %v1274_v23 = vld [vmem:[%s1782_s1 + $0x344] ss:$8 sps:$4 sm:$0xff]   ;;  %v1272_v25 = vld [vmem:[%s1782_s1 + $0x340] ss:$8 sps:$4 sm:$0xff]  }
  0x1e   :  { %v1277_v26 = vld [vmem:[%s1782_s1 + $0x154] ss:$8 sps:$4 sm:$0xff]   ;;  %v1275_v28 = vld [vmem:[%s1782_s1 + $0x150] ss:$8 sps:$4 sm:$0xff]   ;;  %v1307_v50 = vld [vmem:[%s1782_s1 + $0x1a4] ss:$8 sps:$4 sm:$0xff]  }
  0x1f   :  { %841 = vmatpush1.bf16.msra.mxu1 %v1191_v30  ;;  %v1280_v27 = vld [vmem:[%s1782_s1 + $0x354] ss:$8 sps:$4 sm:$0xff]   ;;  %v1278_v29 = vld [vmem:[%s1782_s1 + $0x350] ss:$8 sps:$4 sm:$0xff]   ;;  %v1283_v30 = vld [vmem:[%s1782_s1 + $0x164] ss:$8 sps:$4 sm:$0xff]  }
  0x20   :  { %923 = vmatpush1.bf16.msra.mxu0 %v1192_v31  ;;  %842 = vmatprep.subr.bf16.mxu1 %v1193_v32  ;;  %v1286_v31 = vld [vmem:[%s1782_s1 + $0x364] ss:$8 sps:$4 sm:$0xff]   ;;  %v1301_v46 = vld [vmem:[%s1782_s1 + $0x194] ss:$8 sps:$4 sm:$0xff]   ;;  %v1299_v48 = vld [vmem:[%s1782_s1 + $0x190] ss:$8 sps:$4 sm:$0xff]  }
  0x21   :  { %924 = vmatprep.subr.bf16.mxu0 %v1195_v33  ;;  %v1644_v32 = vld [vmem:[%s1783_s0 + $0x8] sm:$0xff]  ;;  %v1649_v33 = vld [vmem:[%s1783_s0 + $0x18] sm:$0xff] }
  0x22   :  { %v1308_v53 = vld [vmem:[%s1782_s1 + $0x3a0] ss:$8 sps:$4 sm:$0xff]  }
  0x23   :  { %843 = vmatpush1.bf16.msra.mxu1 %v1197_v34  ;;  %v1000_v34 = vcombine.high %v1644_v32, %v1644_v32 }
  0x24   :  { %925 = vmatpush1.bf16.msra.mxu0 %v1198_v35  ;;  %844 = vmatprep.subr.bf16.mxu1 %v1199_v36  ;;  %v1004_v35 = vcombine.high %v1649_v33, %v1649_v33  ;;  %v1281_v36 = vld [vmem:[%s1782_s1 + $0x160] ss:$8 sps:$4 sm:$0xff]  }
  0x25   :  { %926 = vmatprep.subr.bf16.mxu0 %v1201_v37  ;;  %v1284_v37 = vld [vmem:[%s1782_s1 + $0x360] ss:$8 sps:$4 sm:$0xff]  }
  0x27   :  { %845 = vmatpush1.bf16.msra.mxu1 %v1203_v38  ;;  %v1289_v38 = vld [vmem:[%s1782_s1 + $0x174] ss:$8 sps:$4 sm:$0xff]  }
  0x28   :  { %927 = vmatpush1.bf16.msra.mxu0 %v1204_v39  ;;  %846 = vmatprep.subr.bf16.mxu1 %v1205_v40  ;;  %v1292_v39 = vld [vmem:[%s1782_s1 + $0x374] ss:$8 sps:$4 sm:$0xff]   ;;  %v1287_v40 = vld [vmem:[%s1782_s1 + $0x170] ss:$8 sps:$4 sm:$0xff]  }
  0x29   :  { %928 = vmatprep.subr.bf16.mxu0 %v1207_v41  ;;  %v1290_v41 = vld [vmem:[%s1782_s1 + $0x370] ss:$8 sps:$4 sm:$0xff]  }
  0x2b   :  { %847 = vmatpush1.bf16.msra.mxu1 %v1209_v42  ;;  %v1295_v42 = vld [vmem:[%s1782_s1 + $0x184] ss:$8 sps:$4 sm:$0xff]  }
  0x2c   :  { %929 = vmatpush1.bf16.msra.mxu0 %v1210_v43  ;;  %848 = vmatprep.subr.bf16.mxu1 %v1211_v44  ;;  %v1298_v43 = vld [vmem:[%s1782_s1 + $0x384] ss:$8 sps:$4 sm:$0xff]   ;;  %v1293_v44 = vld [vmem:[%s1782_s1 + $0x180] ss:$8 sps:$4 sm:$0xff]  }
  0x2d   :  { %930 = vmatprep.subr.bf16.mxu0 %v1213_v45  ;;  %v1296_v45 = vld [vmem:[%s1782_s1 + $0x380] ss:$8 sps:$4 sm:$0xff]  }
  0x2f   :  { %849 = vmatpush1.bf16.msra.mxu1 %v1215_v47  ;;  %v1304_v47 = vld [vmem:[%s1782_s1 + $0x394] ss:$8 sps:$4 sm:$0xff]  }
  0x30   :  { %931 = vmatpush1.bf16.msra.mxu0 %v1216_v49  ;;  %850 = vmatprep.subr.bf16.mxu1 %v1217_v51  ;;  %v1302_v49 = vld [vmem:[%s1782_s1 + $0x390] ss:$8 sps:$4 sm:$0xff]   ;;  %v1310_v51 = vld [vmem:[%s1782_s1 + $0x3a4] ss:$8 sps:$4 sm:$0xff]  }
  0x31   :  { %932 = vmatprep.subr.bf16.mxu0 %v1219_v52  ;;  %v1305_v52 = vld [vmem:[%s1782_s1 + $0x1a0] ss:$8 sps:$4 sm:$0xff]  }
  0x33   :  { %851 = vmatpush1.bf16.msra.mxu1 %v1221_v54  ;;  %v1313_v54 = vld [vmem:[%s1782_s1 + $0x1b4] ss:$8 sps:$4 sm:$0xff]  }
  0x34   :  { %933 = vmatpush1.bf16.msra.mxu0 %v1222_v55  ;;  %852 = vmatprep.subr.bf16.mxu1 %v1223_v56  ;;  %v1316_v55 = vld [vmem:[%s1782_s1 + $0x3b4] ss:$8 sps:$4 sm:$0xff]   ;;  %v1311_v56 = vld [vmem:[%s1782_s1 + $0x1b0] ss:$8 sps:$4 sm:$0xff]  }
  0x35   :  { %934 = vmatprep.subr.bf16.mxu0 %v1225_v57  ;;  %v1314_v57 = vld [vmem:[%s1782_s1 + $0x3b0] ss:$8 sps:$4 sm:$0xff]  }
  0x37   :  { %853 = vmatpush1.bf16.msra.mxu1 %v1227_v58  ;;  %v1319_v58 = vld [vmem:[%s1782_s1 + $0x1c4] ss:$8 sps:$4 sm:$0xff]  }
  0x38   :  { %935 = vmatpush1.bf16.msra.mxu0 %v1228_v59  ;;  %854 = vmatprep.subr.bf16.mxu1 %v1229_v60  ;;  %v1322_v59 = vld [vmem:[%s1782_s1 + $0x3c4] ss:$8 sps:$4 sm:$0xff]   ;;  %v1317_v60 = vld [vmem:[%s1782_s1 + $0x1c0] ss:$8 sps:$4 sm:$0xff]  }
  0x39   :  { %936 = vmatprep.subr.bf16.mxu0 %v1231_v61  ;;  %v1320_v61 = vld [vmem:[%s1782_s1 + $0x3c0] ss:$8 sps:$4 sm:$0xff]  }
  0x3b   :  { %855 = vmatpush1.bf16.msra.mxu1 %v1233_v62  ;;  %v1325_v62 = vld [vmem:[%s1782_s1 + $0x1d4] ss:$8 sps:$4 sm:$0xff]  }
  0x3c   :  { %937 = vmatpush1.bf16.msra.mxu0 %v1234_v63  ;;  %856 = vmatprep.subr.bf16.mxu1 %v1235_v0  ;;  %v1328_v63 = vld [vmem:[%s1782_s1 + $0x3d4] ss:$8 sps:$4 sm:$0xff]   ;;  %v1323_v0 = vld [vmem:[%s1782_s1 + $0x1d0] ss:$8 sps:$4 sm:$0xff]  }
  0x3d   :  { %938 = vmatprep.subr.bf16.mxu0 %v1237_v1  ;;  %v1326_v1 = vld [vmem:[%s1782_s1 + $0x3d0] ss:$8 sps:$4 sm:$0xff]  }
  0x3f   :  { %857 = vmatpush1.bf16.msra.mxu1 %v1239_v2  ;;  %v1331_v2 = vld [vmem:[%s1782_s1 + $0x1e4] ss:$8 sps:$4 sm:$0xff]  }
  0x40   :  { %939 = vmatpush1.bf16.msra.mxu0 %v1240_v3  ;;  %867 = vmatprep.subr.bf16.mxu1 %v1245_v4  ;;  %v1334_v3 = vld [vmem:[%s1782_s1 + $0x3e4] ss:$8 sps:$4 sm:$0xff]   ;;  %v1329_v4 = vld [vmem:[%s1782_s1 + $0x1e0] ss:$8 sps:$4 sm:$0xff]  }
  0x41   :  { %949 = vmatprep.subr.bf16.mxu0 %v1250_v5  ;;  %v1332_v5 = vld [vmem:[%s1782_s1 + $0x3e0] ss:$8 sps:$4 sm:$0xff]  }
  0x42   :  { %859 = vmatmul.mubr.bf16.vlgmr.msra.gmra.mrb[0].mxu1 %v997_v6  ;;  %v1337_v6 = vld [vmem:[%s1782_s1 + $0x1f4] ss:$8 sps:$4 sm:$0xff]  }
  0x43   :  { %941 = vmatmul.mubr.bf16.vlgmr.msra.gmra.mrb[0].mxu0 %v1001_v7  ;;  %868 = vmatpush1.bf16.msra.mxu1 %v1243_v8  ;;  %v1340_v7 = vld [vmem:[%s1782_s1 + $0x3f4] ss:$8 sps:$4 sm:$0xff]   ;;  %v1335_v8 = vld [vmem:[%s1782_s1 + $0x1f0] ss:$8 sps:$4 sm:$0xff]  }
  0x44   :  { %950 = vmatpush1.bf16.msra.mxu0 %v1248_v9  ;;  %869 = vmatprep.subr.bf16.mxu1 %v1253_v10  ;;  %v1338_v9 = vld [vmem:[%s1782_s1 + $0x3f0] ss:$8 sps:$4 sm:$0xff]   ;;  %v999_v10 = vcombine.low %v1644_v32, %v1644_v32 }
  0x45   :  { %951 = vmatprep.subr.bf16.mxu0 %v1256_v11  ;;  %899 = vmatprep.mubr.bf16.mxu1 %v1000_v34  ;;  %v1003_v11 = vcombine.low %v1649_v33, %v1649_v33 }
  0x46   :  { %981 = vmatprep.mubr.bf16.mxu0 %v1004_v35 }
  0x47   :  { %870 = vmatpush1.bf16.msra.mxu1 %v1251_v12  ;;  %v148_v12 = vlaneseq }
  0x48   :  { %952 = vmatpush1.bf16.msra.mxu0 %v1254_v13  ;;  %871 = vmatprep.subr.bf16.mxu1 %v1259_v14 }
  0x49   :  { %953 = vmatprep.subr.bf16.mxu0 %v1262_v15  ;;  %v149_v13 = vshrl.u32 %v148_v12, 7  ;;  %v146_v15 = vld [vmem:[%s1784_s2] sm:$0x3] }
  0x4b   :  { %872 = vmatpush1.bf16.msra.mxu1 %v1257_v16  ;;  %v150_v14 = vsub.s32 0, %v149_v13  ;;  %v154_v16 = vsub.s32 1, %v149_v13 }
  0x4c   :  { %954 = vmatpush1.bf16.msra.mxu0 %v1260_v17  ;;  %873 = vmatprep.subr.bf16.mxu1 %v1265_v18 }
  0x4d   :  { %955 = vmatprep.subr.bf16.mxu0 %v1268_v19  ;;  %v151_v17 = vrot.slane %v146_v15, %v150_v14  ;;  %v155_v18 = vrot.slane %v146_v15, %v154_v16 }
  0x4f   :  { %874 = vmatpush1.bf16.msra.mxu1 %v1263_v20 }
  0x50   :  { %956 = vmatpush1.bf16.msra.mxu0 %v1266_v21  ;;  %875 = vmatprep.subr.bf16.mxu1 %v1271_v22 }
  0x51   :  { %957 = vmatprep.subr.bf16.mxu0 %v1274_v23 }
  0x53   :  { %876 = vmatpush1.bf16.msra.mxu1 %v1269_v24 }
  0x54   :  { %958 = vmatpush1.bf16.msra.mxu0 %v1272_v25  ;;  %877 = vmatprep.subr.bf16.mxu1 %v1277_v26 }
  0x55   :  { %959 = vmatprep.subr.bf16.mxu0 %v1280_v27 }
  0x57   :  { %878 = vmatpush1.bf16.msra.mxu1 %v1275_v28 }
  0x58   :  { %960 = vmatpush1.bf16.msra.mxu0 %v1278_v29  ;;  %879 = vmatprep.subr.bf16.mxu1 %v1283_v30 }
  0x59   :  { %961 = vmatprep.subr.bf16.mxu0 %v1286_v31 }
  0x5b   :  { %880 = vmatpush1.bf16.msra.mxu1 %v1281_v36 }
  0x5c   :  { %962 = vmatpush1.bf16.msra.mxu0 %v1284_v37  ;;  %881 = vmatprep.subr.bf16.mxu1 %v1289_v38 }
  0x5d   :  { %963 = vmatprep.subr.bf16.mxu0 %v1292_v39 }
  0x5f   :  { %882 = vmatpush1.bf16.msra.mxu1 %v1287_v40 }
  0x60   :  { %964 = vmatpush1.bf16.msra.mxu0 %v1290_v41  ;;  %883 = vmatprep.subr.bf16.mxu1 %v1295_v42 }
  0x61   :  { %965 = vmatprep.subr.bf16.mxu0 %v1298_v43 }
  0x63   :  { %884 = vmatpush1.bf16.msra.mxu1 %v1293_v44 }
  0x64   :  { %966 = vmatpush1.bf16.msra.mxu0 %v1296_v45  ;;  %885 = vmatprep.subr.bf16.mxu1 %v1301_v46 }
  0x65   :  { %967 = vmatprep.subr.bf16.mxu0 %v1304_v47 }
  0x67   :  { %886 = vmatpush1.bf16.msra.mxu1 %v1299_v48 }
  0x68   :  { %968 = vmatpush1.bf16.msra.mxu0 %v1302_v49  ;;  %887 = vmatprep.subr.bf16.mxu1 %v1307_v50 }
  0x69   :  { %969 = vmatprep.subr.bf16.mxu0 %v1310_v51 }
  0x6b   :  { %888 = vmatpush1.bf16.msra.mxu1 %v1305_v52 }
  0x6c   :  { %970 = vmatpush1.bf16.msra.mxu0 %v1308_v53  ;;  %889 = vmatprep.subr.bf16.mxu1 %v1313_v54 }
  0x6d   :  { %971 = vmatprep.subr.bf16.mxu0 %v1316_v55 }
  0x6f   :  { %890 = vmatpush1.bf16.msra.mxu1 %v1311_v56 }
  0x70   :  { %972 = vmatpush1.bf16.msra.mxu0 %v1314_v57  ;;  %891 = vmatprep.subr.bf16.mxu1 %v1319_v58 }
  0x71   :  { %973 = vmatprep.subr.bf16.mxu0 %v1322_v59 }
  0x73   :  { %892 = vmatpush1.bf16.msra.mxu1 %v1317_v60 }
  0x74   :  { %974 = vmatpush1.bf16.msra.mxu0 %v1320_v61  ;;  %893 = vmatprep.subr.bf16.mxu1 %v1325_v62 }
  0x75   :  { %975 = vmatprep.subr.bf16.mxu0 %v1328_v63 }
  0x77   :  { %894 = vmatpush1.bf16.msra.mxu1 %v1323_v0 }
  0x78   :  { %976 = vmatpush1.bf16.msra.mxu0 %v1326_v1  ;;  %895 = vmatprep.subr.bf16.mxu1 %v1331_v2 }
  0x79   :  { %977 = vmatprep.subr.bf16.mxu0 %v1334_v3 }
  0x7b   :  { %896 = vmatpush1.bf16.msra.mxu1 %v1329_v4 }
  0x7c   :  { %978 = vmatpush1.bf16.msra.mxu0 %v1332_v5  ;;  %897 = vmatprep.subr.bf16.mxu1 %v1337_v6 }
  0x7d   :  { %979 = vmatprep.subr.bf16.mxu0 %v1340_v7 }
  0x7f   :  { %898 = vmatpush1.bf16.msra.mxu1 %v1335_v8 }
  0x80   :  { %980 = vmatpush1.bf16.msra.mxu0 %v1338_v9 }
  0x82   :  { %900 = vmatmul.mubr.bf16.vlgmr.msra.gmra.mrb[0].mxu1 %v999_v10 }
  0x83   :  { %982 = vmatmul.mubr.bf16.vlgmr.msra.gmra.mrb[0].mxu0 %v1003_v11 }
 0x155   :  { %v901_v19 = vpop.f32.mrb[0].mxu1 }
 0x156   :  { %v983_v20 = vpop.f32.mrb[0].mxu0  ;;  %v1133_v21 = vadd.f32 %v901_v19, %v151_v17  ;;  %v903_v22 = vpop.f32.mrb[1].mxu1 }
 0x157   :  { %v985_v23 = vpop.f32.mrb[1].mxu0  ;;  %v1135_v24 = vadd.f32 %v903_v22, %v155_v18  ;;  %v905_v25 = vpop.f32.mrb[2].mxu1 }
 0x158   :  { %v987_v26 = vpop.f32.mrb[2].mxu0  ;;  %v1134_v27 = vadd.f32 %v1133_v21, %v983_v20  ;;  %v906_v28 = vpop.f32.mrb[3].mxu1 }
 0x159   :  { %v988_v29 = vpop.f32.mrb[3].mxu0  ;;  %v1136_v30 = vadd.f32 %v1135_v24, %v985_v23 }
 0x15a   :  { %990 = vst [vmem:[%s1785_s3] sm:$0xff] %v1134_v27 }
 0x15b   :  { %992 = vst.msk [vmem:[%s1785_s3 + $0x8] sm:$0xff] %vm991_vm0, %v1136_v30 }

</bundles_post_ra>
